<compile_context>
chip_gen: v5e
topology: v5e:2x2
jax: 0.10.0
libtpu: 0.0.40
codegen_flags: <defaults>
</compile_context>

<pallas_src>
import functools

import jax
import jax.numpy as jnp
from jax.experimental import pallas as pl
from jax.experimental.pallas import tpu as pltpu


def _round_up(x, m):
    return (x + m - 1) // m * m


# =============================================================================
# Fused encoder kernel
# =============================================================================
def _encoder_kernel(*refs, num_layers, T, BP, Hp):
    # refs: [x, (w_ih, w_hh, gib, bhn) * num_layers, w_heads, b_heads,
    #        out, gi_scr, seq_scr]
    x_ref = refs[0]
    layer_refs = [refs[1 + 4 * l: 1 + 4 * (l + 1)] for l in range(num_layers)]
    w_heads_ref = refs[1 + 4 * num_layers]
    b_heads_ref = refs[2 + 4 * num_layers]
    out_ref = refs[3 + 4 * num_layers]
    gi_scr = refs[4 + 4 * num_layers]     # (T*BP, 3*Hp): hoisted input projections
    seq_scr = refs[5 + 4 * num_layers]    # (T*BP, Hp):   previous layer's hidden seq

    h = jnp.zeros((BP, Hp), jnp.float32)
    for l in range(num_layers):
        w_ih_ref, w_hh_ref, gib_ref, bhn_ref = layer_refs[l]

        # ---- input projection hoisted off the serial critical path ----------
        if l == 0:
            # D_in == 1: (T*BP,1) * (1,3Hp) outer product on the VPU (MXU free).
            gi_scr[...] = x_ref[...] * w_ih_ref[...] + gib_ref[...]
        else:
            # One batched MXU matmul over all timesteps of the previous layer.
            gi_scr[...] = (jnp.dot(seq_scr[...], w_ih_ref[...],
                                   preferred_element_type=jnp.float32)
                           + gib_ref[...])

        bhn = bhn_ref[...]                                    # (1, Hp)
        h = jnp.zeros((BP, Hp), jnp.float32)                  # zero initial hidden
        last_layer = (l == num_layers - 1)

        # ---- serial GRU recurrence, fully unrolled (T small & static) -------
        for t in range(T):
            gi = gi_scr[pl.ds(t * BP, BP), :]                 # (BP, 3Hp), tile-aligned
            gh = jnp.dot(h, w_hh_ref[...],                    # only h-dependent matmul
                         preferred_element_type=jnp.float32)
            # gates [r | z | n], each padded to Hp lanes -> vreg-aligned slices.
            # r and z share one fused sigmoid over (BP, 2*Hp).
            rz = jax.nn.sigmoid(gi[:, :2 * Hp] + gh[:, :2 * Hp])
            r = rz[:, :Hp]
            z = rz[:, Hp:]
            n = jnp.tanh(gi[:, 2 * Hp:] + r * (gh[:, 2 * Hp:] + bhn))
            h = (1.0 - z) * n + z * h
            if not last_layer:                                # next layer needs the seq
                seq_scr[pl.ds(t * BP, BP), :] = h

    # ---- fused mu/logvar heads: single lane-dense (BP, 2*Np) write ----------
    out_ref[...] = (jnp.dot(h, w_heads_ref[...], preferred_element_type=jnp.float32)
                    + b_heads_ref[...]).astype(out_ref.dtype)


# =============================================================================
# One-time parameter preparation (outside the hot path)
# =============================================================================
def prepare_encoder_params(params, hidden_size, noise_size):
    """Transpose weights, pad each gate block to 128 lanes, fold r/z biases,
    and pack the mu/logvar heads into one lane-dense weight slab."""
    H, N = hidden_size, noise_size
    Hp = _round_up(H, 128)
    Np = _round_up(N, 128)

    def pad_gate_cols(w_t):   # (rows, 3H) -> (rows, 3Hp), one 128-lane block per gate
        rows = w_t.shape[0]
        out = jnp.zeros((rows, 3 * Hp), jnp.float32)
        for g in range(3):
            out = out.at[:, g * Hp: g * Hp + H].set(w_t[:, g * H:(g + 1) * H])
        return out

    layers = []
    for i, lyr in enumerate(params["gru"]):
        w_ih = jnp.asarray(lyr["w_ih"], jnp.float32)          # (3H, D_in)
        w_hh = jnp.asarray(lyr["w_hh"], jnp.float32)          # (3H, H)
        b_ih = jnp.asarray(lyr["b_ih"], jnp.float32)          # (3H,)
        b_hh = jnp.asarray(lyr["b_hh"], jnp.float32)          # (3H,)
        d_in = w_ih.shape[1]

        w_ih_t = pad_gate_cols(w_ih.T)                        # (d_in, 3Hp)
        if i > 0:                                             # pad rows H -> Hp
            w_ih_t = jnp.zeros((Hp, 3 * Hp), jnp.float32).at[:d_in].set(w_ih_t)
        w_hh_t = jnp.zeros((Hp, 3 * Hp), jnp.float32).at[:H].set(pad_gate_cols(w_hh.T))

        # folded gi bias: b_ih + b_hh for r,z; b_ih only for n (b_hh_n stays inside r*(...))
        gib = jnp.zeros((1, 3 * Hp), jnp.float32)
        gib = gib.at[0, 0:H].set(b_ih[0:H] + b_hh[0:H])                    # r
        gib = gib.at[0, Hp:Hp + H].set(b_ih[H:2 * H] + b_hh[H:2 * H])      # z
        gib = gib.at[0, 2 * Hp:2 * Hp + H].set(b_ih[2 * H:3 * H])          # n (input bias)
        bhn = jnp.zeros((1, Hp), jnp.float32).at[0, :H].set(b_hh[2 * H:3 * H])

        layers.append((w_ih_t, w_hh_t, gib, bhn))

    w_mu = jnp.asarray(params["w_mu"], jnp.float32)           # (N, H)
    w_lv = jnp.asarray(params["w_logvar"], jnp.float32)
    w_heads = jnp.zeros((Hp, 2 * Np), jnp.float32)
    w_heads = w_heads.at[:H, 0:N].set(w_mu.T)
    w_heads = w_heads.at[:H, Np:Np + N].set(w_lv.T)
    b_heads = jnp.zeros((1, 2 * Np), jnp.float32)
    b_heads = b_heads.at[0, 0:N].set(jnp.asarray(params["b_mu"], jnp.float32))
    b_heads = b_heads.at[0, Np:Np + N].set(jnp.asarray(params["b_logvar"], jnp.float32))

    return {"layers": layers, "w_heads": w_heads, "b_heads": b_heads,
            "H": H, "N": N, "Hp": Hp, "Np": Np}


# =============================================================================
# Encoder forward (GRU cell_type), mirroring the PyTorch module.
# =============================================================================
def encoder_forward(prepped, history_window, forecast, horizon):
    """history_window: (B, history_window_size, 1); forecast: (B, horizon).
    Returns (mu, logvar), each (B, noise_size)."""
    B = history_window.shape[0]
    T = history_window.shape[1] + horizon
    Hp, Np, N = prepped["Hp"], prepped["Np"], prepped["N"]
    num_layers = len(prepped["layers"])
    BP = _round_up(B, 8)   # pad batch to a full sublane tile -> whole-tile loads/stores

    # Layout plumbing (XLA wrapper ops): concat, seq-first, pad batch rows with zeros.
    enc_in = jnp.concatenate(
        [history_window, forecast.reshape(B, horizon, 1)], axis=1)        # (B, T, 1)
    x_seq = jnp.transpose(enc_in, (1, 0, 2)).astype(jnp.float32)          # (T, B, 1)
    x_pad = jnp.zeros((T, BP, 1), jnp.float32).at[:, :B, :].set(x_seq)
    x_flat = x_pad.reshape(T * BP, 1)                                     # (T*BP, 1)

    inputs = [x_flat]
    in_specs = [pl.BlockSpec((T * BP, 1), lambda i: (0, 0))]
    for (w_ih, w_hh, gib, bhn) in prepped["layers"]:
        inputs += [w_ih, w_hh, gib, bhn]
        in_specs += [pl.BlockSpec(w_ih.shape, lambda i: (0, 0)),
                     pl.BlockSpec(w_hh.shape, lambda i: (0, 0)),
                     pl.BlockSpec(gib.shape, lambda i: (0, 0)),
                     pl.BlockSpec(bhn.shape, lambda i: (0, 0))]
    inputs += [prepped["w_heads"], prepped["b_heads"]]
    in_specs += [pl.BlockSpec(prepped["w_heads"].shape, lambda i: (0, 0)),
                 pl.BlockSpec(prepped["b_heads"].shape, lambda i: (0, 0))]

    kernel = functools.partial(_encoder_kernel, num_layers=num_layers,
                               T=T, BP=BP, Hp=Hp)

    out = pl.pallas_call(
        kernel,
        out_shape=jax.ShapeDtypeStruct((BP, 2 * Np), jnp.float32),
        grid_spec=pltpu.PrefetchScalarGridSpec(
            num_scalar_prefetch=0,
            grid=(1,),                                  # everything fused in one step
            in_specs=in_specs,
            out_specs=pl.BlockSpec((BP, 2 * Np), lambda i: (0, 0)),
            scratch_shapes=[
                pltpu.VMEM((T * BP, 3 * Hp), jnp.float32),   # hoisted gi per layer
                pltpu.VMEM((T * BP, Hp), jnp.float32),       # previous layer hidden seq
            ],
        ),
        # Strictly sequential recurrence: do NOT megacore-shard.
        compiler_params=pltpu.CompilerParams(
            dimension_semantics=("arbitrary",)),
    )(*inputs)

    mu = out[:B, :N]
    logvar = out[:B, Np:Np + N]
    return mu, logvar


# =============================================================================
# Pure-JAX reference (lax.scan GRU) for correctness check.
# =============================================================================
def _ref_gru_layer(x, w_ih, w_hh, b_ih, b_hh):
    H = w_hh.shape[1]

    def step(h, x_t):
        gi = x_t @ w_ih.T + b_ih
        gh = h @ w_hh.T + b_hh
        i_r, i_z, i_n = gi[:, :H], gi[:, H:2 * H], gi[:, 2 * H:]
        h_r, h_z, h_n = gh[:, :H], gh[:, H:2 * H], gh[:, 2 * H:]
        r = jax.nn.sigmoid(i_r + h_r)
        z = jax.nn.sigmoid(i_z + h_z)
        n = jnp.tanh(i_n + r * h_n)
        h_new = (1.0 - z) * n + z * h
        return h_new, h_new

    h0 = jnp.zeros((x.shape[1], H), jnp.float32)
    _, ys = jax.lax.scan(step, h0, x)
    return ys


def _ref_forward(params, history_window, forecast, horizon):
    B = history_window.shape[0]
    x = jnp.transpose(
        jnp.concatenate([history_window, forecast.reshape(B, horizon, 1)], axis=1),
        (1, 0, 2)).astype(jnp.float32)
    for layer in params["gru"]:
        x = _ref_gru_layer(x, layer["w_ih"], layer["w_hh"],
                           layer["b_ih"], layer["b_hh"])
    h_last = x[-1]
    mu = h_last @ params["w_mu"].T + params["b_mu"]
    lv = h_last @ params["w_logvar"].T + params["b_logvar"]
    return mu, lv


# =============================================================================
# Deterministic parameter init (PyTorch-style uniform(-1/sqrt(H), 1/sqrt(H))).
# =============================================================================
def init_params(key, hidden_size, num_layers, noise_size, input_size=1):
    params = {"gru": []}
    bound = 1.0 / jnp.sqrt(hidden_size)
    for layer in range(num_layers):
        d_in = input_size if layer == 0 else hidden_size
        key, k1, k2, k3, k4 = jax.random.split(key, 5)
        params["gru"].append({
            "w_ih": jax.random.uniform(k1, (3 * hidden_size, d_in),
                                       jnp.float32, -bound, bound),
            "w_hh": jax.random.uniform(k2, (3 * hidden_size, hidden_size),
                                       jnp.float32, -bound, bound),
            "b_ih": jax.random.uniform(k3, (3 * hidden_size,),
                                       jnp.float32, -bound, bound),
            "b_hh": jax.random.uniform(k4, (3 * hidden_size,),
                                       jnp.float32, -bound, bound),
        })
    lbound = 1.0 / jnp.sqrt(hidden_size)
    key, k1, k2, k3, k4 = jax.random.split(key, 5)
    params["w_mu"] = jax.random.uniform(k1, (noise_size, hidden_size),
                                        jnp.float32, -lbound, lbound)
    params["b_mu"] = jax.random.uniform(k2, (noise_size,),
                                        jnp.float32, -lbound, lbound)
    params["w_logvar"] = jax.random.uniform(k3, (noise_size, hidden_size),
                                            jnp.float32, -lbound, lbound)
    params["b_logvar"] = jax.random.uniform(k4, (noise_size,),
                                            jnp.float32, -lbound, lbound)
    return params


if __name__ == "__main__":
    batch = 2
    history_window_size = 8
    horizon = 4
    hidden_size = 32
    num_layers = 2
    noise_size = 16

    key = jax.random.PRNGKey(0)
    key, kp, kh, kf = jax.random.split(key, 4)
    params = init_params(kp, hidden_size, num_layers, noise_size)
    prepped = prepare_encoder_params(params, hidden_size, noise_size)   # one-time prep

    history_window = jax.random.normal(kh, (batch, history_window_size, 1), jnp.float32)
    forecast = jax.random.normal(kf, (batch, horizon), jnp.float32)

    mu, logvar = encoder_forward(prepped, history_window, forecast, horizon)
    mu, logvar = jax.block_until_ready(mu), jax.block_until_ready(logvar)

    mu_ref, lv_ref = _ref_forward(params, history_window, forecast, horizon)
    assert mu.shape == (batch, noise_size) and logvar.shape == (batch, noise_size)
    assert jnp.allclose(mu, mu_ref, atol=1e-4), "mu mismatch vs reference"
    assert jnp.allclose(logvar, lv_ref, atol=1e-4), "logvar mismatch vs reference"

    print("KERNEL_OK")
</pallas_src>

<mosaic_0001>
module attributes {stable_mosaic.version = 11 : i64} {
  func.func @_encoder_kernel(%arg0: i32, %arg1: memref<96x1xf32, #tpu.memory_space<vmem>>, %arg2: memref<1x384xf32, #tpu.memory_space<vmem>>, %arg3: memref<128x384xf32, #tpu.memory_space<vmem>>, %arg4: memref<1x384xf32, #tpu.memory_space<vmem>>, %arg5: memref<1x128xf32, #tpu.memory_space<vmem>>, %arg6: memref<128x384xf32, #tpu.memory_space<vmem>>, %arg7: memref<128x384xf32, #tpu.memory_space<vmem>>, %arg8: memref<1x384xf32, #tpu.memory_space<vmem>>, %arg9: memref<1x128xf32, #tpu.memory_space<vmem>>, %arg10: memref<128x256xf32, #tpu.memory_space<vmem>>, %arg11: memref<1x256xf32, #tpu.memory_space<vmem>>, %arg12: memref<8x256xf32, #tpu.memory_space<vmem>>, %arg13: memref<96x384xf32, #tpu.memory_space<vmem>>, %arg14: memref<96x128xf32, #tpu.memory_space<vmem>>) attributes {dimension_semantics = [#tpu.dimension_semantics<arbitrary>], iteration_bounds = array<i64: 1>, scalar_prefetch = 0 : i64, scratch_operands = 2 : i64, tpu.core_type = #tpu.core_type<tc>, window_params = [{pipeline_mode = #tpu.pipeline_mode<synchronous>, transform_indices = @transform_0, window_bounds = array<i64: 96, 1>}, {pipeline_mode = #tpu.pipeline_mode<synchronous>, transform_indices = @transform_1, window_bounds = array<i64: 1, 384>}, {pipeline_mode = #tpu.pipeline_mode<synchronous>, transform_indices = @transform_2, window_bounds = array<i64: 128, 384>}, {pipeline_mode = #tpu.pipeline_mode<synchronous>, transform_indices = @transform_3, window_bounds = array<i64: 1, 384>}, {pipeline_mode = #tpu.pipeline_mode<synchronous>, transform_indices = @transform_4, window_bounds = array<i64: 1, 128>}, {pipeline_mode = #tpu.pipeline_mode<synchronous>, transform_indices = @transform_5, window_bounds = array<i64: 128, 384>}, {pipeline_mode = #tpu.pipeline_mode<synchronous>, transform_indices = @transform_6, window_bounds = array<i64: 128, 384>}, {pipeline_mode = #tpu.pipeline_mode<synchronous>, transform_indices = @transform_7, window_bounds = array<i64: 1, 384>}, {pipeline_mode = #tpu.pipeline_mode<synchronous>, transform_indices = @transform_8, window_bounds = array<i64: 1, 128>}, {pipeline_mode = #tpu.pipeline_mode<synchronous>, transform_indices = @transform_9, window_bounds = array<i64: 128, 256>}, {pipeline_mode = #tpu.pipeline_mode<synchronous>, transform_indices = @transform_10, window_bounds = array<i64: 1, 256>}, {pipeline_mode = #tpu.pipeline_mode<synchronous>, transform_indices = @transform_11, window_bounds = array<i64: 8, 256>}]} {
    %c0 = arith.constant 0 : index
    %c0_0 = arith.constant 0 : index
    %0 = vector.load %arg1[%c0, %c0_0] : memref<96x1xf32, #tpu.memory_space<vmem>>, vector<96x1xf32>
    %c0_1 = arith.constant 0 : index
    %c0_2 = arith.constant 0 : index
    %1 = vector.load %arg2[%c0_1, %c0_2] : memref<1x384xf32, #tpu.memory_space<vmem>>, vector<1x384xf32>
    %2 = vector.broadcast %0 : vector<96x1xf32> to vector<96x384xf32>
    %3 = vector.broadcast %1 : vector<1x384xf32> to vector<96x384xf32>
    %4 = arith.mulf %2, %3 : vector<96x384xf32>
    %c0_3 = arith.constant 0 : index
    %c0_4 = arith.constant 0 : index
    %5 = vector.load %arg4[%c0_3, %c0_4] : memref<1x384xf32, #tpu.memory_space<vmem>>, vector<1x384xf32>
    %6 = vector.broadcast %5 : vector<1x384xf32> to vector<96x384xf32>
    %7 = arith.addf %4, %6 : vector<96x384xf32>
    %c0_5 = arith.constant 0 : index
    %c0_6 = arith.constant 0 : index
    %8 = vector.load %arg13[%c0_5, %c0_6] : memref<96x384xf32, #tpu.memory_space<vmem>>, vector<96x384xf32>
    tpu.vector_store %arg13[%c0_5, %c0_6], %7 {strides = array<i32>} : memref<96x384xf32, #tpu.memory_space<vmem>>, vector<96x384xf32>,
    %c0_7 = arith.constant 0 : index
    %c0_8 = arith.constant 0 : index
    %9 = vector.load %arg5[%c0_7, %c0_8] : memref<1x128xf32, #tpu.memory_space<vmem>>, vector<1x128xf32>
    %cst = arith.constant 0.000000e+00 : f32
    %10 = vector.broadcast %cst : f32 to vector<8x128xf32>
    %c0_9 = arith.constant 0 : index
    %c0_10 = arith.constant 0 : index
    %11 = vector.load %arg13[%c0_9, %c0_10] : memref<96x384xf32, #tpu.memory_space<vmem>>, vector<8x384xf32>
    %c0_11 = arith.constant 0 : index
    %c0_12 = arith.constant 0 : index
    %12 = vector.load %arg3[%c0_11, %c0_12] : memref<128x384xf32, #tpu.memory_space<vmem>>, vector<128x384xf32>
    %cst_13 = arith.constant dense<0.000000e+00> : vector<8x384xf32>
    %13 = tpu.matmul %10, %12, %cst_13 {dimension_numbers = #tpu.dot_dimension_numbers<[1], [0], [0], [1], [0, 0, 1, 1], [], []>} : vector<8x128xf32>, vector<128x384xf32>, vector<8x384xf32> -> vector<8x384xf32>
    %14 = vector.extract_strided_slice %11 {offsets = [0, 0], sizes = [8, 256], strides = [1, 1]} : vector<8x384xf32> to vector<8x256xf32>
    %15 = vector.extract_strided_slice %13 {offsets = [0, 0], sizes = [8, 256], strides = [1, 1]} : vector<8x384xf32> to vector<8x256xf32>
    %16 = arith.addf %14, %15 : vector<8x256xf32>
    %17 = arith.negf %16 : vector<8x256xf32>
    %18 = math.exp %17 : vector<8x256xf32>
    %cst_14 = arith.constant 1.000000e+00 : f32
    %19 = vector.broadcast %cst_14 : f32 to vector<8x256xf32>
    %20 = arith.addf %19, %18 : vector<8x256xf32>
    %21 = arith.divf %19, %20 : vector<8x256xf32>
    %22 = vector.extract_strided_slice %21 {offsets = [0, 0], sizes = [8, 128], strides = [1, 1]} : vector<8x256xf32> to vector<8x128xf32>
    %23 = vector.extract_strided_slice %21 {offsets = [0, 128], sizes = [8, 128], strides = [1, 1]} : vector<8x256xf32> to vector<8x128xf32>
    %24 = vector.extract_strided_slice %11 {offsets = [0, 256], sizes = [8, 128], strides = [1, 1]} : vector<8x384xf32> to vector<8x128xf32>
    %25 = vector.extract_strided_slice %13 {offsets = [0, 256], sizes = [8, 128], strides = [1, 1]} : vector<8x384xf32> to vector<8x128xf32>
    %26 = vector.broadcast %9 : vector<1x128xf32> to vector<8x128xf32>
    %27 = arith.addf %25, %26 : vector<8x128xf32>
    %28 = arith.mulf %22, %27 : vector<8x128xf32>
    %29 = arith.addf %24, %28 : vector<8x128xf32>
    %30 = math.tanh %29 : vector<8x128xf32>
    %cst_15 = arith.constant 1.000000e+00 : f32
    %31 = vector.broadcast %cst_15 : f32 to vector<8x128xf32>
    %32 = arith.subf %31, %23 : vector<8x128xf32>
    %33 = arith.mulf %32, %30 : vector<8x128xf32>
    %34 = arith.mulf %23, %10 : vector<8x128xf32>
    %35 = arith.addf %33, %34 : vector<8x128xf32>
    %c0_16 = arith.constant 0 : index
    %c0_17 = arith.constant 0 : index
    %36 = vector.load %arg14[%c0_16, %c0_17] : memref<96x128xf32, #tpu.memory_space<vmem>>, vector<8x128xf32>
    tpu.vector_store %arg14[%c0_16, %c0_17], %35 {strides = array<i32>} : memref<96x128xf32, #tpu.memory_space<vmem>>, vector<8x128xf32>,
    %c8 = arith.constant 8 : index
    %c0_18 = arith.constant 0 : index
    %37 = vector.load %arg13[%c8, %c0_18] : memref<96x384xf32, #tpu.memory_space<vmem>>, vector<8x384xf32>
    %c0_19 = arith.constant 0 : index
    %c0_20 = arith.constant 0 : index
    %38 = vector.load %arg3[%c0_19, %c0_20] : memref<128x384xf32, #tpu.memory_space<vmem>>, vector<128x384xf32>
    %cst_21 = arith.constant dense<0.000000e+00> : vector<8x384xf32>
    %39 = tpu.matmul %35, %38, %cst_21 {dimension_numbers = #tpu.dot_dimension_numbers<[1], [0], [0], [1], [0, 0, 1, 1], [], []>} : vector<8x128xf32>, vector<128x384xf32>, vector<8x384xf32> -> vector<8x384xf32>
    %40 = vector.extract_strided_slice %37 {offsets = [0, 0], sizes = [8, 256], strides = [1, 1]} : vector<8x384xf32> to vector<8x256xf32>
    %41 = vector.extract_strided_slice %39 {offsets = [0, 0], sizes = [8, 256], strides = [1, 1]} : vector<8x384xf32> to vector<8x256xf32>
    %42 = arith.addf %40, %41 : vector<8x256xf32>
    %43 = arith.negf %42 : vector<8x256xf32>
    %44 = math.exp %43 : vector<8x256xf32>
    %cst_22 = arith.constant 1.000000e+00 : f32
    %45 = vector.broadcast %cst_22 : f32 to vector<8x256xf32>
    %46 = arith.addf %45, %44 : vector<8x256xf32>
    %47 = arith.divf %45, %46 : vector<8x256xf32>
    %48 = vector.extract_strided_slice %47 {offsets = [0, 0], sizes = [8, 128], strides = [1, 1]} : vector<8x256xf32> to vector<8x128xf32>
    %49 = vector.extract_strided_slice %47 {offsets = [0, 128], sizes = [8, 128], strides = [1, 1]} : vector<8x256xf32> to vector<8x128xf32>
    %50 = vector.extract_strided_slice %37 {offsets = [0, 256], sizes = [8, 128], strides = [1, 1]} : vector<8x384xf32> to vector<8x128xf32>
    %51 = vector.extract_strided_slice %39 {offsets = [0, 256], sizes = [8, 128], strides = [1, 1]} : vector<8x384xf32> to vector<8x128xf32>
    %52 = vector.broadcast %9 : vector<1x128xf32> to vector<8x128xf32>
    %53 = arith.addf %51, %52 : vector<8x128xf32>
    %54 = arith.mulf %48, %53 : vector<8x128xf32>
    %55 = arith.addf %50, %54 : vector<8x128xf32>
    %56 = math.tanh %55 : vector<8x128xf32>
    %cst_23 = arith.constant 1.000000e+00 : f32
    %57 = vector.broadcast %cst_23 : f32 to vector<8x128xf32>
    %58 = arith.subf %57, %49 : vector<8x128xf32>
    %59 = arith.mulf %58, %56 : vector<8x128xf32>
    %60 = arith.mulf %49, %35 : vector<8x128xf32>
    %61 = arith.addf %59, %60 : vector<8x128xf32>
    %c8_24 = arith.constant 8 : index
    %c0_25 = arith.constant 0 : index
    %62 = vector.load %arg14[%c8_24, %c0_25] : memref<96x128xf32, #tpu.memory_space<vmem>>, vector<8x128xf32>
    tpu.vector_store %arg14[%c8_24, %c0_25], %61 {strides = array<i32>} : memref<96x128xf32, #tpu.memory_space<vmem>>, vector<8x128xf32>,
    %c16 = arith.constant 16 : index
    %c0_26 = arith.constant 0 : index
    %63 = vector.load %arg13[%c16, %c0_26] : memref<96x384xf32, #tpu.memory_space<vmem>>, vector<8x384xf32>
    %c0_27 = arith.constant 0 : index
    %c0_28 = arith.constant 0 : index
    %64 = vector.load %arg3[%c0_27, %c0_28] : memref<128x384xf32, #tpu.memory_space<vmem>>, vector<128x384xf32>
    %cst_29 = arith.constant dense<0.000000e+00> : vector<8x384xf32>
    %65 = tpu.matmul %61, %64, %cst_29 {dimension_numbers = #tpu.dot_dimension_numbers<[1], [0], [0], [1], [0, 0, 1, 1], [], []>} : vector<8x128xf32>, vector<128x384xf32>, vector<8x384xf32> -> vector<8x384xf32>
    %66 = vector.extract_strided_slice %63 {offsets = [0, 0], sizes = [8, 256], strides = [1, 1]} : vector<8x384xf32> to vector<8x256xf32>
    %67 = vector.extract_strided_slice %65 {offsets = [0, 0], sizes = [8, 256], strides = [1, 1]} : vector<8x384xf32> to vector<8x256xf32>
    %68 = arith.addf %66, %67 : vector<8x256xf32>
    %69 = arith.negf %68 : vector<8x256xf32>
    %70 = math.exp %69 : vector<8x256xf32>
    %cst_30 = arith.constant 1.000000e+00 : f32
    %71 = vector.broadcast %cst_30 : f32 to vector<8x256xf32>
    %72 = arith.addf %71, %70 : vector<8x256xf32>
    %73 = arith.divf %71, %72 : vector<8x256xf32>
    %74 = vector.extract_strided_slice %73 {offsets = [0, 0], sizes = [8, 128], strides = [1, 1]} : vector<8x256xf32> to vector<8x128xf32>
    %75 = vector.extract_strided_slice %73 {offsets = [0, 128], sizes = [8, 128], strides = [1, 1]} : vector<8x256xf32> to vector<8x128xf32>
    %76 = vector.extract_strided_slice %63 {offsets = [0, 256], sizes = [8, 128], strides = [1, 1]} : vector<8x384xf32> to vector<8x128xf32>
    %77 = vector.extract_strided_slice %65 {offsets = [0, 256], sizes = [8, 128], strides = [1, 1]} : vector<8x384xf32> to vector<8x128xf32>
    %78 = vector.broadcast %9 : vector<1x128xf32> to vector<8x128xf32>
    %79 = arith.addf %77, %78 : vector<8x128xf32>
    %80 = arith.mulf %74, %79 : vector<8x128xf32>
    %81 = arith.addf %76, %80 : vector<8x128xf32>
    %82 = math.tanh %81 : vector<8x128xf32>
    %cst_31 = arith.constant 1.000000e+00 : f32
    %83 = vector.broadcast %cst_31 : f32 to vector<8x128xf32>
    %84 = arith.subf %83, %75 : vector<8x128xf32>
    %85 = arith.mulf %84, %82 : vector<8x128xf32>
    %86 = arith.mulf %75, %61 : vector<8x128xf32>
    %87 = arith.addf %85, %86 : vector<8x128xf32>
    %c16_32 = arith.constant 16 : index
    %c0_33 = arith.constant 0 : index
    %88 = vector.load %arg14[%c16_32, %c0_33] : memref<96x128xf32, #tpu.memory_space<vmem>>, vector<8x128xf32>
    tpu.vector_store %arg14[%c16_32, %c0_33], %87 {strides = array<i32>} : memref<96x128xf32, #tpu.memory_space<vmem>>, vector<8x128xf32>,
    %c24 = arith.constant 24 : index
    %c0_34 = arith.constant 0 : index
    %89 = vector.load %arg13[%c24, %c0_34] : memref<96x384xf32, #tpu.memory_space<vmem>>, vector<8x384xf32>
    %c0_35 = arith.constant 0 : index
    %c0_36 = arith.constant 0 : index
    %90 = vector.load %arg3[%c0_35, %c0_36] : memref<128x384xf32, #tpu.memory_space<vmem>>, vector<128x384xf32>
    %cst_37 = arith.constant dense<0.000000e+00> : vector<8x384xf32>
    %91 = tpu.matmul %87, %90, %cst_37 {dimension_numbers = #tpu.dot_dimension_numbers<[1], [0], [0], [1], [0, 0, 1, 1], [], []>} : vector<8x128xf32>, vector<128x384xf32>, vector<8x384xf32> -> vector<8x384xf32>
    %92 = vector.extract_strided_slice %89 {offsets = [0, 0], sizes = [8, 256], strides = [1, 1]} : vector<8x384xf32> to vector<8x256xf32>
    %93 = vector.extract_strided_slice %91 {offsets = [0, 0], sizes = [8, 256], strides = [1, 1]} : vector<8x384xf32> to vector<8x256xf32>
    %94 = arith.addf %92, %93 : vector<8x256xf32>
    %95 = arith.negf %94 : vector<8x256xf32>
    %96 = math.exp %95 : vector<8x256xf32>
    %cst_38 = arith.constant 1.000000e+00 : f32
    %97 = vector.broadcast %cst_38 : f32 to vector<8x256xf32>
    %98 = arith.addf %97, %96 : vector<8x256xf32>
    %99 = arith.divf %97, %98 : vector<8x256xf32>
    %100 = vector.extract_strided_slice %99 {offsets = [0, 0], sizes = [8, 128], strides = [1, 1]} : vector<8x256xf32> to vector<8x128xf32>
    %101 = vector.extract_strided_slice %99 {offsets = [0, 128], sizes = [8, 128], strides = [1, 1]} : vector<8x256xf32> to vector<8x128xf32>
    %102 = vector.extract_strided_slice %89 {offsets = [0, 256], sizes = [8, 128], strides = [1, 1]} : vector<8x384xf32> to vector<8x128xf32>
    %103 = vector.extract_strided_slice %91 {offsets = [0, 256], sizes = [8, 128], strides = [1, 1]} : vector<8x384xf32> to vector<8x128xf32>
    %104 = vector.broadcast %9 : vector<1x128xf32> to vector<8x128xf32>
    %105 = arith.addf %103, %104 : vector<8x128xf32>
    %106 = arith.mulf %100, %105 : vector<8x128xf32>
    %107 = arith.addf %102, %106 : vector<8x128xf32>
    %108 = math.tanh %107 : vector<8x128xf32>
    %cst_39 = arith.constant 1.000000e+00 : f32
    %109 = vector.broadcast %cst_39 : f32 to vector<8x128xf32>
    %110 = arith.subf %109, %101 : vector<8x128xf32>
    %111 = arith.mulf %110, %108 : vector<8x128xf32>
    %112 = arith.mulf %101, %87 : vector<8x128xf32>
    %113 = arith.addf %111, %112 : vector<8x128xf32>
    %c24_40 = arith.constant 24 : index
    %c0_41 = arith.constant 0 : index
    %114 = vector.load %arg14[%c24_40, %c0_41] : memref<96x128xf32, #tpu.memory_space<vmem>>, vector<8x128xf32>
    tpu.vector_store %arg14[%c24_40, %c0_41], %113 {strides = array<i32>} : memref<96x128xf32, #tpu.memory_space<vmem>>, vector<8x128xf32>,
    %c32 = arith.constant 32 : index
    %c0_42 = arith.constant 0 : index
    %115 = vector.load %arg13[%c32, %c0_42] : memref<96x384xf32, #tpu.memory_space<vmem>>, vector<8x384xf32>
    %c0_43 = arith.constant 0 : index
    %c0_44 = arith.constant 0 : index
    %116 = vector.load %arg3[%c0_43, %c0_44] : memref<128x384xf32, #tpu.memory_space<vmem>>, vector<128x384xf32>
    %cst_45 = arith.constant dense<0.000000e+00> : vector<8x384xf32>
    %117 = tpu.matmul %113, %116, %cst_45 {dimension_numbers = #tpu.dot_dimension_numbers<[1], [0], [0], [1], [0, 0, 1, 1], [], []>} : vector<8x128xf32>, vector<128x384xf32>, vector<8x384xf32> -> vector<8x384xf32>
    %118 = vector.extract_strided_slice %115 {offsets = [0, 0], sizes = [8, 256], strides = [1, 1]} : vector<8x384xf32> to vector<8x256xf32>
    %119 = vector.extract_strided_slice %117 {offsets = [0, 0], sizes = [8, 256], strides = [1, 1]} : vector<8x384xf32> to vector<8x256xf32>
    %120 = arith.addf %118, %119 : vector<8x256xf32>
    %121 = arith.negf %120 : vector<8x256xf32>
    %122 = math.exp %121 : vector<8x256xf32>
    %cst_46 = arith.constant 1.000000e+00 : f32
    %123 = vector.broadcast %cst_46 : f32 to vector<8x256xf32>
    %124 = arith.addf %123, %122 : vector<8x256xf32>
    %125 = arith.divf %123, %124 : vector<8x256xf32>
    %126 = vector.extract_strided_slice %125 {offsets = [0, 0], sizes = [8, 128], strides = [1, 1]} : vector<8x256xf32> to vector<8x128xf32>
    %127 = vector.extract_strided_slice %125 {offsets = [0, 128], sizes = [8, 128], strides = [1, 1]} : vector<8x256xf32> to vector<8x128xf32>
    %128 = vector.extract_strided_slice %115 {offsets = [0, 256], sizes = [8, 128], strides = [1, 1]} : vector<8x384xf32> to vector<8x128xf32>
    %129 = vector.extract_strided_slice %117 {offsets = [0, 256], sizes = [8, 128], strides = [1, 1]} : vector<8x384xf32> to vector<8x128xf32>
    %130 = vector.broadcast %9 : vector<1x128xf32> to vector<8x128xf32>
    %131 = arith.addf %129, %130 : vector<8x128xf32>
    %132 = arith.mulf %126, %131 : vector<8x128xf32>
    %133 = arith.addf %128, %132 : vector<8x128xf32>
    %134 = math.tanh %133 : vector<8x128xf32>
    %cst_47 = arith.constant 1.000000e+00 : f32
    %135 = vector.broadcast %cst_47 : f32 to vector<8x128xf32>
    %136 = arith.subf %135, %127 : vector<8x128xf32>
    %137 = arith.mulf %136, %134 : vector<8x128xf32>
    %138 = arith.mulf %127, %113 : vector<8x128xf32>
    %139 = arith.addf %137, %138 : vector<8x128xf32>
    %c32_48 = arith.constant 32 : index
    %c0_49 = arith.constant 0 : index
    %140 = vector.load %arg14[%c32_48, %c0_49] : memref<96x128xf32, #tpu.memory_space<vmem>>, vector<8x128xf32>
    tpu.vector_store %arg14[%c32_48, %c0_49], %139 {strides = array<i32>} : memref<96x128xf32, #tpu.memory_space<vmem>>, vector<8x128xf32>,
    %c40 = arith.constant 40 : index
    %c0_50 = arith.constant 0 : index
    %141 = vector.load %arg13[%c40, %c0_50] : memref<96x384xf32, #tpu.memory_space<vmem>>, vector<8x384xf32>
    %c0_51 = arith.constant 0 : index
    %c0_52 = arith.constant 0 : index
    %142 = vector.load %arg3[%c0_51, %c0_52] : memref<128x384xf32, #tpu.memory_space<vmem>>, vector<128x384xf32>
    %cst_53 = arith.constant dense<0.000000e+00> : vector<8x384xf32>
    %143 = tpu.matmul %139, %142, %cst_53 {dimension_numbers = #tpu.dot_dimension_numbers<[1], [0], [0], [1], [0, 0, 1, 1], [], []>} : vector<8x128xf32>, vector<128x384xf32>, vector<8x384xf32> -> vector<8x384xf32>
    %144 = vector.extract_strided_slice %141 {offsets = [0, 0], sizes = [8, 256], strides = [1, 1]} : vector<8x384xf32> to vector<8x256xf32>
    %145 = vector.extract_strided_slice %143 {offsets = [0, 0], sizes = [8, 256], strides = [1, 1]} : vector<8x384xf32> to vector<8x256xf32>
    %146 = arith.addf %144, %145 : vector<8x256xf32>
    %147 = arith.negf %146 : vector<8x256xf32>
    %148 = math.exp %147 : vector<8x256xf32>
    %cst_54 = arith.constant 1.000000e+00 : f32
    %149 = vector.broadcast %cst_54 : f32 to vector<8x256xf32>
    %150 = arith.addf %149, %148 : vector<8x256xf32>
    %151 = arith.divf %149, %150 : vector<8x256xf32>
    %152 = vector.extract_strided_slice %151 {offsets = [0, 0], sizes = [8, 128], strides = [1, 1]} : vector<8x256xf32> to vector<8x128xf32>
    %153 = vector.extract_strided_slice %151 {offsets = [0, 128], sizes = [8, 128], strides = [1, 1]} : vector<8x256xf32> to vector<8x128xf32>
    %154 = vector.extract_strided_slice %141 {offsets = [0, 256], sizes = [8, 128], strides = [1, 1]} : vector<8x384xf32> to vector<8x128xf32>
    %155 = vector.extract_strided_slice %143 {offsets = [0, 256], sizes = [8, 128], strides = [1, 1]} : vector<8x384xf32> to vector<8x128xf32>
    %156 = vector.broadcast %9 : vector<1x128xf32> to vector<8x128xf32>
    %157 = arith.addf %155, %156 : vector<8x128xf32>
    %158 = arith.mulf %152, %157 : vector<8x128xf32>
    %159 = arith.addf %154, %158 : vector<8x128xf32>
    %160 = math.tanh %159 : vector<8x128xf32>
    %cst_55 = arith.constant 1.000000e+00 : f32
    %161 = vector.broadcast %cst_55 : f32 to vector<8x128xf32>
    %162 = arith.subf %161, %153 : vector<8x128xf32>
    %163 = arith.mulf %162, %160 : vector<8x128xf32>
    %164 = arith.mulf %153, %139 : vector<8x128xf32>
    %165 = arith.addf %163, %164 : vector<8x128xf32>
    %c40_56 = arith.constant 40 : index
    %c0_57 = arith.constant 0 : index
    %166 = vector.load %arg14[%c40_56, %c0_57] : memref<96x128xf32, #tpu.memory_space<vmem>>, vector<8x128xf32>
    tpu.vector_store %arg14[%c40_56, %c0_57], %165 {strides = array<i32>} : memref<96x128xf32, #tpu.memory_space<vmem>>, vector<8x128xf32>,
    %c48 = arith.constant 48 : index
    %c0_58 = arith.constant 0 : index
    %167 = vector.load %arg13[%c48, %c0_58] : memref<96x384xf32, #tpu.memory_space<vmem>>, vector<8x384xf32>
    %c0_59 = arith.constant 0 : index
    %c0_60 = arith.constant 0 : index
    %168 = vector.load %arg3[%c0_59, %c0_60] : memref<128x384xf32, #tpu.memory_space<vmem>>, vector<128x384xf32>
    %cst_61 = arith.constant dense<0.000000e+00> : vector<8x384xf32>
    %169 = tpu.matmul %165, %168, %cst_61 {dimension_numbers = #tpu.dot_dimension_numbers<[1], [0], [0], [1], [0, 0, 1, 1], [], []>} : vector<8x128xf32>, vector<128x384xf32>, vector<8x384xf32> -> vector<8x384xf32>
    %170 = vector.extract_strided_slice %167 {offsets = [0, 0], sizes = [8, 256], strides = [1, 1]} : vector<8x384xf32> to vector<8x256xf32>
    %171 = vector.extract_strided_slice %169 {offsets = [0, 0], sizes = [8, 256], strides = [1, 1]} : vector<8x384xf32> to vector<8x256xf32>
    %172 = arith.addf %170, %171 : vector<8x256xf32>
    %173 = arith.negf %172 : vector<8x256xf32>
    %174 = math.exp %173 : vector<8x256xf32>
    %cst_62 = arith.constant 1.000000e+00 : f32
    %175 = vector.broadcast %cst_62 : f32 to vector<8x256xf32>
    %176 = arith.addf %175, %174 : vector<8x256xf32>
    %177 = arith.divf %175, %176 : vector<8x256xf32>
    %178 = vector.extract_strided_slice %177 {offsets = [0, 0], sizes = [8, 128], strides = [1, 1]} : vector<8x256xf32> to vector<8x128xf32>
    %179 = vector.extract_strided_slice %177 {offsets = [0, 128], sizes = [8, 128], strides = [1, 1]} : vector<8x256xf32> to vector<8x128xf32>
    %180 = vector.extract_strided_slice %167 {offsets = [0, 256], sizes = [8, 128], strides = [1, 1]} : vector<8x384xf32> to vector<8x128xf32>
    %181 = vector.extract_strided_slice %169 {offsets = [0, 256], sizes = [8, 128], strides = [1, 1]} : vector<8x384xf32> to vector<8x128xf32>
    %182 = vector.broadcast %9 : vector<1x128xf32> to vector<8x128xf32>
    %183 = arith.addf %181, %182 : vector<8x128xf32>
    %184 = arith.mulf %178, %183 : vector<8x128xf32>
    %185 = arith.addf %180, %184 : vector<8x128xf32>
    %186 = math.tanh %185 : vector<8x128xf32>
    %cst_63 = arith.constant 1.000000e+00 : f32
    %187 = vector.broadcast %cst_63 : f32 to vector<8x128xf32>
    %188 = arith.subf %187, %179 : vector<8x128xf32>
    %189 = arith.mulf %188, %186 : vector<8x128xf32>
    %190 = arith.mulf %179, %165 : vector<8x128xf32>
    %191 = arith.addf %189, %190 : vector<8x128xf32>
    %c48_64 = arith.constant 48 : index
    %c0_65 = arith.constant 0 : index
    %192 = vector.load %arg14[%c48_64, %c0_65] : memref<96x128xf32, #tpu.memory_space<vmem>>, vector<8x128xf32>
    tpu.vector_store %arg14[%c48_64, %c0_65], %191 {strides = array<i32>} : memref<96x128xf32, #tpu.memory_space<vmem>>, vector<8x128xf32>,
    %c56 = arith.constant 56 : index
    %c0_66 = arith.constant 0 : index
    %193 = vector.load %arg13[%c56, %c0_66] : memref<96x384xf32, #tpu.memory_space<vmem>>, vector<8x384xf32>
    %c0_67 = arith.constant 0 : index
    %c0_68 = arith.constant 0 : index
    %194 = vector.load %arg3[%c0_67, %c0_68] : memref<128x384xf32, #tpu.memory_space<vmem>>, vector<128x384xf32>
    %cst_69 = arith.constant dense<0.000000e+00> : vector<8x384xf32>
    %195 = tpu.matmul %191, %194, %cst_69 {dimension_numbers = #tpu.dot_dimension_numbers<[1], [0], [0], [1], [0, 0, 1, 1], [], []>} : vector<8x128xf32>, vector<128x384xf32>, vector<8x384xf32> -> vector<8x384xf32>
    %196 = vector.extract_strided_slice %193 {offsets = [0, 0], sizes = [8, 256], strides = [1, 1]} : vector<8x384xf32> to vector<8x256xf32>
    %197 = vector.extract_strided_slice %195 {offsets = [0, 0], sizes = [8, 256], strides = [1, 1]} : vector<8x384xf32> to vector<8x256xf32>
    %198 = arith.addf %196, %197 : vector<8x256xf32>
    %199 = arith.negf %198 : vector<8x256xf32>
    %200 = math.exp %199 : vector<8x256xf32>
    %cst_70 = arith.constant 1.000000e+00 : f32
    %201 = vector.broadcast %cst_70 : f32 to vector<8x256xf32>
    %202 = arith.addf %201, %200 : vector<8x256xf32>
    %203 = arith.divf %201, %202 : vector<8x256xf32>
    %204 = vector.extract_strided_slice %203 {offsets = [0, 0], sizes = [8, 128], strides = [1, 1]} : vector<8x256xf32> to vector<8x128xf32>
    %205 = vector.extract_strided_slice %203 {offsets = [0, 128], sizes = [8, 128], strides = [1, 1]} : vector<8x256xf32> to vector<8x128xf32>
    %206 = vector.extract_strided_slice %193 {offsets = [0, 256], sizes = [8, 128], strides = [1, 1]} : vector<8x384xf32> to vector<8x128xf32>
    %207 = vector.extract_strided_slice %195 {offsets = [0, 256], sizes = [8, 128], strides = [1, 1]} : vector<8x384xf32> to vector<8x128xf32>
    %208 = vector.broadcast %9 : vector<1x128xf32> to vector<8x128xf32>
    %209 = arith.addf %207, %208 : vector<8x128xf32>
    %210 = arith.mulf %204, %209 : vector<8x128xf32>
    %211 = arith.addf %206, %210 : vector<8x128xf32>
    %212 = math.tanh %211 : vector<8x128xf32>
    %cst_71 = arith.constant 1.000000e+00 : f32
    %213 = vector.broadcast %cst_71 : f32 to vector<8x128xf32>
    %214 = arith.subf %213, %205 : vector<8x128xf32>
    %215 = arith.mulf %214, %212 : vector<8x128xf32>
    %216 = arith.mulf %205, %191 : vector<8x128xf32>
    %217 = arith.addf %215, %216 : vector<8x128xf32>
    %c56_72 = arith.constant 56 : index
    %c0_73 = arith.constant 0 : index
    %218 = vector.load %arg14[%c56_72, %c0_73] : memref<96x128xf32, #tpu.memory_space<vmem>>, vector<8x128xf32>
    tpu.vector_store %arg14[%c56_72, %c0_73], %217 {strides = array<i32>} : memref<96x128xf32, #tpu.memory_space<vmem>>, vector<8x128xf32>,
    %c64 = arith.constant 64 : index
    %c0_74 = arith.constant 0 : index
    %219 = vector.load %arg13[%c64, %c0_74] : memref<96x384xf32, #tpu.memory_space<vmem>>, vector<8x384xf32>
    %c0_75 = arith.constant 0 : index
    %c0_76 = arith.constant 0 : index
    %220 = vector.load %arg3[%c0_75, %c0_76] : memref<128x384xf32, #tpu.memory_space<vmem>>, vector<128x384xf32>
    %cst_77 = arith.constant dense<0.000000e+00> : vector<8x384xf32>
    %221 = tpu.matmul %217, %220, %cst_77 {dimension_numbers = #tpu.dot_dimension_numbers<[1], [0], [0], [1], [0, 0, 1, 1], [], []>} : vector<8x128xf32>, vector<128x384xf32>, vector<8x384xf32> -> vector<8x384xf32>
    %222 = vector.extract_strided_slice %219 {offsets = [0, 0], sizes = [8, 256], strides = [1, 1]} : vector<8x384xf32> to vector<8x256xf32>
    %223 = vector.extract_strided_slice %221 {offsets = [0, 0], sizes = [8, 256], strides = [1, 1]} : vector<8x384xf32> to vector<8x256xf32>
    %224 = arith.addf %222, %223 : vector<8x256xf32>
    %225 = arith.negf %224 : vector<8x256xf32>
    %226 = math.exp %225 : vector<8x256xf32>
    %cst_78 = arith.constant 1.000000e+00 : f32
    %227 = vector.broadcast %cst_78 : f32 to vector<8x256xf32>
    %228 = arith.addf %227, %226 : vector<8x256xf32>
    %229 = arith.divf %227, %228 : vector<8x256xf32>
    %230 = vector.extract_strided_slice %229 {offsets = [0, 0], sizes = [8, 128], strides = [1, 1]} : vector<8x256xf32> to vector<8x128xf32>
    %231 = vector.extract_strided_slice %229 {offsets = [0, 128], sizes = [8, 128], strides = [1, 1]} : vector<8x256xf32> to vector<8x128xf32>
    %232 = vector.extract_strided_slice %219 {offsets = [0, 256], sizes = [8, 128], strides = [1, 1]} : vector<8x384xf32> to vector<8x128xf32>
    %233 = vector.extract_strided_slice %221 {offsets = [0, 256], sizes = [8, 128], strides = [1, 1]} : vector<8x384xf32> to vector<8x128xf32>
    %234 = vector.broadcast %9 : vector<1x128xf32> to vector<8x128xf32>
    %235 = arith.addf %233, %234 : vector<8x128xf32>
    %236 = arith.mulf %230, %235 : vector<8x128xf32>
    %237 = arith.addf %232, %236 : vector<8x128xf32>
    %238 = math.tanh %237 : vector<8x128xf32>
    %cst_79 = arith.constant 1.000000e+00 : f32
    %239 = vector.broadcast %cst_79 : f32 to vector<8x128xf32>
    %240 = arith.subf %239, %231 : vector<8x128xf32>
    %241 = arith.mulf %240, %238 : vector<8x128xf32>
    %242 = arith.mulf %231, %217 : vector<8x128xf32>
    %243 = arith.addf %241, %242 : vector<8x128xf32>
    %c64_80 = arith.constant 64 : index
    %c0_81 = arith.constant 0 : index
    %244 = vector.load %arg14[%c64_80, %c0_81] : memref<96x128xf32, #tpu.memory_space<vmem>>, vector<8x128xf32>
    tpu.vector_store %arg14[%c64_80, %c0_81], %243 {strides = array<i32>} : memref<96x128xf32, #tpu.memory_space<vmem>>, vector<8x128xf32>,
    %c72 = arith.constant 72 : index
    %c0_82 = arith.constant 0 : index
    %245 = vector.load %arg13[%c72, %c0_82] : memref<96x384xf32, #tpu.memory_space<vmem>>, vector<8x384xf32>
    %c0_83 = arith.constant 0 : index
    %c0_84 = arith.constant 0 : index
    %246 = vector.load %arg3[%c0_83, %c0_84] : memref<128x384xf32, #tpu.memory_space<vmem>>, vector<128x384xf32>
    %cst_85 = arith.constant dense<0.000000e+00> : vector<8x384xf32>
    %247 = tpu.matmul %243, %246, %cst_85 {dimension_numbers = #tpu.dot_dimension_numbers<[1], [0], [0], [1], [0, 0, 1, 1], [], []>} : vector<8x128xf32>, vector<128x384xf32>, vector<8x384xf32> -> vector<8x384xf32>
    %248 = vector.extract_strided_slice %245 {offsets = [0, 0], sizes = [8, 256], strides = [1, 1]} : vector<8x384xf32> to vector<8x256xf32>
    %249 = vector.extract_strided_slice %247 {offsets = [0, 0], sizes = [8, 256], strides = [1, 1]} : vector<8x384xf32> to vector<8x256xf32>
    %250 = arith.addf %248, %249 : vector<8x256xf32>
    %251 = arith.negf %250 : vector<8x256xf32>
    %252 = math.exp %251 : vector<8x256xf32>
    %cst_86 = arith.constant 1.000000e+00 : f32
    %253 = vector.broadcast %cst_86 : f32 to vector<8x256xf32>
    %254 = arith.addf %253, %252 : vector<8x256xf32>
    %255 = arith.divf %253, %254 : vector<8x256xf32>
    %256 = vector.extract_strided_slice %255 {offsets = [0, 0], sizes = [8, 128], strides = [1, 1]} : vector<8x256xf32> to vector<8x128xf32>
    %257 = vector.extract_strided_slice %255 {offsets = [0, 128], sizes = [8, 128], strides = [1, 1]} : vector<8x256xf32> to vector<8x128xf32>
    %258 = vector.extract_strided_slice %245 {offsets = [0, 256], sizes = [8, 128], strides = [1, 1]} : vector<8x384xf32> to vector<8x128xf32>
    %259 = vector.extract_strided_slice %247 {offsets = [0, 256], sizes = [8, 128], strides = [1, 1]} : vector<8x384xf32> to vector<8x128xf32>
    %260 = vector.broadcast %9 : vector<1x128xf32> to vector<8x128xf32>
    %261 = arith.addf %259, %260 : vector<8x128xf32>
    %262 = arith.mulf %256, %261 : vector<8x128xf32>
    %263 = arith.addf %258, %262 : vector<8x128xf32>
    %264 = math.tanh %263 : vector<8x128xf32>
    %cst_87 = arith.constant 1.000000e+00 : f32
    %265 = vector.broadcast %cst_87 : f32 to vector<8x128xf32>
    %266 = arith.subf %265, %257 : vector<8x128xf32>
    %267 = arith.mulf %266, %264 : vector<8x128xf32>
    %268 = arith.mulf %257, %243 : vector<8x128xf32>
    %269 = arith.addf %267, %268 : vector<8x128xf32>
    %c72_88 = arith.constant 72 : index
    %c0_89 = arith.constant 0 : index
    %270 = vector.load %arg14[%c72_88, %c0_89] : memref<96x128xf32, #tpu.memory_space<vmem>>, vector<8x128xf32>
    tpu.vector_store %arg14[%c72_88, %c0_89], %269 {strides = array<i32>} : memref<96x128xf32, #tpu.memory_space<vmem>>, vector<8x128xf32>,
    %c80 = arith.constant 80 : index
    %c0_90 = arith.constant 0 : index
    %271 = vector.load %arg13[%c80, %c0_90] : memref<96x384xf32, #tpu.memory_space<vmem>>, vector<8x384xf32>
    %c0_91 = arith.constant 0 : index
    %c0_92 = arith.constant 0 : index
    %272 = vector.load %arg3[%c0_91, %c0_92] : memref<128x384xf32, #tpu.memory_space<vmem>>, vector<128x384xf32>
    %cst_93 = arith.constant dense<0.000000e+00> : vector<8x384xf32>
    %273 = tpu.matmul %269, %272, %cst_93 {dimension_numbers = #tpu.dot_dimension_numbers<[1], [0], [0], [1], [0, 0, 1, 1], [], []>} : vector<8x128xf32>, vector<128x384xf32>, vector<8x384xf32> -> vector<8x384xf32>
    %274 = vector.extract_strided_slice %271 {offsets = [0, 0], sizes = [8, 256], strides = [1, 1]} : vector<8x384xf32> to vector<8x256xf32>
    %275 = vector.extract_strided_slice %273 {offsets = [0, 0], sizes = [8, 256], strides = [1, 1]} : vector<8x384xf32> to vector<8x256xf32>
    %276 = arith.addf %274, %275 : vector<8x256xf32>
    %277 = arith.negf %276 : vector<8x256xf32>
    %278 = math.exp %277 : vector<8x256xf32>
    %cst_94 = arith.constant 1.000000e+00 : f32
    %279 = vector.broadcast %cst_94 : f32 to vector<8x256xf32>
    %280 = arith.addf %279, %278 : vector<8x256xf32>
    %281 = arith.divf %279, %280 : vector<8x256xf32>
    %282 = vector.extract_strided_slice %281 {offsets = [0, 0], sizes = [8, 128], strides = [1, 1]} : vector<8x256xf32> to vector<8x128xf32>
    %283 = vector.extract_strided_slice %281 {offsets = [0, 128], sizes = [8, 128], strides = [1, 1]} : vector<8x256xf32> to vector<8x128xf32>
    %284 = vector.extract_strided_slice %271 {offsets = [0, 256], sizes = [8, 128], strides = [1, 1]} : vector<8x384xf32> to vector<8x128xf32>
    %285 = vector.extract_strided_slice %273 {offsets = [0, 256], sizes = [8, 128], strides = [1, 1]} : vector<8x384xf32> to vector<8x128xf32>
    %286 = vector.broadcast %9 : vector<1x128xf32> to vector<8x128xf32>
    %287 = arith.addf %285, %286 : vector<8x128xf32>
    %288 = arith.mulf %282, %287 : vector<8x128xf32>
    %289 = arith.addf %284, %288 : vector<8x128xf32>
    %290 = math.tanh %289 : vector<8x128xf32>
    %cst_95 = arith.constant 1.000000e+00 : f32
    %291 = vector.broadcast %cst_95 : f32 to vector<8x128xf32>
    %292 = arith.subf %291, %283 : vector<8x128xf32>
    %293 = arith.mulf %292, %290 : vector<8x128xf32>
    %294 = arith.mulf %283, %269 : vector<8x128xf32>
    %295 = arith.addf %293, %294 : vector<8x128xf32>
    %c80_96 = arith.constant 80 : index
    %c0_97 = arith.constant 0 : index
    %296 = vector.load %arg14[%c80_96, %c0_97] : memref<96x128xf32, #tpu.memory_space<vmem>>, vector<8x128xf32>
    tpu.vector_store %arg14[%c80_96, %c0_97], %295 {strides = array<i32>} : memref<96x128xf32, #tpu.memory_space<vmem>>, vector<8x128xf32>,
    %c88 = arith.constant 88 : index
    %c0_98 = arith.constant 0 : index
    %297 = vector.load %arg13[%c88, %c0_98] : memref<96x384xf32, #tpu.memory_space<vmem>>, vector<8x384xf32>
    %c0_99 = arith.constant 0 : index
    %c0_100 = arith.constant 0 : index
    %298 = vector.load %arg3[%c0_99, %c0_100] : memref<128x384xf32, #tpu.memory_space<vmem>>, vector<128x384xf32>
    %cst_101 = arith.constant dense<0.000000e+00> : vector<8x384xf32>
    %299 = tpu.matmul %295, %298, %cst_101 {dimension_numbers = #tpu.dot_dimension_numbers<[1], [0], [0], [1], [0, 0, 1, 1], [], []>} : vector<8x128xf32>, vector<128x384xf32>, vector<8x384xf32> -> vector<8x384xf32>
    %300 = vector.extract_strided_slice %297 {offsets = [0, 0], sizes = [8, 256], strides = [1, 1]} : vector<8x384xf32> to vector<8x256xf32>
    %301 = vector.extract_strided_slice %299 {offsets = [0, 0], sizes = [8, 256], strides = [1, 1]} : vector<8x384xf32> to vector<8x256xf32>
    %302 = arith.addf %300, %301 : vector<8x256xf32>
    %303 = arith.negf %302 : vector<8x256xf32>
    %304 = math.exp %303 : vector<8x256xf32>
    %cst_102 = arith.constant 1.000000e+00 : f32
    %305 = vector.broadcast %cst_102 : f32 to vector<8x256xf32>
    %306 = arith.addf %305, %304 : vector<8x256xf32>
    %307 = arith.divf %305, %306 : vector<8x256xf32>
    %308 = vector.extract_strided_slice %307 {offsets = [0, 0], sizes = [8, 128], strides = [1, 1]} : vector<8x256xf32> to vector<8x128xf32>
    %309 = vector.extract_strided_slice %307 {offsets = [0, 128], sizes = [8, 128], strides = [1, 1]} : vector<8x256xf32> to vector<8x128xf32>
    %310 = vector.extract_strided_slice %297 {offsets = [0, 256], sizes = [8, 128], strides = [1, 1]} : vector<8x384xf32> to vector<8x128xf32>
    %311 = vector.extract_strided_slice %299 {offsets = [0, 256], sizes = [8, 128], strides = [1, 1]} : vector<8x384xf32> to vector<8x128xf32>
    %312 = vector.broadcast %9 : vector<1x128xf32> to vector<8x128xf32>
    %313 = arith.addf %311, %312 : vector<8x128xf32>
    %314 = arith.mulf %308, %313 : vector<8x128xf32>
    %315 = arith.addf %310, %314 : vector<8x128xf32>
    %316 = math.tanh %315 : vector<8x128xf32>
    %cst_103 = arith.constant 1.000000e+00 : f32
    %317 = vector.broadcast %cst_103 : f32 to vector<8x128xf32>
    %318 = arith.subf %317, %309 : vector<8x128xf32>
    %319 = arith.mulf %318, %316 : vector<8x128xf32>
    %320 = arith.mulf %309, %295 : vector<8x128xf32>
    %321 = arith.addf %319, %320 : vector<8x128xf32>
    %c88_104 = arith.constant 88 : index
    %c0_105 = arith.constant 0 : index
    %322 = vector.load %arg14[%c88_104, %c0_105] : memref<96x128xf32, #tpu.memory_space<vmem>>, vector<8x128xf32>
    tpu.vector_store %arg14[%c88_104, %c0_105], %321 {strides = array<i32>} : memref<96x128xf32, #tpu.memory_space<vmem>>, vector<8x128xf32>,
    %c0_106 = arith.constant 0 : index
    %c0_107 = arith.constant 0 : index
    %323 = vector.load %arg14[%c0_106, %c0_107] : memref<96x128xf32, #tpu.memory_space<vmem>>, vector<96x128xf32>
    %c0_108 = arith.constant 0 : index
    %c0_109 = arith.constant 0 : index
    %324 = vector.load %arg6[%c0_108, %c0_109] : memref<128x384xf32, #tpu.memory_space<vmem>>, vector<128x384xf32>
    %cst_110 = arith.constant dense<0.000000e+00> : vector<96x384xf32>
    %325 = tpu.matmul %323, %324, %cst_110 {dimension_numbers = #tpu.dot_dimension_numbers<[1], [0], [0], [1], [0, 0, 1, 1], [], []>} : vector<96x128xf32>, vector<128x384xf32>, vector<96x384xf32> -> vector<96x384xf32>
    %c0_111 = arith.constant 0 : index
    %c0_112 = arith.constant 0 : index
    %326 = vector.load %arg8[%c0_111, %c0_112] : memref<1x384xf32, #tpu.memory_space<vmem>>, vector<1x384xf32>
    %327 = vector.broadcast %326 : vector<1x384xf32> to vector<96x384xf32>
    %328 = arith.addf %325, %327 : vector<96x384xf32>
    %c0_113 = arith.constant 0 : index
    %c0_114 = arith.constant 0 : index
    %329 = vector.load %arg13[%c0_113, %c0_114] : memref<96x384xf32, #tpu.memory_space<vmem>>, vector<96x384xf32>
    tpu.vector_store %arg13[%c0_113, %c0_114], %328 {strides = array<i32>} : memref<96x384xf32, #tpu.memory_space<vmem>>, vector<96x384xf32>,
    %c0_115 = arith.constant 0 : index
    %c0_116 = arith.constant 0 : index
    %330 = vector.load %arg9[%c0_115, %c0_116] : memref<1x128xf32, #tpu.memory_space<vmem>>, vector<1x128xf32>
    %cst_117 = arith.constant 0.000000e+00 : f32
    %331 = vector.broadcast %cst_117 : f32 to vector<8x128xf32>
    %c0_118 = arith.constant 0 : index
    %c0_119 = arith.constant 0 : index
    %332 = vector.load %arg13[%c0_118, %c0_119] : memref<96x384xf32, #tpu.memory_space<vmem>>, vector<8x384xf32>
    %c0_120 = arith.constant 0 : index
    %c0_121 = arith.constant 0 : index
    %333 = vector.load %arg7[%c0_120, %c0_121] : memref<128x384xf32, #tpu.memory_space<vmem>>, vector<128x384xf32>
    %cst_122 = arith.constant dense<0.000000e+00> : vector<8x384xf32>
    %334 = tpu.matmul %331, %333, %cst_122 {dimension_numbers = #tpu.dot_dimension_numbers<[1], [0], [0], [1], [0, 0, 1, 1], [], []>} : vector<8x128xf32>, vector<128x384xf32>, vector<8x384xf32> -> vector<8x384xf32>
    %335 = vector.extract_strided_slice %332 {offsets = [0, 0], sizes = [8, 256], strides = [1, 1]} : vector<8x384xf32> to vector<8x256xf32>
    %336 = vector.extract_strided_slice %334 {offsets = [0, 0], sizes = [8, 256], strides = [1, 1]} : vector<8x384xf32> to vector<8x256xf32>
    %337 = arith.addf %335, %336 : vector<8x256xf32>
    %338 = arith.negf %337 : vector<8x256xf32>
    %339 = math.exp %338 : vector<8x256xf32>
    %cst_123 = arith.constant 1.000000e+00 : f32
    %340 = vector.broadcast %cst_123 : f32 to vector<8x256xf32>
    %341 = arith.addf %340, %339 : vector<8x256xf32>
    %342 = arith.divf %340, %341 : vector<8x256xf32>
    %343 = vector.extract_strided_slice %342 {offsets = [0, 0], sizes = [8, 128], strides = [1, 1]} : vector<8x256xf32> to vector<8x128xf32>
    %344 = vector.extract_strided_slice %342 {offsets = [0, 128], sizes = [8, 128], strides = [1, 1]} : vector<8x256xf32> to vector<8x128xf32>
    %345 = vector.extract_strided_slice %332 {offsets = [0, 256], sizes = [8, 128], strides = [1, 1]} : vector<8x384xf32> to vector<8x128xf32>
    %346 = vector.extract_strided_slice %334 {offsets = [0, 256], sizes = [8, 128], strides = [1, 1]} : vector<8x384xf32> to vector<8x128xf32>
    %347 = vector.broadcast %330 : vector<1x128xf32> to vector<8x128xf32>
    %348 = arith.addf %346, %347 : vector<8x128xf32>
    %349 = arith.mulf %343, %348 : vector<8x128xf32>
    %350 = arith.addf %345, %349 : vector<8x128xf32>
    %351 = math.tanh %350 : vector<8x128xf32>
    %cst_124 = arith.constant 1.000000e+00 : f32
    %352 = vector.broadcast %cst_124 : f32 to vector<8x128xf32>
    %353 = arith.subf %352, %344 : vector<8x128xf32>
    %354 = arith.mulf %353, %351 : vector<8x128xf32>
    %355 = arith.mulf %344, %331 : vector<8x128xf32>
    %356 = arith.addf %354, %355 : vector<8x128xf32>
    %c8_125 = arith.constant 8 : index
    %c0_126 = arith.constant 0 : index
    %357 = vector.load %arg13[%c8_125, %c0_126] : memref<96x384xf32, #tpu.memory_space<vmem>>, vector<8x384xf32>
    %c0_127 = arith.constant 0 : index
    %c0_128 = arith.constant 0 : index
    %358 = vector.load %arg7[%c0_127, %c0_128] : memref<128x384xf32, #tpu.memory_space<vmem>>, vector<128x384xf32>
    %cst_129 = arith.constant dense<0.000000e+00> : vector<8x384xf32>
    %359 = tpu.matmul %356, %358, %cst_129 {dimension_numbers = #tpu.dot_dimension_numbers<[1], [0], [0], [1], [0, 0, 1, 1], [], []>} : vector<8x128xf32>, vector<128x384xf32>, vector<8x384xf32> -> vector<8x384xf32>
    %360 = vector.extract_strided_slice %357 {offsets = [0, 0], sizes = [8, 256], strides = [1, 1]} : vector<8x384xf32> to vector<8x256xf32>
    %361 = vector.extract_strided_slice %359 {offsets = [0, 0], sizes = [8, 256], strides = [1, 1]} : vector<8x384xf32> to vector<8x256xf32>
    %362 = arith.addf %360, %361 : vector<8x256xf32>
    %363 = arith.negf %362 : vector<8x256xf32>
    %364 = math.exp %363 : vector<8x256xf32>
    %cst_130 = arith.constant 1.000000e+00 : f32
    %365 = vector.broadcast %cst_130 : f32 to vector<8x256xf32>
    %366 = arith.addf %365, %364 : vector<8x256xf32>
    %367 = arith.divf %365, %366 : vector<8x256xf32>
    %368 = vector.extract_strided_slice %367 {offsets = [0, 0], sizes = [8, 128], strides = [1, 1]} : vector<8x256xf32> to vector<8x128xf32>
    %369 = vector.extract_strided_slice %367 {offsets = [0, 128], sizes = [8, 128], strides = [1, 1]} : vector<8x256xf32> to vector<8x128xf32>
    %370 = vector.extract_strided_slice %357 {offsets = [0, 256], sizes = [8, 128], strides = [1, 1]} : vector<8x384xf32> to vector<8x128xf32>
    %371 = vector.extract_strided_slice %359 {offsets = [0, 256], sizes = [8, 128], strides = [1, 1]} : vector<8x384xf32> to vector<8x128xf32>
    %372 = vector.broadcast %330 : vector<1x128xf32> to vector<8x128xf32>
    %373 = arith.addf %371, %372 : vector<8x128xf32>
    %374 = arith.mulf %368, %373 : vector<8x128xf32>
    %375 = arith.addf %370, %374 : vector<8x128xf32>
    %376 = math.tanh %375 : vector<8x128xf32>
    %cst_131 = arith.constant 1.000000e+00 : f32
    %377 = vector.broadcast %cst_131 : f32 to vector<8x128xf32>
    %378 = arith.subf %377, %369 : vector<8x128xf32>
    %379 = arith.mulf %378, %376 : vector<8x128xf32>
    %380 = arith.mulf %369, %356 : vector<8x128xf32>
    %381 = arith.addf %379, %380 : vector<8x128xf32>
    %c16_132 = arith.constant 16 : index
    %c0_133 = arith.constant 0 : index
    %382 = vector.load %arg13[%c16_132, %c0_133] : memref<96x384xf32, #tpu.memory_space<vmem>>, vector<8x384xf32>
    %c0_134 = arith.constant 0 : index
    %c0_135 = arith.constant 0 : index
    %383 = vector.load %arg7[%c0_134, %c0_135] : memref<128x384xf32, #tpu.memory_space<vmem>>, vector<128x384xf32>
    %cst_136 = arith.constant dense<0.000000e+00> : vector<8x384xf32>
    %384 = tpu.matmul %381, %383, %cst_136 {dimension_numbers = #tpu.dot_dimension_numbers<[1], [0], [0], [1], [0, 0, 1, 1], [], []>} : vector<8x128xf32>, vector<128x384xf32>, vector<8x384xf32> -> vector<8x384xf32>
    %385 = vector.extract_strided_slice %382 {offsets = [0, 0], sizes = [8, 256], strides = [1, 1]} : vector<8x384xf32> to vector<8x256xf32>
    %386 = vector.extract_strided_slice %384 {offsets = [0, 0], sizes = [8, 256], strides = [1, 1]} : vector<8x384xf32> to vector<8x256xf32>
    %387 = arith.addf %385, %386 : vector<8x256xf32>
    %388 = arith.negf %387 : vector<8x256xf32>
    %389 = math.exp %388 : vector<8x256xf32>
    %cst_137 = arith.constant 1.000000e+00 : f32
    %390 = vector.broadcast %cst_137 : f32 to vector<8x256xf32>
    %391 = arith.addf %390, %389 : vector<8x256xf32>
    %392 = arith.divf %390, %391 : vector<8x256xf32>
    %393 = vector.extract_strided_slice %392 {offsets = [0, 0], sizes = [8, 128], strides = [1, 1]} : vector<8x256xf32> to vector<8x128xf32>
    %394 = vector.extract_strided_slice %392 {offsets = [0, 128], sizes = [8, 128], strides = [1, 1]} : vector<8x256xf32> to vector<8x128xf32>
    %395 = vector.extract_strided_slice %382 {offsets = [0, 256], sizes = [8, 128], strides = [1, 1]} : vector<8x384xf32> to vector<8x128xf32>
    %396 = vector.extract_strided_slice %384 {offsets = [0, 256], sizes = [8, 128], strides = [1, 1]} : vector<8x384xf32> to vector<8x128xf32>
    %397 = vector.broadcast %330 : vector<1x128xf32> to vector<8x128xf32>
    %398 = arith.addf %396, %397 : vector<8x128xf32>
    %399 = arith.mulf %393, %398 : vector<8x128xf32>
    %400 = arith.addf %395, %399 : vector<8x128xf32>
    %401 = math.tanh %400 : vector<8x128xf32>
    %cst_138 = arith.constant 1.000000e+00 : f32
    %402 = vector.broadcast %cst_138 : f32 to vector<8x128xf32>
    %403 = arith.subf %402, %394 : vector<8x128xf32>
    %404 = arith.mulf %403, %401 : vector<8x128xf32>
    %405 = arith.mulf %394, %381 : vector<8x128xf32>
    %406 = arith.addf %404, %405 : vector<8x128xf32>
    %c24_139 = arith.constant 24 : index
    %c0_140 = arith.constant 0 : index
    %407 = vector.load %arg13[%c24_139, %c0_140] : memref<96x384xf32, #tpu.memory_space<vmem>>, vector<8x384xf32>
    %c0_141 = arith.constant 0 : index
    %c0_142 = arith.constant 0 : index
    %408 = vector.load %arg7[%c0_141, %c0_142] : memref<128x384xf32, #tpu.memory_space<vmem>>, vector<128x384xf32>
    %cst_143 = arith.constant dense<0.000000e+00> : vector<8x384xf32>
    %409 = tpu.matmul %406, %408, %cst_143 {dimension_numbers = #tpu.dot_dimension_numbers<[1], [0], [0], [1], [0, 0, 1, 1], [], []>} : vector<8x128xf32>, vector<128x384xf32>, vector<8x384xf32> -> vector<8x384xf32>
    %410 = vector.extract_strided_slice %407 {offsets = [0, 0], sizes = [8, 256], strides = [1, 1]} : vector<8x384xf32> to vector<8x256xf32>
    %411 = vector.extract_strided_slice %409 {offsets = [0, 0], sizes = [8, 256], strides = [1, 1]} : vector<8x384xf32> to vector<8x256xf32>
    %412 = arith.addf %410, %411 : vector<8x256xf32>
    %413 = arith.negf %412 : vector<8x256xf32>
    %414 = math.exp %413 : vector<8x256xf32>
    %cst_144 = arith.constant 1.000000e+00 : f32
    %415 = vector.broadcast %cst_144 : f32 to vector<8x256xf32>
    %416 = arith.addf %415, %414 : vector<8x256xf32>
    %417 = arith.divf %415, %416 : vector<8x256xf32>
    %418 = vector.extract_strided_slice %417 {offsets = [0, 0], sizes = [8, 128], strides = [1, 1]} : vector<8x256xf32> to vector<8x128xf32>
    %419 = vector.extract_strided_slice %417 {offsets = [0, 128], sizes = [8, 128], strides = [1, 1]} : vector<8x256xf32> to vector<8x128xf32>
    %420 = vector.extract_strided_slice %407 {offsets = [0, 256], sizes = [8, 128], strides = [1, 1]} : vector<8x384xf32> to vector<8x128xf32>
    %421 = vector.extract_strided_slice %409 {offsets = [0, 256], sizes = [8, 128], strides = [1, 1]} : vector<8x384xf32> to vector<8x128xf32>
    %422 = vector.broadcast %330 : vector<1x128xf32> to vector<8x128xf32>
    %423 = arith.addf %421, %422 : vector<8x128xf32>
    %424 = arith.mulf %418, %423 : vector<8x128xf32>
    %425 = arith.addf %420, %424 : vector<8x128xf32>
    %426 = math.tanh %425 : vector<8x128xf32>
    %cst_145 = arith.constant 1.000000e+00 : f32
    %427 = vector.broadcast %cst_145 : f32 to vector<8x128xf32>
    %428 = arith.subf %427, %419 : vector<8x128xf32>
    %429 = arith.mulf %428, %426 : vector<8x128xf32>
    %430 = arith.mulf %419, %406 : vector<8x128xf32>
    %431 = arith.addf %429, %430 : vector<8x128xf32>
    %c32_146 = arith.constant 32 : index
    %c0_147 = arith.constant 0 : index
    %432 = vector.load %arg13[%c32_146, %c0_147] : memref<96x384xf32, #tpu.memory_space<vmem>>, vector<8x384xf32>
    %c0_148 = arith.constant 0 : index
    %c0_149 = arith.constant 0 : index
    %433 = vector.load %arg7[%c0_148, %c0_149] : memref<128x384xf32, #tpu.memory_space<vmem>>, vector<128x384xf32>
    %cst_150 = arith.constant dense<0.000000e+00> : vector<8x384xf32>
    %434 = tpu.matmul %431, %433, %cst_150 {dimension_numbers = #tpu.dot_dimension_numbers<[1], [0], [0], [1], [0, 0, 1, 1], [], []>} : vector<8x128xf32>, vector<128x384xf32>, vector<8x384xf32> -> vector<8x384xf32>
    %435 = vector.extract_strided_slice %432 {offsets = [0, 0], sizes = [8, 256], strides = [1, 1]} : vector<8x384xf32> to vector<8x256xf32>
    %436 = vector.extract_strided_slice %434 {offsets = [0, 0], sizes = [8, 256], strides = [1, 1]} : vector<8x384xf32> to vector<8x256xf32>
    %437 = arith.addf %435, %436 : vector<8x256xf32>
    %438 = arith.negf %437 : vector<8x256xf32>
    %439 = math.exp %438 : vector<8x256xf32>
    %cst_151 = arith.constant 1.000000e+00 : f32
    %440 = vector.broadcast %cst_151 : f32 to vector<8x256xf32>
    %441 = arith.addf %440, %439 : vector<8x256xf32>
    %442 = arith.divf %440, %441 : vector<8x256xf32>
    %443 = vector.extract_strided_slice %442 {offsets = [0, 0], sizes = [8, 128], strides = [1, 1]} : vector<8x256xf32> to vector<8x128xf32>
    %444 = vector.extract_strided_slice %442 {offsets = [0, 128], sizes = [8, 128], strides = [1, 1]} : vector<8x256xf32> to vector<8x128xf32>
    %445 = vector.extract_strided_slice %432 {offsets = [0, 256], sizes = [8, 128], strides = [1, 1]} : vector<8x384xf32> to vector<8x128xf32>
    %446 = vector.extract_strided_slice %434 {offsets = [0, 256], sizes = [8, 128], strides = [1, 1]} : vector<8x384xf32> to vector<8x128xf32>
    %447 = vector.broadcast %330 : vector<1x128xf32> to vector<8x128xf32>
    %448 = arith.addf %446, %447 : vector<8x128xf32>
    %449 = arith.mulf %443, %448 : vector<8x128xf32>
    %450 = arith.addf %445, %449 : vector<8x128xf32>
    %451 = math.tanh %450 : vector<8x128xf32>
    %cst_152 = arith.constant 1.000000e+00 : f32
    %452 = vector.broadcast %cst_152 : f32 to vector<8x128xf32>
    %453 = arith.subf %452, %444 : vector<8x128xf32>
    %454 = arith.mulf %453, %451 : vector<8x128xf32>
    %455 = arith.mulf %444, %431 : vector<8x128xf32>
    %456 = arith.addf %454, %455 : vector<8x128xf32>
    %c40_153 = arith.constant 40 : index
    %c0_154 = arith.constant 0 : index
    %457 = vector.load %arg13[%c40_153, %c0_154] : memref<96x384xf32, #tpu.memory_space<vmem>>, vector<8x384xf32>
    %c0_155 = arith.constant 0 : index
    %c0_156 = arith.constant 0 : index
    %458 = vector.load %arg7[%c0_155, %c0_156] : memref<128x384xf32, #tpu.memory_space<vmem>>, vector<128x384xf32>
    %cst_157 = arith.constant dense<0.000000e+00> : vector<8x384xf32>
    %459 = tpu.matmul %456, %458, %cst_157 {dimension_numbers = #tpu.dot_dimension_numbers<[1], [0], [0], [1], [0, 0, 1, 1], [], []>} : vector<8x128xf32>, vector<128x384xf32>, vector<8x384xf32> -> vector<8x384xf32>
    %460 = vector.extract_strided_slice %457 {offsets = [0, 0], sizes = [8, 256], strides = [1, 1]} : vector<8x384xf32> to vector<8x256xf32>
    %461 = vector.extract_strided_slice %459 {offsets = [0, 0], sizes = [8, 256], strides = [1, 1]} : vector<8x384xf32> to vector<8x256xf32>
    %462 = arith.addf %460, %461 : vector<8x256xf32>
    %463 = arith.negf %462 : vector<8x256xf32>
    %464 = math.exp %463 : vector<8x256xf32>
    %cst_158 = arith.constant 1.000000e+00 : f32
    %465 = vector.broadcast %cst_158 : f32 to vector<8x256xf32>
    %466 = arith.addf %465, %464 : vector<8x256xf32>
    %467 = arith.divf %465, %466 : vector<8x256xf32>
    %468 = vector.extract_strided_slice %467 {offsets = [0, 0], sizes = [8, 128], strides = [1, 1]} : vector<8x256xf32> to vector<8x128xf32>
    %469 = vector.extract_strided_slice %467 {offsets = [0, 128], sizes = [8, 128], strides = [1, 1]} : vector<8x256xf32> to vector<8x128xf32>
    %470 = vector.extract_strided_slice %457 {offsets = [0, 256], sizes = [8, 128], strides = [1, 1]} : vector<8x384xf32> to vector<8x128xf32>
    %471 = vector.extract_strided_slice %459 {offsets = [0, 256], sizes = [8, 128], strides = [1, 1]} : vector<8x384xf32> to vector<8x128xf32>
    %472 = vector.broadcast %330 : vector<1x128xf32> to vector<8x128xf32>
    %473 = arith.addf %471, %472 : vector<8x128xf32>
    %474 = arith.mulf %468, %473 : vector<8x128xf32>
    %475 = arith.addf %470, %474 : vector<8x128xf32>
    %476 = math.tanh %475 : vector<8x128xf32>
    %cst_159 = arith.constant 1.000000e+00 : f32
    %477 = vector.broadcast %cst_159 : f32 to vector<8x128xf32>
    %478 = arith.subf %477, %469 : vector<8x128xf32>
    %479 = arith.mulf %478, %476 : vector<8x128xf32>
    %480 = arith.mulf %469, %456 : vector<8x128xf32>
    %481 = arith.addf %479, %480 : vector<8x128xf32>
    %c48_160 = arith.constant 48 : index
    %c0_161 = arith.constant 0 : index
    %482 = vector.load %arg13[%c48_160, %c0_161] : memref<96x384xf32, #tpu.memory_space<vmem>>, vector<8x384xf32>
    %c0_162 = arith.constant 0 : index
    %c0_163 = arith.constant 0 : index
    %483 = vector.load %arg7[%c0_162, %c0_163] : memref<128x384xf32, #tpu.memory_space<vmem>>, vector<128x384xf32>
    %cst_164 = arith.constant dense<0.000000e+00> : vector<8x384xf32>
    %484 = tpu.matmul %481, %483, %cst_164 {dimension_numbers = #tpu.dot_dimension_numbers<[1], [0], [0], [1], [0, 0, 1, 1], [], []>} : vector<8x128xf32>, vector<128x384xf32>, vector<8x384xf32> -> vector<8x384xf32>
    %485 = vector.extract_strided_slice %482 {offsets = [0, 0], sizes = [8, 256], strides = [1, 1]} : vector<8x384xf32> to vector<8x256xf32>
    %486 = vector.extract_strided_slice %484 {offsets = [0, 0], sizes = [8, 256], strides = [1, 1]} : vector<8x384xf32> to vector<8x256xf32>
    %487 = arith.addf %485, %486 : vector<8x256xf32>
    %488 = arith.negf %487 : vector<8x256xf32>
    %489 = math.exp %488 : vector<8x256xf32>
    %cst_165 = arith.constant 1.000000e+00 : f32
    %490 = vector.broadcast %cst_165 : f32 to vector<8x256xf32>
    %491 = arith.addf %490, %489 : vector<8x256xf32>
    %492 = arith.divf %490, %491 : vector<8x256xf32>
    %493 = vector.extract_strided_slice %492 {offsets = [0, 0], sizes = [8, 128], strides = [1, 1]} : vector<8x256xf32> to vector<8x128xf32>
    %494 = vector.extract_strided_slice %492 {offsets = [0, 128], sizes = [8, 128], strides = [1, 1]} : vector<8x256xf32> to vector<8x128xf32>
    %495 = vector.extract_strided_slice %482 {offsets = [0, 256], sizes = [8, 128], strides = [1, 1]} : vector<8x384xf32> to vector<8x128xf32>
    %496 = vector.extract_strided_slice %484 {offsets = [0, 256], sizes = [8, 128], strides = [1, 1]} : vector<8x384xf32> to vector<8x128xf32>
    %497 = vector.broadcast %330 : vector<1x128xf32> to vector<8x128xf32>
    %498 = arith.addf %496, %497 : vector<8x128xf32>
    %499 = arith.mulf %493, %498 : vector<8x128xf32>
    %500 = arith.addf %495, %499 : vector<8x128xf32>
    %501 = math.tanh %500 : vector<8x128xf32>
    %cst_166 = arith.constant 1.000000e+00 : f32
    %502 = vector.broadcast %cst_166 : f32 to vector<8x128xf32>
    %503 = arith.subf %502, %494 : vector<8x128xf32>
    %504 = arith.mulf %503, %501 : vector<8x128xf32>
    %505 = arith.mulf %494, %481 : vector<8x128xf32>
    %506 = arith.addf %504, %505 : vector<8x128xf32>
    %c56_167 = arith.constant 56 : index
    %c0_168 = arith.constant 0 : index
    %507 = vector.load %arg13[%c56_167, %c0_168] : memref<96x384xf32, #tpu.memory_space<vmem>>, vector<8x384xf32>
    %c0_169 = arith.constant 0 : index
    %c0_170 = arith.constant 0 : index
    %508 = vector.load %arg7[%c0_169, %c0_170] : memref<128x384xf32, #tpu.memory_space<vmem>>, vector<128x384xf32>
    %cst_171 = arith.constant dense<0.000000e+00> : vector<8x384xf32>
    %509 = tpu.matmul %506, %508, %cst_171 {dimension_numbers = #tpu.dot_dimension_numbers<[1], [0], [0], [1], [0, 0, 1, 1], [], []>} : vector<8x128xf32>, vector<128x384xf32>, vector<8x384xf32> -> vector<8x384xf32>
    %510 = vector.extract_strided_slice %507 {offsets = [0, 0], sizes = [8, 256], strides = [1, 1]} : vector<8x384xf32> to vector<8x256xf32>
    %511 = vector.extract_strided_slice %509 {offsets = [0, 0], sizes = [8, 256], strides = [1, 1]} : vector<8x384xf32> to vector<8x256xf32>
    %512 = arith.addf %510, %511 : vector<8x256xf32>
    %513 = arith.negf %512 : vector<8x256xf32>
    %514 = math.exp %513 : vector<8x256xf32>
    %cst_172 = arith.constant 1.000000e+00 : f32
    %515 = vector.broadcast %cst_172 : f32 to vector<8x256xf32>
    %516 = arith.addf %515, %514 : vector<8x256xf32>
    %517 = arith.divf %515, %516 : vector<8x256xf32>
    %518 = vector.extract_strided_slice %517 {offsets = [0, 0], sizes = [8, 128], strides = [1, 1]} : vector<8x256xf32> to vector<8x128xf32>
    %519 = vector.extract_strided_slice %517 {offsets = [0, 128], sizes = [8, 128], strides = [1, 1]} : vector<8x256xf32> to vector<8x128xf32>
    %520 = vector.extract_strided_slice %507 {offsets = [0, 256], sizes = [8, 128], strides = [1, 1]} : vector<8x384xf32> to vector<8x128xf32>
    %521 = vector.extract_strided_slice %509 {offsets = [0, 256], sizes = [8, 128], strides = [1, 1]} : vector<8x384xf32> to vector<8x128xf32>
    %522 = vector.broadcast %330 : vector<1x128xf32> to vector<8x128xf32>
    %523 = arith.addf %521, %522 : vector<8x128xf32>
    %524 = arith.mulf %518, %523 : vector<8x128xf32>
    %525 = arith.addf %520, %524 : vector<8x128xf32>
    %526 = math.tanh %525 : vector<8x128xf32>
    %cst_173 = arith.constant 1.000000e+00 : f32
    %527 = vector.broadcast %cst_173 : f32 to vector<8x128xf32>
    %528 = arith.subf %527, %519 : vector<8x128xf32>
    %529 = arith.mulf %528, %526 : vector<8x128xf32>
    %530 = arith.mulf %519, %506 : vector<8x128xf32>
    %531 = arith.addf %529, %530 : vector<8x128xf32>
    %c64_174 = arith.constant 64 : index
    %c0_175 = arith.constant 0 : index
    %532 = vector.load %arg13[%c64_174, %c0_175] : memref<96x384xf32, #tpu.memory_space<vmem>>, vector<8x384xf32>
    %c0_176 = arith.constant 0 : index
    %c0_177 = arith.constant 0 : index
    %533 = vector.load %arg7[%c0_176, %c0_177] : memref<128x384xf32, #tpu.memory_space<vmem>>, vector<128x384xf32>
    %cst_178 = arith.constant dense<0.000000e+00> : vector<8x384xf32>
    %534 = tpu.matmul %531, %533, %cst_178 {dimension_numbers = #tpu.dot_dimension_numbers<[1], [0], [0], [1], [0, 0, 1, 1], [], []>} : vector<8x128xf32>, vector<128x384xf32>, vector<8x384xf32> -> vector<8x384xf32>
    %535 = vector.extract_strided_slice %532 {offsets = [0, 0], sizes = [8, 256], strides = [1, 1]} : vector<8x384xf32> to vector<8x256xf32>
    %536 = vector.extract_strided_slice %534 {offsets = [0, 0], sizes = [8, 256], strides = [1, 1]} : vector<8x384xf32> to vector<8x256xf32>
    %537 = arith.addf %535, %536 : vector<8x256xf32>
    %538 = arith.negf %537 : vector<8x256xf32>
    %539 = math.exp %538 : vector<8x256xf32>
    %cst_179 = arith.constant 1.000000e+00 : f32
    %540 = vector.broadcast %cst_179 : f32 to vector<8x256xf32>
    %541 = arith.addf %540, %539 : vector<8x256xf32>
    %542 = arith.divf %540, %541 : vector<8x256xf32>
    %543 = vector.extract_strided_slice %542 {offsets = [0, 0], sizes = [8, 128], strides = [1, 1]} : vector<8x256xf32> to vector<8x128xf32>
    %544 = vector.extract_strided_slice %542 {offsets = [0, 128], sizes = [8, 128], strides = [1, 1]} : vector<8x256xf32> to vector<8x128xf32>
    %545 = vector.extract_strided_slice %532 {offsets = [0, 256], sizes = [8, 128], strides = [1, 1]} : vector<8x384xf32> to vector<8x128xf32>
    %546 = vector.extract_strided_slice %534 {offsets = [0, 256], sizes = [8, 128], strides = [1, 1]} : vector<8x384xf32> to vector<8x128xf32>
    %547 = vector.broadcast %330 : vector<1x128xf32> to vector<8x128xf32>
    %548 = arith.addf %546, %547 : vector<8x128xf32>
    %549 = arith.mulf %543, %548 : vector<8x128xf32>
    %550 = arith.addf %545, %549 : vector<8x128xf32>
    %551 = math.tanh %550 : vector<8x128xf32>
    %cst_180 = arith.constant 1.000000e+00 : f32
    %552 = vector.broadcast %cst_180 : f32 to vector<8x128xf32>
    %553 = arith.subf %552, %544 : vector<8x128xf32>
    %554 = arith.mulf %553, %551 : vector<8x128xf32>
    %555 = arith.mulf %544, %531 : vector<8x128xf32>
    %556 = arith.addf %554, %555 : vector<8x128xf32>
    %c72_181 = arith.constant 72 : index
    %c0_182 = arith.constant 0 : index
    %557 = vector.load %arg13[%c72_181, %c0_182] : memref<96x384xf32, #tpu.memory_space<vmem>>, vector<8x384xf32>
    %c0_183 = arith.constant 0 : index
    %c0_184 = arith.constant 0 : index
    %558 = vector.load %arg7[%c0_183, %c0_184] : memref<128x384xf32, #tpu.memory_space<vmem>>, vector<128x384xf32>
    %cst_185 = arith.constant dense<0.000000e+00> : vector<8x384xf32>
    %559 = tpu.matmul %556, %558, %cst_185 {dimension_numbers = #tpu.dot_dimension_numbers<[1], [0], [0], [1], [0, 0, 1, 1], [], []>} : vector<8x128xf32>, vector<128x384xf32>, vector<8x384xf32> -> vector<8x384xf32>
    %560 = vector.extract_strided_slice %557 {offsets = [0, 0], sizes = [8, 256], strides = [1, 1]} : vector<8x384xf32> to vector<8x256xf32>
    %561 = vector.extract_strided_slice %559 {offsets = [0, 0], sizes = [8, 256], strides = [1, 1]} : vector<8x384xf32> to vector<8x256xf32>
    %562 = arith.addf %560, %561 : vector<8x256xf32>
    %563 = arith.negf %562 : vector<8x256xf32>
    %564 = math.exp %563 : vector<8x256xf32>
    %cst_186 = arith.constant 1.000000e+00 : f32
    %565 = vector.broadcast %cst_186 : f32 to vector<8x256xf32>
    %566 = arith.addf %565, %564 : vector<8x256xf32>
    %567 = arith.divf %565, %566 : vector<8x256xf32>
    %568 = vector.extract_strided_slice %567 {offsets = [0, 0], sizes = [8, 128], strides = [1, 1]} : vector<8x256xf32> to vector<8x128xf32>
    %569 = vector.extract_strided_slice %567 {offsets = [0, 128], sizes = [8, 128], strides = [1, 1]} : vector<8x256xf32> to vector<8x128xf32>
    %570 = vector.extract_strided_slice %557 {offsets = [0, 256], sizes = [8, 128], strides = [1, 1]} : vector<8x384xf32> to vector<8x128xf32>
    %571 = vector.extract_strided_slice %559 {offsets = [0, 256], sizes = [8, 128], strides = [1, 1]} : vector<8x384xf32> to vector<8x128xf32>
    %572 = vector.broadcast %330 : vector<1x128xf32> to vector<8x128xf32>
    %573 = arith.addf %571, %572 : vector<8x128xf32>
    %574 = arith.mulf %568, %573 : vector<8x128xf32>
    %575 = arith.addf %570, %574 : vector<8x128xf32>
    %576 = math.tanh %575 : vector<8x128xf32>
    %cst_187 = arith.constant 1.000000e+00 : f32
    %577 = vector.broadcast %cst_187 : f32 to vector<8x128xf32>
    %578 = arith.subf %577, %569 : vector<8x128xf32>
    %579 = arith.mulf %578, %576 : vector<8x128xf32>
    %580 = arith.mulf %569, %556 : vector<8x128xf32>
    %581 = arith.addf %579, %580 : vector<8x128xf32>
    %c80_188 = arith.constant 80 : index
    %c0_189 = arith.constant 0 : index
    %582 = vector.load %arg13[%c80_188, %c0_189] : memref<96x384xf32, #tpu.memory_space<vmem>>, vector<8x384xf32>
    %c0_190 = arith.constant 0 : index
    %c0_191 = arith.constant 0 : index
    %583 = vector.load %arg7[%c0_190, %c0_191] : memref<128x384xf32, #tpu.memory_space<vmem>>, vector<128x384xf32>
    %cst_192 = arith.constant dense<0.000000e+00> : vector<8x384xf32>
    %584 = tpu.matmul %581, %583, %cst_192 {dimension_numbers = #tpu.dot_dimension_numbers<[1], [0], [0], [1], [0, 0, 1, 1], [], []>} : vector<8x128xf32>, vector<128x384xf32>, vector<8x384xf32> -> vector<8x384xf32>
    %585 = vector.extract_strided_slice %582 {offsets = [0, 0], sizes = [8, 256], strides = [1, 1]} : vector<8x384xf32> to vector<8x256xf32>
    %586 = vector.extract_strided_slice %584 {offsets = [0, 0], sizes = [8, 256], strides = [1, 1]} : vector<8x384xf32> to vector<8x256xf32>
    %587 = arith.addf %585, %586 : vector<8x256xf32>
    %588 = arith.negf %587 : vector<8x256xf32>
    %589 = math.exp %588 : vector<8x256xf32>
    %cst_193 = arith.constant 1.000000e+00 : f32
    %590 = vector.broadcast %cst_193 : f32 to vector<8x256xf32>
    %591 = arith.addf %590, %589 : vector<8x256xf32>
    %592 = arith.divf %590, %591 : vector<8x256xf32>
    %593 = vector.extract_strided_slice %592 {offsets = [0, 0], sizes = [8, 128], strides = [1, 1]} : vector<8x256xf32> to vector<8x128xf32>
    %594 = vector.extract_strided_slice %592 {offsets = [0, 128], sizes = [8, 128], strides = [1, 1]} : vector<8x256xf32> to vector<8x128xf32>
    %595 = vector.extract_strided_slice %582 {offsets = [0, 256], sizes = [8, 128], strides = [1, 1]} : vector<8x384xf32> to vector<8x128xf32>
    %596 = vector.extract_strided_slice %584 {offsets = [0, 256], sizes = [8, 128], strides = [1, 1]} : vector<8x384xf32> to vector<8x128xf32>
    %597 = vector.broadcast %330 : vector<1x128xf32> to vector<8x128xf32>
    %598 = arith.addf %596, %597 : vector<8x128xf32>
    %599 = arith.mulf %593, %598 : vector<8x128xf32>
    %600 = arith.addf %595, %599 : vector<8x128xf32>
    %601 = math.tanh %600 : vector<8x128xf32>
    %cst_194 = arith.constant 1.000000e+00 : f32
    %602 = vector.broadcast %cst_194 : f32 to vector<8x128xf32>
    %603 = arith.subf %602, %594 : vector<8x128xf32>
    %604 = arith.mulf %603, %601 : vector<8x128xf32>
    %605 = arith.mulf %594, %581 : vector<8x128xf32>
    %606 = arith.addf %604, %605 : vector<8x128xf32>
    %c88_195 = arith.constant 88 : index
    %c0_196 = arith.constant 0 : index
    %607 = vector.load %arg13[%c88_195, %c0_196] : memref<96x384xf32, #tpu.memory_space<vmem>>, vector<8x384xf32>
    %c0_197 = arith.constant 0 : index
    %c0_198 = arith.constant 0 : index
    %608 = vector.load %arg7[%c0_197, %c0_198] : memref<128x384xf32, #tpu.memory_space<vmem>>, vector<128x384xf32>
    %cst_199 = arith.constant dense<0.000000e+00> : vector<8x384xf32>
    %609 = tpu.matmul %606, %608, %cst_199 {dimension_numbers = #tpu.dot_dimension_numbers<[1], [0], [0], [1], [0, 0, 1, 1], [], []>} : vector<8x128xf32>, vector<128x384xf32>, vector<8x384xf32> -> vector<8x384xf32>
    %610 = vector.extract_strided_slice %607 {offsets = [0, 0], sizes = [8, 256], strides = [1, 1]} : vector<8x384xf32> to vector<8x256xf32>
    %611 = vector.extract_strided_slice %609 {offsets = [0, 0], sizes = [8, 256], strides = [1, 1]} : vector<8x384xf32> to vector<8x256xf32>
    %612 = arith.addf %610, %611 : vector<8x256xf32>
    %613 = arith.negf %612 : vector<8x256xf32>
    %614 = math.exp %613 : vector<8x256xf32>
    %cst_200 = arith.constant 1.000000e+00 : f32
    %615 = vector.broadcast %cst_200 : f32 to vector<8x256xf32>
    %616 = arith.addf %615, %614 : vector<8x256xf32>
    %617 = arith.divf %615, %616 : vector<8x256xf32>
    %618 = vector.extract_strided_slice %617 {offsets = [0, 0], sizes = [8, 128], strides = [1, 1]} : vector<8x256xf32> to vector<8x128xf32>
    %619 = vector.extract_strided_slice %617 {offsets = [0, 128], sizes = [8, 128], strides = [1, 1]} : vector<8x256xf32> to vector<8x128xf32>
    %620 = vector.extract_strided_slice %607 {offsets = [0, 256], sizes = [8, 128], strides = [1, 1]} : vector<8x384xf32> to vector<8x128xf32>
    %621 = vector.extract_strided_slice %609 {offsets = [0, 256], sizes = [8, 128], strides = [1, 1]} : vector<8x384xf32> to vector<8x128xf32>
    %622 = vector.broadcast %330 : vector<1x128xf32> to vector<8x128xf32>
    %623 = arith.addf %621, %622 : vector<8x128xf32>
    %624 = arith.mulf %618, %623 : vector<8x128xf32>
    %625 = arith.addf %620, %624 : vector<8x128xf32>
    %626 = math.tanh %625 : vector<8x128xf32>
    %cst_201 = arith.constant 1.000000e+00 : f32
    %627 = vector.broadcast %cst_201 : f32 to vector<8x128xf32>
    %628 = arith.subf %627, %619 : vector<8x128xf32>
    %629 = arith.mulf %628, %626 : vector<8x128xf32>
    %630 = arith.mulf %619, %606 : vector<8x128xf32>
    %631 = arith.addf %629, %630 : vector<8x128xf32>
    %c0_202 = arith.constant 0 : index
    %c0_203 = arith.constant 0 : index
    %632 = vector.load %arg10[%c0_202, %c0_203] : memref<128x256xf32, #tpu.memory_space<vmem>>, vector<128x256xf32>
    %cst_204 = arith.constant dense<0.000000e+00> : vector<8x256xf32>
    %633 = tpu.matmul %631, %632, %cst_204 {dimension_numbers = #tpu.dot_dimension_numbers<[1], [0], [0], [1], [0, 0, 1, 1], [], []>} : vector<8x128xf32>, vector<128x256xf32>, vector<8x256xf32> -> vector<8x256xf32>
    %c0_205 = arith.constant 0 : index
    %c0_206 = arith.constant 0 : index
    %634 = vector.load %arg11[%c0_205, %c0_206] : memref<1x256xf32, #tpu.memory_space<vmem>>, vector<1x256xf32>
    %635 = vector.broadcast %634 : vector<1x256xf32> to vector<8x256xf32>
    %636 = arith.addf %633, %635 : vector<8x256xf32>
    %c0_207 = arith.constant 0 : index
    %c0_208 = arith.constant 0 : index
    %637 = vector.load %arg12[%c0_207, %c0_208] : memref<8x256xf32, #tpu.memory_space<vmem>>, vector<8x256xf32>
    tpu.vector_store %arg12[%c0_207, %c0_208], %636 {strides = array<i32>} : memref<8x256xf32, #tpu.memory_space<vmem>>, vector<8x256xf32>,
    return
  }
  func.func @transform_0(%arg0: i32) -> (i32, i32) {
    %c0_i32 = arith.constant 0 : i32
    %c0_i32_0 = arith.constant 0 : i32
    %c0_i32_1 = arith.constant 0 : i32
    return %c0_i32, %c0_i32_0 : i32, i32
  }
  func.func @transform_1(%arg0: i32) -> (i32, i32) {
    %c0_i32 = arith.constant 0 : i32
    %c0_i32_0 = arith.constant 0 : i32
    %c0_i32_1 = arith.constant 0 : i32
    return %c0_i32, %c0_i32_0 : i32, i32
  }
  func.func @transform_2(%arg0: i32) -> (i32, i32) {
    %c0_i32 = arith.constant 0 : i32
    %c0_i32_0 = arith.constant 0 : i32
    %c0_i32_1 = arith.constant 0 : i32
    return %c0_i32, %c0_i32_0 : i32, i32
  }
  func.func @transform_3(%arg0: i32) -> (i32, i32) {
    %c0_i32 = arith.constant 0 : i32
    %c0_i32_0 = arith.constant 0 : i32
    %c0_i32_1 = arith.constant 0 : i32
    return %c0_i32, %c0_i32_0 : i32, i32
  }
  func.func @transform_4(%arg0: i32) -> (i32, i32) {
    %c0_i32 = arith.constant 0 : i32
    %c0_i32_0 = arith.constant 0 : i32
    %c0_i32_1 = arith.constant 0 : i32
    return %c0_i32, %c0_i32_0 : i32, i32
  }
  func.func @transform_5(%arg0: i32) -> (i32, i32) {
    %c0_i32 = arith.constant 0 : i32
    %c0_i32_0 = arith.constant 0 : i32
    %c0_i32_1 = arith.constant 0 : i32
    return %c0_i32, %c0_i32_0 : i32, i32
  }
  func.func @transform_6(%arg0: i32) -> (i32, i32) {
    %c0_i32 = arith.constant 0 : i32
    %c0_i32_0 = arith.constant 0 : i32
    %c0_i32_1 = arith.constant 0 : i32
    return %c0_i32, %c0_i32_0 : i32, i32
  }
  func.func @transform_7(%arg0: i32) -> (i32, i32) {
    %c0_i32 = arith.constant 0 : i32
    %c0_i32_0 = arith.constant 0 : i32
    %c0_i32_1 = arith.constant 0 : i32
    return %c0_i32, %c0_i32_0 : i32, i32
  }
  func.func @transform_8(%arg0: i32) -> (i32, i32) {
    %c0_i32 = arith.constant 0 : i32
    %c0_i32_0 = arith.constant 0 : i32
    %c0_i32_1 = arith.constant 0 : i32
    return %c0_i32, %c0_i32_0 : i32, i32
  }
  func.func @transform_9(%arg0: i32) -> (i32, i32) {
    %c0_i32 = arith.constant 0 : i32
    %c0_i32_0 = arith.constant 0 : i32
    %c0_i32_1 = arith.constant 0 : i32
    return %c0_i32, %c0_i32_0 : i32, i32
  }
  func.func @transform_10(%arg0: i32) -> (i32, i32) {
    %c0_i32 = arith.constant 0 : i32
    %c0_i32_0 = arith.constant 0 : i32
    %c0_i32_1 = arith.constant 0 : i32
    return %c0_i32, %c0_i32_0 : i32, i32
  }
  func.func @transform_11(%arg0: i32) -> (i32, i32) {
    %c0_i32 = arith.constant 0 : i32
    %c0_i32_0 = arith.constant 0 : i32
    %c0_i32_1 = arith.constant 0 : i32
    return %c0_i32, %c0_i32_0 : i32, i32
  }
}

</mosaic_0001>

<bundles_post_ra>
// kernel: tpu_custom_call.1
= control target key start
LH: loop header
LB: loop body
LE: loop exit
PB: predicated region body
PF: predicated region fallthrough
CT: control target
= control target key end

     0   :  { %16 = vsyncpa [#allocation5], 0  ;;  %s6795_s0 = inlined_call_operand.vmem [shape: f32[96,1], index: 0, kind: input, shape index: {}]   ;;  %s6796_s1 = inlined_call_operand.vmem [shape: f32[1,384], index: 1, kind: input, shape index: {}]   ;;  %s6797_s2 = inlined_call_operand.hbm [shape: f32[128,384], index: 2, kind: input, shape index: {}]   ;;  %s6798_s3 = inlined_call_operand.vmem [shape: f32[1,384], index: 3, kind: input, shape index: {}]   ;;  %s6799_s4 = inlined_call_operand.vmem [shape: f32[1,128], index: 4, kind: input, shape index: {}]   ;;  %s6800_s5 = inlined_call_operand.hbm [shape: f32[128,384], index: 5, kind: input, shape index: {}]   ;;  %s6801_s6 = inlined_call_operand.hbm [shape: f32[128,384], index: 6, kind: input, shape index: {}]   ;;  %s6802_s7 = inlined_call_operand.vmem [shape: f32[1,384], index: 7, kind: input, shape index: {}]   ;;  %s6803_s8 = inlined_call_operand.vmem [shape: f32[1,128], index: 8, kind: input, shape index: {}]   ;;  %s6804_s9 = inlined_call_operand.hbm [shape: f32[128,256], index: 9, kind: input, shape index: {}]   ;;  %s6805_s10 = inlined_call_operand.vmem [shape: f32[1,256], index: 10, kind: input, shape index: {}]   ;;  %s6806_s11 = inlined_call_operand.hbm [shape: f32[8,256], index: 11, kind: output, shape index: {}]  }
   0x1   :  { %17 = vsyncpa [#allocation8], 0 }
   0x2   :  { %18 = vsyncpa [#allocation11], 0 }
   0x3   :  { %19 = vsyncpa [#allocation6], 0  ;;  %s45_s19 = sshll.u32 %s6800_s5, 4  ;;  %s4500_s20 = smov [#allocation7]   ;;  %s46_s19 = int_to_ptr.hbm [resolvable:$true] %s45_s19 }
   0x4   :  { %s47_s21 = sshll.u32 %s4500_s20, 4  ;;  %s28_s24 = sshll.u32 %s6797_s2, 4  ;;  %s48_s21 = int_to_ptr.vmem [resolvable:$true] %s47_s21  ;;  %s29_s24 = int_to_ptr.hbm [resolvable:$true] %s28_s24 }
   0x5   :  { %s4501_s25 = smov 384   ;;  %s4502_s26 = smov 24  }
   0x6   :  { %53 = dma.hbm_to_vmem [thread:$0]  %s46_s19, 6144, %s48_s21, [#allocation8], %s4501_s25, %s4501_s25, %s4502_s26  }
   0x7   :  { %s4503_s27 = smov [#allocation4]   ;;  %s58_s12 = sshll.u32 %s6801_s6, 4  ;;  %s59_s12 = int_to_ptr.hbm [resolvable:$true] %s58_s12 }
   0x8   :  { %s30_s28 = sshll.u32 %s4503_s27, 4  ;;  %s75_s14 = sshll.u32 %s6804_s9, 4  ;;  %s31_s28 = int_to_ptr.vmem [resolvable:$true] %s30_s28  ;;  %s76_s14 = int_to_ptr.hbm [resolvable:$true] %s75_s14 }
   0x9   :  { %36 = dma.hbm_to_vmem [thread:$0]  %s29_s24, 6144, %s31_s28, [#allocation5], %s4501_s25, %s4501_s25, %s4502_s26  }
   0xa   :  { %s4504_s15 = smov [#allocation9]   ;;  %s4505_s2 = smov [#allocation10]  }
   0xb   :  { %s60_s16 = sshll.u32 %s4504_s15, 4  ;;  %s77_s17 = sshll.u32 %s4505_s2, 4  ;;  %s61_s16 = int_to_ptr.vmem [resolvable:$true] %s60_s16  ;;  %s78_s17 = int_to_ptr.vmem [resolvable:$true] %s77_s17 }
   0xc   :  { %66 = dma.hbm_to_vmem [thread:$0]  %s59_s12, 6144, %s61_s16, [#allocation8], %s4501_s25, %s4501_s25, %s4502_s26  }
   0xd   :  { %s4506_s18 = smov 256   ;;  %s4507_s19 = smov 16  }
   0xe   :  { %83 = dma.hbm_to_vmem [thread:$0]  %s76_s14, 4096, %s78_s17, [#allocation11], %s4506_s18, %s4506_s18, %s4507_s19  }
   0xf   :  { %4492 = dma.done.wait [#allocation5], 6144  }
  0x10   :  { %4493 = vsyncadd [#allocation5], 4294961152 }
  0x11   :  { %4494 = dma.done.wait [#allocation8], 12288  }
  0x12   :  { %4495 = vsyncadd [#allocation8], 4294955008 }
  0x13   :  { %4496 = dma.done.wait [#allocation11], 4096  }
  0x14   :  { %4497 = vsyncadd [#allocation11], 4294963200  ;;  %v4508_v0 = vmov 0   ;;  %v4583_v1 = vld [vmem:[#allocation4 + $0x168] sm:$0xff]  ;;  %v4585_v2 = vld [vmem:[#allocation4 + $0x170] sm:$0xff]  ;;  %v4509_v49 = vmov 0.0  }
  0x15   :  { %4027 = vset.pattern.permute.xlu0 %v4508_v0  ;;  %4028 = vset.pattern.permute.xlu1 %v4508_v0  ;;  %v4587_v3 = vld [vmem:[#allocation4 + $0x150] sm:$0xff]  ;;  %v4591_v4 = vld [vmem:[#allocation4 + $0x158] sm:$0xff]  ;;  %v4595_v6 = vld [vmem:[#allocation4 + $0x140] sm:$0xff]  ;;  %s4510_s13 = smov [#allocation12]   ;;  %s3956_s2 = sshll.u32 %s6806_s11, 4  ;;  %s3957_s2 = int_to_ptr.hbm [resolvable:$true] %s3956_s2 }
  0x16   :  { %4029 = vset.pattern.permute.xlu2 %v4508_v0  ;;  %350 = vmatpush.msra.mxu0 %v4583_v1  ;;  %v4593_v5 = vld [vmem:[#allocation4 + $0x138] sm:$0xff]  ;;  %v4600_v7 = vld [vmem:[#allocation4 + $0x120] sm:$0xff]  ;;  %v4602_v8 = vld [vmem:[#allocation4 + $0x128] sm:$0xff]  ;;  %s3954_s14 = sshll.u32 %s4510_s13, 4  ;;  %s3955_s14 = int_to_ptr.vmem [resolvable:$true] %s3954_s14 }
  0x17   :  { %370 = vmatpush.msra.mxu1 %v4585_v2  ;;  %513 = vmatpush.msra.mxu3 %v4583_v1  ;;  %v102_v9 = vld [vmem:[%s6795_s0] sm:$0xff]  ;;  %v4610_v10 = vld [vmem:[#allocation4 + $0x108] sm:$0xff]  ;;  %v4612_v11 = vld [vmem:[#allocation4 + $0x110] sm:$0xff] }
  0x18   :  { %351 = vmatpush.msra.mxu0 %v4587_v3  ;;  %117 = vperm.xlu0 %4027, %v102_v9   ;;  %v4617_v12 = vld [vmem:[#allocation4 + $0xf0] sm:$0xff]  ;;  %v4619_v13 = vld [vmem:[#allocation4 + $0xf8] sm:$0xff]  ;;  %v4626_v15 = vld [vmem:[#allocation4 + $0x160] sm:$0xff] }
  0x19   :  { %371 = vmatpush.msra.mxu1 %v4591_v4  ;;  %514 = vmatpush.msra.mxu3 %v4587_v3  ;;  %v4621_v14 = vld [vmem:[#allocation4 + $0x178] sm:$0xff]  ;;  %v4630_v17 = vld [vmem:[#allocation4 + $0xe0] sm:$0xff]  ;;  %v103_v18 = vld [vmem:[%s6795_s0 + $0x8] sm:$0xff] }
  0x1a   :  { %352 = vmatpush.msra.mxu0 %v4593_v5  ;;  %v4628_v16 = vld [vmem:[#allocation4 + $0xd8] sm:$0xff]  ;;  %390 = vmatpush.msra.mxu2 %v4621_v14  ;;  %v4639_v19 = vld [vmem:[#allocation4 + $0x148] sm:$0xff]  ;;  %v4641_v20 = vld [vmem:[#allocation4 + $0xc0] sm:$0xff] }
  0x1b   :  { %372 = vmatpush.msra.mxu1 %v4595_v6  ;;  %515 = vmatpush.msra.mxu3 %v4593_v5  ;;  %v4643_v21 = vld [vmem:[#allocation4 + $0xc8] sm:$0xff]  ;;  %v4649_v22 = vld [vmem:[#allocation4 + $0x130] sm:$0xff]  ;;  %v4658_v25 = vld [vmem:[#allocation4 + $0x118] sm:$0xff] }
  0x1c   :  { %353 = vmatpush.msra.mxu0 %v4600_v7  ;;  %391 = vmatpush.msra.mxu2 %v4626_v15  ;;  %v4651_v23 = vld [vmem:[#allocation4 + $0xa8] sm:$0xff]  ;;  %v4653_v24 = vld [vmem:[#allocation4 + $0xb0] sm:$0xff]  ;;  %v4662_v27 = vld [vmem:[#allocation4 + $0x98] sm:$0xff] }
  0x1d   :  { %373 = vmatpush.msra.mxu1 %v4602_v8  ;;  %516 = vmatpush.msra.mxu3 %v4600_v7  ;;  %v4660_v26 = vld [vmem:[#allocation4 + $0x90] sm:$0xff]  ;;  %v4668_v28 = vld [vmem:[#allocation4 + $0x100] sm:$0xff]  ;;  %v4670_v29 = vld [vmem:[#allocation4 + $0x78] sm:$0xff] }
  0x1e   :  { %354 = vmatpush.msra.mxu0 %v4610_v10  ;;  %392 = vmatpush.msra.mxu2 %v4639_v19  ;;  %v4672_v30 = vld [vmem:[#allocation4 + $0x80] sm:$0xff]  ;;  %v108_v31 = vld [vmem:[%s6795_s0 + $0x30] sm:$0xff]  ;;  %v4681_v32 = vld [vmem:[#allocation4 + $0xe8] sm:$0xff] }
  0x1f   :  { %374 = vmatpush.msra.mxu1 %v4612_v11  ;;  %517 = vmatpush.msra.mxu3 %v4610_v10  ;;  %v4683_v33 = vld [vmem:[#allocation4 + $0x60] sm:$0xff]  ;;  %v4685_v34 = vld [vmem:[#allocation4 + $0x68] sm:$0xff]  ;;  %v4691_v35 = vld [vmem:[#allocation4 + $0xd0] sm:$0xff] }
  0x20   :  { %355 = vmatpush.msra.mxu0 %v4617_v12  ;;  %122 = vperm.xlu0 %4027, %v103_v18   ;;  %v4693_v36 = vld [vmem:[#allocation4 + $0x48] sm:$0xff]  ;;  %v4695_v37 = vld [vmem:[#allocation4 + $0x50] sm:$0xff]  ;;  %v4700_v38 = vld [vmem:[#allocation4 + $0xb8] sm:$0xff] }
  0x21   :  { %375 = vmatpush.msra.mxu1 %v4619_v13  ;;  %518 = vmatpush.msra.mxu3 %v4617_v12  ;;  %v4702_v39 = vld [vmem:[#allocation4 + $0x30] sm:$0xff]  ;;  %v4704_v40 = vld [vmem:[#allocation4 + $0x38] sm:$0xff]  ;;  %v4710_v41 = vld [vmem:[#allocation4 + $0xa0] sm:$0xff] }
  0x22   :  { %356 = vmatpush.msra.mxu0 %v4628_v16  ;;  %393 = vmatpush.msra.mxu2 %v4649_v22  ;;  %v4712_v42 = vld [vmem:[#allocation4 + $0x18] sm:$0xff]  ;;  %v4714_v43 = vld [vmem:[#allocation4 + $0x20] sm:$0xff]  ;;  %v111_v44 = vld [vmem:[%s6795_s0 + $0x48] sm:$0xff] }
  0x23   :  { %376 = vmatpush.msra.mxu1 %v4630_v17  ;;  %519 = vmatpush.msra.mxu3 %v4628_v16  ;;  %v4723_v45 = vld [vmem:[#allocation4 + $0x88] sm:$0xff]  ;;  %v4725_v46 = vld [vmem:[#allocation4] sm:$0xff]  ;;  %v4734_v48 = vld [vmem:[#allocation4 + $0x70] sm:$0xff] }
  0x24   :  { %357 = vmatpush.msra.mxu0 %v4641_v20  ;;  %394 = vmatpush.msra.mxu2 %v4658_v25  ;;  %v4727_v47 = vld [vmem:[#allocation4 + $0x8] sm:$0xff]  ;;  %v4740_v50 = vld [vmem:[#allocation4 + $0x58] sm:$0xff]  ;;  %v4744_v51 = vld [vmem:[#allocation4 + $0x40] sm:$0xff] }
  0x25   :  { %377 = vmatpush.msra.mxu1 %v4643_v21  ;;  %520 = vmatpush.msra.mxu3 %v4641_v20  ;;  %v4750_v52 = vld [vmem:[#allocation4 + $0x28] sm:$0xff]  ;;  %v4756_v53 = vld [vmem:[#allocation4 + $0x10] sm:$0xff]  ;;  %v114_v54 = vld [vmem:[%s6796_s1] sm:$0x7] }
  0x26   :  { %358 = vmatpush.msra.mxu0 %v4651_v23  ;;  %395 = vmatpush.msra.mxu2 %v4668_v28  ;;  %v4841_v55 = vperm.slane %v114_v54, 0  ;;  %v4843_v56 = vperm.slane %v114_v54, 1  ;;  %v218_v57 = vld [vmem:[%s6798_s3] sm:$0x7] }
  0x27   :  { %378 = vmatpush.msra.mxu1 %v4653_v24  ;;  %521 = vmatpush.msra.mxu3 %v4651_v23  ;;  %v4850_v61 = vperm.slane %v218_v57, 0  ;;  %v4852_v62 = vperm.slane %v218_v57, 1 }
  0x28   :  { %359 = vmatpush.msra.mxu0 %v4660_v26  ;;  %147 = vperm.xlu0 %4027, %v108_v31  }
  0x29   :  { %379 = vmatpush.msra.mxu1 %v4662_v27  ;;  %396 = vmatpush.msra.mxu2 %v4681_v32 }
  0x2a   :  { %360 = vmatpush.msra.mxu0 %v4670_v29  ;;  %522 = vmatpush.msra.mxu3 %v4660_v26 }
  0x2b   :  { %380 = vmatpush.msra.mxu1 %v4672_v30  ;;  %397 = vmatpush.msra.mxu2 %v4691_v35 }
  0x2c   :  { %361 = vmatpush.msra.mxu0 %v4683_v33  ;;  %523 = vmatpush.msra.mxu3 %v4670_v29 }
  0x2d   :  { %381 = vmatpush.msra.mxu1 %v4685_v34  ;;  %398 = vmatpush.msra.mxu2 %v4700_v38 }
  0x2e   :  { %362 = vmatpush.msra.mxu0 %v4693_v36  ;;  %524 = vmatpush.msra.mxu3 %v4683_v33 }
  0x2f   :  { %382 = vmatpush.msra.mxu1 %v4695_v37  ;;  %399 = vmatpush.msra.mxu2 %v4710_v41 }
  0x30   :  { %363 = vmatpush.msra.mxu0 %v4702_v39  ;;  %162 = vperm.xlu0 %4027, %v111_v44  }
  0x31   :  { %383 = vmatpush.msra.mxu1 %v4704_v40  ;;  %400 = vmatpush.msra.mxu2 %v4723_v45 }
  0x32   :  { %364 = vmatpush.msra.mxu0 %v4712_v42  ;;  %525 = vmatpush.msra.mxu3 %v4693_v36 }
  0x33   :  { %384 = vmatpush.msra.mxu1 %v4714_v43  ;;  %401 = vmatpush.msra.mxu2 %v4734_v48 }
  0x34   :  { %365 = vmatpush.msra.mxu0 %v4725_v46  ;;  %526 = vmatpush.msra.mxu3 %v4702_v39 }
  0x35   :  { %385 = vmatpush.msra.mxu1 %v4727_v47  ;;  %366 = vmatmul.f32.vlgmr.msra.gmra.mxu0 %v4509_v49 }
  0x36   :  { %386 = vmatmul.f32.vlgmr.msra.gmra.mxu1 %v4509_v49  ;;  %533 = vmatpush.msrb.mxu0 %v4585_v2 }
  0x37   :  { %553 = vmatpush.msrb.mxu1 %v4621_v14  ;;  %402 = vmatpush.msra.mxu2 %v4740_v50 }
  0x38   :  { %534 = vmatpush.msrb.mxu0 %v4591_v4  ;;  %527 = vmatpush.msra.mxu3 %v4712_v42 }
  0x39   :  { %554 = vmatpush.msrb.mxu1 %v4626_v15  ;;  %403 = vmatpush.msra.mxu2 %v4744_v51 }
  0x3a   :  { %535 = vmatpush.msrb.mxu0 %v4595_v6  ;;  %528 = vmatpush.msra.mxu3 %v4725_v46 }
  0x3b   :  { %555 = vmatpush.msrb.mxu1 %v4639_v19  ;;  %404 = vmatpush.msra.mxu2 %v4750_v52 }
  0x3c   :  { %536 = vmatpush.msrb.mxu0 %v4602_v8  ;;  %693 = vmatpush.msrb.mxu3 %v4585_v2 }
  0x3d   :  { %556 = vmatpush.msrb.mxu1 %v4649_v22  ;;  %405 = vmatpush.msra.mxu2 %v4756_v53 }
  0x3e   :  { %537 = vmatpush.msrb.mxu0 %v4612_v11  ;;  %406 = vmatmul.f32.vlgmr.msra.gmra.mxu2 %v4509_v49 }
  0x3f   :  { %557 = vmatpush.msrb.mxu1 %v4658_v25  ;;  %673 = vmatpush.msrb.mxu2 %v4583_v1 }
  0x40   :  { %538 = vmatpush.msrb.mxu0 %v4619_v13  ;;  %694 = vmatpush.msrb.mxu3 %v4591_v4 }
  0x41   :  { %558 = vmatpush.msrb.mxu1 %v4668_v28  ;;  %674 = vmatpush.msrb.mxu2 %v4587_v3 }
  0x42   :  { %539 = vmatpush.msrb.mxu0 %v4630_v17  ;;  %695 = vmatpush.msrb.mxu3 %v4595_v6 }
  0x43   :  { %559 = vmatpush.msrb.mxu1 %v4681_v32  ;;  %675 = vmatpush.msrb.mxu2 %v4593_v5 }
  0x44   :  { %540 = vmatpush.msrb.mxu0 %v4643_v21  ;;  %696 = vmatpush.msrb.mxu3 %v4602_v8 }
  0x45   :  { %560 = vmatpush.msrb.mxu1 %v4691_v35  ;;  %676 = vmatpush.msrb.mxu2 %v4600_v7 }
  0x46   :  { %541 = vmatpush.msrb.mxu0 %v4653_v24  ;;  %697 = vmatpush.msrb.mxu3 %v4612_v11 }
  0x47   :  { %561 = vmatpush.msrb.mxu1 %v4700_v38  ;;  %677 = vmatpush.msrb.mxu2 %v4610_v10 }
  0x48   :  { %542 = vmatpush.msrb.mxu0 %v4662_v27  ;;  %698 = vmatpush.msrb.mxu3 %v4619_v13 }
  0x49   :  { %562 = vmatpush.msrb.mxu1 %v4710_v41  ;;  %678 = vmatpush.msrb.mxu2 %v4617_v12 }
  0x4a   :  { %543 = vmatpush.msrb.mxu0 %v4672_v30  ;;  %699 = vmatpush.msrb.mxu3 %v4630_v17  ;;  %v4856_v17 = vperm.slane %v114_v54, 2 }
  0x4b   :  { %563 = vmatpush.msrb.mxu1 %v4723_v45  ;;  %679 = vmatpush.msrb.mxu2 %v4628_v16 }
  0x4c   :  { %544 = vmatpush.msrb.mxu0 %v4685_v34  ;;  %700 = vmatpush.msrb.mxu3 %v4643_v21 }
  0x4d   :  { %564 = vmatpush.msrb.mxu1 %v4734_v48  ;;  %680 = vmatpush.msrb.mxu2 %v4641_v20  ;;  %v4861_v20 = vld [vmem:[%s6799_s4] ss:$0 sm:$0xff] }
  0x4e   :  { %545 = vmatpush.msrb.mxu0 %v4695_v37  ;;  %701 = vmatpush.msrb.mxu3 %v4653_v24 }
  0x4f   :  { %565 = vmatpush.msrb.mxu1 %v4740_v50  ;;  %681 = vmatpush.msrb.mxu2 %v4651_v23 }
  0x50   :  { %546 = vmatpush.msrb.mxu0 %v4704_v40  ;;  %702 = vmatpush.msrb.mxu3 %v4662_v27 }
  0x51   :  { %566 = vmatpush.msrb.mxu1 %v4744_v51  ;;  %682 = vmatpush.msrb.mxu2 %v4660_v26 }
  0x52   :  { %547 = vmatpush.msrb.mxu0 %v4714_v43  ;;  %703 = vmatpush.msrb.mxu3 %v4672_v30 }
  0x53   :  { %567 = vmatpush.msrb.mxu1 %v4750_v52  ;;  %683 = vmatpush.msrb.mxu2 %v4670_v29  ;;  %v4863_v29 = vperm.slane %v218_v57, 2 }
  0x54   :  { %548 = vmatpush.msrb.mxu0 %v4727_v47  ;;  %704 = vmatpush.msrb.mxu3 %v4685_v34 }
  0x55   :  { %568 = vmatpush.msrb.mxu1 %v4756_v53  ;;  %684 = vmatpush.msrb.mxu2 %v4683_v33 }
  0x56   :  { %713 = vmatpush.msra.mxu0 %v4621_v14  ;;  %705 = vmatpush.msrb.mxu3 %v4695_v37 }
  0x57   :  { %685 = vmatpush.msrb.mxu2 %v4693_v36 }
  0x58   :  { %714 = vmatpush.msra.mxu0 %v4626_v15  ;;  %706 = vmatpush.msrb.mxu3 %v4704_v40 }
  0x59   :  { %686 = vmatpush.msrb.mxu2 %v4702_v39 }
  0x5a   :  { %715 = vmatpush.msra.mxu0 %v4639_v19  ;;  %707 = vmatpush.msrb.mxu3 %v4714_v43 }
  0x5b   :  { %687 = vmatpush.msrb.mxu2 %v4712_v42 }
  0x5c   :  { %716 = vmatpush.msra.mxu0 %v4649_v22  ;;  %708 = vmatpush.msrb.mxu3 %v4727_v47 }
  0x5d   :  { %688 = vmatpush.msrb.mxu2 %v4725_v46 }
  0x5e   :  { %717 = vmatpush.msra.mxu0 %v4658_v25 }
  0x60   :  { %718 = vmatpush.msra.mxu0 %v4668_v28 }
  0x62   :  { %719 = vmatpush.msra.mxu0 %v4681_v32 }
  0x64   :  { %720 = vmatpush.msra.mxu0 %v4691_v35 }
  0x66   :  { %721 = vmatpush.msra.mxu0 %v4700_v38 }
  0x68   :  { %722 = vmatpush.msra.mxu0 %v4710_v41 }
  0x6a   :  { %723 = vmatpush.msra.mxu0 %v4723_v45 }
  0x6c   :  { %724 = vmatpush.msra.mxu0 %v4734_v48 }
  0x6e   :  { %725 = vmatpush.msra.mxu0 %v4740_v50 }
  0x70   :  { %726 = vmatpush.msra.mxu0 %v4744_v51 }
  0x72   :  { %727 = vmatpush.msra.mxu0 %v4750_v52 }
  0x74   :  { %728 = vmatpush.msra.mxu0 %v4756_v53 }
  0x8a   :  { %v118_v58 = vpop.permute.xlu0 %117 }
  0x8b   :  { %v182_v59 = vmul.f32 %v4841_v55, %v118_v58  ;;  %v183_v60 = vmul.f32 %v4843_v56, %v118_v58  ;;  %v184_v31 = vmul.f32 %v4856_v17, %v118_v58 }
  0x8d   :  { %v226_v63 = vadd.f32 %v4850_v61, %v182_v59  ;;  %v227_v0 = vadd.f32 %v4852_v62, %v183_v60  ;;  %v228_v42 = vadd.f32 %v4863_v29, %v184_v31 }
  0xb2   :  { %v367_v1 = vpop.f32.mrf.mxu0 }
  0xb3   :  { %v387_v2 = vpop.f32.mrf.mxu1  ;;  %v410_v3 = vadd.f32 %v367_v1, %v226_v63 }
  0xb4   :  { %v411_v4 = vadd.f32 %v387_v2, %v227_v0 }
  0xb5   :  { %v3968_v5 = vmul.f32 -1.442695, %v410_v3 }
  0xb6   :  { %v3969_v6 = vmul.f32 -1.442695, %v411_v4  ;;  %v109_v4 = vld [vmem:[%s6795_s0 + $0x38] sm:$0xff] }
  0xb7   :  { %4032 = vpow2.f32 %v3968_v5 }
  0xb8   :  { %4034 = vpow2.f32 %v3969_v6 }
  0xbd   :  { %v4033_v7 = vpop.eup %4032 }
  0xbe   :  { %v4035_v8 = vpop.eup %4034  ;;  %v418_v9 = vadd.f32 1.0, %v4033_v7 }
  0xbf   :  { %v419_v10 = vadd.f32 1.0, %v4035_v8 }
  0xc0   :  { %4036 = vrcp.f32 %v418_v9  ;;  %v431_v24 = vand.u32 2147483648, %v418_v9  ;;  %v429_v27 = vand.u32 2147483647, %v418_v9  ;;  %vm425_vm1 = vweird.f32 %v418_v9 }
  0xc1   :  { %4038 = vrcp.f32 %v419_v10  ;;  %v407_v23 = vpop.f32.mrf.mxu2  ;;  %v446_v43 = vand.u32 2147483648, %v419_v10  ;;  %vm440_vm5 = vweird.f32 %v419_v10  ;;  %v444_v46 = vand.u32 2147483647, %v419_v10 }
  0xc2   :  { %v453_v34 = vadd.f32 %v4861_v20, %v407_v23  ;;  %v432_v36 = vor.u32 1.1754944e-38, %v431_v24  ;;  %vm430_vm3 = vcmp.eq.f32.partialorder %v429_v27, 8.507059e+37 }
  0xc3   :  { %v447_v57 = vor.u32 1.1754944e-38, %v446_v43  ;;  %vm445_vm7 = vcmp.eq.f32.partialorder %v444_v46, 8.507059e+37 }
  0xc6   :  { %v4037_v11 = vpop.eup %4036 }
  0xc7   :  { %v4039_v12 = vpop.eup %4038  ;;  %v421_v13 = vmul.f32 %v4037_v11, %v418_v9  ;;  %vm426_vm0 = vweird.f32 %v4037_v11 }
  0xc8   :  { %v436_v16 = vmul.f32 %v4039_v12, %v419_v10  ;;  %vm427_vm2 = vmor %vm425_vm1, %vm426_vm0  ;;  %vm441_vm4 = vweird.f32 %v4039_v12 }
  0xc9   :  { %v422_v18 = vsub.f32 1.0, %v421_v13  ;;  %vm442_vm6 = vmor %vm440_vm5, %vm441_vm4  ;;  %v112_v13 = vld [vmem:[%s6795_s0 + $0x50] sm:$0xff] }
  0xca   :  { %v437_v21 = vsub.f32 1.0, %v436_v16 }
  0xcb   :  { %v423_v26 = vmul.f32 %v4037_v11, %v422_v18 }
  0xcc   :  { %v438_v30 = vmul.f32 %v4039_v12, %v437_v21 }
  0xcd   :  { %v424_v33 = vadd.f32 %v4037_v11, %v423_v26 }
  0xce   :  { %v439_v39 = vadd.f32 %v4039_v12, %v438_v30 }
  0xcf   :  { %v428_v37 = vsel %vm427_vm2, %v4037_v11, %v424_v33 }
  0xd0   :  { %v433_v40 = vsel %vm430_vm3, %v432_v36, %v428_v37  ;;  %v443_v54 = vsel %vm442_vm6, %v4039_v12, %v439_v39 }
  0xd1   :  { %v454_v44 = vmul.f32 %v453_v34, %v433_v40  ;;  %v448_v58 = vsel %vm445_vm7, %v447_v57, %v443_v54 }
  0xd2   :  { %v457_v59 = vsub.f32 1.0, %v448_v58  ;;  %v459_v0 = vmul.f32 0.0, %v448_v58  ;;  %v4914_v58 = vld [vmem:[#allocation4 + $0x168] sm:$0xff] }
  0xd3   :  { %v455_v47 = vadd.f32 %v454_v44, %v228_v42  ;;  %833 = vmatpush.msra.mxu1 %v4914_v58 }
  0xd5   :  { %4040 = vtanh.f32 %v455_v47 }
  0xdb   :  { %v4041_v60 = vpop.eup %4040 }
  0xdc   :  { %v458_v63 = vmul.f32 %v4041_v60, %v457_v59  ;;  %v4916_v59 = vld [vmem:[#allocation4 + $0x170] sm:$0xff] }
  0xdd   :  { %853 = vmatpush.msra.mxu2 %v4916_v59  ;;  %v4920_v60 = vld [vmem:[#allocation4 + $0x150] sm:$0xff] }
  0xde   :  { %v4868_v1 = vadd.f32 %v459_v0, %v458_v63  ;;  %v4922_v63 = vld [vmem:[#allocation4 + $0x158] sm:$0xff]  ;;  %834 = vmatpush.msra.mxu1 %v4920_v60 }
  0xdf   :  { %854 = vmatpush.msra.mxu2 %v4922_v63  ;;  %v4928_v0 = vld [vmem:[#allocation4 + $0x138] sm:$0xff] }
  0xe0   :  { %529 = vmatmul.f32.vlgmr.msra.gmra.mxu3 %v4868_v1  ;;  %549 = vmatmul.f32.vlgmr.msrb.gmra.mxu0 %v4868_v1 }
  0xe1   :  { %569 = vmatmul.f32.vlgmr.msrb.gmra.mxu1 %v4868_v1  ;;  %873 = vmatpush.msra.mxu3 %v4621_v14  ;;  %v123_v14 = vpop.permute.xlu0 %122 }
  0xe2   :  { %v187_v21 = vmul.f32 %v4856_v17, %v123_v14  ;;  %993 = vmatpush.msrb.mxu0 %v4914_v58  ;;  %835 = vmatpush.msra.mxu1 %v4928_v0 }
  0xe3   :  { %874 = vmatpush.msra.mxu3 %v4626_v15  ;;  %v186_v15 = vmul.f32 %v4843_v56, %v123_v14 }
  0xe4   :  { %v231_v33 = vadd.f32 %v4863_v29, %v187_v21  ;;  %994 = vmatpush.msrb.mxu0 %v4920_v60  ;;  %v5016_v21 = vld [vmem:[#allocation4 + $0x48] sm:$0xff] }
  0xe5   :  { %875 = vmatpush.msra.mxu3 %v4639_v19  ;;  %v230_v19 = vadd.f32 %v4852_v62, %v186_v15  ;;  %v4936_v15 = vld [vmem:[#allocation4 + $0x120] sm:$0xff] }
  0xe6   :  { %995 = vmatpush.msrb.mxu0 %v4928_v0  ;;  %836 = vmatpush.msra.mxu1 %v4936_v15 }
  0xe7   :  { %876 = vmatpush.msra.mxu3 %v4649_v22 }
  0xe8   :  { %996 = vmatpush.msrb.mxu0 %v4936_v15 }
  0xe9   :  { %877 = vmatpush.msra.mxu3 %v4658_v25  ;;  %v185_v25 = vmul.f32 %v4841_v55, %v123_v14  ;;  %v4930_v14 = vld [vmem:[#allocation4 + $0x140] sm:$0xff] }
  0xea   :  { %855 = vmatpush.msra.mxu2 %v4930_v14 }
  0xeb   :  { %878 = vmatpush.msra.mxu3 %v4668_v28 }
  0xed   :  { %879 = vmatpush.msra.mxu3 %v4681_v32 }
  0xef   :  { %880 = vmatpush.msra.mxu3 %v4691_v35  ;;  %v229_v35 = vadd.f32 %v4850_v61, %v185_v25  ;;  %v4946_v25 = vld [vmem:[#allocation4 + $0x110] sm:$0xff] }
  0xf1   :  { %881 = vmatpush.msra.mxu3 %v4700_v38 }
  0xf3   :  { %882 = vmatpush.msra.mxu3 %v4710_v41 }
  0xf5   :  { %883 = vmatpush.msra.mxu3 %v4723_v45 }
  0xf7   :  { %884 = vmatpush.msra.mxu3 %v4734_v48  ;;  %v104_v48 = vld [vmem:[%s6795_s0 + $0x10] sm:$0xff] }
  0xf8   :  { %127 = vperm.xlu1 %4028, %v104_v48   ;;  %v4968_v48 = vld [vmem:[#allocation4 + $0xe0] sm:$0xff] }
  0xf9   :  { %885 = vmatpush.msra.mxu3 %v4740_v50 }
  0xfb   :  { %886 = vmatpush.msra.mxu3 %v4744_v51 }
  0xfd   :  { %887 = vmatpush.msra.mxu3 %v4750_v52  ;;  %v105_v52 = vld [vmem:[%s6795_s0 + $0x18] sm:$0xff] }
  0xff   :  { %888 = vmatpush.msra.mxu3 %v4756_v53 }
 0x100   :  { %132 = vperm.xlu1 %4028, %v105_v52   ;;  %v4976_v52 = vld [vmem:[#allocation4 + $0xc0] sm:$0xff] }
 0x108   :  { %152 = vperm.xlu1 %4028, %v109_v4  }
 0x110   :  { %167 = vperm.xlu1 %4028, %v112_v13   ;;  %v5002_v13 = vld [vmem:[#allocation4 + $0x80] sm:$0xff] }
 0x15d   :  { %v550_v22 = vpop.f32.mrf.mxu0 }
 0x15e   :  { %v574_v28 = vadd.f32 %v550_v22, %v230_v19  ;;  %v570_v18 = vpop.f32.mrf.mxu1  ;;  %v4938_v19 = vld [vmem:[#allocation4 + $0x128] sm:$0xff] }
 0x15f   :  { %v613_v26 = vadd.f32 %v4861_v20, %v570_v18  ;;  %856 = vmatpush.msra.mxu2 %v4938_v19  ;;  %v4944_v22 = vld [vmem:[#allocation4 + $0x108] sm:$0xff] }
 0x160   :  { %v3971_v32 = vmul.f32 -1.442695, %v574_v28  ;;  %837 = vmatpush.msra.mxu1 %v4944_v22  ;;  %997 = vmatpush.msrb.mxu0 %v4944_v22  ;;  %v5010_v18 = vld [vmem:[#allocation4 + $0x68] sm:$0xff] }
 0x161   :  { %857 = vmatpush.msra.mxu2 %v4946_v25 }
 0x162   :  { %4042 = vpow2.f32 %v3971_v32 }
 0x163   :  { %v530_v38 = vpop.f32.mrf.mxu3 }
 0x164   :  { %v573_v41 = vadd.f32 %v530_v38, %v229_v35  ;;  %v4958_v38 = vld [vmem:[#allocation4 + $0xf0] sm:$0xff] }
 0x165   :  { %838 = vmatpush.msra.mxu1 %v4958_v38  ;;  %998 = vmatpush.msrb.mxu0 %v4958_v38 }
 0x166   :  { %v3970_v45 = vmul.f32 -1.442695, %v573_v41  ;;  %v4960_v41 = vld [vmem:[#allocation4 + $0xf8] sm:$0xff] }
 0x167   :  { %858 = vmatpush.msra.mxu2 %v4960_v41 }
 0x168   :  { %v4043_v50 = vpop.eup %4042  ;;  %4044 = vpow2.f32 %v3970_v45  ;;  %v4966_v45 = vld [vmem:[#allocation4 + $0xd8] sm:$0xff] }
 0x169   :  { %v582_v51 = vadd.f32 1.0, %v4043_v50  ;;  %839 = vmatpush.msra.mxu1 %v4966_v45  ;;  %859 = vmatpush.msra.mxu2 %v4968_v48 }
 0x16a   :  { %v4950_v28 = vpop.permute.xlu1 %127  ;;  %999 = vmatpush.msrb.mxu0 %v4966_v45 }
 0x16b   :  { %4046 = vrcp.f32 %v582_v51  ;;  %v609_v34 = vand.u32 2147483648, %v582_v51  ;;  %vm603_vm13 = vweird.f32 %v582_v51  ;;  %v607_v37 = vand.u32 2147483647, %v582_v51  ;;  %840 = vmatpush.msra.mxu1 %v4976_v52 }
 0x16c   :  { %v188_v32 = vmul.f32 %v4841_v55, %v4950_v28  ;;  %v189_v35 = vmul.f32 %v4843_v56, %v4950_v28  ;;  %1000 = vmatpush.msrb.mxu0 %v4976_v52 }
 0x16d   :  { %v610_v42 = vor.u32 1.1754944e-38, %v609_v34  ;;  %vm608_vm15 = vcmp.eq.f32.partialorder %v607_v37, 8.507059e+37  ;;  %v5042_v37 = vld [vmem:[#allocation4 + $0x8] sm:$0xff] }
 0x16e   :  { %v4045_v53 = vpop.eup %4044  ;;  %v232_v50 = vadd.f32 %v4850_v61, %v188_v32 }
 0x16f   :  { %v581_v2 = vadd.f32 1.0, %v4045_v53  ;;  %v4978_v53 = vld [vmem:[#allocation4 + $0xc8] sm:$0xff] }
 0x170   :  { %860 = vmatpush.msra.mxu2 %v4978_v53 }
 0x171   :  { %4048 = vrcp.f32 %v581_v2  ;;  %v4047_v3 = vpop.eup %4046  ;;  %v594_v10 = vand.u32 2147483648, %v581_v2  ;;  %v592_v12 = vand.u32 2147483647, %v581_v2  ;;  %vm588_vm9 = vweird.f32 %v581_v2 }
 0x172   :  { %v599_v5 = vmul.f32 %v4047_v3, %v582_v51  ;;  %vm604_vm12 = vweird.f32 %v4047_v3  ;;  %v233_v51 = vadd.f32 %v4852_v62, %v189_v35 }
 0x173   :  { %v595_v24 = vor.u32 1.1754944e-38, %v594_v10  ;;  %vm593_vm11 = vcmp.eq.f32.partialorder %v592_v12, 8.507059e+37  ;;  %vm605_vm14 = vmor %vm603_vm13, %vm604_vm12  ;;  %v5000_v12 = vld [vmem:[#allocation4 + $0x78] sm:$0xff] }
 0x174   :  { %v600_v8 = vsub.f32 1.0, %v599_v5 }
 0x176   :  { %v601_v16 = vmul.f32 %v4047_v3, %v600_v8  ;;  %v4992_v8 = vld [vmem:[#allocation4 + $0x90] sm:$0xff] }
 0x177   :  { %v4049_v6 = vpop.eup %4048 }
 0x178   :  { %v584_v7 = vmul.f32 %v4049_v6, %v581_v2  ;;  %vm589_vm8 = vweird.f32 %v4049_v6  ;;  %v602_v30 = vadd.f32 %v4047_v3, %v601_v16  ;;  %v4984_v2 = vld [vmem:[#allocation4 + $0xa8] sm:$0xff]  ;;  %v5008_v16 = vld [vmem:[#allocation4 + $0x60] sm:$0xff] }
 0x179   :  { %vm590_vm10 = vmor %vm588_vm9, %vm589_vm8  ;;  %841 = vmatpush.msra.mxu1 %v4984_v2  ;;  %1001 = vmatpush.msrb.mxu0 %v4984_v2 }
 0x17a   :  { %v585_v9 = vsub.f32 1.0, %v584_v7  ;;  %v606_v40 = vsel %vm605_vm14, %v4047_v3, %v602_v30  ;;  %v4986_v3 = vld [vmem:[#allocation4 + $0xb0] sm:$0xff]  ;;  %v5032_v30 = vld [vmem:[#allocation4 + $0x18] sm:$0xff] }
 0x17b   :  { %v611_v43 = vsel %vm608_vm15, %v610_v42, %v606_v40  ;;  %861 = vmatpush.msra.mxu2 %v4986_v3  ;;  %842 = vmatpush.msra.mxu1 %v4992_v8 }
 0x17c   :  { %v586_v11 = vmul.f32 %v4049_v6, %v585_v9  ;;  %v617_v44 = vsub.f32 1.0, %v611_v43  ;;  %v619_v47 = vmul.f32 %v611_v43, %v4868_v1  ;;  %v4994_v9 = vld [vmem:[#allocation4 + $0x98] sm:$0xff]  ;;  %1002 = vmatpush.msrb.mxu0 %v4992_v8 }
 0x17d   :  { %862 = vmatpush.msra.mxu2 %v4994_v9  ;;  %843 = vmatpush.msra.mxu1 %v5000_v12 }
 0x17e   :  { %v587_v23 = vadd.f32 %v4049_v6, %v586_v11  ;;  %1003 = vmatpush.msrb.mxu0 %v5000_v12 }
 0x17f   :  { %863 = vmatpush.msra.mxu2 %v5002_v13  ;;  %844 = vmatpush.msra.mxu1 %v5008_v16 }
 0x180   :  { %v591_v27 = vsel %vm590_vm10, %v4049_v6, %v587_v23  ;;  %v5018_v23 = vld [vmem:[#allocation4 + $0x50] sm:$0xff]  ;;  %1004 = vmatpush.msrb.mxu0 %v5008_v16 }
 0x181   :  { %v596_v31 = vsel %vm593_vm11, %v595_v24, %v591_v27  ;;  %864 = vmatpush.msra.mxu2 %v5010_v18  ;;  %845 = vmatpush.msra.mxu1 %v5016_v21  ;;  %v5024_v24 = vld [vmem:[#allocation4 + $0x30] sm:$0xff] }
 0x182   :  { %v614_v36 = vmul.f32 %v613_v26, %v596_v31  ;;  %v5026_v26 = vld [vmem:[#allocation4 + $0x38] sm:$0xff]  ;;  %1005 = vmatpush.msrb.mxu0 %v5016_v21  ;;  %v5034_v31 = vld [vmem:[#allocation4 + $0x20] sm:$0xff] }
 0x183   :  { %865 = vmatpush.msra.mxu2 %v5018_v23  ;;  %846 = vmatpush.msra.mxu1 %v5024_v24 }
 0x184   :  { %v615_v39 = vadd.f32 %v614_v36, %v231_v33  ;;  %1006 = vmatpush.msrb.mxu0 %v5024_v24  ;;  %v5040_v36 = vld [vmem:[#allocation4] sm:$0xff] }
 0x185   :  { %866 = vmatpush.msra.mxu2 %v5026_v26  ;;  %847 = vmatpush.msra.mxu1 %v5032_v30 }
 0x186   :  { %4050 = vtanh.f32 %v615_v39  ;;  %1007 = vmatpush.msrb.mxu0 %v5032_v30 }
 0x187   :  { %867 = vmatpush.msra.mxu2 %v5034_v31  ;;  %848 = vmatpush.msra.mxu1 %v5040_v36 }
 0x188   :  { %1008 = vmatpush.msrb.mxu0 %v5040_v36 }
 0x189   :  { %868 = vmatpush.msra.mxu2 %v5042_v37  ;;  %1013 = vmatpush.msrb.mxu1 %v4916_v59 }
 0x18b   :  { %1014 = vmatpush.msrb.mxu1 %v4922_v63 }
 0x18c   :  { %v4051_v46 = vpop.eup %4050 }
 0x18d   :  { %v618_v54 = vmul.f32 %v4051_v46, %v617_v44  ;;  %1015 = vmatpush.msrb.mxu1 %v4930_v14 }
 0x18f   :  { %v4909_v57 = vadd.f32 %v619_v47, %v618_v54  ;;  %1016 = vmatpush.msrb.mxu1 %v4938_v19 }
 0x191   :  { %689 = vmatmul.f32.vlgmr.msrb.gmra.mxu2 %v4909_v57  ;;  %709 = vmatmul.f32.vlgmr.msrb.gmra.mxu3 %v4909_v57 }
 0x192   :  { %729 = vmatmul.f32.vlgmr.msra.gmra.mxu0 %v4909_v57  ;;  %1153 = vmatpush.msrb.mxu3 %v4914_v58 }
 0x193   :  { %1173 = vmatpush.msra.mxu0 %v4916_v59  ;;  %1017 = vmatpush.msrb.mxu1 %v4946_v25 }
 0x194   :  { %1154 = vmatpush.msrb.mxu3 %v4920_v60 }
 0x195   :  { %1174 = vmatpush.msra.mxu0 %v4922_v63  ;;  %1018 = vmatpush.msrb.mxu1 %v4960_v41 }
 0x196   :  { %1155 = vmatpush.msrb.mxu3 %v4928_v0 }
 0x197   :  { %1175 = vmatpush.msra.mxu0 %v4930_v14  ;;  %1019 = vmatpush.msrb.mxu1 %v4968_v48 }
 0x198   :  { %1156 = vmatpush.msrb.mxu3 %v4936_v15 }
 0x199   :  { %1176 = vmatpush.msra.mxu0 %v4938_v19  ;;  %1020 = vmatpush.msrb.mxu1 %v4978_v53 }
 0x19a   :  { %1157 = vmatpush.msrb.mxu3 %v4944_v22 }
 0x19b   :  { %1177 = vmatpush.msra.mxu0 %v4946_v25  ;;  %1021 = vmatpush.msrb.mxu1 %v4986_v3 }
 0x19c   :  { %1158 = vmatpush.msrb.mxu3 %v4958_v38 }
 0x19d   :  { %1178 = vmatpush.msra.mxu0 %v4960_v41  ;;  %1022 = vmatpush.msrb.mxu1 %v4994_v9 }
 0x19e   :  { %1159 = vmatpush.msrb.mxu3 %v4966_v45 }
 0x19f   :  { %1179 = vmatpush.msra.mxu0 %v4968_v48  ;;  %1023 = vmatpush.msrb.mxu1 %v5002_v13 }
 0x1a0   :  { %1160 = vmatpush.msrb.mxu3 %v4976_v52 }
 0x1a1   :  { %1180 = vmatpush.msra.mxu0 %v4978_v53  ;;  %1024 = vmatpush.msrb.mxu1 %v5010_v18 }
 0x1a2   :  { %1161 = vmatpush.msrb.mxu3 %v4984_v2 }
 0x1a3   :  { %1181 = vmatpush.msra.mxu0 %v4986_v3  ;;  %1025 = vmatpush.msrb.mxu1 %v5018_v23 }
 0x1a4   :  { %1162 = vmatpush.msrb.mxu3 %v4992_v8 }
 0x1a5   :  { %1182 = vmatpush.msra.mxu0 %v4994_v9  ;;  %1026 = vmatpush.msrb.mxu1 %v5026_v26 }
 0x1a6   :  { %1163 = vmatpush.msrb.mxu3 %v5000_v12 }
 0x1a7   :  { %1183 = vmatpush.msra.mxu0 %v5002_v13  ;;  %1027 = vmatpush.msrb.mxu1 %v5034_v31 }
 0x1a8   :  { %1164 = vmatpush.msrb.mxu3 %v5008_v16 }
 0x1a9   :  { %1184 = vmatpush.msra.mxu0 %v5010_v18  ;;  %1028 = vmatpush.msrb.mxu1 %v5042_v37 }
 0x1aa   :  { %1165 = vmatpush.msrb.mxu3 %v5016_v21 }
 0x1ab   :  { %1185 = vmatpush.msra.mxu0 %v5018_v23 }
 0x1ac   :  { %1166 = vmatpush.msrb.mxu3 %v5024_v24 }
 0x1ad   :  { %1186 = vmatpush.msra.mxu0 %v5026_v26 }
 0x1ae   :  { %1167 = vmatpush.msrb.mxu3 %v5032_v30 }
 0x1af   :  { %1187 = vmatpush.msra.mxu0 %v5034_v31 }
 0x1b0   :  { %1168 = vmatpush.msrb.mxu3 %v5040_v36 }
 0x1b1   :  { %1188 = vmatpush.msra.mxu0 %v5042_v37 }
 0x214   :  { %v690_v4 = vpop.f32.mrf.mxu2  ;;  %v710_v5 = vpop.f32.mrf.mxu3 }
 0x215   :  { %v733_v6 = vadd.f32 %v690_v4, %v232_v50  ;;  %v734_v7 = vadd.f32 %v710_v5, %v233_v51  ;;  %v730_v50 = vpop.f32.mrf.mxu0  ;;  %v190_v4 = vmul.f32 %v4856_v17, %v4950_v28 }
 0x217   :  { %v3972_v10 = vmul.f32 -1.442695, %v733_v6  ;;  %v3973_v11 = vmul.f32 -1.442695, %v734_v7  ;;  %v773_v7 = vadd.f32 %v4861_v20, %v730_v50  ;;  %v234_v28 = vadd.f32 %v4863_v29, %v190_v4 }
 0x219   :  { %4052 = vpow2.f32 %v3972_v10 }
 0x21a   :  { %4054 = vpow2.f32 %v3973_v11 }
 0x21f   :  { %v4053_v27 = vpop.eup %4052 }
 0x220   :  { %v4055_v33 = vpop.eup %4054  ;;  %v741_v34 = vadd.f32 1.0, %v4053_v27 }
 0x221   :  { %v5044_v39 = vadd.f32 1.0, %v4055_v33 }
 0x222   :  { %4056 = vrcp.f32 %v741_v34  ;;  %v754_v47 = vand.u32 2147483648, %v741_v34  ;;  %v752_v35 = vand.u32 2147483647, %v741_v34  ;;  %vm748_vm1 = vweird.f32 %v741_v34 }
 0x223   :  { %4058 = vrcp.f32 %v5044_v39  ;;  %vm763_vm5 = vweird.f32 %v5044_v39 }
 0x224   :  { %v755_v6 = vor.u32 1.1754944e-38, %v754_v47  ;;  %vm753_vm3 = vcmp.eq.f32.partialorder %v752_v35, 8.507059e+37 }
 0x228   :  { %v4057_v40 = vpop.eup %4056 }
 0x229   :  { %v4059_v42 = vpop.eup %4058  ;;  %v744_v43 = vmul.f32 %v4057_v40, %v741_v34  ;;  %vm749_vm0 = vweird.f32 %v4057_v40  ;;  %v769_v34 = vand.u32 2147483648, %v5044_v39 }
 0x22a   :  { %v759_v44 = vmul.f32 %v4059_v42, %v5044_v39  ;;  %vm750_vm2 = vmor %vm748_vm1, %vm749_vm0  ;;  %vm764_vm4 = vweird.f32 %v4059_v42 }
 0x22b   :  { %v745_v46 = vsub.f32 1.0, %v744_v43  ;;  %v767_v43 = vand.u32 2147483647, %v5044_v39  ;;  %vm765_vm6 = vmor %vm763_vm5, %vm764_vm4 }
 0x22c   :  { %v760_v54 = vsub.f32 1.0, %v759_v44 }
 0x22d   :  { %v746_v32 = vmul.f32 %v4057_v40, %v745_v46  ;;  %v770_v46 = vor.u32 1.1754944e-38, %v769_v34  ;;  %vm768_vm7 = vcmp.eq.f32.partialorder %v767_v43, 8.507059e+37  ;;  %v5182_v43 = vld [vmem:[#allocation4 + $0x10] sm:$0xff] }
 0x22e   :  { %v761_v51 = vmul.f32 %v4059_v42, %v760_v54 }
 0x22f   :  { %v747_v5 = vadd.f32 %v4057_v40, %v746_v32 }
 0x230   :  { %v762_v27 = vadd.f32 %v4059_v42, %v761_v51  ;;  %v5162_v51 = vld [vmem:[#allocation4 + $0x88] sm:$0xff] }
 0x231   :  { %v751_v10 = vsel %vm750_vm2, %v4057_v40, %v747_v5  ;;  %v5167_v5 = vld [vmem:[#allocation4 + $0x70] sm:$0xff] }
 0x232   :  { %v756_v11 = vsel %vm753_vm3, %v755_v6, %v751_v10  ;;  %v766_v44 = vsel %vm765_vm6, %v4059_v42, %v762_v27  ;;  %v5171_v10 = vld [vmem:[#allocation4 + $0x58] sm:$0xff]  ;;  %v5175_v27 = vld [vmem:[#allocation4 + $0x40] sm:$0xff] }
 0x233   :  { %v774_v33 = vmul.f32 %v773_v7, %v756_v11  ;;  %v771_v47 = vsel %vm768_vm7, %v770_v46, %v766_v44 }
 0x234   :  { %v777_v39 = vsub.f32 1.0, %v771_v47  ;;  %v779_v32 = vmul.f32 %v771_v47, %v4909_v57 }
 0x235   :  { %v775_v40 = vadd.f32 %v774_v33, %v234_v28  ;;  %v5179_v33 = vld [vmem:[#allocation4 + $0x28] sm:$0xff] }
 0x237   :  { %4060 = vtanh.f32 %v775_v40  ;;  %v106_v40 = vld [vmem:[%s6795_s0 + $0x20] sm:$0xff] }
 0x238   :  { %137 = vperm.xlu2 %4029, %v106_v40  }
 0x23d   :  { %v4061_v42 = vpop.eup %4060 }
 0x23e   :  { %v778_v54 = vmul.f32 %v4061_v42, %v777_v39  ;;  %v107_v42 = vld [vmem:[%s6795_s0 + $0x28] sm:$0xff] }
 0x240   :  { %v5091_v35 = vadd.f32 %v779_v32, %v778_v54  ;;  %142 = vperm.xlu2 %4029, %v107_v42  }
 0x242   :  { %849 = vmatmul.f32.vlgmr.msra.gmra.mxu1 %v5091_v35  ;;  %869 = vmatmul.f32.vlgmr.msra.gmra.mxu2 %v5091_v35 }
 0x243   :  { %889 = vmatmul.f32.vlgmr.msra.gmra.mxu3 %v5091_v35 }
 0x244   :  { %1333 = vmatpush.msra.mxu3 %v4916_v59  ;;  %v5115_v59 = vld [vmem:[#allocation4 + $0x178] sm:$0xff] }
 0x245   :  { %1033 = vmatpush.msrb.mxu2 %v5115_v59  ;;  %1193 = vmatpush.msra.mxu1 %v5115_v59 }
 0x246   :  { %1334 = vmatpush.msra.mxu3 %v4922_v63  ;;  %v5119_v63 = vld [vmem:[#allocation4 + $0x160] sm:$0xff] }
 0x247   :  { %1034 = vmatpush.msrb.mxu2 %v5119_v63  ;;  %1194 = vmatpush.msra.mxu1 %v5119_v63 }
 0x248   :  { %1335 = vmatpush.msra.mxu3 %v4930_v14  ;;  %v5123_v14 = vld [vmem:[#allocation4 + $0x148] sm:$0xff] }
 0x249   :  { %1035 = vmatpush.msrb.mxu2 %v5123_v14  ;;  %1195 = vmatpush.msra.mxu1 %v5123_v14 }
 0x24a   :  { %1336 = vmatpush.msra.mxu3 %v4938_v19  ;;  %v5127_v19 = vld [vmem:[#allocation4 + $0x130] sm:$0xff] }
 0x24b   :  { %1036 = vmatpush.msrb.mxu2 %v5127_v19  ;;  %1196 = vmatpush.msra.mxu1 %v5127_v19 }
 0x24c   :  { %1337 = vmatpush.msra.mxu3 %v4946_v25  ;;  %v5131_v25 = vld [vmem:[#allocation4 + $0x118] sm:$0xff] }
 0x24d   :  { %1037 = vmatpush.msrb.mxu2 %v5131_v25  ;;  %1197 = vmatpush.msra.mxu1 %v5131_v25 }
 0x24e   :  { %1338 = vmatpush.msra.mxu3 %v4960_v41  ;;  %v5135_v41 = vld [vmem:[#allocation4 + $0x100] sm:$0xff] }
 0x24f   :  { %1038 = vmatpush.msrb.mxu2 %v5135_v41  ;;  %1198 = vmatpush.msra.mxu1 %v5135_v41 }
 0x250   :  { %1339 = vmatpush.msra.mxu3 %v4968_v48  ;;  %v5137_v48 = vpop.permute.xlu1 %132 }
 0x252   :  { %1340 = vmatpush.msra.mxu3 %v4978_v53  ;;  %v191_v53 = vmul.f32 %v4841_v55, %v5137_v48 }
 0x254   :  { %1341 = vmatpush.msra.mxu3 %v4986_v3  ;;  %v5143_v3 = vld [vmem:[#allocation4 + $0xe8] sm:$0xff] }
 0x255   :  { %1039 = vmatpush.msrb.mxu2 %v5143_v3  ;;  %1199 = vmatpush.msra.mxu1 %v5143_v3 }
 0x256   :  { %1342 = vmatpush.msra.mxu3 %v4994_v9  ;;  %v5147_v9 = vld [vmem:[#allocation4 + $0xd0] sm:$0xff] }
 0x257   :  { %1040 = vmatpush.msrb.mxu2 %v5147_v9  ;;  %1200 = vmatpush.msra.mxu1 %v5147_v9 }
 0x258   :  { %1343 = vmatpush.msra.mxu3 %v5002_v13  ;;  %v235_v13 = vadd.f32 %v4850_v61, %v191_v53  ;;  %v193_v53 = vmul.f32 %v4856_v17, %v5137_v48 }
 0x25a   :  { %1344 = vmatpush.msra.mxu3 %v5010_v18  ;;  %v5152_v18 = vld [vmem:[#allocation4 + $0xb8] sm:$0xff] }
 0x25b   :  { %1041 = vmatpush.msrb.mxu2 %v5152_v18  ;;  %1201 = vmatpush.msra.mxu1 %v5152_v18 }
 0x25c   :  { %1345 = vmatpush.msra.mxu3 %v5018_v23 }
 0x25e   :  { %1346 = vmatpush.msra.mxu3 %v5026_v26  ;;  %v192_v26 = vmul.f32 %v4843_v56, %v5137_v48  ;;  %v237_v48 = vadd.f32 %v4863_v29, %v193_v53 }
 0x260   :  { %1347 = vmatpush.msra.mxu3 %v5034_v31  ;;  %v236_v4 = vadd.f32 %v4852_v62, %v192_v26 }
 0x262   :  { %1348 = vmatpush.msra.mxu3 %v5042_v37  ;;  %v5158_v37 = vld [vmem:[#allocation4 + $0xa0] sm:$0xff] }
 0x263   :  { %1042 = vmatpush.msrb.mxu2 %v5158_v37  ;;  %1202 = vmatpush.msra.mxu1 %v5158_v37 }
 0x265   :  { %1043 = vmatpush.msrb.mxu2 %v5162_v51  ;;  %1203 = vmatpush.msra.mxu1 %v5162_v51 }
 0x267   :  { %1044 = vmatpush.msrb.mxu2 %v5167_v5  ;;  %1204 = vmatpush.msra.mxu1 %v5167_v5 }
 0x269   :  { %1045 = vmatpush.msrb.mxu2 %v5171_v10  ;;  %1205 = vmatpush.msra.mxu1 %v5171_v10 }
 0x26b   :  { %1046 = vmatpush.msrb.mxu2 %v5175_v27  ;;  %1206 = vmatpush.msra.mxu1 %v5175_v27 }
 0x26d   :  { %1047 = vmatpush.msrb.mxu2 %v5179_v33  ;;  %1207 = vmatpush.msra.mxu1 %v5179_v33 }
 0x26f   :  { %1048 = vmatpush.msrb.mxu2 %v5182_v43  ;;  %1208 = vmatpush.msra.mxu1 %v5182_v43 }
 0x271   :  { %1313 = vmatpush.msra.mxu2 %v4914_v58 }
 0x273   :  { %1314 = vmatpush.msra.mxu2 %v4920_v60 }
 0x275   :  { %1315 = vmatpush.msra.mxu2 %v4928_v0 }
 0x277   :  { %1316 = vmatpush.msra.mxu2 %v4936_v15 }
 0x279   :  { %1317 = vmatpush.msra.mxu2 %v4944_v22 }
 0x27b   :  { %1318 = vmatpush.msra.mxu2 %v4958_v38  ;;  %v110_v38 = vld [vmem:[%s6795_s0 + $0x40] sm:$0xff] }
 0x27c   :  { %157 = vperm.xlu2 %4029, %v110_v38  }
 0x27d   :  { %1319 = vmatpush.msra.mxu2 %v4966_v45 }
 0x27f   :  { %1320 = vmatpush.msra.mxu2 %v4976_v52 }
 0x281   :  { %1321 = vmatpush.msra.mxu2 %v4984_v2 }
 0x283   :  { %1322 = vmatpush.msra.mxu2 %v4992_v8 }
 0x285   :  { %1323 = vmatpush.msra.mxu2 %v5000_v12 }
 0x287   :  { %1324 = vmatpush.msra.mxu2 %v5008_v16 }
 0x289   :  { %1325 = vmatpush.msra.mxu2 %v5016_v21 }
 0x28b   :  { %1326 = vmatpush.msra.mxu2 %v5024_v24 }
 0x28d   :  { %1327 = vmatpush.msra.mxu2 %v5032_v30 }
 0x28f   :  { %1328 = vmatpush.msra.mxu2 %v5040_v36 }
 0x292   :  { %v138_v16 = vpop.permute.xlu2 %137 }
 0x293   :  { %v194_v21 = vmul.f32 %v4841_v55, %v138_v16  ;;  %v195_v24 = vmul.f32 %v4843_v56, %v138_v16 }
 0x295   :  { %v238_v30 = vadd.f32 %v4850_v61, %v194_v21  ;;  %v239_v36 = vadd.f32 %v4852_v62, %v195_v24 }
 0x2bf   :  { %v850_v23 = vpop.f32.mrf.mxu1 }
 0x2c0   :  { %v893_v31 = vadd.f32 %v850_v23, %v235_v13 }
 0x2c2   :  { %v3974_v50 = vmul.f32 -1.442695, %v893_v31 }
 0x2c4   :  { %4062 = vpow2.f32 %v3974_v50 }
 0x2c5   :  { %v870_v6 = vpop.f32.mrf.mxu2 }
 0x2c6   :  { %v894_v7 = vadd.f32 %v870_v6, %v236_v4  ;;  %v890_v13 = vpop.f32.mrf.mxu3 }
 0x2c7   :  { %v933_v50 = vadd.f32 %v4861_v20, %v890_v13 }
 0x2c8   :  { %v3975_v11 = vmul.f32 -1.442695, %v894_v7 }
 0x2ca   :  { %v4063_v28 = vpop.eup %4062  ;;  %4064 = vpow2.f32 %v3975_v11 }
 0x2cb   :  { %v901_v34 = vadd.f32 1.0, %v4063_v28 }
 0x2cd   :  { %4066 = vrcp.f32 %v901_v34  ;;  %v914_v58 = vand.u32 2147483648, %v901_v34  ;;  %v912_v60 = vand.u32 2147483647, %v901_v34  ;;  %vm908_vm9 = vweird.f32 %v901_v34 }
 0x2cf   :  { %v915_v15 = vor.u32 1.1754944e-38, %v914_v58  ;;  %vm913_vm11 = vcmp.eq.f32.partialorder %v912_v60, 8.507059e+37 }
 0x2d0   :  { %v4065_v44 = vpop.eup %4064 }
 0x2d1   :  { %v902_v46 = vadd.f32 1.0, %v4065_v44  ;;  %v113_v44 = vld [vmem:[%s6795_s0 + $0x58] sm:$0xff] }
 0x2d2   :  { %172 = vperm.xlu2 %4029, %v113_v44  }
 0x2d3   :  { %v4067_v47 = vpop.eup %4066  ;;  %4068 = vrcp.f32 %v902_v46  ;;  %v929_v7 = vand.u32 2147483648, %v902_v46  ;;  %v927_v11 = vand.u32 2147483647, %v902_v46  ;;  %vm923_vm13 = vweird.f32 %v902_v46 }
 0x2d4   :  { %v904_v39 = vmul.f32 %v4067_v47, %v901_v34  ;;  %vm909_vm8 = vweird.f32 %v4067_v47 }
 0x2d5   :  { %vm910_vm10 = vmor %vm908_vm9, %vm909_vm8  ;;  %v930_v34 = vor.u32 1.1754944e-38, %v929_v7  ;;  %vm928_vm15 = vcmp.eq.f32.partialorder %v927_v11, 8.507059e+37  ;;  %v196_v11 = vmul.f32 %v4856_v17, %v138_v16 }
 0x2d6   :  { %v905_v54 = vsub.f32 1.0, %v904_v39 }
 0x2d8   :  { %v906_v32 = vmul.f32 %v4067_v47, %v905_v54 }
 0x2d9   :  { %v4069_v0 = vpop.eup %4068 }
 0x2da   :  { %v919_v23 = vmul.f32 %v4069_v0, %v902_v46  ;;  %v907_v26 = vadd.f32 %v4067_v47, %v906_v32  ;;  %vm924_vm12 = vweird.f32 %v4069_v0 }
 0x2db   :  { %vm925_vm14 = vmor %vm923_vm13, %vm924_vm12 }
 0x2dc   :  { %v920_v22 = vsub.f32 1.0, %v919_v23  ;;  %v911_v31 = vsel %vm910_vm10, %v4067_v47, %v907_v26 }
 0x2dd   :  { %v916_v4 = vsel %vm913_vm11, %v915_v15, %v911_v31 }
 0x2de   :  { %v921_v6 = vmul.f32 %v4069_v0, %v920_v22  ;;  %v934_v45 = vmul.f32 %v933_v50, %v916_v4 }
 0x2e0   :  { %v922_v28 = vadd.f32 %v4069_v0, %v921_v6  ;;  %v935_v20 = vadd.f32 %v934_v45, %v237_v48 }
 0x2e2   :  { %v926_v40 = vsel %vm925_vm14, %v4069_v0, %v922_v28  ;;  %4070 = vtanh.f32 %v935_v20 }
 0x2e3   :  { %v931_v52 = vsel %vm928_vm15, %v930_v34, %v926_v40  ;;  %v5249_v40 = vld [vmem:[%s6799_s4] ss:$0 sm:$0xff] }
 0x2e4   :  { %v937_v2 = vsub.f32 1.0, %v931_v52  ;;  %v939_v47 = vmul.f32 %v931_v52, %v5091_v35 }
 0x2e8   :  { %v4071_v46 = vpop.eup %4070 }
 0x2e9   :  { %v938_v8 = vmul.f32 %v4071_v46, %v937_v2  ;;  %v240_v46 = vadd.f32 %v4863_v29, %v196_v11 }
 0x2eb   :  { %v5219_v12 = vadd.f32 %v939_v47, %v938_v8 }
 0x2ed   :  { %1009 = vmatmul.f32.vlgmr.msrb.gmra.mxu0 %v5219_v12  ;;  %1029 = vmatmul.f32.vlgmr.msrb.gmra.mxu1 %v5219_v12 }
 0x2ee   :  { %1049 = vmatmul.f32.vlgmr.msrb.gmra.mxu2 %v5219_v12  ;;  %1353 = vmatpush.msrb.mxu0 %v5115_v59 }
 0x2f0   :  { %1354 = vmatpush.msrb.mxu0 %v5119_v63 }
 0x2f2   :  { %1355 = vmatpush.msrb.mxu0 %v5123_v14 }
 0x2f4   :  { %1356 = vmatpush.msrb.mxu0 %v5127_v19 }
 0x2f6   :  { %1357 = vmatpush.msrb.mxu0 %v5131_v25 }
 0x2f8   :  { %1358 = vmatpush.msrb.mxu0 %v5135_v41 }
 0x2fa   :  { %1359 = vmatpush.msrb.mxu0 %v5143_v3 }
 0x2fc   :  { %1360 = vmatpush.msrb.mxu0 %v5147_v9 }
 0x2fe   :  { %1361 = vmatpush.msrb.mxu0 %v5152_v18 }
 0x300   :  { %1362 = vmatpush.msrb.mxu0 %v5158_v37 }
 0x302   :  { %1363 = vmatpush.msrb.mxu0 %v5162_v51 }
 0x304   :  { %1364 = vmatpush.msrb.mxu0 %v5167_v5 }
 0x306   :  { %1365 = vmatpush.msrb.mxu0 %v5171_v10 }
 0x308   :  { %1366 = vmatpush.msrb.mxu0 %v5175_v27 }
 0x30a   :  { %1367 = vmatpush.msrb.mxu0 %v5179_v33 }
 0x30c   :  { %1368 = vmatpush.msrb.mxu0 %v5182_v43 }
 0x36a   :  { %v1010_v39 = vpop.f32.mrf.mxu0  ;;  %v1030_v42 = vpop.f32.mrf.mxu1 }
 0x36b   :  { %v1053_v54 = vadd.f32 %v1010_v39, %v238_v30  ;;  %v1054_v58 = vadd.f32 %v1030_v42, %v239_v36 }
 0x36d   :  { %v3976_v32 = vmul.f32 -1.442695, %v1053_v54  ;;  %v3977_v60 = vmul.f32 -1.442695, %v1054_v58 }
 0x36f   :  { %4072 = vpow2.f32 %v3976_v32 }
 0x370   :  { %4074 = vpow2.f32 %v3977_v60 }
 0x371   :  { %v1050_v45 = vpop.f32.mrf.mxu2 }
 0x372   :  { %v1093_v52 = vadd.f32 %v5249_v40, %v1050_v45 }
 0x375   :  { %v4073_v0 = vpop.eup %4072 }
 0x376   :  { %v4075_v53 = vpop.eup %4074  ;;  %v1061_v13 = vadd.f32 1.0, %v4073_v0 }
 0x377   :  { %v1062_v23 = vadd.f32 1.0, %v4075_v53 }
 0x378   :  { %4076 = vrcp.f32 %v1061_v13  ;;  %v1074_v48 = vand.u32 2147483648, %v1061_v13  ;;  %v1072_v6 = vand.u32 2147483647, %v1061_v13  ;;  %vm1068_vm1 = vweird.f32 %v1061_v13 }
 0x379   :  { %4078 = vrcp.f32 %v1062_v23  ;;  %v1089_v8 = vand.u32 2147483648, %v1062_v23  ;;  %vm1083_vm5 = vweird.f32 %v1062_v23  ;;  %v1087_v16 = vand.u32 2147483647, %v1062_v23 }
 0x37a   :  { %v1075_v20 = vor.u32 1.1754944e-38, %v1074_v48  ;;  %vm1073_vm3 = vcmp.eq.f32.partialorder %v1072_v6, 8.507059e+37 }
 0x37b   :  { %v1090_v30 = vor.u32 1.1754944e-38, %v1089_v8  ;;  %vm1088_vm7 = vcmp.eq.f32.partialorder %v1087_v16, 8.507059e+37 }
 0x37e   :  { %v4077_v26 = vpop.eup %4076 }
 0x37f   :  { %v4079_v15 = vpop.eup %4078  ;;  %v1064_v22 = vmul.f32 %v4077_v26, %v1061_v13  ;;  %vm1069_vm0 = vweird.f32 %v4077_v26 }
 0x380   :  { %v1079_v31 = vmul.f32 %v4079_v15, %v1062_v23  ;;  %vm1070_vm2 = vmor %vm1068_vm1, %vm1069_vm0  ;;  %vm1084_vm4 = vweird.f32 %v4079_v15 }
 0x381   :  { %v1065_v50 = vsub.f32 1.0, %v1064_v22  ;;  %vm1085_vm6 = vmor %vm1083_vm5, %vm1084_vm4 }
 0x382   :  { %v1080_v38 = vsub.f32 1.0, %v1079_v31 }
 0x383   :  { %v1066_v4 = vmul.f32 %v4077_v26, %v1065_v50 }
 0x384   :  { %v1081_v7 = vmul.f32 %v4079_v15, %v1080_v38 }
 0x385   :  { %v1067_v28 = vadd.f32 %v4077_v26, %v1066_v4 }
 0x386   :  { %v1082_v44 = vadd.f32 %v4079_v15, %v1081_v7 }
 0x387   :  { %v1071_v34 = vsel %vm1070_vm2, %v4077_v26, %v1067_v28 }
 0x388   :  { %v1076_v2 = vsel %vm1073_vm3, %v1075_v20, %v1071_v34  ;;  %v1086_v24 = vsel %vm1085_vm6, %v4079_v15, %v1082_v44 }
 0x389   :  { %v1094_v47 = vmul.f32 %v1093_v52, %v1076_v2  ;;  %v1091_v36 = vsel %vm1088_vm7, %v1090_v30, %v1086_v24 }
 0x38a   :  { %v1097_v39 = vsub.f32 1.0, %v1091_v36  ;;  %v1099_v58 = vmul.f32 %v1091_v36, %v5219_v12  ;;  %v5288_v36 = vld [vmem:[#allocation4 + $0x168] sm:$0xff] }
 0x38b   :  { %v1095_v21 = vadd.f32 %v1094_v47, %v240_v46  ;;  %1473 = vmatpush.msrb.mxu1 %v5288_v36 }
 0x38d   :  { %4080 = vtanh.f32 %v1095_v21 }
 0x393   :  { %v4081_v42 = vpop.eup %4080 }
 0x394   :  { %v1098_v54 = vmul.f32 %v4081_v42, %v1097_v39  ;;  %v5290_v39 = vld [vmem:[#allocation4 + $0x170] sm:$0xff] }
 0x395   :  { %1493 = vmatpush.msrb.mxu2 %v5290_v39  ;;  %v5294_v42 = vld [vmem:[#allocation4 + $0x150] sm:$0xff] }
 0x396   :  { %v5254_v32 = vadd.f32 %v1099_v58, %v1098_v54  ;;  %v5296_v54 = vld [vmem:[#allocation4 + $0x158] sm:$0xff]  ;;  %1474 = vmatpush.msrb.mxu1 %v5294_v42 }
 0x397   :  { %1494 = vmatpush.msrb.mxu2 %v5296_v54  ;;  %v5302_v58 = vld [vmem:[#allocation4 + $0x138] sm:$0xff] }
 0x398   :  { %1169 = vmatmul.f32.vlgmr.msrb.gmra.mxu3 %v5254_v32  ;;  %1189 = vmatmul.f32.vlgmr.msra.gmra.mxu0 %v5254_v32 }
 0x399   :  { %1209 = vmatmul.f32.vlgmr.msra.gmra.mxu1 %v5254_v32  ;;  %1513 = vmatpush.msrb.mxu3 %v5115_v59  ;;  %v143_v59 = vpop.permute.xlu2 %142 }
 0x39a   :  { %v199_v38 = vmul.f32 %v4856_v17, %v143_v59  ;;  %1633 = vmatpush.msra.mxu0 %v5288_v36  ;;  %1475 = vmatpush.msrb.mxu1 %v5302_v58 }
 0x39b   :  { %1514 = vmatpush.msrb.mxu3 %v5119_v63  ;;  %v198_v63 = vmul.f32 %v4843_v56, %v143_v59 }
 0x39c   :  { %v243_v28 = vadd.f32 %v4863_v29, %v199_v38  ;;  %1634 = vmatpush.msra.mxu0 %v5294_v42  ;;  %v5374_v38 = vld [vmem:[#allocation4 + $0x78] sm:$0xff] }
 0x39d   :  { %1515 = vmatpush.msrb.mxu3 %v5123_v14  ;;  %v242_v14 = vadd.f32 %v4852_v62, %v198_v63  ;;  %v5310_v63 = vld [vmem:[#allocation4 + $0x120] sm:$0xff] }
 0x39e   :  { %1635 = vmatpush.msra.mxu0 %v5302_v58  ;;  %1476 = vmatpush.msrb.mxu1 %v5310_v63 }
 0x39f   :  { %1516 = vmatpush.msrb.mxu3 %v5127_v19 }
 0x3a0   :  { %1636 = vmatpush.msra.mxu0 %v5310_v63 }
 0x3a1   :  { %1517 = vmatpush.msrb.mxu3 %v5131_v25  ;;  %v197_v25 = vmul.f32 %v4841_v55, %v143_v59  ;;  %v5304_v59 = vld [vmem:[#allocation4 + $0x140] sm:$0xff] }
 0x3a2   :  { %1495 = vmatpush.msrb.mxu2 %v5304_v59 }
 0x3a3   :  { %1518 = vmatpush.msrb.mxu3 %v5135_v41 }
 0x3a5   :  { %1519 = vmatpush.msrb.mxu3 %v5143_v3 }
 0x3a7   :  { %1520 = vmatpush.msrb.mxu3 %v5147_v9  ;;  %v241_v9 = vadd.f32 %v4850_v61, %v197_v25  ;;  %v5320_v25 = vld [vmem:[#allocation4 + $0x110] sm:$0xff] }
 0x3a9   :  { %1521 = vmatpush.msrb.mxu3 %v5152_v18 }
 0x3ab   :  { %1522 = vmatpush.msrb.mxu3 %v5158_v37 }
 0x3ad   :  { %1523 = vmatpush.msrb.mxu3 %v5162_v51 }
 0x3af   :  { %1524 = vmatpush.msrb.mxu3 %v5167_v5 }
 0x3b1   :  { %1525 = vmatpush.msrb.mxu3 %v5171_v10 }
 0x3b3   :  { %1526 = vmatpush.msrb.mxu3 %v5175_v27 }
 0x3b5   :  { %1527 = vmatpush.msrb.mxu3 %v5179_v33 }
 0x3b7   :  { %1528 = vmatpush.msrb.mxu3 %v5182_v43 }
 0x415   :  { %v1190_v19 = vpop.f32.mrf.mxu0 }
 0x416   :  { %v1214_v41 = vadd.f32 %v1190_v19, %v242_v14  ;;  %v1210_v50 = vpop.f32.mrf.mxu1  ;;  %v5312_v14 = vld [vmem:[#allocation4 + $0x128] sm:$0xff] }
 0x417   :  { %v1253_v6 = vadd.f32 %v5249_v40, %v1210_v50  ;;  %1496 = vmatpush.msrb.mxu2 %v5312_v14  ;;  %v5318_v19 = vld [vmem:[#allocation4 + $0x108] sm:$0xff] }
 0x418   :  { %v3979_v3 = vmul.f32 -1.442695, %v1214_v41  ;;  %1477 = vmatpush.msrb.mxu1 %v5318_v19  ;;  %v5326_v41 = vld [vmem:[#allocation4 + $0xf0] sm:$0xff]  ;;  %1637 = vmatpush.msra.mxu0 %v5318_v19 }
 0x419   :  { %1497 = vmatpush.msrb.mxu2 %v5320_v25 }
 0x41a   :  { %4082 = vpow2.f32 %v3979_v3  ;;  %v5328_v3 = vld [vmem:[#allocation4 + $0xf8] sm:$0xff]  ;;  %1478 = vmatpush.msrb.mxu1 %v5326_v41  ;;  %1638 = vmatpush.msra.mxu0 %v5326_v41 }
 0x41b   :  { %v1170_v18 = vpop.f32.mrf.mxu3  ;;  %1498 = vmatpush.msrb.mxu2 %v5328_v3 }
 0x41c   :  { %v1213_v37 = vadd.f32 %v1170_v18, %v241_v9  ;;  %v5332_v9 = vpop.permute.xlu0 %147 }
 0x41d   :  { %v200_v18 = vmul.f32 %v4841_v55, %v5332_v9 }
 0x41e   :  { %v3978_v51 = vmul.f32 -1.442695, %v1213_v37  ;;  %v201_v37 = vmul.f32 %v4843_v56, %v5332_v9 }
 0x420   :  { %v4083_v5 = vpop.eup %4082  ;;  %4084 = vpow2.f32 %v3978_v51  ;;  %v5340_v51 = vld [vmem:[#allocation4 + $0xd8] sm:$0xff] }
 0x421   :  { %v1222_v10 = vadd.f32 1.0, %v4083_v5  ;;  %v5342_v5 = vld [vmem:[#allocation4 + $0xe0] sm:$0xff]  ;;  %1479 = vmatpush.msrb.mxu1 %v5340_v51  ;;  %1639 = vmatpush.msra.mxu0 %v5340_v51 }
 0x422   :  { %1499 = vmatpush.msrb.mxu2 %v5342_v5 }
 0x423   :  { %4086 = vrcp.f32 %v1222_v10  ;;  %v1249_v20 = vand.u32 2147483648, %v1222_v10  ;;  %vm1243_vm13 = vweird.f32 %v1222_v10  ;;  %v1247_v52 = vand.u32 2147483647, %v1222_v10 }
 0x425   :  { %v1250_v46 = vor.u32 1.1754944e-38, %v1249_v20  ;;  %vm1248_vm15 = vcmp.eq.f32.partialorder %v1247_v52, 8.507059e+37  ;;  %v5408_v52 = vld [vmem:[#allocation4 + $0x20] sm:$0xff] }
 0x426   :  { %v4085_v27 = vpop.eup %4084 }
 0x427   :  { %v1221_v33 = vadd.f32 1.0, %v4085_v27  ;;  %v5350_v27 = vld [vmem:[#allocation4 + $0xc8] sm:$0xff] }
 0x428   :  { %1500 = vmatpush.msrb.mxu2 %v5350_v27 }
 0x429   :  { %4088 = vrcp.f32 %v1221_v33  ;;  %v4087_v43 = vpop.eup %4086  ;;  %v1234_v26 = vand.u32 2147483648, %v1221_v33  ;;  %v1232_v22 = vand.u32 2147483647, %v1221_v33  ;;  %vm1228_vm9 = vweird.f32 %v1221_v33 }
 0x42a   :  { %v1239_v60 = vmul.f32 %v4087_v43, %v1222_v10  ;;  %vm1244_vm12 = vweird.f32 %v4087_v43  ;;  %v5348_v10 = vld [vmem:[#allocation4 + $0xc0] sm:$0xff] }
 0x42b   :  { %v1235_v4 = vor.u32 1.1754944e-38, %v1234_v26  ;;  %vm1233_vm11 = vcmp.eq.f32.partialorder %v1232_v22, 8.507059e+37  ;;  %vm1245_vm14 = vmor %vm1243_vm13, %vm1244_vm12  ;;  %1480 = vmatpush.msrb.mxu1 %v5348_v10  ;;  %1640 = vmatpush.msra.mxu0 %v5348_v10  ;;  %v5368_v22 = vld [vmem:[#allocation4 + $0x98] sm:$0xff] }
 0x42c   :  { %v1240_v13 = vsub.f32 1.0, %v1239_v60  ;;  %v5358_v60 = vld [vmem:[#allocation4 + $0xa8] sm:$0xff] }
 0x42d   :  { %1481 = vmatpush.msrb.mxu1 %v5358_v60  ;;  %1641 = vmatpush.msra.mxu0 %v5358_v60 }
 0x42e   :  { %v1241_v31 = vmul.f32 %v4087_v43, %v1240_v13 }
 0x42f   :  { %v4089_v0 = vpop.eup %4088 }
 0x430   :  { %v1224_v53 = vmul.f32 %v4089_v0, %v1221_v33  ;;  %vm1229_vm8 = vweird.f32 %v4089_v0  ;;  %v1242_v45 = vadd.f32 %v4087_v43, %v1241_v31  ;;  %v244_v33 = vadd.f32 %v4850_v61, %v200_v18 }
 0x431   :  { %vm1230_vm10 = vmor %vm1228_vm9, %vm1229_vm8 }
 0x432   :  { %v1225_v23 = vsub.f32 1.0, %v1224_v53  ;;  %v1246_v2 = vsel %vm1245_vm14, %v4087_v43, %v1242_v45  ;;  %v245_v43 = vadd.f32 %v4852_v62, %v201_v37  ;;  %v5392_v45 = vld [vmem:[#allocation4 + $0x50] sm:$0xff] }
 0x433   :  { %v1251_v8 = vsel %vm1248_vm15, %v1250_v46, %v1246_v2  ;;  %v5414_v46 = vld [vmem:[#allocation4] sm:$0xff] }
 0x434   :  { %v1226_v15 = vmul.f32 %v4089_v0, %v1225_v23  ;;  %v1257_v47 = vsub.f32 1.0, %v1251_v8  ;;  %v1259_v21 = vmul.f32 %v1251_v8, %v5254_v32  ;;  %v5416_v8 = vld [vmem:[#allocation4 + $0x8] sm:$0xff] }
 0x436   :  { %v1227_v48 = vadd.f32 %v4089_v0, %v1226_v15  ;;  %v5366_v15 = vld [vmem:[#allocation4 + $0x90] sm:$0xff] }
 0x437   :  { %1482 = vmatpush.msrb.mxu1 %v5366_v15  ;;  %1642 = vmatpush.msra.mxu0 %v5366_v15 }
 0x438   :  { %v1231_v7 = vsel %vm1230_vm10, %v4089_v0, %v1227_v48  ;;  %v5360_v0 = vld [vmem:[#allocation4 + $0xb0] sm:$0xff]  ;;  %v5376_v48 = vld [vmem:[#allocation4 + $0x80] sm:$0xff] }
 0x439   :  { %v1236_v11 = vsel %vm1233_vm11, %v1235_v4, %v1231_v7  ;;  %1501 = vmatpush.msrb.mxu2 %v5360_v0  ;;  %1483 = vmatpush.msrb.mxu1 %v5374_v38  ;;  %v5382_v4 = vld [vmem:[#allocation4 + $0x60] sm:$0xff]  ;;  %v5390_v7 = vld [vmem:[#allocation4 + $0x48] sm:$0xff] }
 0x43a   :  { %v1254_v34 = vmul.f32 %v1253_v6, %v1236_v11  ;;  %v5384_v6 = vld [vmem:[#allocation4 + $0x68] sm:$0xff]  ;;  %1643 = vmatpush.msra.mxu0 %v5374_v38  ;;  %v5398_v11 = vld [vmem:[#allocation4 + $0x30] sm:$0xff] }
 0x43b   :  { %1502 = vmatpush.msrb.mxu2 %v5368_v22  ;;  %1484 = vmatpush.msrb.mxu1 %v5382_v4 }
 0x43c   :  { %v1255_v44 = vadd.f32 %v1254_v34, %v243_v28  ;;  %1644 = vmatpush.msra.mxu0 %v5382_v4  ;;  %v5400_v28 = vld [vmem:[#allocation4 + $0x38] sm:$0xff] }
 0x43d   :  { %1503 = vmatpush.msrb.mxu2 %v5376_v48  ;;  %1485 = vmatpush.msrb.mxu1 %v5390_v7  ;;  %v5406_v34 = vld [vmem:[#allocation4 + $0x18] sm:$0xff] }
 0x43e   :  { %4090 = vtanh.f32 %v1255_v44  ;;  %1645 = vmatpush.msra.mxu0 %v5390_v7 }
 0x43f   :  { %1504 = vmatpush.msrb.mxu2 %v5384_v6  ;;  %1486 = vmatpush.msrb.mxu1 %v5398_v11 }
 0x440   :  { %1646 = vmatpush.msra.mxu0 %v5398_v11 }
 0x441   :  { %1505 = vmatpush.msrb.mxu2 %v5392_v45  ;;  %1487 = vmatpush.msrb.mxu1 %v5406_v34 }
 0x442   :  { %1647 = vmatpush.msra.mxu0 %v5406_v34 }
 0x443   :  { %1506 = vmatpush.msrb.mxu2 %v5400_v28  ;;  %1488 = vmatpush.msrb.mxu1 %v5414_v46 }
 0x444   :  { %v4091_v16 = vpop.eup %4090  ;;  %1648 = vmatpush.msra.mxu0 %v5414_v46 }
 0x445   :  { %v1258_v24 = vmul.f32 %v4091_v16, %v1257_v47  ;;  %1507 = vmatpush.msrb.mxu2 %v5408_v52  ;;  %1653 = vmatpush.msra.mxu1 %v5290_v39 }
 0x447   :  { %v5283_v30 = vadd.f32 %v1259_v21, %v1258_v24  ;;  %1508 = vmatpush.msrb.mxu2 %v5416_v8  ;;  %1654 = vmatpush.msra.mxu1 %v5296_v54 }
 0x449   :  { %1329 = vmatmul.f32.vlgmr.msra.gmra.mxu2 %v5283_v30  ;;  %1349 = vmatmul.f32.vlgmr.msra.gmra.mxu3 %v5283_v30 }
 0x44a   :  { %1369 = vmatmul.f32.vlgmr.msrb.gmra.mxu0 %v5283_v30  ;;  %1793 = vmatpush.msra.mxu3 %v5288_v36 }
 0x44b   :  { %1813 = vmatpush.msrb.mxu0 %v5290_v39  ;;  %1655 = vmatpush.msra.mxu1 %v5304_v59 }
 0x44c   :  { %1794 = vmatpush.msra.mxu3 %v5294_v42 }
 0x44d   :  { %1814 = vmatpush.msrb.mxu0 %v5296_v54  ;;  %1656 = vmatpush.msra.mxu1 %v5312_v14 }
 0x44e   :  { %1795 = vmatpush.msra.mxu3 %v5302_v58 }
 0x44f   :  { %1815 = vmatpush.msrb.mxu0 %v5304_v59  ;;  %1657 = vmatpush.msra.mxu1 %v5320_v25 }
 0x450   :  { %1796 = vmatpush.msra.mxu3 %v5310_v63 }
 0x451   :  { %1816 = vmatpush.msrb.mxu0 %v5312_v14  ;;  %1658 = vmatpush.msra.mxu1 %v5328_v3 }
 0x452   :  { %1797 = vmatpush.msra.mxu3 %v5318_v19 }
 0x453   :  { %1817 = vmatpush.msrb.mxu0 %v5320_v25  ;;  %1659 = vmatpush.msra.mxu1 %v5342_v5 }
 0x454   :  { %1798 = vmatpush.msra.mxu3 %v5326_v41 }
 0x455   :  { %1818 = vmatpush.msrb.mxu0 %v5328_v3  ;;  %1660 = vmatpush.msra.mxu1 %v5350_v27 }
 0x456   :  { %1799 = vmatpush.msra.mxu3 %v5340_v51 }
 0x457   :  { %1819 = vmatpush.msrb.mxu0 %v5342_v5  ;;  %1661 = vmatpush.msra.mxu1 %v5360_v0 }
 0x458   :  { %1800 = vmatpush.msra.mxu3 %v5348_v10 }
 0x459   :  { %1820 = vmatpush.msrb.mxu0 %v5350_v27  ;;  %1662 = vmatpush.msra.mxu1 %v5368_v22 }
 0x45a   :  { %1801 = vmatpush.msra.mxu3 %v5358_v60 }
 0x45b   :  { %1821 = vmatpush.msrb.mxu0 %v5360_v0  ;;  %1663 = vmatpush.msra.mxu1 %v5376_v48 }
 0x45c   :  { %1802 = vmatpush.msra.mxu3 %v5366_v15 }
 0x45d   :  { %1822 = vmatpush.msrb.mxu0 %v5368_v22  ;;  %1664 = vmatpush.msra.mxu1 %v5384_v6 }
 0x45e   :  { %1803 = vmatpush.msra.mxu3 %v5374_v38 }
 0x45f   :  { %1823 = vmatpush.msrb.mxu0 %v5376_v48  ;;  %1665 = vmatpush.msra.mxu1 %v5392_v45 }
 0x460   :  { %1804 = vmatpush.msra.mxu3 %v5382_v4 }
 0x461   :  { %1824 = vmatpush.msrb.mxu0 %v5384_v6  ;;  %1666 = vmatpush.msra.mxu1 %v5400_v28 }
 0x462   :  { %1805 = vmatpush.msra.mxu3 %v5390_v7 }
 0x463   :  { %1825 = vmatpush.msrb.mxu0 %v5392_v45  ;;  %1667 = vmatpush.msra.mxu1 %v5408_v52 }
 0x464   :  { %1806 = vmatpush.msra.mxu3 %v5398_v11 }
 0x465   :  { %1826 = vmatpush.msrb.mxu0 %v5400_v28  ;;  %1668 = vmatpush.msra.mxu1 %v5416_v8 }
 0x466   :  { %1807 = vmatpush.msra.mxu3 %v5406_v34 }
 0x467   :  { %1827 = vmatpush.msrb.mxu0 %v5408_v52 }
 0x468   :  { %1808 = vmatpush.msra.mxu3 %v5414_v46 }
 0x469   :  { %1828 = vmatpush.msrb.mxu0 %v5416_v8 }
 0x4cc   :  { %v1330_v53 = vpop.f32.mrf.mxu2  ;;  %v1350_v13 = vpop.f32.mrf.mxu3 }
 0x4cd   :  { %v1373_v23 = vadd.f32 %v1330_v53, %v244_v33  ;;  %v1374_v26 = vadd.f32 %v1350_v13, %v245_v43 }
 0x4cf   :  { %v3980_v31 = vmul.f32 -1.442695, %v1373_v23  ;;  %v3981_v50 = vmul.f32 -1.442695, %v1374_v26  ;;  %v1370_v23 = vpop.f32.mrf.mxu0 }
 0x4d1   :  { %4092 = vpow2.f32 %v3980_v31  ;;  %v202_v31 = vmul.f32 %v4856_v17, %v5332_v9 }
 0x4d2   :  { %4094 = vpow2.f32 %v3981_v50 }
 0x4d3   :  { %v246_v9 = vadd.f32 %v4863_v29, %v202_v31 }
 0x4d7   :  { %v4093_v20 = vpop.eup %4092 }
 0x4d8   :  { %v4095_v44 = vpop.eup %4094  ;;  %v1381_v2 = vadd.f32 1.0, %v4093_v20 }
 0x4d9   :  { %v5418_v47 = vadd.f32 1.0, %v4095_v44  ;;  %v1413_v44 = vadd.f32 %v5249_v40, %v1370_v23 }
 0x4da   :  { %4096 = vrcp.f32 %v1381_v2  ;;  %v1394_v33 = vand.u32 2147483648, %v1381_v2  ;;  %v1392_v13 = vand.u32 2147483647, %v1381_v2  ;;  %vm1388_vm1 = vweird.f32 %v1381_v2 }
 0x4db   :  { %4098 = vrcp.f32 %v5418_v47  ;;  %vm1403_vm5 = vweird.f32 %v5418_v47 }
 0x4dc   :  { %v1395_v20 = vor.u32 1.1754944e-38, %v1394_v33  ;;  %vm1393_vm3 = vcmp.eq.f32.partialorder %v1392_v13, 8.507059e+37  ;;  %v1407_v33 = vand.u32 2147483647, %v5418_v47 }
 0x4de   :  { %vm1408_vm7 = vcmp.eq.f32.partialorder %v1407_v33, 8.507059e+37  ;;  %v5549_v33 = vld [vmem:[#allocation4 + $0x40] sm:$0xff] }
 0x4e0   :  { %v4097_v16 = vpop.eup %4096 }
 0x4e1   :  { %v4099_v21 = vpop.eup %4098  ;;  %v1384_v24 = vmul.f32 %v4097_v16, %v1381_v2  ;;  %vm1389_vm0 = vweird.f32 %v4097_v16 }
 0x4e2   :  { %v1399_v18 = vmul.f32 %v4099_v21, %v5418_v47  ;;  %vm1390_vm2 = vmor %vm1388_vm1, %vm1389_vm0  ;;  %vm1404_vm4 = vweird.f32 %v4099_v21 }
 0x4e3   :  { %v1385_v37 = vsub.f32 1.0, %v1384_v24  ;;  %vm1405_vm6 = vmor %vm1403_vm5, %vm1404_vm4 }
 0x4e4   :  { %v1400_v43 = vsub.f32 1.0, %v1399_v18 }
 0x4e5   :  { %v1386_v53 = vmul.f32 %v4097_v16, %v1385_v37 }
 0x4e6   :  { %v1401_v26 = vmul.f32 %v4099_v21, %v1400_v43  ;;  %v1409_v43 = vand.u32 2147483648, %v5418_v47 }
 0x4e7   :  { %v1387_v50 = vadd.f32 %v4097_v16, %v1386_v53 }
 0x4e8   :  { %v1402_v37 = vadd.f32 %v4099_v21, %v1401_v26  ;;  %v1410_v13 = vor.u32 1.1754944e-38, %v1409_v43 }
 0x4e9   :  { %v1391_v24 = vsel %vm1390_vm2, %v4097_v16, %v1387_v50 }
 0x4ea   :  { %v1396_v18 = vsel %vm1393_vm3, %v1395_v20, %v1391_v24  ;;  %v1406_v53 = vsel %vm1405_vm6, %v4099_v21, %v1402_v37 }
 0x4eb   :  { %v1414_v2 = vmul.f32 %v1413_v44, %v1396_v18  ;;  %v1411_v23 = vsel %vm1408_vm7, %v1410_v13, %v1406_v53  ;;  %v5536_v44 = vld [vmem:[#allocation4 + $0x88] sm:$0xff]  ;;  %v5541_v18 = vld [vmem:[#allocation4 + $0x70] sm:$0xff] }
 0x4ec   :  { %v1417_v47 = vsub.f32 1.0, %v1411_v23  ;;  %v1419_v31 = vmul.f32 %v1411_v23, %v5283_v30  ;;  %v5553_v53 = vld [vmem:[#allocation4 + $0x28] sm:$0xff]  ;;  %v5556_v23 = vld [vmem:[#allocation4 + $0x10] sm:$0xff] }
 0x4ed   :  { %v1415_v16 = vadd.f32 %v1414_v2, %v246_v9  ;;  %v5545_v2 = vld [vmem:[#allocation4 + $0x58] sm:$0xff] }
 0x4ef   :  { %4100 = vtanh.f32 %v1415_v16 }
 0x4f5   :  { %v4101_v21 = vpop.eup %4100 }
 0x4f6   :  { %v1418_v26 = vmul.f32 %v4101_v21, %v1417_v47 }
 0x4f8   :  { %v5465_v50 = vadd.f32 %v1419_v31, %v1418_v26 }
 0x4fa   :  { %1489 = vmatmul.f32.vlgmr.msrb.gmra.mxu1 %v5465_v50  ;;  %1509 = vmatmul.f32.vlgmr.msrb.gmra.mxu2 %v5465_v50 }
 0x4fb   :  { %1529 = vmatmul.f32.vlgmr.msrb.gmra.mxu3 %v5465_v50 }
 0x4fc   :  { %1973 = vmatpush.msrb.mxu3 %v5290_v39  ;;  %v5489_v39 = vld [vmem:[#allocation4 + $0x178] sm:$0xff] }
 0x4fd   :  { %1673 = vmatpush.msra.mxu2 %v5489_v39  ;;  %1833 = vmatpush.msrb.mxu1 %v5489_v39 }
 0x4fe   :  { %1974 = vmatpush.msrb.mxu3 %v5296_v54  ;;  %v5493_v54 = vld [vmem:[#allocation4 + $0x160] sm:$0xff] }
 0x4ff   :  { %1674 = vmatpush.msra.mxu2 %v5493_v54  ;;  %1834 = vmatpush.msrb.mxu1 %v5493_v54 }
 0x500   :  { %1975 = vmatpush.msrb.mxu3 %v5304_v59  ;;  %v5497_v59 = vld [vmem:[#allocation4 + $0x148] sm:$0xff] }
 0x501   :  { %1675 = vmatpush.msra.mxu2 %v5497_v59  ;;  %1835 = vmatpush.msrb.mxu1 %v5497_v59 }
 0x502   :  { %1976 = vmatpush.msrb.mxu3 %v5312_v14  ;;  %v5501_v14 = vld [vmem:[#allocation4 + $0x130] sm:$0xff] }
 0x503   :  { %1676 = vmatpush.msra.mxu2 %v5501_v14  ;;  %1836 = vmatpush.msrb.mxu1 %v5501_v14 }
 0x504   :  { %1977 = vmatpush.msrb.mxu3 %v5320_v25  ;;  %v5505_v25 = vld [vmem:[#allocation4 + $0x118] sm:$0xff] }
 0x505   :  { %1677 = vmatpush.msra.mxu2 %v5505_v25  ;;  %1837 = vmatpush.msrb.mxu1 %v5505_v25 }
 0x506   :  { %1978 = vmatpush.msrb.mxu3 %v5328_v3  ;;  %v5509_v3 = vld [vmem:[#allocation4 + $0x100] sm:$0xff] }
 0x507   :  { %1678 = vmatpush.msra.mxu2 %v5509_v3  ;;  %1838 = vmatpush.msrb.mxu1 %v5509_v3 }
 0x508   :  { %1979 = vmatpush.msrb.mxu3 %v5342_v5  ;;  %v5511_v5 = vpop.permute.xlu1 %152 }
 0x50a   :  { %1980 = vmatpush.msrb.mxu3 %v5350_v27  ;;  %v203_v27 = vmul.f32 %v4841_v55, %v5511_v5 }
 0x50c   :  { %1981 = vmatpush.msrb.mxu3 %v5360_v0  ;;  %v5517_v0 = vld [vmem:[#allocation4 + $0xe8] sm:$0xff] }
 0x50d   :  { %1679 = vmatpush.msra.mxu2 %v5517_v0  ;;  %1839 = vmatpush.msrb.mxu1 %v5517_v0 }
 0x50e   :  { %1982 = vmatpush.msrb.mxu3 %v5368_v22  ;;  %v5521_v22 = vld [vmem:[#allocation4 + $0xd0] sm:$0xff] }
 0x50f   :  { %1680 = vmatpush.msra.mxu2 %v5521_v22  ;;  %1840 = vmatpush.msrb.mxu1 %v5521_v22 }
 0x510   :  { %1983 = vmatpush.msrb.mxu3 %v5376_v48  ;;  %v247_v48 = vadd.f32 %v4850_v61, %v203_v27 }
 0x512   :  { %1984 = vmatpush.msrb.mxu3 %v5384_v6  ;;  %v5526_v6 = vld [vmem:[#allocation4 + $0xb8] sm:$0xff] }
 0x513   :  { %1681 = vmatpush.msra.mxu2 %v5526_v6  ;;  %1841 = vmatpush.msrb.mxu1 %v5526_v6 }
 0x514   :  { %1985 = vmatpush.msrb.mxu3 %v5392_v45 }
 0x516   :  { %1986 = vmatpush.msrb.mxu3 %v5400_v28  ;;  %v204_v28 = vmul.f32 %v4843_v56, %v5511_v5 }
 0x518   :  { %1987 = vmatpush.msrb.mxu3 %v5408_v52  ;;  %v248_v24 = vadd.f32 %v4852_v62, %v204_v28 }
 0x51a   :  { %1988 = vmatpush.msrb.mxu3 %v5416_v8  ;;  %v5532_v8 = vld [vmem:[#allocation4 + $0xa0] sm:$0xff] }
 0x51b   :  { %1682 = vmatpush.msra.mxu2 %v5532_v8  ;;  %1842 = vmatpush.msrb.mxu1 %v5532_v8 }
 0x51d   :  { %1683 = vmatpush.msra.mxu2 %v5536_v44  ;;  %1843 = vmatpush.msrb.mxu1 %v5536_v44 }
 0x51f   :  { %1684 = vmatpush.msra.mxu2 %v5541_v18  ;;  %1844 = vmatpush.msrb.mxu1 %v5541_v18 }
 0x521   :  { %1685 = vmatpush.msra.mxu2 %v5545_v2  ;;  %1845 = vmatpush.msrb.mxu1 %v5545_v2 }
 0x523   :  { %1686 = vmatpush.msra.mxu2 %v5549_v33  ;;  %1846 = vmatpush.msrb.mxu1 %v5549_v33 }
 0x525   :  { %1687 = vmatpush.msra.mxu2 %v5553_v53  ;;  %1847 = vmatpush.msrb.mxu1 %v5553_v53 }
 0x527   :  { %1688 = vmatpush.msra.mxu2 %v5556_v23  ;;  %1848 = vmatpush.msrb.mxu1 %v5556_v23 }
 0x529   :  { %1953 = vmatpush.msrb.mxu2 %v5288_v36 }
 0x52b   :  { %1954 = vmatpush.msrb.mxu2 %v5294_v42  ;;  %v205_v42 = vmul.f32 %v4856_v17, %v5511_v5 }
 0x52d   :  { %1955 = vmatpush.msrb.mxu2 %v5302_v58 }
 0x52f   :  { %1956 = vmatpush.msrb.mxu2 %v5310_v63 }
 0x531   :  { %1957 = vmatpush.msrb.mxu2 %v5318_v19 }
 0x533   :  { %1958 = vmatpush.msrb.mxu2 %v5326_v41  ;;  %v249_v41 = vadd.f32 %v4863_v29, %v205_v42 }
 0x535   :  { %1959 = vmatpush.msrb.mxu2 %v5340_v51 }
 0x537   :  { %1960 = vmatpush.msrb.mxu2 %v5348_v10 }
 0x539   :  { %1961 = vmatpush.msrb.mxu2 %v5358_v60 }
 0x53b   :  { %1962 = vmatpush.msrb.mxu2 %v5366_v15 }
 0x53d   :  { %1963 = vmatpush.msrb.mxu2 %v5374_v38  ;;  %v158_v38 = vpop.permute.xlu2 %157 }
 0x53f   :  { %1964 = vmatpush.msrb.mxu2 %v5382_v4  ;;  %v206_v4 = vmul.f32 %v4841_v55, %v158_v38 }
 0x541   :  { %1965 = vmatpush.msrb.mxu2 %v5390_v7  ;;  %v207_v7 = vmul.f32 %v4843_v56, %v158_v38 }
 0x543   :  { %1966 = vmatpush.msrb.mxu2 %v5398_v11  ;;  %v250_v11 = vadd.f32 %v4850_v61, %v206_v4 }
 0x545   :  { %1967 = vmatpush.msrb.mxu2 %v5406_v34  ;;  %v251_v34 = vadd.f32 %v4852_v62, %v207_v7 }
 0x547   :  { %1968 = vmatpush.msrb.mxu2 %v5414_v46 }
 0x577   :  { %v1490_v45 = vpop.f32.mrf.mxu1 }
 0x578   :  { %v1533_v52 = vadd.f32 %v1490_v45, %v247_v48 }
 0x57a   :  { %v3982_v20 = vmul.f32 -1.442695, %v1533_v52 }
 0x57c   :  { %4102 = vpow2.f32 %v3982_v20 }
 0x57d   :  { %v1510_v37 = vpop.f32.mrf.mxu2 }
 0x57e   :  { %v1534_v9 = vadd.f32 %v1510_v37, %v248_v24  ;;  %v1530_v52 = vpop.f32.mrf.mxu3 }
 0x57f   :  { %v1573_v37 = vadd.f32 %v5249_v40, %v1530_v52 }
 0x580   :  { %v3983_v43 = vmul.f32 -1.442695, %v1534_v9 }
 0x582   :  { %v4103_v16 = vpop.eup %4102  ;;  %4104 = vpow2.f32 %v3983_v43 }
 0x583   :  { %v1541_v13 = vadd.f32 1.0, %v4103_v16 }
 0x585   :  { %4106 = vrcp.f32 %v1541_v13  ;;  %v1554_v48 = vand.u32 2147483648, %v1541_v13  ;;  %v1552_v28 = vand.u32 2147483647, %v1541_v13  ;;  %vm1548_vm9 = vweird.f32 %v1541_v13 }
 0x587   :  { %v1555_v63 = vor.u32 1.1754944e-38, %v1554_v48  ;;  %vm1553_vm11 = vcmp.eq.f32.partialorder %v1552_v28, 8.507059e+37 }
 0x588   :  { %v4105_v47 = vpop.eup %4104 }
 0x589   :  { %v1542_v21 = vadd.f32 1.0, %v4105_v47 }
 0x58b   :  { %v4107_v26 = vpop.eup %4106  ;;  %4108 = vrcp.f32 %v1542_v21  ;;  %v1569_v5 = vand.u32 2147483648, %v1542_v21  ;;  %vm1563_vm13 = vweird.f32 %v1542_v21 }
 0x58c   :  { %v1544_v31 = vmul.f32 %v4107_v26, %v1541_v13  ;;  %vm1549_vm8 = vweird.f32 %v4107_v26  ;;  %v1567_v13 = vand.u32 2147483647, %v1542_v21 }
 0x58d   :  { %vm1550_vm10 = vmor %vm1548_vm9, %vm1549_vm8 }
 0x58e   :  { %v1545_v27 = vsub.f32 1.0, %v1544_v31  ;;  %vm1568_vm15 = vcmp.eq.f32.partialorder %v1567_v13, 8.507059e+37 }
 0x590   :  { %v1546_v45 = vmul.f32 %v4107_v26, %v1545_v27 }
 0x591   :  { %v4109_v36 = vpop.eup %4108 }
 0x592   :  { %v1559_v58 = vmul.f32 %v4109_v36, %v1542_v21  ;;  %v1547_v20 = vadd.f32 %v4107_v26, %v1546_v45  ;;  %vm1564_vm12 = vweird.f32 %v4109_v36 }
 0x593   :  { %vm1565_vm14 = vmor %vm1563_vm13, %vm1564_vm12 }
 0x594   :  { %v1560_v24 = vsub.f32 1.0, %v1559_v58  ;;  %v1551_v19 = vsel %vm1550_vm10, %v4107_v26, %v1547_v20  ;;  %v1570_v26 = vor.u32 1.1754944e-38, %v1569_v5 }
 0x595   :  { %v1556_v9 = vsel %vm1553_vm11, %v1555_v63, %v1551_v19 }
 0x596   :  { %v1561_v43 = vmul.f32 %v4109_v36, %v1560_v24  ;;  %v1574_v16 = vmul.f32 %v1573_v37, %v1556_v9 }
 0x598   :  { %v1562_v51 = vadd.f32 %v4109_v36, %v1561_v43  ;;  %v1575_v47 = vadd.f32 %v1574_v16, %v249_v41 }
 0x59a   :  { %v1566_v31 = vsel %vm1565_vm14, %v4109_v36, %v1562_v51  ;;  %4110 = vtanh.f32 %v1575_v47 }
 0x59b   :  { %v1571_v10 = vsel %vm1568_vm15, %v1570_v26, %v1566_v31  ;;  %v208_v31 = vmul.f32 %v4856_v17, %v158_v38 }
 0x59c   :  { %v1577_v27 = vsub.f32 1.0, %v1571_v10  ;;  %v1579_v48 = vmul.f32 %v1571_v10, %v5465_v50 }
 0x59d   :  { %v252_v7 = vadd.f32 %v4863_v29, %v208_v31  ;;  %v2240_v31 = vld [vmem:[#allocation7 + $0x30] sm:$0xff] }
 0x5a0   :  { %v4111_v60 = vpop.eup %4110 }
 0x5a1   :  { %v1578_v21 = vmul.f32 %v4111_v60, %v1577_v27 }
 0x5a3   :  { %v5581_v15 = vadd.f32 %v1579_v48, %v1578_v21 }
 0x5a5   :  { %1649 = vmatmul.f32.vlgmr.msra.gmra.mxu0 %v5581_v15  ;;  %1669 = vmatmul.f32.vlgmr.msra.gmra.mxu1 %v5581_v15 }
 0x5a6   :  { %1689 = vmatmul.f32.vlgmr.msra.gmra.mxu2 %v5581_v15  ;;  %1993 = vmatpush.msra.mxu0 %v5489_v39 }
 0x5a8   :  { %1994 = vmatpush.msra.mxu0 %v5493_v54 }
 0x5aa   :  { %1995 = vmatpush.msra.mxu0 %v5497_v59 }
 0x5ac   :  { %1996 = vmatpush.msra.mxu0 %v5501_v14 }
 0x5ae   :  { %1997 = vmatpush.msra.mxu0 %v5505_v25 }
 0x5b0   :  { %1998 = vmatpush.msra.mxu0 %v5509_v3 }
 0x5b2   :  { %1999 = vmatpush.msra.mxu0 %v5517_v0 }
 0x5b4   :  { %2000 = vmatpush.msra.mxu0 %v5521_v22 }
 0x5b6   :  { %2001 = vmatpush.msra.mxu0 %v5526_v6 }
 0x5b8   :  { %2002 = vmatpush.msra.mxu0 %v5532_v8 }
 0x5ba   :  { %2003 = vmatpush.msra.mxu0 %v5536_v44 }
 0x5bc   :  { %2004 = vmatpush.msra.mxu0 %v5541_v18 }
 0x5be   :  { %2005 = vmatpush.msra.mxu0 %v5545_v2 }
 0x5c0   :  { %2006 = vmatpush.msra.mxu0 %v5549_v33 }
 0x5c2   :  { %2007 = vmatpush.msra.mxu0 %v5553_v53 }
 0x5c4   :  { %2008 = vmatpush.msra.mxu0 %v5556_v23 }
 0x622   :  { %v1650_v46 = vpop.f32.mrf.mxu0  ;;  %v1670_v45 = vpop.f32.mrf.mxu1 }
 0x623   :  { %v1693_v28 = vadd.f32 %v1650_v46, %v250_v11  ;;  %v1694_v36 = vadd.f32 %v1670_v45, %v251_v34 }
 0x625   :  { %v3984_v42 = vmul.f32 -1.442695, %v1693_v28  ;;  %v3985_v52 = vmul.f32 -1.442695, %v1694_v36 }
 0x627   :  { %4112 = vpow2.f32 %v3984_v42 }
 0x628   :  { %4114 = vpow2.f32 %v3985_v52 }
 0x629   :  { %v1690_v26 = vpop.f32.mrf.mxu2 }
 0x62a   :  { %v1733_v21 = vadd.f32 %v5249_v40, %v1690_v26  ;;  %v2243_v26 = vld [vmem:[#allocation7 + $0x48] sm:$0xff] }
 0x62d   :  { %v4113_v58 = vpop.eup %4112 }
 0x62e   :  { %v4115_v20 = vpop.eup %4114  ;;  %v1701_v63 = vadd.f32 1.0, %v4113_v58 }
 0x62f   :  { %v1702_v24 = vadd.f32 1.0, %v4115_v20 }
 0x630   :  { %4116 = vrcp.f32 %v1701_v63  ;;  %v1714_v16 = vand.u32 2147483648, %v1701_v63  ;;  %v1712_v51 = vand.u32 2147483647, %v1701_v63  ;;  %vm1708_vm1 = vweird.f32 %v1701_v63 }
 0x631   :  { %4118 = vrcp.f32 %v1702_v24  ;;  %v1729_v11 = vand.u32 2147483648, %v1702_v24  ;;  %vm1723_vm5 = vweird.f32 %v1702_v24  ;;  %v1727_v46 = vand.u32 2147483647, %v1702_v24 }
 0x632   :  { %v1715_v27 = vor.u32 1.1754944e-38, %v1714_v16  ;;  %vm1713_vm3 = vcmp.eq.f32.partialorder %v1712_v51, 8.507059e+37 }
 0x633   :  { %v1730_v28 = vor.u32 1.1754944e-38, %v1729_v11  ;;  %vm1728_vm7 = vcmp.eq.f32.partialorder %v1727_v46, 8.507059e+37 }
 0x636   :  { %v4117_v19 = vpop.eup %4116 }
 0x637   :  { %v4119_v37 = vpop.eup %4118  ;;  %v1704_v41 = vmul.f32 %v4117_v19, %v1701_v63  ;;  %vm1709_vm0 = vweird.f32 %v4117_v19 }
 0x638   :  { %v1719_v9 = vmul.f32 %v4119_v37, %v1702_v24  ;;  %vm1710_vm2 = vmor %vm1708_vm1, %vm1709_vm0  ;;  %vm1724_vm4 = vweird.f32 %v4119_v37  ;;  %v2261_v24 = vld [vmem:[#allocation7 + $0xd8] sm:$0xff] }
 0x639   :  { %v1705_v43 = vsub.f32 1.0, %v1704_v41  ;;  %vm1725_vm6 = vmor %vm1723_vm5, %vm1724_vm4  ;;  %v2255_v41 = vld [vmem:[#allocation7 + $0xa8] sm:$0xff] }
 0x63a   :  { %v1720_v5 = vsub.f32 1.0, %v1719_v9 }
 0x63b   :  { %v1706_v13 = vmul.f32 %v4117_v19, %v1705_v43  ;;  %v2252_v43 = vld [vmem:[#allocation7 + $0x90] sm:$0xff] }
 0x63c   :  { %v1721_v47 = vmul.f32 %v4119_v37, %v1720_v5  ;;  %v2249_v5 = vld [vmem:[#allocation7 + $0x78] sm:$0xff] }
 0x63d   :  { %v1707_v10 = vadd.f32 %v4117_v19, %v1706_v13  ;;  %v2246_v13 = vld [vmem:[#allocation7 + $0x60] sm:$0xff] }
 0x63e   :  { %v1722_v48 = vadd.f32 %v4119_v37, %v1721_v47 }
 0x63f   :  { %v1711_v60 = vsel %vm1710_vm2, %v4117_v19, %v1707_v10  ;;  %v2258_v19 = vld [vmem:[#allocation7 + $0xc0] sm:$0xff]  ;;  %v2237_v10 = vld [vmem:[#allocation7 + $0x18] sm:$0xff] }
 0x640   :  { %v1716_v4 = vsel %vm1713_vm3, %v1715_v27, %v1711_v60  ;;  %v1726_v38 = vsel %vm1725_vm6, %v4119_v37, %v1722_v48  ;;  %v2234_v60 = vld [vmem:[#allocation7] sm:$0xff] }
 0x641   :  { %v1734_v34 = vmul.f32 %v1733_v21, %v1716_v4  ;;  %v1731_v36 = vsel %vm1728_vm7, %v1730_v28, %v1726_v38 }
 0x642   :  { %v1737_v42 = vsub.f32 1.0, %v1731_v36  ;;  %v1739_v40 = vmul.f32 %v1731_v36, %v5581_v15 }
 0x643   :  { %v1735_v45 = vadd.f32 %v1734_v34, %v252_v7 }
 0x645   :  { %4120 = vtanh.f32 %v1735_v45 }
 0x64b   :  { %v4121_v52 = vpop.eup %4120 }
 0x64c   :  { %v1738_v58 = vmul.f32 %v4121_v52, %v1737_v42  ;;  %v5645_v52 = vld [vmem:[%s6799_s4] ss:$0 sm:$0xff] }
 0x64e   :  { %v5611_v20 = vadd.f32 %v1739_v40, %v1738_v58 }
 0x650   :  { %1809 = vmatmul.f32.vlgmr.msra.gmra.mxu3 %v5611_v20  ;;  %1829 = vmatmul.f32.vlgmr.msrb.gmra.mxu0 %v5611_v20 }
 0x651   :  { %1849 = vmatmul.f32.vlgmr.msrb.gmra.mxu1 %v5611_v20  ;;  %2153 = vmatpush.msra.mxu3 %v5489_v39  ;;  %v5632_v39 = vpop.permute.xlu0 %162 }
 0x652   :  { %v211_v28 = vmul.f32 %v4856_v17, %v5632_v39 }
 0x653   :  { %2154 = vmatpush.msra.mxu3 %v5493_v54  ;;  %v210_v54 = vmul.f32 %v4843_v56, %v5632_v39 }
 0x655   :  { %2155 = vmatpush.msra.mxu3 %v5497_v59  ;;  %v2279_v59 = vld [vmem:[#allocation7 + $0x168] sm:$0xff] }
 0x656   :  { %2290 = vmatpush.msrb.mxu0 %v2279_v59 }
 0x657   :  { %2156 = vmatpush.msra.mxu3 %v5501_v14  ;;  %v254_v14 = vadd.f32 %v4852_v62, %v210_v54 }
 0x659   :  { %2157 = vmatpush.msra.mxu3 %v5505_v25  ;;  %v2276_v25 = vld [vmem:[#allocation7 + $0x150] sm:$0xff] }
 0x65a   :  { %2291 = vmatpush.msrb.mxu0 %v2276_v25 }
 0x65b   :  { %2158 = vmatpush.msra.mxu3 %v5509_v3 }
 0x65d   :  { %2159 = vmatpush.msra.mxu3 %v5517_v0  ;;  %v209_v0 = vmul.f32 %v4841_v55, %v5632_v39 }
 0x65f   :  { %2160 = vmatpush.msra.mxu3 %v5521_v22 }
 0x661   :  { %2161 = vmatpush.msra.mxu3 %v5526_v6  ;;  %v2273_v6 = vld [vmem:[#allocation7 + $0x138] sm:$0xff] }
 0x662   :  { %2292 = vmatpush.msrb.mxu0 %v2273_v6 }
 0x663   :  { %2162 = vmatpush.msra.mxu3 %v5532_v8 }
 0x665   :  { %2163 = vmatpush.msra.mxu3 %v5536_v44  ;;  %v2270_v44 = vld [vmem:[#allocation7 + $0x120] sm:$0xff] }
 0x666   :  { %2293 = vmatpush.msrb.mxu0 %v2270_v44 }
 0x667   :  { %2164 = vmatpush.msra.mxu3 %v5541_v18  ;;  %v253_v18 = vadd.f32 %v4850_v61, %v209_v0 }
 0x669   :  { %2165 = vmatpush.msra.mxu3 %v5545_v2  ;;  %v2267_v2 = vld [vmem:[#allocation7 + $0x108] sm:$0xff] }
 0x66a   :  { %2294 = vmatpush.msrb.mxu0 %v2267_v2 }
 0x66b   :  { %2166 = vmatpush.msra.mxu3 %v5549_v33 }
 0x66d   :  { %2167 = vmatpush.msra.mxu3 %v5553_v53 }
 0x66f   :  { %2168 = vmatpush.msra.mxu3 %v5556_v23  ;;  %v2264_v23 = vld [vmem:[#allocation7 + $0xf0] sm:$0xff] }
 0x670   :  { %2295 = vmatpush.msrb.mxu0 %v2264_v23  ;;  %v2110_v23 = vld [vmem:[#allocation4 + $0x168] sm:$0xff] }
 0x671   :  { %2113 = vmatpush.msra.mxu1 %v2110_v23  ;;  %v2275_v23 = vld [vmem:[#allocation7 + $0x148] sm:$0xff] }
 0x672   :  { %2296 = vmatpush.msrb.mxu0 %v2261_v24  ;;  %v2107_v24 = vld [vmem:[#allocation4 + $0x150] sm:$0xff] }
 0x673   :  { %2114 = vmatpush.msra.mxu1 %v2107_v24  ;;  %v2271_v24 = vld [vmem:[#allocation7 + $0x128] sm:$0xff] }
 0x674   :  { %2297 = vmatpush.msrb.mxu0 %v2258_v19  ;;  %v2108_v19 = vld [vmem:[#allocation4 + $0x158] sm:$0xff] }
 0x676   :  { %2298 = vmatpush.msrb.mxu0 %v2255_v41  ;;  %v2105_v41 = vld [vmem:[#allocation4 + $0x140] sm:$0xff] }
 0x678   :  { %2299 = vmatpush.msrb.mxu0 %v2252_v43  ;;  %v2102_v43 = vld [vmem:[#allocation4 + $0x128] sm:$0xff] }
 0x67a   :  { %2300 = vmatpush.msrb.mxu0 %v2249_v5  ;;  %v2098_v5 = vld [vmem:[#allocation4 + $0x108] sm:$0xff] }
 0x67c   :  { %2301 = vmatpush.msrb.mxu0 %v2246_v13  ;;  %v2095_v13 = vld [vmem:[#allocation4 + $0xf0] sm:$0xff] }
 0x67e   :  { %2302 = vmatpush.msrb.mxu0 %v2243_v26  ;;  %v2093_v26 = vld [vmem:[#allocation4 + $0xe0] sm:$0xff] }
 0x680   :  { %2303 = vmatpush.msrb.mxu0 %v2240_v31  ;;  %v2089_v31 = vld [vmem:[#allocation4 + $0xc0] sm:$0xff] }
 0x682   :  { %2304 = vmatpush.msrb.mxu0 %v2237_v10  ;;  %v2090_v10 = vld [vmem:[#allocation4 + $0xc8] sm:$0xff] }
 0x684   :  { %2305 = vmatpush.msrb.mxu0 %v2234_v60  ;;  %v2087_v60 = vld [vmem:[#allocation4 + $0xb0] sm:$0xff] }
 0x6cd   :  { %v1830_v3 = vpop.f32.mrf.mxu0 }
 0x6ce   :  { %v1854_v22 = vadd.f32 %v1830_v3, %v254_v14  ;;  %v1850_v38 = vpop.f32.mrf.mxu1  ;;  %v255_v14 = vadd.f32 %v4863_v29, %v211_v28  ;;  %v5669_v28 = vld [vmem:[#allocation9 + $0x150] sm:$0xff] }
 0x6cf   :  { %v1893_v58 = vadd.f32 %v5645_v52, %v1850_v38  ;;  %v2075_v38 = vld [vmem:[#allocation4 + $0x50] sm:$0xff] }
 0x6d0   :  { %v3987_v8 = vmul.f32 -1.442695, %v1854_v22 }
 0x6d2   :  { %4122 = vpow2.f32 %v3987_v8 }
 0x6d3   :  { %v1810_v33 = vpop.f32.mrf.mxu3 }
 0x6d4   :  { %v1853_v53 = vadd.f32 %v1810_v33, %v253_v18 }
 0x6d6   :  { %v3986_v63 = vmul.f32 -1.442695, %v1853_v53 }
 0x6d8   :  { %v4123_v37 = vpop.eup %4122  ;;  %4124 = vpow2.f32 %v3986_v63  ;;  %v2111_v63 = vld [vmem:[#allocation4 + $0x170] sm:$0xff] }
 0x6d9   :  { %v1862_v9 = vadd.f32 1.0, %v4123_v37  ;;  %2133 = vmatpush.msra.mxu2 %v2111_v63  ;;  %v2104_v37 = vld [vmem:[#allocation4 + $0x138] sm:$0xff] }
 0x6da   :  { %2115 = vmatpush.msra.mxu1 %v2104_v37  ;;  %v5694_v63 = vld [vmem:[#allocation9 + $0xd8] sm:$0xff]  ;;  %v5698_v37 = vld [vmem:[#allocation9 + $0xc0] sm:$0xff] }
 0x6db   :  { %4126 = vrcp.f32 %v1862_v9  ;;  %v1889_v25 = vand.u32 2147483648, %v1862_v9  ;;  %vm1883_vm13 = vweird.f32 %v1862_v9  ;;  %v1887_v3 = vand.u32 2147483647, %v1862_v9  ;;  %2134 = vmatpush.msra.mxu2 %v2108_v19  ;;  %v2272_v19 = vld [vmem:[#allocation7 + $0x130] sm:$0xff] }
 0x6dd   :  { %v1890_v6 = vor.u32 1.1754944e-38, %v1889_v25  ;;  %vm1888_vm15 = vcmp.eq.f32.partialorder %v1887_v3, 8.507059e+37  ;;  %2135 = vmatpush.msra.mxu2 %v2105_v41  ;;  %v2066_v25 = vld [vmem:[#allocation4 + $0x8] sm:$0xff]  ;;  %v2281_v3 = vld [vmem:[#allocation7 + $0x178] sm:$0xff] }
 0x6de   :  { %v4125_v16 = vpop.eup %4124 }
 0x6df   :  { %v1861_v51 = vadd.f32 1.0, %v4125_v16  ;;  %2136 = vmatpush.msra.mxu2 %v2102_v43  ;;  %v2099_v16 = vld [vmem:[#allocation4 + $0x110] sm:$0xff] }
 0x6e0   :  { %v2268_v43 = vld [vmem:[#allocation7 + $0x110] sm:$0xff] }
 0x6e1   :  { %4128 = vrcp.f32 %v1861_v51  ;;  %v4127_v47 = vpop.eup %4126  ;;  %v1874_v11 = vand.u32 2147483648, %v1861_v51  ;;  %v1872_v46 = vand.u32 2147483647, %v1861_v51  ;;  %vm1868_vm9 = vweird.f32 %v1861_v51  ;;  %2137 = vmatpush.msra.mxu2 %v2099_v16  ;;  %v5704_v16 = vld [vmem:[#allocation9 + $0xa8] sm:$0xff] }
 0x6e2   :  { %v1879_v27 = vmul.f32 %v4127_v47, %v1862_v9  ;;  %vm1884_vm12 = vweird.f32 %v4127_v47  ;;  %v2101_v9 = vld [vmem:[#allocation4 + $0x120] sm:$0xff] }
 0x6e3   :  { %v1875_v42 = vor.u32 1.1754944e-38, %v1874_v11  ;;  %vm1873_vm11 = vcmp.eq.f32.partialorder %v1872_v46, 8.507059e+37  ;;  %vm1885_vm14 = vmor %vm1883_vm13, %vm1884_vm12  ;;  %2116 = vmatpush.msra.mxu1 %v2101_v9  ;;  %v2077_v11 = vld [vmem:[#allocation4 + $0x60] sm:$0xff]  ;;  %v5665_v46 = vld [vmem:[#allocation9 + $0x168] sm:$0xff] }
 0x6e4   :  { %v1880_v4 = vsub.f32 1.0, %v1879_v27  ;;  %v2086_v27 = vld [vmem:[#allocation4 + $0xa8] sm:$0xff] }
 0x6e5   :  { %2117 = vmatpush.msra.mxu1 %v2098_v5  ;;  %v2269_v5 = vld [vmem:[#allocation7 + $0x118] sm:$0xff] }
 0x6e6   :  { %v1881_v45 = vmul.f32 %v4127_v47, %v1880_v4  ;;  %v2080_v4 = vld [vmem:[#allocation4 + $0x78] sm:$0xff] }
 0x6e7   :  { %v4129_v21 = vpop.eup %4128  ;;  %2118 = vmatpush.msra.mxu1 %v2095_v13 }
 0x6e8   :  { %v1864_v48 = vmul.f32 %v4129_v21, %v1861_v51  ;;  %vm1869_vm8 = vweird.f32 %v4129_v21  ;;  %v1882_v54 = vadd.f32 %v4127_v47, %v1881_v45  ;;  %v2096_v51 = vld [vmem:[#allocation4 + $0xf8] sm:$0xff]  ;;  %v2074_v45 = vld [vmem:[#allocation4 + $0x48] sm:$0xff] }
 0x6e9   :  { %vm1870_vm10 = vmor %vm1868_vm9, %vm1869_vm8  ;;  %2138 = vmatpush.msra.mxu2 %v2096_v51 }
 0x6ea   :  { %v1865_v7 = vsub.f32 1.0, %v1864_v48  ;;  %v1886_v22 = vsel %vm1885_vm14, %v4127_v47, %v1882_v54  ;;  %v2092_v47 = vld [vmem:[#allocation4 + $0xd8] sm:$0xff]  ;;  %v2069_v54 = vld [vmem:[#allocation4 + $0x20] sm:$0xff] }
 0x6eb   :  { %v1891_v8 = vsel %vm1888_vm15, %v1890_v6, %v1886_v22  ;;  %2119 = vmatpush.msra.mxu1 %v2092_v47  ;;  %2139 = vmatpush.msra.mxu2 %v2093_v26  ;;  %v2084_v48 = vld [vmem:[#allocation4 + $0x98] sm:$0xff]  ;;  %v5683_v22 = vpop.permute.xlu1 %167 }
 0x6ec   :  { %v1866_v34 = vmul.f32 %v4129_v21, %v1865_v7  ;;  %v1897_v44 = vsub.f32 1.0, %v1891_v8  ;;  %v1899_v2 = vmul.f32 %v1891_v8, %v5611_v20  ;;  %v2081_v7 = vld [vmem:[#allocation4 + $0x80] sm:$0xff]  ;;  %v2277_v6 = vld [vmem:[#allocation7 + $0x158] sm:$0xff] }
 0x6ed   :  { %2120 = vmatpush.msra.mxu1 %v2089_v31  ;;  %2140 = vmatpush.msra.mxu2 %v2090_v10  ;;  %v2278_v8 = vld [vmem:[#allocation7 + $0x160] sm:$0xff]  ;;  %v2265_v31 = vld [vmem:[#allocation7 + $0xf8] sm:$0xff] }
 0x6ee   :  { %v1867_v36 = vadd.f32 %v4129_v21, %v1866_v34  ;;  %v2078_v34 = vld [vmem:[#allocation4 + $0x68] sm:$0xff]  ;;  %v2266_v10 = vld [vmem:[#allocation7 + $0x100] sm:$0xff] }
 0x6ef   :  { %2121 = vmatpush.msra.mxu1 %v2086_v27  ;;  %2141 = vmatpush.msra.mxu2 %v2087_v60  ;;  %v5708_v27 = vld [vmem:[#allocation9 + $0x90] sm:$0xff] }
 0x6f0   :  { %v1871_v40 = vsel %vm1870_vm10, %v4129_v21, %v1867_v36  ;;  %v2083_v21 = vld [vmem:[#allocation4 + $0x90] sm:$0xff] }
 0x6f1   :  { %v1876_v59 = vsel %vm1873_vm11, %v1875_v42, %v1871_v40  ;;  %2122 = vmatpush.msra.mxu1 %v2083_v21  ;;  %2142 = vmatpush.msra.mxu2 %v2084_v48  ;;  %v2071_v36 = vld [vmem:[#allocation4 + $0x30] sm:$0xff]  ;;  %v2072_v42 = vld [vmem:[#allocation4 + $0x38] sm:$0xff]  ;;  %v2262_v48 = vld [vmem:[#allocation7 + $0xe0] sm:$0xff] }
 0x6f2   :  { %v1894_v39 = vmul.f32 %v1893_v58, %v1876_v59  ;;  %v5673_v58 = vld [vmem:[#allocation9 + $0x138] sm:$0xff]  ;;  %v5677_v59 = vld [vmem:[#allocation9 + $0x120] sm:$0xff] }
 0x6f3   :  { %2123 = vmatpush.msra.mxu1 %v2080_v4  ;;  %2143 = vmatpush.msra.mxu2 %v2081_v7  ;;  %v2068_v40 = vld [vmem:[#allocation4 + $0x18] sm:$0xff]  ;;  %v2263_v4 = vld [vmem:[#allocation7 + $0xe8] sm:$0xff] }
 0x6f4   :  { %v1895_v0 = vadd.f32 %v1894_v39, %v255_v14  ;;  %v2065_v14 = vld [vmem:[#allocation4] sm:$0xff]  ;;  %v2280_v39 = vld [vmem:[#allocation7 + $0x170] sm:$0xff]  ;;  %v5713_v7 = vld [vmem:[#allocation9 + $0x78] sm:$0xff] }
 0x6f5   :  { %2124 = vmatpush.msra.mxu1 %v2077_v11  ;;  %2144 = vmatpush.msra.mxu2 %v2078_v34  ;;  %v2259_v11 = vld [vmem:[#allocation7 + $0xc8] sm:$0xff]  ;;  %v2260_v34 = vld [vmem:[#allocation7 + $0xd0] sm:$0xff] }
 0x6f6   :  { %4130 = vtanh.f32 %v1895_v0  ;;  %v5681_v0 = vld [vmem:[#allocation9 + $0x108] sm:$0xff] }
 0x6f7   :  { %2125 = vmatpush.msra.mxu1 %v2074_v45  ;;  %2145 = vmatpush.msra.mxu2 %v2075_v38  ;;  %v5716_v45 = vld [vmem:[#allocation9 + $0x60] sm:$0xff]  ;;  %v2256_v38 = vld [vmem:[#allocation7 + $0xb0] sm:$0xff] }
 0x6f9   :  { %2126 = vmatpush.msra.mxu1 %v2071_v36  ;;  %2146 = vmatpush.msra.mxu2 %v2072_v42  ;;  %v2257_v36 = vld [vmem:[#allocation7 + $0xb8] sm:$0xff]  ;;  %v5720_v42 = vld [vmem:[#allocation9 + $0x48] sm:$0xff] }
 0x6fb   :  { %2127 = vmatpush.msra.mxu1 %v2068_v40  ;;  %2147 = vmatpush.msra.mxu2 %v2069_v54  ;;  %v2253_v40 = vld [vmem:[#allocation7 + $0x98] sm:$0xff]  ;;  %v2254_v54 = vld [vmem:[#allocation7 + $0xa0] sm:$0xff] }
 0x6fc   :  { %v4131_v18 = vpop.eup %4130 }
 0x6fd   :  { %v1898_v33 = vmul.f32 %v4131_v18, %v1897_v44  ;;  %2128 = vmatpush.msra.mxu1 %v2065_v14  ;;  %2148 = vmatpush.msra.mxu2 %v2066_v25  ;;  %v5686_v44 = vld [vmem:[#allocation9 + $0xf0] sm:$0xff]  ;;  %v212_v18 = vmul.f32 %v4841_v55, %v5683_v22 }
 0x6fe   :  { %v5724_v14 = vld [vmem:[#allocation9 + $0x30] sm:$0xff] }
 0x6ff   :  { %v5650_v53 = vadd.f32 %v1899_v2, %v1898_v33  ;;  %2343 = vmatpush.msrb.mxu1 %v2280_v39  ;;  %v213_v2 = vmul.f32 %v4843_v56, %v5683_v22  ;;  %v2274_v33 = vld [vmem:[#allocation7 + $0x140] sm:$0xff]  ;;  %v256_v41 = vadd.f32 %v4850_v61, %v212_v18  ;;  %6843 = vst [vmem:[#allocation17_spill] sm:$0xff] %v5724_v14 }
 0x700   :  { %v2250_v39 = vld [vmem:[#allocation7 + $0x80] sm:$0xff] }
 0x701   :  { %1969 = vmatmul.f32.vlgmr.msrb.gmra.mxu2 %v5650_v53  ;;  %1989 = vmatmul.f32.vlgmr.msrb.gmra.mxu3 %v5650_v53  ;;  %v257_v9 = vadd.f32 %v4852_v62, %v213_v2  ;;  %v2247_v2 = vld [vmem:[#allocation7 + $0x68] sm:$0xff] }
 0x702   :  { %2009 = vmatmul.f32.vlgmr.msra.gmra.mxu0 %v5650_v53  ;;  %2537 = vmatpush.msrb.mxu3 %v5665_v46 }
 0x703   :  { %2651 = vmatpush.msra.mxu0 %v5665_v46  ;;  %2396 = vmatpush.msrb.mxu2 %v2281_v3  ;;  %v2251_v3 = vld [vmem:[#allocation7 + $0x88] sm:$0xff] }
 0x704   :  { %2538 = vmatpush.msrb.mxu3 %v5669_v28  ;;  %2344 = vmatpush.msrb.mxu1 %v2277_v6  ;;  %v5728_v6 = vld [vmem:[#allocation9 + $0x18] sm:$0xff] }
 0x705   :  { %2652 = vmatpush.msra.mxu0 %v5669_v28  ;;  %2397 = vmatpush.msrb.mxu2 %v2278_v8  ;;  %6844 = vst [vmem:[#allocation18_spill] sm:$0xff] %v5728_v6 }
 0x706   :  { %2539 = vmatpush.msrb.mxu3 %v5673_v58  ;;  %2345 = vmatpush.msrb.mxu1 %v2274_v33  ;;  %v2248_v33 = vld [vmem:[#allocation7 + $0x70] sm:$0xff] }
 0x707   :  { %2653 = vmatpush.msra.mxu0 %v5673_v58  ;;  %2398 = vmatpush.msrb.mxu2 %v2275_v23  ;;  %v5733_v23 = vld [vmem:[#allocation9] sm:$0xff] }
 0x708   :  { %2540 = vmatpush.msrb.mxu3 %v5677_v59  ;;  %2346 = vmatpush.msrb.mxu1 %v2271_v24  ;;  %6845 = vst [vmem:[#allocation19_spill] sm:$0xff] %v5733_v23 }
 0x709   :  { %2654 = vmatpush.msra.mxu0 %v5677_v59  ;;  %2399 = vmatpush.msrb.mxu2 %v2272_v19  ;;  %v5742_v19 = vld [vmem:[#allocation9 + $0x170] sm:$0xff] }
 0x70a   :  { %2306 = vmatmul.f32.vlgmr.msrb.gmra.mxu0 %v4868_v1  ;;  %2541 = vmatpush.msrb.mxu3 %v5681_v0 }
 0x70b   :  { %2655 = vmatpush.msra.mxu0 %v5681_v0  ;;  %2347 = vmatpush.msrb.mxu1 %v2268_v43  ;;  %v5746_v43 = vld [vmem:[#allocation9 + $0x158] sm:$0xff] }
 0x70c   :  { %2542 = vmatpush.msrb.mxu3 %v5686_v44  ;;  %2400 = vmatpush.msrb.mxu2 %v2269_v5  ;;  %v2241_v5 = vld [vmem:[#allocation7 + $0x38] sm:$0xff] }
 0x70d   :  { %2656 = vmatpush.msra.mxu0 %v5686_v44  ;;  %2348 = vmatpush.msrb.mxu1 %v2265_v31  ;;  %v2239_v31 = vld [vmem:[#allocation7 + $0x28] sm:$0xff] }
 0x70e   :  { %2543 = vmatpush.msrb.mxu3 %v5694_v63  ;;  %2401 = vmatpush.msrb.mxu2 %v2266_v10 }
 0x70f   :  { %2657 = vmatpush.msra.mxu0 %v5694_v63  ;;  %2349 = vmatpush.msrb.mxu1 %v2262_v48 }
 0x710   :  { %2544 = vmatpush.msrb.mxu3 %v5698_v37  ;;  %2402 = vmatpush.msrb.mxu2 %v2263_v4  ;;  %v2235_v4 = vld [vmem:[#allocation7 + $0x8] sm:$0xff] }
 0x711   :  { %2658 = vmatpush.msra.mxu0 %v5698_v37  ;;  %2350 = vmatpush.msrb.mxu1 %v2259_v11  ;;  %v2236_v11 = vld [vmem:[#allocation7 + $0x10] sm:$0xff] }
 0x712   :  { %2309 = vmatmul.f32.gmra.mxu0 %v4909_v57  ;;  %2545 = vmatpush.msrb.mxu3 %v5704_v16 }
 0x713   :  { %2659 = vmatpush.msra.mxu0 %v5704_v16  ;;  %2403 = vmatpush.msrb.mxu2 %v2260_v34 }
 0x714   :  { %2546 = vmatpush.msrb.mxu3 %v5708_v27  ;;  %2351 = vmatpush.msrb.mxu1 %v2256_v38  ;;  %v5757_v38 = vld [vmem:[#allocation9 + $0x110] sm:$0xff] }
 0x715   :  { %2660 = vmatpush.msra.mxu0 %v5708_v27  ;;  %2404 = vmatpush.msrb.mxu2 %v2257_v36 }
 0x716   :  { %2547 = vmatpush.msrb.mxu3 %v5713_v7  ;;  %2352 = vmatpush.msrb.mxu1 %v2253_v40 }
 0x717   :  { %2661 = vmatpush.msra.mxu0 %v5713_v7  ;;  %2405 = vmatpush.msrb.mxu2 %v2254_v54 }
 0x718   :  { %2548 = vmatpush.msrb.mxu3 %v5716_v45  ;;  %2353 = vmatpush.msrb.mxu1 %v2250_v39  ;;  %v5762_v39 = vld [vmem:[#allocation9 + $0xf8] sm:$0xff] }
 0x719   :  { %2662 = vmatpush.msra.mxu0 %v5716_v45  ;;  %2406 = vmatpush.msrb.mxu2 %v2251_v3 }
 0x71a   :  { %2312 = vmatmul.f32.gmra.mxu0 %v5091_v35  ;;  %2549 = vmatpush.msrb.mxu3 %v5720_v42 }
 0x71b   :  { %2663 = vmatpush.msra.mxu0 %v5720_v42  ;;  %2354 = vmatpush.msrb.mxu1 %v2247_v2  ;;  %v214_v2 = vmul.f32 %v4856_v17, %v5683_v22 }
 0x71c   :  { %2550 = vmatpush.msrb.mxu3 %v5724_v14  ;;  %2407 = vmatpush.msrb.mxu2 %v2248_v33 }
 0x71d   :  { %2664 = vmatpush.msra.mxu0 %v5724_v14  ;;  %v258_v22 = vadd.f32 %v4863_v29, %v214_v2 }
 0x71e   :  { %2551 = vmatpush.msrb.mxu3 %v5728_v6 }
 0x71f   :  { %2665 = vmatpush.msra.mxu0 %v5728_v6 }
 0x720   :  { %2552 = vmatpush.msrb.mxu3 %v5733_v23 }
 0x721   :  { %2666 = vmatpush.msra.mxu0 %v5733_v23 }
 0x722   :  { %2315 = vmatmul.f32.gmra.mxu0 %v5219_v12 }
 0x723   :  { %2782 = vmatpush.msrb.mxu0 %v5742_v19 }
 0x725   :  { %2783 = vmatpush.msrb.mxu0 %v5746_v43 }
 0x72a   :  { %2318 = vmatmul.f32.gmra.mxu0 %v5254_v32 }
 0x732   :  { %2321 = vmatmul.f32.gmra.mxu0 %v5283_v30 }
 0x73a   :  { %2324 = vmatmul.f32.gmra.mxu0 %v5465_v50 }
 0x742   :  { %2327 = vmatmul.f32.gmra.mxu0 %v5581_v15 }
 0x74a   :  { %2330 = vmatmul.f32.gmra.mxu0 %v5611_v20 }
 0x752   :  { %2333 = vmatmul.f32.gmra.mxu0 %v5650_v53 }
 0x77f   :  { %v2010_v3 = vpop.f32.mrf.mxu0 }
 0x784   :  { %v1970_v13 = vpop.f32.mrf.mxu2  ;;  %v1990_v51 = vpop.f32.mrf.mxu3 }
 0x785   :  { %v2013_v47 = vadd.f32 %v1970_v13, %v256_v41  ;;  %v2014_v26 = vadd.f32 %v1990_v51, %v257_v9  ;;  %v2244_v41 = vld [vmem:[#allocation7 + $0x50] sm:$0xff]  ;;  %v2245_v9 = vld [vmem:[#allocation7 + $0x58] sm:$0xff]  ;;  %v2242_v13 = vld [vmem:[#allocation7 + $0x40] sm:$0xff] }
 0x786   :  { %2355 = vmatpush.msrb.mxu1 %v2244_v41  ;;  %2408 = vmatpush.msrb.mxu2 %v2245_v9  ;;  %v5749_v51 = vld [vmem:[#allocation9 + $0x140] sm:$0xff] }
 0x787   :  { %v3988_v60 = vmul.f32 -1.442695, %v2013_v47  ;;  %v3989_v21 = vmul.f32 -1.442695, %v2014_v26  ;;  %v2238_v26 = vld [vmem:[#allocation7 + $0x20] sm:$0xff]  ;;  %2784 = vmatpush.msrb.mxu0 %v5749_v51 }
 0x788   :  { %2356 = vmatpush.msrb.mxu1 %v2241_v5  ;;  %2409 = vmatpush.msrb.mxu2 %v2242_v13  ;;  %v5768_v41 = vld [vmem:[#allocation9 + $0xe0] sm:$0xff]  ;;  %v2053_v5 = vadd.f32 %v5645_v52, %v2010_v3 }
 0x789   :  { %4132 = vpow2.f32 %v3988_v60 }
 0x78a   :  { %4134 = vpow2.f32 %v3989_v21  ;;  %2357 = vmatpush.msrb.mxu1 %v2238_v26  ;;  %2410 = vmatpush.msrb.mxu2 %v2239_v31  ;;  %v5753_v21 = vld [vmem:[#allocation9 + $0x128] sm:$0xff] }
 0x78b   :  { %2785 = vmatpush.msrb.mxu0 %v5753_v21  ;;  %v5772_v26 = vld [vmem:[#allocation9 + $0xc8] sm:$0xff] }
 0x78c   :  { %2358 = vmatpush.msrb.mxu1 %v2235_v4  ;;  %2411 = vmatpush.msrb.mxu2 %v2236_v11  ;;  %v5777_v4 = vld [vmem:[#allocation9 + $0xb0] sm:$0xff]  ;;  %v5782_v11 = vld [vmem:[#allocation9 + $0x98] sm:$0xff] }
 0x78d   :  { %2786 = vmatpush.msrb.mxu0 %v5757_v38 }
 0x78f   :  { %v4133_v25 = vpop.eup %4132  ;;  %2787 = vmatpush.msrb.mxu0 %v5762_v39 }
 0x790   :  { %v4135_v8 = vpop.eup %4134  ;;  %v5731_v18 = vadd.f32 1.0, %v4133_v25 }
 0x791   :  { %v5735_v24 = vadd.f32 1.0, %v4135_v8  ;;  %2788 = vmatpush.msrb.mxu0 %v5768_v41 }
 0x792   :  { %4136 = vrcp.f32 %v5731_v18  ;;  %v2034_v36 = vand.u32 2147483648, %v5731_v18  ;;  %v2032_v25 = vand.u32 2147483647, %v5731_v18  ;;  %vm2028_vm1 = vweird.f32 %v5731_v18 }
 0x793   :  { %4138 = vrcp.f32 %v5735_v24  ;;  %2789 = vmatpush.msrb.mxu0 %v5772_v26  ;;  %vm2043_vm5 = vweird.f32 %v5735_v24  ;;  %v2047_v52 = vand.u32 2147483647, %v5735_v24 }
 0x794   :  { %v2035_v9 = vor.u32 1.1754944e-38, %v2034_v36  ;;  %vm2033_vm3 = vcmp.eq.f32.partialorder %v2032_v25, 8.507059e+37  ;;  %v5788_v25 = vld [vmem:[#allocation9 + $0x68] sm:$0xff] }
 0x795   :  { %2790 = vmatpush.msrb.mxu0 %v5777_v4  ;;  %vm2048_vm7 = vcmp.eq.f32.partialorder %v2047_v52, 8.507059e+37  ;;  %v5847_v52 = vld [vmem:[#allocation9 + $0xe8] sm:$0xff] }
 0x797   :  { %2791 = vmatpush.msrb.mxu0 %v5782_v11 }
 0x798   :  { %v4137_v47 = vpop.eup %4136 }
 0x799   :  { %v4139_v10 = vpop.eup %4138  ;;  %v2024_v60 = vmul.f32 %v4137_v47, %v5731_v18  ;;  %vm2029_vm0 = vweird.f32 %v4137_v47 }
 0x79a   :  { %v2039_v48 = vmul.f32 %v4139_v10, %v5735_v24  ;;  %vm2030_vm2 = vmor %vm2028_vm1, %vm2029_vm0  ;;  %vm2044_vm4 = vweird.f32 %v4139_v10 }
 0x79b   :  { %v2025_v34 = vsub.f32 1.0, %v2024_v60  ;;  %vm2045_vm6 = vmor %vm2043_vm5, %vm2044_vm4 }
 0x79c   :  { %v2040_v40 = vsub.f32 1.0, %v2039_v48  ;;  %v2049_v48 = vand.u32 2147483648, %v5735_v24  ;;  %v5791_v24 = vld [vmem:[#allocation9 + $0x50] sm:$0xff] }
 0x79d   :  { %v2026_v54 = vmul.f32 %v4137_v47, %v2025_v34 }
 0x79e   :  { %v2041_v8 = vmul.f32 %v4139_v10, %v2040_v40  ;;  %v2050_v36 = vor.u32 1.1754944e-38, %v2049_v48  ;;  %v5785_v40 = vld [vmem:[#allocation9 + $0x80] sm:$0xff]  ;;  %v5835_v48 = vld [vmem:[#allocation9 + $0x118] sm:$0xff] }
 0x79f   :  { %v2027_v33 = vadd.f32 %v4137_v47, %v2026_v54  ;;  %2792 = vmatpush.msrb.mxu0 %v5785_v40 }
 0x7a0   :  { %v2042_v60 = vadd.f32 %v4139_v10, %v2041_v8  ;;  %v5794_v8 = vld [vmem:[#allocation9 + $0x38] sm:$0xff] }
 0x7a1   :  { %v2031_v13 = vsel %vm2030_vm2, %v4137_v47, %v2027_v33  ;;  %2793 = vmatpush.msrb.mxu0 %v5788_v25  ;;  %6846 = vst [vmem:[#allocation20_spill] sm:$0xff] %v5794_v8 }
 0x7a2   :  { %v2036_v31 = vsel %vm2033_vm3, %v2035_v9, %v2031_v13  ;;  %v2046_v34 = vsel %vm2045_vm6, %v4139_v10, %v2042_v60  ;;  %v5798_v9 = vld [vmem:[#allocation9 + $0x20] sm:$0xff]  ;;  %v5808_v13 = vld [vmem:[#allocation9 + $0x8] sm:$0xff] }
 0x7a3   :  { %v2054_v18 = vmul.f32 %v2053_v5, %v2036_v31  ;;  %v2051_v54 = vsel %vm2048_vm7, %v2050_v36, %v2046_v34  ;;  %2794 = vmatpush.msrb.mxu0 %v5791_v24  ;;  %6847 = vst [vmem:[#allocation21_spill] sm:$0xff] %v5798_v9  ;;  %v5810_v31 = vld [vmem:[#allocation9 + $0x178] sm:$0xff]  ;;  %v5816_v60 = vld [vmem:[#allocation9 + $0x160] sm:$0xff]  ;;  %v5871_v36 = vld [vmem:[#allocation9 + $0x88] sm:$0xff] }
 0x7a4   :  { %v2057_v3 = vsub.f32 1.0, %v2051_v54  ;;  %v2059_v33 = vmul.f32 %v2051_v54, %v5650_v53  ;;  %6848 = vst [vmem:[#allocation22_spill] sm:$0xff] %v5808_v13  ;;  %v5857_v34 = vld [vmem:[#allocation9 + $0xb8] sm:$0xff]  ;;  %v5876_v54 = vld [vmem:[#allocation9 + $0x70] sm:$0xff] }
 0x7a5   :  { %v2055_v47 = vadd.f32 %v2054_v18, %v258_v22  ;;  %2795 = vmatpush.msrb.mxu0 %v5794_v8  ;;  %v5821_v22 = vld [vmem:[#allocation9 + $0x148] sm:$0xff]  ;;  %v5830_v18 = vld [vmem:[#allocation9 + $0x130] sm:$0xff] }
 0x7a7   :  { %4140 = vtanh.f32 %v2055_v47  ;;  %2796 = vmatpush.msrb.mxu0 %v5798_v9  ;;  %v5852_v47 = vld [vmem:[#allocation9 + $0xd0] sm:$0xff] }
 0x7a9   :  { %2797 = vmatpush.msrb.mxu0 %v5808_v13 }
 0x7ad   :  { %v4141_v10 = vpop.eup %4140 }
 0x7ae   :  { %v2058_v2 = vmul.f32 %v4141_v10, %v2057_v3  ;;  %v5890_v3 = vld [vmem:[#allocation9 + $0x40] sm:$0xff]  ;;  %v5895_v10 = vld [vmem:[#allocation9 + $0x28] sm:$0xff] }
 0x7af   :  { %6849 = vst [vmem:[#allocation23_spill] sm:$0xff] %v5895_v10 }
 0x7b0   :  { %v5800_v5 = vadd.f32 %v2059_v33, %v2058_v2 }
 0x7b2   :  { %2129 = vmatmul.f32.vlgmr.msra.gmra.mxu1 %v5800_v5  ;;  %2149 = vmatmul.f32.vlgmr.msra.gmra.mxu2 %v5800_v5 }
 0x7b3   :  { %2169 = vmatmul.f32.vlgmr.msra.gmra.mxu3 %v5800_v5  ;;  %2336 = vmatmul.f32.gmra.mxu0 %v5800_v5 }
 0x7b4   :  { %2557 = vmatpush.msra.mxu3 %v5742_v19  ;;  %2671 = vmatpush.msra.mxu1 %v5742_v19 }
 0x7b5   :  { %2691 = vmatpush.msra.mxu2 %v5810_v31 }
 0x7b6   :  { %2558 = vmatpush.msra.mxu3 %v5746_v43  ;;  %2672 = vmatpush.msra.mxu1 %v5746_v43 }
 0x7b7   :  { %2692 = vmatpush.msra.mxu2 %v5816_v60 }
 0x7b8   :  { %2559 = vmatpush.msra.mxu3 %v5749_v51  ;;  %2673 = vmatpush.msra.mxu1 %v5749_v51 }
 0x7b9   :  { %2693 = vmatpush.msra.mxu2 %v5821_v22 }
 0x7ba   :  { %2560 = vmatpush.msra.mxu3 %v5753_v21  ;;  %2359 = vmatmul.f32.vlgmr.msrb.gmra.mxu1 %v4868_v1 }
 0x7bb   :  { %2412 = vmatmul.f32.vlgmr.msrb.gmra.mxu2 %v4868_v1  ;;  %2553 = vmatmul.f32.vlgmr.msrb.gmra.mxu3 %v4509_v49  ;;  %v5840_v1 = vld [vmem:[#allocation9 + $0x100] sm:$0xff] }
 0x7bc   :  { %2561 = vmatpush.msra.mxu3 %v5757_v38  ;;  %2674 = vmatpush.msra.mxu1 %v5753_v21 }
 0x7bd   :  { %2694 = vmatpush.msra.mxu2 %v5830_v18 }
 0x7be   :  { %2562 = vmatpush.msra.mxu3 %v5762_v39  ;;  %2675 = vmatpush.msra.mxu1 %v5757_v38 }
 0x7bf   :  { %2695 = vmatpush.msra.mxu2 %v5835_v48 }
 0x7c0   :  { %2563 = vmatpush.msra.mxu3 %v5768_v41  ;;  %2676 = vmatpush.msra.mxu1 %v5762_v39 }
 0x7c1   :  { %2696 = vmatpush.msra.mxu2 %v5840_v1 }
 0x7c2   :  { %2564 = vmatpush.msra.mxu3 %v5772_v26  ;;  %2362 = vmatmul.f32.gmra.mxu1 %v4909_v57 }
 0x7c3   :  { %2415 = vmatmul.f32.gmra.mxu2 %v4909_v57  ;;  %2677 = vmatpush.msra.mxu1 %v5768_v41  ;;  %v5866_v57 = vld [vmem:[#allocation9 + $0xa0] sm:$0xff] }
 0x7c4   :  { %2565 = vmatpush.msra.mxu3 %v5777_v4  ;;  %2697 = vmatpush.msra.mxu2 %v5847_v52 }
 0x7c5   :  { %2678 = vmatpush.msra.mxu1 %v5772_v26 }
 0x7c6   :  { %2566 = vmatpush.msra.mxu3 %v5782_v11  ;;  %2698 = vmatpush.msra.mxu2 %v5852_v47 }
 0x7c7   :  { %2679 = vmatpush.msra.mxu1 %v5777_v4 }
 0x7c8   :  { %2567 = vmatpush.msra.mxu3 %v5785_v40  ;;  %2699 = vmatpush.msra.mxu2 %v5857_v34 }
 0x7c9   :  { %2680 = vmatpush.msra.mxu1 %v5782_v11 }
 0x7ca   :  { %2568 = vmatpush.msra.mxu3 %v5788_v25  ;;  %2365 = vmatmul.f32.gmra.mxu1 %v5091_v35 }
 0x7cb   :  { %2418 = vmatmul.f32.gmra.mxu2 %v5091_v35  ;;  %2681 = vmatpush.msra.mxu1 %v5785_v40  ;;  %v5886_v35 = vld [vmem:[#allocation9 + $0x58] sm:$0xff] }
 0x7cc   :  { %2569 = vmatpush.msra.mxu3 %v5791_v24  ;;  %2700 = vmatpush.msra.mxu2 %v5866_v57 }
 0x7cd   :  { %2682 = vmatpush.msra.mxu1 %v5788_v25 }
 0x7ce   :  { %2570 = vmatpush.msra.mxu3 %v5794_v8  ;;  %2701 = vmatpush.msra.mxu2 %v5871_v36 }
 0x7cf   :  { %2683 = vmatpush.msra.mxu1 %v5791_v24 }
 0x7d0   :  { %2571 = vmatpush.msra.mxu3 %v5798_v9  ;;  %2702 = vmatpush.msra.mxu2 %v5876_v54 }
 0x7d1   :  { %2684 = vmatpush.msra.mxu1 %v5794_v8 }
 0x7d2   :  { %2572 = vmatpush.msra.mxu3 %v5808_v13  ;;  %2368 = vmatmul.f32.gmra.mxu1 %v5219_v12 }
 0x7d3   :  { %2573 = vmatmul.f32.vlgmr.msra.gmra.mxu3 %v4509_v49  ;;  %2421 = vmatmul.f32.gmra.mxu2 %v5219_v12  ;;  %v5904_v12 = vld [vmem:[#allocation9 + $0x10] sm:$0xff] }
 0x7d4   :  { %2577 = vmatpush.msrb.mxu3 %v5810_v31  ;;  %2703 = vmatpush.msra.mxu2 %v5886_v35  ;;  %6850 = vst [vmem:[#allocation24_spill] sm:$0xff] %v5904_v12 }
 0x7d5   :  { %2685 = vmatpush.msra.mxu1 %v5798_v9 }
 0x7d6   :  { %2578 = vmatpush.msrb.mxu3 %v5816_v60  ;;  %2704 = vmatpush.msra.mxu2 %v5890_v3 }
 0x7d7   :  { %2686 = vmatpush.msra.mxu1 %v5808_v13 }
 0x7d8   :  { %2579 = vmatpush.msrb.mxu3 %v5821_v22  ;;  %2705 = vmatpush.msra.mxu2 %v5895_v10 }
 0x7d9   :  { %2802 = vmatpush.msrb.mxu1 %v5810_v31 }
 0x7da   :  { %2580 = vmatpush.msrb.mxu3 %v5830_v18  ;;  %2371 = vmatmul.f32.gmra.mxu1 %v5254_v32 }
 0x7db   :  { %2424 = vmatmul.f32.gmra.mxu2 %v5254_v32  ;;  %2803 = vmatpush.msrb.mxu1 %v5816_v60 }
 0x7dc   :  { %2581 = vmatpush.msrb.mxu3 %v5835_v48  ;;  %2706 = vmatpush.msra.mxu2 %v5904_v12 }
 0x7dd   :  { %2804 = vmatpush.msrb.mxu1 %v5821_v22 }
 0x7de   :  { %2873 = vmatpush.msrb.mxu2 %v5665_v46  ;;  %2582 = vmatpush.msrb.mxu3 %v5840_v1 }
 0x7df   :  { %2805 = vmatpush.msrb.mxu1 %v5830_v18 }
 0x7e0   :  { %2874 = vmatpush.msrb.mxu2 %v5669_v28  ;;  %2583 = vmatpush.msrb.mxu3 %v5847_v52 }
 0x7e1   :  { %2806 = vmatpush.msrb.mxu1 %v5835_v48 }
 0x7e2   :  { %2875 = vmatpush.msrb.mxu2 %v5673_v58  ;;  %2584 = vmatpush.msrb.mxu3 %v5852_v47 }
 0x7e3   :  { %2374 = vmatmul.f32.gmra.mxu1 %v5283_v30  ;;  %2427 = vmatmul.f32.gmra.mxu2 %v5283_v30 }
 0x7e4   :  { %2807 = vmatpush.msrb.mxu1 %v5840_v1  ;;  %2585 = vmatpush.msrb.mxu3 %v5857_v34 }
 0x7e5   :  { %2876 = vmatpush.msrb.mxu2 %v5677_v59 }
 0x7e6   :  { %2808 = vmatpush.msrb.mxu1 %v5847_v52  ;;  %2586 = vmatpush.msrb.mxu3 %v5866_v57 }
 0x7e7   :  { %2877 = vmatpush.msrb.mxu2 %v5681_v0 }
 0x7e8   :  { %2809 = vmatpush.msrb.mxu1 %v5852_v47  ;;  %2587 = vmatpush.msrb.mxu3 %v5871_v36 }
 0x7e9   :  { %2878 = vmatpush.msrb.mxu2 %v5686_v44 }
 0x7ea   :  { %2810 = vmatpush.msrb.mxu1 %v5857_v34  ;;  %2588 = vmatpush.msrb.mxu3 %v5876_v54 }
 0x7eb   :  { %2377 = vmatmul.f32.gmra.mxu1 %v5465_v50  ;;  %2430 = vmatmul.f32.gmra.mxu2 %v5465_v50 }
 0x7ec   :  { %2811 = vmatpush.msrb.mxu1 %v5866_v57  ;;  %2589 = vmatpush.msrb.mxu3 %v5886_v35 }
 0x7ed   :  { %2879 = vmatpush.msrb.mxu2 %v5694_v63 }
 0x7ee   :  { %2812 = vmatpush.msrb.mxu1 %v5871_v36  ;;  %2590 = vmatpush.msrb.mxu3 %v5890_v3 }
 0x7ef   :  { %2880 = vmatpush.msrb.mxu2 %v5698_v37 }
 0x7f0   :  { %2813 = vmatpush.msrb.mxu1 %v5876_v54  ;;  %2591 = vmatpush.msrb.mxu3 %v5895_v10 }
 0x7f1   :  { %2881 = vmatpush.msrb.mxu2 %v5704_v16 }
 0x7f2   :  { %2814 = vmatpush.msrb.mxu1 %v5886_v35  ;;  %2592 = vmatpush.msrb.mxu3 %v5904_v12 }
 0x7f3   :  { %2380 = vmatmul.f32.gmra.mxu1 %v5581_v15  ;;  %2593 = vmatmul.f32.vlgmr.msrb.gmra.mxu3 %v4509_v49  ;;  %v173_v49 = vpop.permute.xlu2 %172 }
 0x7f4   :  { %2433 = vmatmul.f32.gmra.mxu2 %v5581_v15  ;;  %2762 = vmatpush.msra.mxu3 %v5665_v46  ;;  %v215_v32 = vmul.f32 %v4841_v55, %v173_v49  ;;  %v216_v15 = vmul.f32 %v4843_v56, %v173_v49 }
 0x7f5   :  { %2815 = vmatpush.msrb.mxu1 %v5890_v3  ;;  %2882 = vmatpush.msrb.mxu2 %v5708_v27 }
 0x7f6   :  { %2763 = vmatpush.msra.mxu3 %v5669_v28  ;;  %v259_v30 = vadd.f32 %v4850_v61, %v215_v32  ;;  %v260_v46 = vadd.f32 %v4852_v62, %v216_v15  ;;  %v6002_v61 = vld [vmem:[%s6802_s7] sm:$0x7] }
 0x7f7   :  { %2816 = vmatpush.msrb.mxu1 %v5895_v10  ;;  %2883 = vmatpush.msrb.mxu2 %v5713_v7  ;;  %v6005_v32 = vperm.slane %v6002_v61, 0 }
 0x7f8   :  { %2764 = vmatpush.msra.mxu3 %v5673_v58 }
 0x7f9   :  { %2817 = vmatpush.msrb.mxu1 %v5904_v12  ;;  %2884 = vmatpush.msrb.mxu2 %v5716_v45  ;;  %6851 = vst [vmem:[#allocation25_spill] sm:$0xff] %v6005_v32  ;;  %v217_v12 = vmul.f32 %v4856_v17, %v173_v49 }
 0x7fa   :  { %2765 = vmatpush.msra.mxu3 %v5677_v59 }
 0x7fb   :  { %2383 = vmatmul.f32.gmra.mxu1 %v5611_v20  ;;  %2885 = vmatpush.msrb.mxu2 %v5720_v42 }
 0x7fc   :  { %2436 = vmatmul.f32.gmra.mxu2 %v5611_v20  ;;  %2766 = vmatpush.msra.mxu3 %v5681_v0 }
 0x7fd   :  { %2886 = vmatpush.msrb.mxu2 %v5724_v14 }
 0x7fe   :  { %2767 = vmatpush.msra.mxu3 %v5686_v44 }
 0x7ff   :  { %2887 = vmatpush.msrb.mxu2 %v5728_v6 }
 0x800   :  { %2768 = vmatpush.msra.mxu3 %v5694_v63 }
 0x801   :  { %2888 = vmatpush.msrb.mxu2 %v5733_v23 }
 0x802   :  { %2769 = vmatpush.msra.mxu3 %v5698_v37 }
 0x803   :  { %2386 = vmatmul.f32.gmra.mxu1 %v5650_v53 }
 0x804   :  { %2439 = vmatmul.f32.gmra.mxu2 %v5650_v53  ;;  %2770 = vmatpush.msra.mxu3 %v5704_v16 }
 0x806   :  { %2771 = vmatpush.msra.mxu3 %v5708_v27 }
 0x808   :  { %2772 = vmatpush.msra.mxu3 %v5713_v7 }
 0x80a   :  { %2773 = vmatpush.msra.mxu3 %v5716_v45 }
 0x80b   :  { %2389 = vmatmul.f32.gmra.mxu1 %v5800_v5 }
 0x80c   :  { %2442 = vmatmul.f32.gmra.mxu2 %v5800_v5  ;;  %2774 = vmatpush.msra.mxu3 %v5720_v42 }
 0x80e   :  { %2775 = vmatpush.msra.mxu3 %v5724_v14 }
 0x810   :  { %2776 = vmatpush.msra.mxu3 %v5728_v6 }
 0x812   :  { %2777 = vmatpush.msra.mxu3 %v5733_v23 }
 0x814   :  { %2893 = vmatpush.msrb.mxu3 %v5742_v19 }
 0x816   :  { %2894 = vmatpush.msrb.mxu3 %v5746_v43 }
 0x818   :  { %2895 = vmatpush.msrb.mxu3 %v5749_v51 }
 0x81a   :  { %2896 = vmatpush.msrb.mxu3 %v5753_v21 }
 0x81c   :  { %2897 = vmatpush.msrb.mxu3 %v5757_v38 }
 0x81e   :  { %2898 = vmatpush.msrb.mxu3 %v5762_v39 }
 0x820   :  { %2899 = vmatpush.msrb.mxu3 %v5768_v41 }
 0x822   :  { %2900 = vmatpush.msrb.mxu3 %v5772_v26 }
 0x824   :  { %2901 = vmatpush.msrb.mxu3 %v5777_v4 }
 0x826   :  { %2902 = vmatpush.msrb.mxu3 %v5782_v11 }
 0x828   :  { %2903 = vmatpush.msrb.mxu3 %v5785_v40 }
 0x82a   :  { %2904 = vmatpush.msrb.mxu3 %v5788_v25 }
 0x82c   :  { %2905 = vmatpush.msrb.mxu3 %v5791_v24 }
 0x82e   :  { %2906 = vmatpush.msrb.mxu3 %v5794_v8 }
 0x82f   :  { %v2130_v50 = vpop.f32.mrf.mxu1 }
 0x830   :  { %2907 = vmatpush.msrb.mxu3 %v5798_v9  ;;  %v2173_v20 = vadd.f32 %v2130_v50, %v259_v30  ;;  %v2307_v50 = vpop.f32.mrf.mxu0 }
 0x832   :  { %2908 = vmatpush.msrb.mxu3 %v5808_v13  ;;  %v3990_v53 = vmul.f32 -1.442695, %v2173_v20 }
 0x834   :  { %4142 = vpow2.f32 %v3990_v53  ;;  %v2308_v53 = vadd.f32 %v2307_v50, %v6005_v32  ;;  %v4274_v50 = vld [vmem:[%s6799_s4] ss:$0 sm:$0xff] }
 0x835   :  { %v2150_v28 = vpop.f32.mrf.mxu2 }
 0x836   :  { %v2174_v55 = vadd.f32 %v2150_v28, %v260_v46  ;;  %v2170_v33 = vpop.f32.mrf.mxu3 }
 0x838   :  { %v3991_v58 = vmul.f32 -1.442695, %v2174_v55 }
 0x83a   :  { %v4143_v2 = vpop.eup %4142  ;;  %4144 = vpow2.f32 %v3991_v58 }
 0x83b   :  { %v2181_v23 = vadd.f32 1.0, %v4143_v2 }
 0x83d   :  { %4146 = vrcp.f32 %v2181_v23  ;;  %v2194_v28 = vand.u32 2147483648, %v2181_v23  ;;  %v2192_v2 = vand.u32 2147483647, %v2181_v23  ;;  %vm2188_vm9 = vweird.f32 %v2181_v23 }
 0x83e   :  { %v2554_v20 = vpop.f32.mrf.mxu3 }
 0x83f   :  { %v2597_v55 = vadd.f32 %v2554_v20, %v2308_v53  ;;  %vm2193_vm11 = vcmp.eq.f32.partialorder %v2192_v2, 8.507059e+37  ;;  %v261_v20 = vadd.f32 %v4863_v29, %v217_v12 }
 0x840   :  { %v4145_v56 = vpop.eup %4144 }
 0x841   :  { %v2182_v30 = vadd.f32 1.0, %v4145_v56  ;;  %v2195_v56 = vor.u32 1.1754944e-38, %v2194_v28  ;;  %v3992_v10 = vmul.f32 -1.442695, %v2597_v55 }
 0x843   :  { %v4147_v62 = vpop.eup %4146  ;;  %4148 = vrcp.f32 %v2182_v30  ;;  %v2209_v17 = vand.u32 2147483648, %v2182_v30  ;;  %vm2203_vm13 = vweird.f32 %v2182_v30 }
 0x844   :  { %v2184_v15 = vmul.f32 %v4147_v62, %v2181_v23  ;;  %vm2189_vm8 = vweird.f32 %v4147_v62  ;;  %4150 = vpow2.f32 %v3992_v10  ;;  %v2207_v23 = vand.u32 2147483647, %v2182_v30 }
 0x845   :  { %vm2190_vm10 = vmor %vm2188_vm9, %vm2189_vm8 }
 0x846   :  { %v2185_v46 = vsub.f32 1.0, %v2184_v15  ;;  %v2213_v15 = vadd.f32 %v4274_v50, %v2170_v33  ;;  %v2210_v33 = vor.u32 1.1754944e-38, %v2209_v17  ;;  %vm2208_vm15 = vcmp.eq.f32.partialorder %v2207_v23, 8.507059e+37 }
 0x848   :  { %v2186_v58 = vmul.f32 %v4147_v62, %v2185_v46 }
 0x849   :  { %v4149_v13 = vpop.eup %4148 }
 0x84a   :  { %v2199_v9 = vmul.f32 %v4149_v13, %v2182_v30  ;;  %v2187_v6 = vadd.f32 %v4147_v62, %v2186_v58  ;;  %vm2204_vm12 = vweird.f32 %v4149_v13 }
 0x84b   :  { %vm2205_vm14 = vmor %vm2203_vm13, %vm2204_vm12 }
 0x84c   :  { %v2200_v8 = vsub.f32 1.0, %v2199_v9  ;;  %v2191_v14 = vsel %vm2190_vm10, %v4147_v62, %v2187_v6  ;;  %v6014_v6 = vperm.slane %v6002_v61, 1  ;;  %v2360_v9 = vpop.f32.mrf.mxu1 }
 0x84d   :  { %v2196_v53 = vsel %vm2193_vm11, %v2195_v56, %v2191_v14  ;;  %v4151_v14 = vpop.eup %4150 }
 0x84e   :  { %v2214_v46 = vmul.f32 %v2213_v15, %v2196_v53  ;;  %v2201_v32 = vmul.f32 %v4149_v13, %v2200_v8  ;;  %6852 = vst [vmem:[#allocation26_spill] sm:$0xff] %v6014_v6  ;;  %v2361_v8 = vadd.f32 %v2360_v9, %v6014_v6  ;;  %v2605_v2 = vadd.f32 1.0, %v4151_v14 }
 0x84f   :  { %v6024_v14 = vperm.slane %v6002_v61, 2 }
 0x850   :  { %v2215_v49 = vadd.f32 %v2214_v46, %v261_v20  ;;  %v2202_v28 = vadd.f32 %v4149_v13, %v2201_v32  ;;  %vm2612_vm1 = vweird.f32 %v2605_v2 }
 0x852   :  { %4152 = vtanh.f32 %v2215_v49  ;;  %v2206_v62 = vsel %vm2205_vm14, %v4149_v13, %v2202_v28 }
 0x853   :  { %v2211_v29 = vsel %vm2208_vm15, %v2210_v33, %v2206_v62  ;;  %v2618_v62 = vand.u32 2147483648, %v2605_v2  ;;  %v6021_v33 = vld [vmem:[%s6803_s8] ss:$0 sm:$0xff] }
 0x854   :  { %v2217_v10 = vsub.f32 1.0, %v2211_v29  ;;  %v2219_v56 = vmul.f32 %v2211_v29, %v5800_v5  ;;  %v2616_v5 = vand.u32 2147483647, %v2605_v2 }
 0x856   :  { %v2574_v12 = vpop.f32.mrf.mxu3  ;;  %vm2617_vm3 = vcmp.eq.f32.partialorder %v2616_v5, 8.507059e+37  ;;  %v6044_v5 = vld [vmem:[#allocation9 + $0x138] sm:$0xff] }
 0x857   :  { %v2598_v55 = vadd.f32 %v2574_v12, %v2361_v8  ;;  %v2413_v12 = vpop.f32.mrf.mxu2 }
 0x858   :  { %v4153_v58 = vpop.eup %4152 }
 0x859   :  { %v3993_v32 = vmul.f32 -1.442695, %v2598_v55  ;;  %v2218_v30 = vmul.f32 %v4153_v58, %v2217_v10  ;;  %v2619_v10 = vor.u32 1.1754944e-38, %v2618_v62 }
 0x85b   :  { %4154 = vpow2.f32 %v3993_v32  ;;  %v2220_v50 = vadd.f32 %v2219_v56, %v2218_v30 }
 0x85c   :  { %4156 = vrcp.f32 %v2605_v2 }
 0x85d   :  { %2339 = vmatmul.f32.gmra.mxu0 %v2220_v50  ;;  %2392 = vmatmul.f32.gmra.mxu1 %v2220_v50 }
 0x85e   :  { %2445 = vmatmul.f32.gmra.mxu2 %v2220_v50 }
 0x861   :  { %v4155_v13 = vpop.eup %4154 }
 0x862   :  { %v4157_v15 = vpop.eup %4156  ;;  %v2606_v20 = vadd.f32 1.0, %v4155_v13 }
 0x863   :  { %v2608_v53 = vmul.f32 %v4157_v15, %v2605_v2  ;;  %vm2613_vm0 = vweird.f32 %v4157_v15  ;;  %v2414_v2 = vadd.f32 %v2413_v12, %v6024_v14 }
 0x864   :  { %4158 = vrcp.f32 %v2606_v20  ;;  %vm2614_vm2 = vmor %vm2612_vm1, %vm2613_vm0  ;;  %v2633_v50 = vand.u32 2147483648, %v2606_v20  ;;  %vm2627_vm5 = vweird.f32 %v2606_v20  ;;  %v2631_v13 = vand.u32 2147483647, %v2606_v20 }
 0x865   :  { %v2609_v46 = vsub.f32 1.0, %v2608_v53 }
 0x866   :  { %vm2632_vm7 = vcmp.eq.f32.partialorder %v2631_v13, 8.507059e+37 }
 0x867   :  { %v2610_v49 = vmul.f32 %v4157_v15, %v2609_v46 }
 0x869   :  { %v2611_v9 = vadd.f32 %v4157_v15, %v2610_v49 }
 0x86a   :  { %v4159_v17 = vpop.eup %4158 }
 0x86b   :  { %v2623_v23 = vmul.f32 %v4159_v17, %v2606_v20  ;;  %v2615_v8 = vsel %vm2614_vm2, %v4157_v15, %v2611_v9  ;;  %vm2628_vm4 = vweird.f32 %v4159_v17  ;;  %v2634_v15 = vor.u32 1.1754944e-38, %v2633_v50  ;;  %v6034_v20 = vld [vmem:[#allocation9 + $0x168] sm:$0xff] }
 0x86c   :  { %v2620_v32 = vsel %vm2617_vm3, %v2619_v10, %v2615_v8  ;;  %vm2629_vm6 = vmor %vm2627_vm5, %vm2628_vm4 }
 0x86d   :  { %v2624_v28 = vsub.f32 1.0, %v2623_v23 }
 0x86f   :  { %v2625_v29 = vmul.f32 %v4159_v17, %v2624_v28 }
 0x871   :  { %v2626_v30 = vadd.f32 %v4159_v17, %v2625_v29 }
 0x873   :  { %v2630_v61 = vsel %vm2629_vm6, %v4159_v17, %v2626_v30  ;;  %v6039_v17 = vld [vmem:[#allocation9 + $0x150] sm:$0xff] }
 0x874   :  { %v2635_v46 = vsel %vm2632_vm7, %v2634_v15, %v2630_v61 }
 0x875   :  { %v2644_v23 = vsub.f32 1.0, %v2635_v46  ;;  %v2646_v9 = vmul.f32 0.0, %v2635_v46 }
 0x876   :  { %v2594_v55 = vpop.f32.mrf.mxu3 }
 0x877   :  { %v2640_v58 = vadd.f32 %v6021_v33, %v2594_v55 }
 0x879   :  { %v2641_v56 = vmul.f32 %v2640_v58, %v2620_v32 }
 0x87b   :  { %v2642_v53 = vadd.f32 %v2641_v56, %v2414_v2 }
 0x87d   :  { %4160 = vtanh.f32 %v2642_v53 }
 0x883   :  { %v4161_v49 = vpop.eup %4160 }
 0x884   :  { %v2645_v28 = vmul.f32 %v4161_v49, %v2644_v23 }
 0x886   :  { %v6028_v62 = vadd.f32 %v2646_v9, %v2645_v28 }
 0x888   :  { %2667 = vmatmul.f32.vlgmr.msra.gmra.mxu0 %v6028_v62  ;;  %2687 = vmatmul.f32.vlgmr.msra.gmra.mxu1 %v6028_v62 }
 0x889   :  { %2707 = vmatmul.f32.vlgmr.msra.gmra.mxu2 %v6028_v62  ;;  %2913 = vmatpush.msra.mxu0 %v5810_v31 }
 0x88a   :  { %2984 = vmatpush.msra.mxu1 %v6034_v20  ;;  %3004 = vmatpush.msra.mxu2 %v5742_v19  ;;  %v6858_v19 = vld [vmem:[#allocation24_spill] sm:$0xff] }
 0x88b   :  { %2914 = vmatpush.msra.mxu0 %v5816_v60 }
 0x88c   :  { %2985 = vmatpush.msra.mxu1 %v6039_v17  ;;  %3005 = vmatpush.msra.mxu2 %v5746_v43  ;;  %v6860_v43 = vld [vmem:[#allocation22_spill] sm:$0xff] }
 0x88d   :  { %2915 = vmatpush.msra.mxu0 %v5821_v22 }
 0x88e   :  { %2986 = vmatpush.msra.mxu1 %v6044_v5  ;;  %3006 = vmatpush.msra.mxu2 %v5749_v51 }
 0x88f   :  { %2916 = vmatpush.msra.mxu0 %v5830_v18 }
 0x890   :  { %2987 = vmatpush.msra.mxu1 %v5677_v59  ;;  %3007 = vmatpush.msra.mxu2 %v5753_v21  ;;  %v2363_v59 = vpop.f32.mrf.mxu1 }
 0x891   :  { %2917 = vmatpush.msra.mxu0 %v5835_v48 }
 0x892   :  { %2988 = vmatpush.msra.mxu1 %v5681_v0  ;;  %3008 = vmatpush.msra.mxu2 %v5757_v38  ;;  %v2310_v0 = vpop.f32.mrf.mxu0  ;;  %v6095_v38 = vpop.f32.mrf.mxu2 }
 0x893   :  { %2918 = vmatpush.msra.mxu0 %v5840_v1 }
 0x894   :  { %2989 = vmatpush.msra.mxu1 %v5686_v44  ;;  %3009 = vmatpush.msra.mxu2 %v5762_v39  ;;  %v6853_v44 = vld [vmem:[#allocation17_spill] sm:$0xff] }
 0x895   :  { %2919 = vmatpush.msra.mxu0 %v5847_v52 }
 0x896   :  { %2990 = vmatpush.msra.mxu1 %v5694_v63  ;;  %3010 = vmatpush.msra.mxu2 %v5768_v41  ;;  %v6854_v63 = vld [vmem:[#allocation20_spill] sm:$0xff] }
 0x897   :  { %2920 = vmatpush.msra.mxu0 %v5852_v47 }
 0x898   :  { %2991 = vmatpush.msra.mxu1 %v5698_v37  ;;  %3011 = vmatpush.msra.mxu2 %v5772_v26  ;;  %v6081_v37 = vpop.f32.mrf.mxu1 }
 0x899   :  { %2921 = vmatpush.msra.mxu0 %v5857_v34 }
 0x89a   :  { %2992 = vmatpush.msra.mxu1 %v5704_v16  ;;  %3012 = vmatpush.msra.mxu2 %v5777_v4  ;;  %v6855_v16 = vld [vmem:[#allocation23_spill] sm:$0xff]  ;;  %v6101_v12 = vpop.f32.mrf.mxu2 }
 0x89b   :  { %2922 = vmatpush.msra.mxu0 %v5866_v57 }
 0x89c   :  { %2993 = vmatpush.msra.mxu1 %v5708_v27  ;;  %3013 = vmatpush.msra.mxu2 %v5782_v11  ;;  %v6856_v27 = vld [vmem:[#allocation18_spill] sm:$0xff] }
 0x89d   :  { %2923 = vmatpush.msra.mxu0 %v5871_v36 }
 0x89e   :  { %2994 = vmatpush.msra.mxu1 %v5713_v7  ;;  %3014 = vmatpush.msra.mxu2 %v5785_v40  ;;  %v6857_v7 = vld [vmem:[#allocation21_spill] sm:$0xff] }
 0x89f   :  { %2924 = vmatpush.msra.mxu0 %v5876_v54 }
 0x8a0   :  { %2995 = vmatpush.msra.mxu1 %v5716_v45  ;;  %3015 = vmatpush.msra.mxu2 %v5788_v25  ;;  %v6086_v45 = vpop.f32.mrf.mxu0  ;;  %v6091_v51 = vpop.f32.mrf.mxu1 }
 0x8a1   :  { %2925 = vmatpush.msra.mxu0 %v5886_v35 }
 0x8a2   :  { %2996 = vmatpush.msra.mxu1 %v5720_v42  ;;  %3016 = vmatpush.msra.mxu2 %v5791_v24  ;;  %v6859_v42 = vld [vmem:[#allocation19_spill] sm:$0xff]  ;;  %v6107_v58 = vpop.f32.mrf.mxu2 }
 0x8a3   :  { %2926 = vmatpush.msra.mxu0 %v5890_v3 }
 0x8a4   :  { %2997 = vmatpush.msra.mxu1 %v6853_v44  ;;  %3017 = vmatpush.msra.mxu2 %v6854_v63 }
 0x8a5   :  { %2927 = vmatpush.msra.mxu0 %v6855_v16 }
 0x8a6   :  { %2998 = vmatpush.msra.mxu1 %v6856_v27  ;;  %3018 = vmatpush.msra.mxu2 %v6857_v7 }
 0x8a7   :  { %2928 = vmatpush.msra.mxu0 %v6858_v19 }
 0x8a8   :  { %2999 = vmatpush.msra.mxu1 %v6859_v42  ;;  %3019 = vmatpush.msra.mxu2 %v6860_v43  ;;  %v6093_v21 = vpop.f32.mrf.mxu0  ;;  %v6097_v29 = vpop.f32.mrf.mxu1 }
 0x8a9   :  { %6861 = vst [vmem:[#allocation17_spill] sm:$0xff] %v6097_v29 }
 0x8aa   :  { %v6113_v2 = vpop.f32.mrf.mxu2 }
 0x8ab   :  { %6867 = vst [vmem:[#allocation19_spill] sm:$0xff] %v6113_v2 }
 0x8b0   :  { %v6099_v8 = vpop.f32.mrf.mxu0  ;;  %v6103_v55 = vpop.f32.mrf.mxu1 }
 0x8b1   :  { %6862 = vst [vmem:[#allocation20_spill] sm:$0xff] %v6099_v8 }
 0x8b2   :  { %6863 = vst [vmem:[#allocation23_spill] sm:$0xff] %v6103_v55  ;;  %v6119_v13 = vpop.f32.mrf.mxu2 }
 0x8b3   :  { %6870 = vst [vmem:[#allocation28_spill] sm:$0xff] %v6119_v13 }
 0x8b8   :  { %v6105_v10 = vpop.f32.mrf.mxu0  ;;  %v6109_v32 = vpop.f32.mrf.mxu1 }
 0x8b9   :  { %6864 = vst [vmem:[#allocation18_spill] sm:$0xff] %v6105_v10 }
 0x8ba   :  { %6865 = vst [vmem:[#allocation21_spill] sm:$0xff] %v6109_v32  ;;  %v6125_v15 = vpop.f32.mrf.mxu2 }
 0x8bb   :  { %6873 = vst [vmem:[#allocation31_spill] sm:$0xff] %v6125_v15 }
 0x8c0   :  { %v6111_v30 = vpop.f32.mrf.mxu0  ;;  %v6115_v56 = vpop.f32.mrf.mxu1 }
 0x8c1   :  { %6866 = vst [vmem:[#allocation24_spill] sm:$0xff] %v6111_v30 }
 0x8c2   :  { %6868 = vst [vmem:[#allocation22_spill] sm:$0xff] %v6115_v56  ;;  %v6131_v49 = vpop.f32.mrf.mxu2  ;;  %v2364_v56 = vadd.f32 %v2363_v59, %v6014_v6 }
 0x8c3   :  { %6876 = vst [vmem:[#allocation34_spill] sm:$0xff] %v6131_v49 }
 0x8c8   :  { %v6117_v50 = vpop.f32.mrf.mxu0  ;;  %v6121_v53 = vpop.f32.mrf.mxu1 }
 0x8c9   :  { %6869 = vst [vmem:[#allocation27_spill] sm:$0xff] %v6117_v50 }
 0x8ca   :  { %6871 = vst [vmem:[#allocation29_spill] sm:$0xff] %v6121_v53  ;;  %v6137_v44 = vpop.f32.mrf.mxu2  ;;  %v6882_v53 = vld [vmem:[#allocation25_spill] sm:$0xff] }
 0x8cb   :  { %6879 = vst [vmem:[#allocation37_spill] sm:$0xff] %v6137_v44 }
 0x8d0   :  { %v6123_v61 = vpop.f32.mrf.mxu0  ;;  %v6127_v46 = vpop.f32.mrf.mxu1 }
 0x8d1   :  { %6872 = vst [vmem:[#allocation30_spill] sm:$0xff] %v6123_v61  ;;  %v2311_v61 = vadd.f32 %v2310_v0, %v6882_v53 }
 0x8d2   :  { %6874 = vst [vmem:[#allocation32_spill] sm:$0xff] %v6127_v46  ;;  %v6145_v50 = vpop.f32.mrf.mxu2 }
 0x8d3   :  { %6883 = vst [vmem:[#allocation40_spill] sm:$0xff] %v6145_v50 }
 0x8d8   :  { %v6129_v23 = vpop.f32.mrf.mxu0  ;;  %v6135_v9 = vpop.f32.mrf.mxu1 }
 0x8d9   :  { %6875 = vst [vmem:[#allocation33_spill] sm:$0xff] %v6129_v23 }
 0x8da   :  { %6878 = vst [vmem:[#allocation36_spill] sm:$0xff] %v6135_v9  ;;  %v6147_v9 = vpop.f32.mrf.mxu2 }
 0x8db   :  { %6884 = vst [vmem:[#allocation41_spill] sm:$0xff] %v6147_v9 }
 0x8e0   :  { %v6133_v28 = vpop.f32.mrf.mxu0  ;;  %v6141_v42 = vpop.f32.mrf.mxu1 }
 0x8e1   :  { %6877 = vst [vmem:[#allocation35_spill] sm:$0xff] %v6133_v28 }
 0x8e2   :  { %6881 = vst [vmem:[#allocation39_spill] sm:$0xff] %v6141_v42  ;;  %v6149_v0 = vpop.f32.mrf.mxu2 }
 0x8e3   :  { %6885 = vst [vmem:[#allocation42_spill] sm:$0xff] %v6149_v0 }
 0x8e8   :  { %v6139_v27 = vpop.f32.mrf.mxu0 }
 0x8e9   :  { %6880 = vst [vmem:[#allocation38_spill] sm:$0xff] %v6139_v27 }
 0x905   :  { %v2668_v46 = vpop.f32.mrf.mxu0  ;;  %v2688_v23 = vpop.f32.mrf.mxu1 }
 0x906   :  { %v2711_v15 = vadd.f32 %v2668_v46, %v2311_v61  ;;  %v2712_v49 = vadd.f32 %v2688_v23, %v2364_v56 }
 0x908   :  { %v3994_v30 = vmul.f32 -1.442695, %v2711_v15  ;;  %v3995_v28 = vmul.f32 -1.442695, %v2712_v49 }
 0x90a   :  { %4162 = vpow2.f32 %v3994_v30 }
 0x90b   :  { %4164 = vpow2.f32 %v3995_v28 }
 0x90c   :  { %v2708_v49 = vpop.f32.mrf.mxu2 }
 0x90d   :  { %v2751_v0 = vadd.f32 %v6021_v33, %v2708_v49 }
 0x910   :  { %v4163_v44 = vpop.eup %4162 }
 0x911   :  { %v4165_v27 = vpop.eup %4164  ;;  %v2719_v32 = vadd.f32 1.0, %v4163_v44 }
 0x912   :  { %v2720_v42 = vadd.f32 1.0, %v4165_v27 }
 0x913   :  { %4166 = vrcp.f32 %v2719_v32  ;;  %v2732_v15 = vand.u32 2147483648, %v2719_v32  ;;  %v2730_v30 = vand.u32 2147483647, %v2719_v32  ;;  %vm2726_vm9 = vweird.f32 %v2719_v32 }
 0x914   :  { %4168 = vrcp.f32 %v2720_v42  ;;  %vm2741_vm13 = vweird.f32 %v2720_v42  ;;  %v2745_v2 = vand.u32 2147483647, %v2720_v42 }
 0x915   :  { %v2733_v44 = vor.u32 1.1754944e-38, %v2732_v15  ;;  %vm2731_vm11 = vcmp.eq.f32.partialorder %v2730_v30, 8.507059e+37 }
 0x916   :  { %vm2746_vm15 = vcmp.eq.f32.partialorder %v2745_v2, 8.507059e+37  ;;  %v6183_v2 = vld [vmem:[#allocation9 + $0x108] sm:$0xff] }
 0x919   :  { %v4167_v59 = vpop.eup %4166 }
 0x91a   :  { %v4169_v50 = vpop.eup %4168  ;;  %v2722_v13 = vmul.f32 %v4167_v59, %v2719_v32  ;;  %vm2727_vm8 = vweird.f32 %v4167_v59 }
 0x91b   :  { %v2737_v55 = vmul.f32 %v4169_v50, %v2720_v42  ;;  %vm2728_vm10 = vmor %vm2726_vm9, %vm2727_vm8  ;;  %vm2742_vm12 = vweird.f32 %v4169_v50 }
 0x91c   :  { %v2723_v61 = vsub.f32 1.0, %v2722_v13  ;;  %vm2743_vm14 = vmor %vm2741_vm13, %vm2742_vm12 }
 0x91d   :  { %v2738_v56 = vsub.f32 1.0, %v2737_v55  ;;  %v2417_v55 = vadd.f32 %v6095_v38, %v6024_v14  ;;  %v6162_v38 = vld [vmem:[#allocation9 + $0x170] sm:$0xff] }
 0x91e   :  { %v2724_v46 = vmul.f32 %v4167_v59, %v2723_v61  ;;  %v2747_v61 = vand.u32 2147483648, %v2720_v42 }
 0x91f   :  { %v2739_v23 = vmul.f32 %v4169_v50, %v2738_v56 }
 0x920   :  { %v2725_v28 = vadd.f32 %v4167_v59, %v2724_v46  ;;  %v2748_v32 = vor.u32 1.1754944e-38, %v2747_v61 }
 0x921   :  { %v2740_v10 = vadd.f32 %v4169_v50, %v2739_v23 }
 0x922   :  { %v2729_v27 = vsel %vm2728_vm10, %v4167_v59, %v2725_v28 }
 0x923   :  { %v2734_v9 = vsel %vm2731_vm11, %v2733_v44, %v2729_v27  ;;  %v2744_v46 = vsel %vm2743_vm14, %v4169_v50, %v2740_v10  ;;  %v6172_v10 = vld [vmem:[#allocation9 + $0x140] sm:$0xff]  ;;  %v6195_v50 = vld [vmem:[#allocation9 + $0xd8] sm:$0xff] }
 0x924   :  { %v2752_v13 = vmul.f32 %v2751_v0, %v2734_v9  ;;  %v2749_v59 = vsel %vm2746_vm15, %v2748_v32, %v2744_v46 }
 0x925   :  { %v2755_v15 = vsub.f32 1.0, %v2749_v59  ;;  %v2757_v23 = vmul.f32 %v2749_v59, %v6028_v62  ;;  %v6167_v62 = vld [vmem:[#allocation9 + $0x158] sm:$0xff] }
 0x926   :  { %v2753_v56 = vadd.f32 %v2752_v13, %v2417_v55 }
 0x928   :  { %4170 = vtanh.f32 %v2753_v56 }
 0x92e   :  { %v4171_v30 = vpop.eup %4170 }
 0x92f   :  { %v2756_v49 = vmul.f32 %v4171_v30, %v2755_v15 }
 0x931   :  { %v6155_v28 = vadd.f32 %v2757_v23, %v2756_v49  ;;  %v2420_v49 = vadd.f32 %v6101_v12, %v6024_v14  ;;  %v6257_v12 = vld [vmem:[#allocation9 + $0x178] sm:$0xff] }
 0x933   :  { %2778 = vmatmul.f32.vlgmr.msra.gmra.mxu3 %v6155_v28  ;;  %2798 = vmatmul.f32.vlgmr.msrb.gmra.mxu0 %v6155_v28 }
 0x934   :  { %2818 = vmatmul.f32.vlgmr.msrb.gmra.mxu1 %v6155_v28  ;;  %3024 = vmatpush.msra.mxu3 %v5810_v31  ;;  %v6176_v31 = vld [vmem:[#allocation9 + $0x120] sm:$0xff] }
 0x935   :  { %3095 = vmatpush.msrb.mxu0 %v6034_v20  ;;  %3115 = vmatpush.msrb.mxu1 %v6162_v38 }
 0x936   :  { %3025 = vmatpush.msra.mxu3 %v5816_v60  ;;  %v6179_v60 = vld [vmem:[#allocation9 + $0x128] sm:$0xff] }
 0x937   :  { %3096 = vmatpush.msrb.mxu0 %v6039_v17  ;;  %3116 = vmatpush.msrb.mxu1 %v6167_v62 }
 0x938   :  { %3026 = vmatpush.msra.mxu3 %v5821_v22  ;;  %v6186_v22 = vld [vmem:[#allocation9 + $0x110] sm:$0xff] }
 0x939   :  { %3097 = vmatpush.msrb.mxu0 %v6044_v5  ;;  %3117 = vmatpush.msrb.mxu1 %v6172_v10 }
 0x93a   :  { %3027 = vmatpush.msra.mxu3 %v5830_v18  ;;  %v6190_v18 = vld [vmem:[#allocation9 + $0xf0] sm:$0xff] }
 0x93b   :  { %3098 = vmatpush.msrb.mxu0 %v6176_v31  ;;  %3118 = vmatpush.msrb.mxu1 %v6179_v60 }
 0x93c   :  { %3028 = vmatpush.msra.mxu3 %v5835_v48  ;;  %v6200_v48 = vld [vmem:[#allocation9 + $0xc0] sm:$0xff] }
 0x93d   :  { %3099 = vmatpush.msrb.mxu0 %v6183_v2  ;;  %3119 = vmatpush.msrb.mxu1 %v6186_v22 }
 0x93e   :  { %3029 = vmatpush.msra.mxu3 %v5840_v1  ;;  %v6205_v1 = vld [vmem:[#allocation9 + $0xa8] sm:$0xff] }
 0x93f   :  { %3100 = vmatpush.msrb.mxu0 %v6190_v18  ;;  %3120 = vmatpush.msrb.mxu1 %v5762_v39  ;;  %v6210_v39 = vld [vmem:[#allocation9 + $0x90] sm:$0xff] }
 0x940   :  { %3030 = vmatpush.msra.mxu3 %v5847_v52 }
 0x941   :  { %3101 = vmatpush.msrb.mxu0 %v6195_v50  ;;  %3121 = vmatpush.msrb.mxu1 %v5768_v41  ;;  %v6215_v41 = vld [vmem:[#allocation9 + $0x78] sm:$0xff] }
 0x942   :  { %3031 = vmatpush.msra.mxu3 %v5852_v47 }
 0x943   :  { %3102 = vmatpush.msrb.mxu0 %v6200_v48  ;;  %3122 = vmatpush.msrb.mxu1 %v5772_v26  ;;  %v6220_v26 = vld [vmem:[#allocation9 + $0x60] sm:$0xff] }
 0x944   :  { %3032 = vmatpush.msra.mxu3 %v5857_v34 }
 0x945   :  { %3103 = vmatpush.msrb.mxu0 %v6205_v1  ;;  %3123 = vmatpush.msrb.mxu1 %v5777_v4  ;;  %v6225_v4 = vld [vmem:[#allocation9 + $0x48] sm:$0xff] }
 0x946   :  { %3033 = vmatpush.msra.mxu3 %v5866_v57  ;;  %v2314_v57 = vadd.f32 %v6086_v45, %v6882_v53 }
 0x947   :  { %3104 = vmatpush.msrb.mxu0 %v6210_v39  ;;  %3124 = vmatpush.msrb.mxu1 %v5782_v11  ;;  %v6230_v11 = vld [vmem:[#allocation9 + $0x30] sm:$0xff] }
 0x948   :  { %3034 = vmatpush.msra.mxu3 %v5871_v36  ;;  %6886 = vst [vmem:[#allocation43_spill] sm:$0xff] %v6230_v11 }
 0x949   :  { %3105 = vmatpush.msrb.mxu0 %v6215_v41  ;;  %3125 = vmatpush.msrb.mxu1 %v5785_v40  ;;  %v6235_v40 = vld [vmem:[#allocation9 + $0x18] sm:$0xff] }
 0x94a   :  { %3035 = vmatpush.msra.mxu3 %v5876_v54  ;;  %6887 = vst [vmem:[#allocation44_spill] sm:$0xff] %v6235_v40 }
 0x94b   :  { %3106 = vmatpush.msrb.mxu0 %v6220_v26  ;;  %3126 = vmatpush.msrb.mxu1 %v5788_v25  ;;  %v6240_v25 = vld [vmem:[#allocation9] sm:$0xff] }
 0x94c   :  { %3036 = vmatpush.msra.mxu3 %v5886_v35  ;;  %6888 = vst [vmem:[#allocation45_spill] sm:$0xff] %v6240_v25 }
 0x94d   :  { %3107 = vmatpush.msrb.mxu0 %v6225_v4  ;;  %3127 = vmatpush.msrb.mxu1 %v5791_v24  ;;  %v2367_v24 = vadd.f32 %v6081_v37, %v6014_v6 }
 0x94e   :  { %3037 = vmatpush.msra.mxu3 %v5890_v3 }
 0x94f   :  { %3108 = vmatpush.msrb.mxu0 %v6230_v11  ;;  %3128 = vmatpush.msrb.mxu1 %v6854_v63 }
 0x950   :  { %3038 = vmatpush.msra.mxu3 %v6855_v16 }
 0x951   :  { %3109 = vmatpush.msrb.mxu0 %v6235_v40  ;;  %3129 = vmatpush.msrb.mxu1 %v6857_v7 }
 0x952   :  { %3039 = vmatpush.msra.mxu3 %v6858_v19 }
 0x953   :  { %3110 = vmatpush.msrb.mxu0 %v6240_v25  ;;  %3130 = vmatpush.msrb.mxu1 %v6860_v43 }
 0x9b0   :  { %v2799_v52 = vpop.f32.mrf.mxu0 }
 0x9b1   :  { %v2823_v47 = vadd.f32 %v2799_v52, %v2367_v24  ;;  %v2819_v61 = vpop.f32.mrf.mxu1 }
 0x9b2   :  { %v2862_v32 = vadd.f32 %v6021_v33, %v2819_v61  ;;  %v6310_v61 = vld [vmem:[#allocation9 + $0xa0] sm:$0xff] }
 0x9b3   :  { %v3997_v34 = vmul.f32 -1.442695, %v2823_v47 }
 0x9b5   :  { %4172 = vpow2.f32 %v3997_v34 }
 0x9b6   :  { %v2779_v36 = vpop.f32.mrf.mxu3 }
 0x9b7   :  { %v2822_v54 = vadd.f32 %v2779_v36, %v2314_v57 }
 0x9b9   :  { %v3996_v35 = vmul.f32 -1.442695, %v2822_v54 }
 0x9bb   :  { %v4173_v3 = vpop.eup %4172  ;;  %4174 = vpow2.f32 %v3996_v35 }
 0x9bc   :  { %v2831_v63 = vadd.f32 1.0, %v4173_v3 }
 0x9be   :  { %4176 = vrcp.f32 %v2831_v63  ;;  %v2858_v23 = vand.u32 2147483648, %v2831_v63  ;;  %vm2852_vm5 = vweird.f32 %v2831_v63  ;;  %v2856_v52 = vand.u32 2147483647, %v2831_v63 }
 0x9c0   :  { %v2859_v57 = vor.u32 1.1754944e-38, %v2858_v23  ;;  %vm2857_vm7 = vcmp.eq.f32.partialorder %v2856_v52, 8.507059e+37  ;;  %v6338_v23 = vld [vmem:[#allocation9 + $0x40] sm:$0xff]  ;;  %v6345_v52 = vld [vmem:[#allocation9 + $0x28] sm:$0xff] }
 0x9c1   :  { %v4175_v16 = vpop.eup %4174  ;;  %6889 = vst [vmem:[#allocation46_spill] sm:$0xff] %v6338_v23 }
 0x9c2   :  { %v2830_v7 = vadd.f32 1.0, %v4175_v16  ;;  %6891 = vst [vmem:[#allocation48_spill] sm:$0xff] %v6345_v52 }
 0x9c4   :  { %4178 = vrcp.f32 %v2830_v7  ;;  %v4177_v43 = vpop.eup %4176  ;;  %v2843_v27 = vand.u32 2147483648, %v2830_v7  ;;  %v2841_v45 = vand.u32 2147483647, %v2830_v7  ;;  %vm2837_vm1 = vweird.f32 %v2830_v7 }
 0x9c5   :  { %v2848_v9 = vmul.f32 %v4177_v43, %v2831_v63  ;;  %vm2853_vm4 = vweird.f32 %v4177_v43  ;;  %v6262_v63 = vld [vmem:[#allocation9 + $0x160] sm:$0xff] }
 0x9c6   :  { %v2844_v46 = vor.u32 1.1754944e-38, %v2843_v27  ;;  %vm2842_vm3 = vcmp.eq.f32.partialorder %v2841_v45, 8.507059e+37  ;;  %vm2854_vm6 = vmor %vm2852_vm5, %vm2853_vm4  ;;  %v6296_v27 = vld [vmem:[#allocation9 + $0xd0] sm:$0xff]  ;;  %v6303_v45 = vld [vmem:[#allocation9 + $0xb8] sm:$0xff] }
 0x9c7   :  { %v2849_v0 = vsub.f32 1.0, %v2848_v9  ;;  %v6277_v9 = vld [vmem:[#allocation9 + $0x118] sm:$0xff] }
 0x9c9   :  { %v2850_v13 = vmul.f32 %v4177_v43, %v2849_v0  ;;  %v6289_v0 = vld [vmem:[#allocation9 + $0xe8] sm:$0xff] }
 0x9ca   :  { %v4179_v37 = vpop.eup %4178 }
 0x9cb   :  { %v2833_v42 = vmul.f32 %v4179_v37, %v2830_v7  ;;  %vm2838_vm0 = vweird.f32 %v4179_v37  ;;  %v2851_v30 = vadd.f32 %v4177_v43, %v2850_v13  ;;  %v6307_v13 = vld [vmem:[#allocation9 + $0xb0] sm:$0xff] }
 0x9cc   :  { %vm2839_vm2 = vmor %vm2837_vm1, %vm2838_vm0 }
 0x9cd   :  { %v2834_v44 = vsub.f32 1.0, %v2833_v42  ;;  %v2855_v34 = vsel %vm2854_vm6, %v4177_v43, %v2851_v30  ;;  %v6272_v43 = vld [vmem:[#allocation9 + $0x130] sm:$0xff]  ;;  %v6286_v42 = vld [vmem:[#allocation9 + $0xf8] sm:$0xff] }
 0x9ce   :  { %v2860_v36 = vsel %vm2857_vm7, %v2859_v57, %v2855_v34  ;;  %v6331_v30 = vld [vmem:[#allocation9 + $0x58] sm:$0xff]  ;;  %v6354_v34 = vld [vmem:[#allocation9 + $0x8] sm:$0xff]  ;;  %v2317_v57 = vadd.f32 %v6093_v21, %v6882_v53 }
 0x9cf   :  { %v2835_v55 = vmul.f32 %v4179_v37, %v2834_v44  ;;  %v2866_v54 = vsub.f32 1.0, %v2860_v36  ;;  %v2868_v16 = vmul.f32 %v2860_v36, %v6155_v28  ;;  %v6267_v28 = vld [vmem:[#allocation9 + $0x148] sm:$0xff]  ;;  %v6293_v44 = vld [vmem:[#allocation9 + $0xe0] sm:$0xff]  ;;  %6893 = vst [vmem:[#allocation50_spill] sm:$0xff] %v6354_v34  ;;  %v2370_v36 = vadd.f32 %v6091_v51, %v6014_v6 }
 0x9d1   :  { %v2836_v56 = vadd.f32 %v4179_v37, %v2835_v55  ;;  %v6300_v55 = vld [vmem:[#allocation9 + $0xc8] sm:$0xff] }
 0x9d3   :  { %v2840_v59 = vsel %vm2839_vm2, %v4179_v37, %v2836_v56  ;;  %v6282_v37 = vld [vmem:[#allocation9 + $0x100] sm:$0xff]  ;;  %v6314_v56 = vld [vmem:[#allocation9 + $0x98] sm:$0xff] }
 0x9d4   :  { %v2845_v15 = vsel %vm2842_vm3, %v2844_v46, %v2840_v59  ;;  %v6317_v46 = vld [vmem:[#allocation9 + $0x88] sm:$0xff]  ;;  %v6324_v59 = vld [vmem:[#allocation9 + $0x70] sm:$0xff] }
 0x9d5   :  { %v2863_v24 = vmul.f32 %v2862_v32, %v2845_v15  ;;  %v6321_v32 = vld [vmem:[#allocation9 + $0x80] sm:$0xff]  ;;  %v6328_v15 = vld [vmem:[#allocation9 + $0x68] sm:$0xff] }
 0x9d7   :  { %v2864_v47 = vadd.f32 %v2863_v24, %v2420_v49  ;;  %v6335_v49 = vld [vmem:[#allocation9 + $0x50] sm:$0xff]  ;;  %v6342_v24 = vld [vmem:[#allocation9 + $0x38] sm:$0xff] }
 0x9d8   :  { %6890 = vst [vmem:[#allocation47_spill] sm:$0xff] %v6342_v24 }
 0x9d9   :  { %4180 = vtanh.f32 %v2864_v47  ;;  %v6349_v47 = vld [vmem:[#allocation9 + $0x20] sm:$0xff] }
 0x9da   :  { %6892 = vst [vmem:[#allocation49_spill] sm:$0xff] %v6349_v47 }
 0x9df   :  { %v4181_v35 = vpop.eup %4180 }
 0x9e0   :  { %v2867_v3 = vmul.f32 %v4181_v35, %v2866_v54 }
 0x9e2   :  { %v6252_v7 = vadd.f32 %v2868_v16, %v2867_v3 }
 0x9e4   :  { %2889 = vmatmul.f32.vlgmr.msrb.gmra.mxu2 %v6252_v7  ;;  %2909 = vmatmul.f32.vlgmr.msrb.gmra.mxu3 %v6252_v7 }
 0x9e5   :  { %2929 = vmatmul.f32.vlgmr.msra.gmra.mxu0 %v6252_v7  ;;  %3135 = vmatpush.msrb.mxu2 %v6257_v12 }
 0x9e6   :  { %3206 = vmatpush.msrb.mxu3 %v6034_v20  ;;  %3226 = vmatpush.msra.mxu0 %v6162_v38 }
 0x9e7   :  { %3136 = vmatpush.msrb.mxu2 %v6262_v63 }
 0x9e8   :  { %3207 = vmatpush.msrb.mxu3 %v6039_v17  ;;  %3227 = vmatpush.msra.mxu0 %v6167_v62 }
 0x9e9   :  { %3137 = vmatpush.msrb.mxu2 %v6267_v28 }
 0x9ea   :  { %3208 = vmatpush.msrb.mxu3 %v6044_v5  ;;  %3228 = vmatpush.msra.mxu0 %v6172_v10 }
 0x9eb   :  { %3138 = vmatpush.msrb.mxu2 %v6272_v43 }
 0x9ec   :  { %3209 = vmatpush.msrb.mxu3 %v6176_v31  ;;  %3229 = vmatpush.msra.mxu0 %v6179_v60 }
 0x9ed   :  { %3139 = vmatpush.msrb.mxu2 %v6277_v9 }
 0x9ee   :  { %3210 = vmatpush.msrb.mxu3 %v6183_v2  ;;  %3230 = vmatpush.msra.mxu0 %v6186_v22 }
 0x9ef   :  { %3140 = vmatpush.msrb.mxu2 %v6282_v37 }
 0x9f0   :  { %3211 = vmatpush.msrb.mxu3 %v6190_v18  ;;  %3231 = vmatpush.msra.mxu0 %v6286_v42 }
 0x9f1   :  { %3141 = vmatpush.msrb.mxu2 %v6289_v0 }
 0x9f2   :  { %3212 = vmatpush.msrb.mxu3 %v6195_v50  ;;  %3232 = vmatpush.msra.mxu0 %v6293_v44 }
 0x9f3   :  { %3142 = vmatpush.msrb.mxu2 %v6296_v27 }
 0x9f4   :  { %3213 = vmatpush.msrb.mxu3 %v6200_v48  ;;  %3233 = vmatpush.msra.mxu0 %v6300_v55 }
 0x9f5   :  { %3143 = vmatpush.msrb.mxu2 %v6303_v45 }
 0x9f6   :  { %3214 = vmatpush.msrb.mxu3 %v6205_v1  ;;  %3234 = vmatpush.msra.mxu0 %v6307_v13 }
 0x9f7   :  { %3144 = vmatpush.msrb.mxu2 %v6310_v61 }
 0x9f8   :  { %3215 = vmatpush.msrb.mxu3 %v6210_v39  ;;  %3235 = vmatpush.msra.mxu0 %v6314_v56 }
 0x9f9   :  { %3145 = vmatpush.msrb.mxu2 %v6317_v46 }
 0x9fa   :  { %3216 = vmatpush.msrb.mxu3 %v6215_v41  ;;  %3236 = vmatpush.msra.mxu0 %v6321_v32 }
 0x9fb   :  { %3146 = vmatpush.msrb.mxu2 %v6324_v59 }
 0x9fc   :  { %3217 = vmatpush.msrb.mxu3 %v6220_v26  ;;  %3237 = vmatpush.msra.mxu0 %v6328_v15 }
 0x9fd   :  { %3147 = vmatpush.msrb.mxu2 %v6331_v30 }
 0x9fe   :  { %3218 = vmatpush.msrb.mxu3 %v6225_v4  ;;  %3238 = vmatpush.msra.mxu0 %v6335_v49 }
 0x9ff   :  { %3148 = vmatpush.msrb.mxu2 %v6338_v23 }
 0xa00   :  { %3219 = vmatpush.msrb.mxu3 %v6230_v11  ;;  %3239 = vmatpush.msra.mxu0 %v6342_v24 }
 0xa01   :  { %3149 = vmatpush.msrb.mxu2 %v6345_v52 }
 0xa02   :  { %3220 = vmatpush.msrb.mxu3 %v6235_v40  ;;  %3240 = vmatpush.msra.mxu0 %v6349_v47 }
 0xa03   :  { %3150 = vmatpush.msrb.mxu2 %v6858_v19 }
 0xa04   :  { %3221 = vmatpush.msrb.mxu3 %v6240_v25  ;;  %3241 = vmatpush.msra.mxu0 %v6354_v34 }
 0xa67   :  { %v2890_v54 = vpop.f32.mrf.mxu2  ;;  %v2910_v35 = vpop.f32.mrf.mxu3 }
 0xa68   :  { %v2933_v3 = vadd.f32 %v2890_v54, %v2317_v57  ;;  %v2934_v16 = vadd.f32 %v2910_v35, %v2370_v36  ;;  %v2930_v36 = vpop.f32.mrf.mxu0 }
 0xa6a   :  { %v3998_v29 = vmul.f32 -1.442695, %v2933_v3  ;;  %v3999_v8 = vmul.f32 -1.442695, %v2934_v16 }
 0xa6c   :  { %4182 = vpow2.f32 %v3998_v29 }
 0xa6d   :  { %4184 = vpow2.f32 %v3999_v8 }
 0xa72   :  { %v4183_v19 = vpop.eup %4182 }
 0xa73   :  { %v4185_v25 = vpop.eup %4184  ;;  %v2941_v47 = vadd.f32 1.0, %v4183_v19  ;;  %v2423_v19 = vadd.f32 %v6107_v58, %v6024_v14  ;;  %v6894_v58 = vld [vmem:[#allocation43_spill] sm:$0xff] }
 0xa74   :  { %v2942_v40 = vadd.f32 1.0, %v4185_v25  ;;  %v2973_v25 = vadd.f32 %v6021_v33, %v2930_v36 }
 0xa75   :  { %4186 = vrcp.f32 %v2941_v47  ;;  %v2954_v51 = vand.u32 2147483648, %v2941_v47  ;;  %v2952_v57 = vand.u32 2147483647, %v2941_v47  ;;  %vm2948_vm9 = vweird.f32 %v2941_v47 }
 0xa76   :  { %4188 = vrcp.f32 %v2942_v40  ;;  %vm2963_vm13 = vweird.f32 %v2942_v40 }
 0xa77   :  { %v2955_v8 = vor.u32 1.1754944e-38, %v2954_v51  ;;  %vm2953_vm11 = vcmp.eq.f32.partialorder %v2952_v57, 8.507059e+37 }
 0xa7b   :  { %v4187_v34 = vpop.eup %4186 }
 0xa7c   :  { %v4189_v52 = vpop.eup %4188  ;;  %v2944_v21 = vmul.f32 %v4187_v34, %v2941_v47  ;;  %vm2949_vm8 = vweird.f32 %v4187_v34 }
 0xa7d   :  { %v2959_v53 = vmul.f32 %v4189_v52, %v2942_v40  ;;  %vm2950_vm10 = vmor %vm2948_vm9, %vm2949_vm8  ;;  %vm2964_vm12 = vweird.f32 %v4189_v52 }
 0xa7e   :  { %v2945_v24 = vsub.f32 1.0, %v2944_v21  ;;  %v2967_v21 = vand.u32 2147483647, %v2942_v40  ;;  %vm2965_vm14 = vmor %vm2963_vm13, %vm2964_vm12 }
 0xa7f   :  { %v2960_v6 = vsub.f32 1.0, %v2959_v53  ;;  %v2969_v53 = vand.u32 2147483648, %v2942_v40  ;;  %v6895_v40 = vld [vmem:[#allocation47_spill] sm:$0xff] }
 0xa80   :  { %v2946_v11 = vmul.f32 %v4187_v34, %v2945_v24  ;;  %vm2968_vm15 = vcmp.eq.f32.partialorder %v2967_v21, 8.507059e+37 }
 0xa81   :  { %v2961_v54 = vmul.f32 %v4189_v52, %v2960_v6  ;;  %v2970_v47 = vor.u32 1.1754944e-38, %v2969_v53 }
 0xa82   :  { %v2947_v29 = vadd.f32 %v4187_v34, %v2946_v11 }
 0xa83   :  { %v2962_v16 = vadd.f32 %v4189_v52, %v2961_v54 }
 0xa84   :  { %v2951_v35 = vsel %vm2950_vm10, %v4187_v34, %v2947_v29 }
 0xa85   :  { %v2956_v3 = vsel %vm2953_vm11, %v2955_v8, %v2951_v35  ;;  %v2966_v11 = vsel %vm2965_vm14, %v4189_v52, %v2962_v16  ;;  %v6897_v52 = vld [vmem:[#allocation44_spill] sm:$0xff]  ;;  %v6898_v8 = vld [vmem:[#allocation49_spill] sm:$0xff] }
 0xa86   :  { %v2974_v24 = vmul.f32 %v2973_v25, %v2956_v3  ;;  %v2971_v51 = vsel %vm2968_vm15, %v2970_v47, %v2966_v11  ;;  %v6415_v25 = vld [vmem:[#allocation9 + $0x10] sm:$0xff]  ;;  %v6901_v3 = vld [vmem:[#allocation50_spill] sm:$0xff] }
 0xa87   :  { %v2977_v36 = vsub.f32 1.0, %v2971_v51  ;;  %v2979_v54 = vmul.f32 %v2971_v51, %v6252_v7  ;;  %v6896_v7 = vld [vmem:[#allocation48_spill] sm:$0xff]  ;;  %6899 = vst [vmem:[#allocation51_spill] sm:$0xff] %v6415_v25  ;;  %v6900_v35 = vld [vmem:[#allocation45_spill] sm:$0xff]  ;;  %v6904_v11 = vld [vmem:[#allocation26_spill] sm:$0xff] }
 0xa88   :  { %v2975_v6 = vadd.f32 %v2974_v24, %v2423_v19  ;;  %v6902_v16 = vld [vmem:[#allocation25_spill] sm:$0xff]  ;;  %v6903_v19 = vld [vmem:[#allocation20_spill] sm:$0xff] }
 0xa89   :  { %v2320_v53 = vadd.f32 %v6903_v19, %v6902_v16  ;;  %v6905_v47 = vld [vmem:[#allocation17_spill] sm:$0xff] }
 0xa8a   :  { %4190 = vtanh.f32 %v2975_v6  ;;  %v2373_v51 = vadd.f32 %v6905_v47, %v6904_v11 }
 0xa90   :  { %v4191_v34 = vpop.eup %4190 }
 0xa91   :  { %v2978_v57 = vmul.f32 %v4191_v34, %v2977_v36 }
 0xa93   :  { %v6365_v29 = vadd.f32 %v2979_v54, %v2978_v57 }
 0xa95   :  { %3000 = vmatmul.f32.vlgmr.msra.gmra.mxu1 %v6365_v29  ;;  %3020 = vmatmul.f32.vlgmr.msra.gmra.mxu2 %v6365_v29 }
 0xa96   :  { %3040 = vmatmul.f32.vlgmr.msra.gmra.mxu3 %v6365_v29  ;;  %3246 = vmatpush.msra.mxu1 %v6257_v12 }
 0xa97   :  { %3317 = vmatpush.msra.mxu2 %v6034_v20  ;;  %3337 = vmatpush.msra.mxu3 %v6162_v38 }
 0xa98   :  { %3247 = vmatpush.msra.mxu1 %v6262_v63 }
 0xa99   :  { %3318 = vmatpush.msra.mxu2 %v6039_v17  ;;  %3338 = vmatpush.msra.mxu3 %v6167_v62 }
 0xa9a   :  { %3248 = vmatpush.msra.mxu1 %v6267_v28 }
 0xa9b   :  { %3319 = vmatpush.msra.mxu2 %v6044_v5  ;;  %3339 = vmatpush.msra.mxu3 %v6172_v10 }
 0xa9c   :  { %3249 = vmatpush.msra.mxu1 %v6272_v43 }
 0xa9d   :  { %3320 = vmatpush.msra.mxu2 %v6176_v31  ;;  %3340 = vmatpush.msra.mxu3 %v6179_v60 }
 0xa9e   :  { %3250 = vmatpush.msra.mxu1 %v6277_v9 }
 0xa9f   :  { %3321 = vmatpush.msra.mxu2 %v6183_v2  ;;  %3341 = vmatpush.msra.mxu3 %v6186_v22 }
 0xaa0   :  { %3251 = vmatpush.msra.mxu1 %v6282_v37 }
 0xaa1   :  { %3322 = vmatpush.msra.mxu2 %v6190_v18  ;;  %3342 = vmatpush.msra.mxu3 %v6286_v42 }
 0xaa2   :  { %3252 = vmatpush.msra.mxu1 %v6289_v0 }
 0xaa3   :  { %3323 = vmatpush.msra.mxu2 %v6195_v50  ;;  %3343 = vmatpush.msra.mxu3 %v6293_v44 }
 0xaa4   :  { %3253 = vmatpush.msra.mxu1 %v6296_v27 }
 0xaa5   :  { %3324 = vmatpush.msra.mxu2 %v6200_v48  ;;  %3344 = vmatpush.msra.mxu3 %v6300_v55 }
 0xaa6   :  { %3254 = vmatpush.msra.mxu1 %v6303_v45 }
 0xaa7   :  { %3325 = vmatpush.msra.mxu2 %v6205_v1  ;;  %3345 = vmatpush.msra.mxu3 %v6307_v13 }
 0xaa8   :  { %3255 = vmatpush.msra.mxu1 %v6310_v61 }
 0xaa9   :  { %3326 = vmatpush.msra.mxu2 %v6210_v39  ;;  %3346 = vmatpush.msra.mxu3 %v6314_v56 }
 0xaaa   :  { %3256 = vmatpush.msra.mxu1 %v6317_v46 }
 0xaab   :  { %3327 = vmatpush.msra.mxu2 %v6215_v41  ;;  %3347 = vmatpush.msra.mxu3 %v6321_v32 }
 0xaac   :  { %3257 = vmatpush.msra.mxu1 %v6324_v59 }
 0xaad   :  { %3328 = vmatpush.msra.mxu2 %v6220_v26  ;;  %3348 = vmatpush.msra.mxu3 %v6328_v15 }
 0xaae   :  { %3258 = vmatpush.msra.mxu1 %v6331_v30 }
 0xaaf   :  { %3329 = vmatpush.msra.mxu2 %v6225_v4  ;;  %3349 = vmatpush.msra.mxu3 %v6335_v49 }
 0xab0   :  { %3259 = vmatpush.msra.mxu1 %v6338_v23 }
 0xab1   :  { %3330 = vmatpush.msra.mxu2 %v6894_v58  ;;  %3350 = vmatpush.msra.mxu3 %v6895_v40 }
 0xab2   :  { %3260 = vmatpush.msra.mxu1 %v6896_v7 }
 0xab3   :  { %3331 = vmatpush.msra.mxu2 %v6897_v52  ;;  %3351 = vmatpush.msra.mxu3 %v6898_v8 }
 0xab4   :  { %3261 = vmatpush.msra.mxu1 %v6415_v25 }
 0xab5   :  { %3332 = vmatpush.msra.mxu2 %v6900_v35  ;;  %3352 = vmatpush.msra.mxu3 %v6901_v3 }
 0xb12   :  { %v3001_v24 = vpop.f32.mrf.mxu1 }
 0xb13   :  { %v3044_v21 = vadd.f32 %v3001_v24, %v2320_v53 }
 0xb15   :  { %v4000_v6 = vmul.f32 -1.442695, %v3044_v21 }
 0xb17   :  { %4192 = vpow2.f32 %v4000_v6 }
 0xb18   :  { %v3021_v36 = vpop.f32.mrf.mxu2 }
 0xb19   :  { %v3045_v34 = vadd.f32 %v3021_v36, %v2373_v51  ;;  %v3041_v47 = vpop.f32.mrf.mxu3 }
 0xb1b   :  { %v4001_v57 = vmul.f32 -1.442695, %v3045_v34 }
 0xb1d   :  { %v4193_v54 = vpop.eup %4192  ;;  %4194 = vpow2.f32 %v4001_v57  ;;  %v6906_v57 = vld [vmem:[#allocation19_spill] sm:$0xff] }
 0xb1e   :  { %v3052_v25 = vadd.f32 1.0, %v4193_v54  ;;  %v2426_v54 = vadd.f32 %v6906_v57, %v6024_v14 }
 0xb20   :  { %4196 = vrcp.f32 %v3052_v25  ;;  %v3065_v16 = vand.u32 2147483648, %v3052_v25  ;;  %v3063_v24 = vand.u32 2147483647, %v3052_v25  ;;  %vm3059_vm1 = vweird.f32 %v3052_v25 }
 0xb22   :  { %v3066_v51 = vor.u32 1.1754944e-38, %v3065_v16  ;;  %vm3064_vm3 = vcmp.eq.f32.partialorder %v3063_v24, 8.507059e+37 }
 0xb23   :  { %v4195_v35 = vpop.eup %4194 }
 0xb24   :  { %v3053_v8 = vadd.f32 1.0, %v4195_v35  ;;  %v3084_v35 = vadd.f32 %v6021_v33, %v3041_v47 }
 0xb26   :  { %v4197_v3 = vpop.eup %4196  ;;  %4198 = vrcp.f32 %v3053_v8  ;;  %v3078_v58 = vand.u32 2147483647, %v3053_v8  ;;  %vm3074_vm5 = vweird.f32 %v3053_v8 }
 0xb27   :  { %v3055_v52 = vmul.f32 %v4197_v3, %v3052_v25  ;;  %vm3060_vm0 = vweird.f32 %v4197_v3 }
 0xb28   :  { %vm3061_vm2 = vmor %vm3059_vm1, %vm3060_vm0  ;;  %vm3079_vm7 = vcmp.eq.f32.partialorder %v3078_v58, 8.507059e+37  ;;  %v6912_v58 = vld [vmem:[#allocation49_spill] sm:$0xff] }
 0xb29   :  { %v3056_v19 = vsub.f32 1.0, %v3055_v52 }
 0xb2b   :  { %v3057_v53 = vmul.f32 %v4197_v3, %v3056_v19  ;;  %v3080_v19 = vand.u32 2147483648, %v3053_v8 }
 0xb2c   :  { %v4199_v21 = vpop.eup %4198 }
 0xb2d   :  { %v3070_v6 = vmul.f32 %v4199_v21, %v3053_v8  ;;  %v3058_v11 = vadd.f32 %v4197_v3, %v3057_v53  ;;  %vm3075_vm4 = vweird.f32 %v4199_v21  ;;  %v3081_v25 = vor.u32 1.1754944e-38, %v3080_v19  ;;  %v6915_v8 = vld [vmem:[#allocation50_spill] sm:$0xff] }
 0xb2e   :  { %vm3076_vm6 = vmor %vm3074_vm5, %vm3075_vm4 }
 0xb2f   :  { %v3071_v36 = vsub.f32 1.0, %v3070_v6  ;;  %v3062_v34 = vsel %vm3061_vm2, %v4197_v3, %v3058_v11 }
 0xb30   :  { %v3067_v52 = vsel %vm3064_vm3, %v3066_v51, %v3062_v34  ;;  %v6917_v51 = vld [vmem:[#allocation18_spill] sm:$0xff] }
 0xb31   :  { %v3072_v7 = vmul.f32 %v4199_v21, %v3071_v36  ;;  %v3085_v40 = vmul.f32 %v3084_v35, %v3067_v52  ;;  %v6918_v34 = vld [vmem:[#allocation26_spill] sm:$0xff]  ;;  %v6919_v35 = vld [vmem:[#allocation23_spill] sm:$0xff] }
 0xb32   :  { %v2376_v57 = vadd.f32 %v6919_v35, %v6918_v34 }
 0xb33   :  { %v3073_v23 = vadd.f32 %v4199_v21, %v3072_v7  ;;  %v3086_v53 = vadd.f32 %v3085_v40, %v2426_v54  ;;  %v6913_v40 = vld [vmem:[#allocation51_spill] sm:$0xff]  ;;  %v6914_v7 = vld [vmem:[#allocation45_spill] sm:$0xff] }
 0xb35   :  { %v3077_v16 = vsel %vm3076_vm6, %v4199_v21, %v3073_v23  ;;  %4200 = vtanh.f32 %v3086_v53  ;;  %v6910_v23 = vld [vmem:[#allocation48_spill] sm:$0xff]  ;;  %v6916_v21 = vld [vmem:[#allocation25_spill] sm:$0xff] }
 0xb36   :  { %v3082_v3 = vsel %vm3079_vm7, %v3081_v25, %v3077_v16  ;;  %v2323_v36 = vadd.f32 %v6917_v51, %v6916_v21 }
 0xb37   :  { %v3088_v11 = vsub.f32 1.0, %v3082_v3  ;;  %v3090_v47 = vmul.f32 %v3082_v3, %v6365_v29  ;;  %v6911_v29 = vld [vmem:[#allocation44_spill] sm:$0xff] }
 0xb3b   :  { %v4201_v33 = vpop.eup %4200 }
 0xb3c   :  { %v3089_v24 = vmul.f32 %v4201_v33, %v3088_v11 }
 0xb3e   :  { %v6428_v6 = vadd.f32 %v3090_v47, %v3089_v24 }
 0xb40   :  { %3111 = vmatmul.f32.vlgmr.msrb.gmra.mxu0 %v6428_v6  ;;  %3131 = vmatmul.f32.vlgmr.msrb.gmra.mxu1 %v6428_v6 }
 0xb41   :  { %3151 = vmatmul.f32.vlgmr.msrb.gmra.mxu2 %v6428_v6  ;;  %3357 = vmatpush.msrb.mxu0 %v6257_v12 }
 0xb42   :  { %3428 = vmatpush.msrb.mxu1 %v6034_v20  ;;  %3448 = vmatpush.msrb.mxu2 %v6162_v38  ;;  %v6907_v20 = vld [vmem:[#allocation46_spill] sm:$0xff] }
 0xb43   :  { %3358 = vmatpush.msrb.mxu0 %v6262_v63 }
 0xb44   :  { %3429 = vmatpush.msrb.mxu1 %v6039_v17  ;;  %3449 = vmatpush.msrb.mxu2 %v6167_v62  ;;  %v6908_v17 = vld [vmem:[#allocation43_spill] sm:$0xff] }
 0xb45   :  { %3359 = vmatpush.msrb.mxu0 %v6267_v28 }
 0xb46   :  { %3430 = vmatpush.msrb.mxu1 %v6044_v5  ;;  %3450 = vmatpush.msrb.mxu2 %v6172_v10  ;;  %v6909_v5 = vld [vmem:[#allocation47_spill] sm:$0xff] }
 0xb47   :  { %3360 = vmatpush.msrb.mxu0 %v6272_v43 }
 0xb48   :  { %3431 = vmatpush.msrb.mxu1 %v6176_v31  ;;  %3451 = vmatpush.msrb.mxu2 %v6179_v60 }
 0xb49   :  { %3361 = vmatpush.msrb.mxu0 %v6277_v9 }
 0xb4a   :  { %3432 = vmatpush.msrb.mxu1 %v6183_v2  ;;  %3452 = vmatpush.msrb.mxu2 %v6186_v22 }
 0xb4b   :  { %3362 = vmatpush.msrb.mxu0 %v6282_v37 }
 0xb4c   :  { %3433 = vmatpush.msrb.mxu1 %v6190_v18  ;;  %3453 = vmatpush.msrb.mxu2 %v6286_v42 }
 0xb4d   :  { %3363 = vmatpush.msrb.mxu0 %v6289_v0 }
 0xb4e   :  { %3434 = vmatpush.msrb.mxu1 %v6195_v50  ;;  %3454 = vmatpush.msrb.mxu2 %v6293_v44 }
 0xb4f   :  { %3364 = vmatpush.msrb.mxu0 %v6296_v27 }
 0xb50   :  { %3435 = vmatpush.msrb.mxu1 %v6200_v48  ;;  %3455 = vmatpush.msrb.mxu2 %v6300_v55 }
 0xb51   :  { %3365 = vmatpush.msrb.mxu0 %v6303_v45 }
 0xb52   :  { %3436 = vmatpush.msrb.mxu1 %v6205_v1  ;;  %3456 = vmatpush.msrb.mxu2 %v6307_v13 }
 0xb53   :  { %3366 = vmatpush.msrb.mxu0 %v6310_v61 }
 0xb54   :  { %3437 = vmatpush.msrb.mxu1 %v6210_v39  ;;  %3457 = vmatpush.msrb.mxu2 %v6314_v56 }
 0xb55   :  { %3367 = vmatpush.msrb.mxu0 %v6317_v46 }
 0xb56   :  { %3438 = vmatpush.msrb.mxu1 %v6215_v41  ;;  %3458 = vmatpush.msrb.mxu2 %v6321_v32 }
 0xb57   :  { %3368 = vmatpush.msrb.mxu0 %v6324_v59 }
 0xb58   :  { %3439 = vmatpush.msrb.mxu1 %v6220_v26  ;;  %3459 = vmatpush.msrb.mxu2 %v6328_v15 }
 0xb59   :  { %3369 = vmatpush.msrb.mxu0 %v6331_v30 }
 0xb5a   :  { %3440 = vmatpush.msrb.mxu1 %v6225_v4  ;;  %3460 = vmatpush.msrb.mxu2 %v6335_v49 }
 0xb5b   :  { %3370 = vmatpush.msrb.mxu0 %v6907_v20 }
 0xb5c   :  { %3441 = vmatpush.msrb.mxu1 %v6908_v17  ;;  %3461 = vmatpush.msrb.mxu2 %v6909_v5 }
 0xb5d   :  { %3371 = vmatpush.msrb.mxu0 %v6910_v23 }
 0xb5e   :  { %3442 = vmatpush.msrb.mxu1 %v6911_v29  ;;  %3462 = vmatpush.msrb.mxu2 %v6912_v58 }
 0xb5f   :  { %3372 = vmatpush.msrb.mxu0 %v6913_v40 }
 0xb60   :  { %3443 = vmatpush.msrb.mxu1 %v6914_v7  ;;  %3463 = vmatpush.msrb.mxu2 %v6915_v8 }
 0xbbd   :  { %v3112_v54 = vpop.f32.mrf.mxu0  ;;  %v3132_v52 = vpop.f32.mrf.mxu1 }
 0xbbe   :  { %v3155_v19 = vadd.f32 %v3112_v54, %v2323_v36  ;;  %v3156_v53 = vadd.f32 %v3132_v52, %v2376_v57 }
 0xbc0   :  { %v4002_v25 = vmul.f32 -1.442695, %v3155_v19  ;;  %v4003_v16 = vmul.f32 -1.442695, %v3156_v53 }
 0xbc2   :  { %4202 = vpow2.f32 %v4002_v25  ;;  %v6488_v25 = vld [vmem:[%s6803_s8] ss:$0 sm:$0xff] }
 0xbc3   :  { %4204 = vpow2.f32 %v4003_v16 }
 0xbc4   :  { %v3152_v54 = vpop.f32.mrf.mxu2 }
 0xbc5   :  { %v3195_v16 = vadd.f32 %v6488_v25, %v3152_v54 }
 0xbc8   :  { %v4203_v3 = vpop.eup %4202 }
 0xbc9   :  { %v4205_v11 = vpop.eup %4204  ;;  %v3163_v33 = vadd.f32 1.0, %v4203_v3 }
 0xbca   :  { %v3164_v24 = vadd.f32 1.0, %v4205_v11 }
 0xbcb   :  { %4206 = vrcp.f32 %v3163_v33  ;;  %v3176_v34 = vand.u32 2147483648, %v3163_v33  ;;  %v3174_v36 = vand.u32 2147483647, %v3163_v33  ;;  %vm3170_vm9 = vweird.f32 %v3163_v33 }
 0xbcc   :  { %4208 = vrcp.f32 %v3164_v24  ;;  %vm3185_vm13 = vweird.f32 %v3164_v24 }
 0xbcd   :  { %v3177_v19 = vor.u32 1.1754944e-38, %v3176_v34  ;;  %vm3175_vm11 = vcmp.eq.f32.partialorder %v3174_v36, 8.507059e+37 }
 0xbd1   :  { %v4207_v47 = vpop.eup %4206 }
 0xbd2   :  { %v4209_v8 = vpop.eup %4208  ;;  %v3166_v51 = vmul.f32 %v4207_v47, %v3163_v33  ;;  %vm3171_vm8 = vweird.f32 %v4207_v47  ;;  %v3189_v33 = vand.u32 2147483647, %v3164_v24 }
 0xbd3   :  { %v3181_v21 = vmul.f32 %v4209_v8, %v3164_v24  ;;  %vm3172_vm10 = vmor %vm3170_vm9, %vm3171_vm8  ;;  %vm3186_vm12 = vweird.f32 %v4209_v8 }
 0xbd4   :  { %v3167_v7 = vsub.f32 1.0, %v3166_v51  ;;  %vm3187_vm14 = vmor %vm3185_vm13, %vm3186_vm12  ;;  %vm3190_vm15 = vcmp.eq.f32.partialorder %v3189_v33, 8.507059e+37 }
 0xbd5   :  { %v3182_v35 = vsub.f32 1.0, %v3181_v21 }
 0xbd6   :  { %v3168_v40 = vmul.f32 %v4207_v47, %v3167_v7  ;;  %v6920_v7 = vld [vmem:[#allocation28_spill] sm:$0xff] }
 0xbd7   :  { %v3183_v57 = vmul.f32 %v4209_v8, %v3182_v35  ;;  %v2429_v11 = vadd.f32 %v6920_v7, %v6024_v14 }
 0xbd8   :  { %v3169_v52 = vadd.f32 %v4207_v47, %v3168_v40  ;;  %v3191_v40 = vand.u32 2147483648, %v3164_v24 }
 0xbd9   :  { %v3184_v3 = vadd.f32 %v4209_v8, %v3183_v57 }
 0xbda   :  { %v3173_v53 = vsel %vm3172_vm10, %v4207_v47, %v3169_v52  ;;  %v3192_v35 = vor.u32 1.1754944e-38, %v3191_v40 }
 0xbdb   :  { %v3178_v21 = vsel %vm3175_vm11, %v3177_v19, %v3173_v53  ;;  %v3188_v47 = vsel %vm3187_vm14, %v4209_v8, %v3184_v3  ;;  %v6500_v8 = vld [vmem:[#allocation9 + $0x168] sm:$0xff] }
 0xbdc   :  { %v3196_v51 = vmul.f32 %v3195_v16, %v3178_v21  ;;  %v3193_v36 = vsel %vm3190_vm15, %v3192_v35, %v3188_v47 }
 0xbdd   :  { %v3199_v52 = vsub.f32 1.0, %v3193_v36  ;;  %v3201_v57 = vmul.f32 %v3193_v36, %v6428_v6  ;;  %v6510_v6 = vld [vmem:[#allocation9 + $0x138] sm:$0xff] }
 0xbde   :  { %v3197_v34 = vadd.f32 %v3196_v51, %v2429_v11 }
 0xbe0   :  { %4210 = vtanh.f32 %v3197_v34 }
 0xbe6   :  { %v4211_v58 = vpop.eup %4210 }
 0xbe7   :  { %v3200_v54 = vmul.f32 %v4211_v58, %v3199_v52  ;;  %v6505_v58 = vld [vmem:[#allocation9 + $0x150] sm:$0xff] }
 0xbe9   :  { %v6494_v19 = vadd.f32 %v3201_v57, %v3200_v54 }
 0xbeb   :  { %3222 = vmatmul.f32.vlgmr.msrb.gmra.mxu3 %v6494_v19  ;;  %3242 = vmatmul.f32.vlgmr.msra.gmra.mxu0 %v6494_v19 }
 0xbec   :  { %3262 = vmatmul.f32.vlgmr.msra.gmra.mxu1 %v6494_v19  ;;  %3468 = vmatpush.msrb.mxu3 %v6257_v12 }
 0xbed   :  { %3539 = vmatpush.msra.mxu0 %v6500_v8  ;;  %3559 = vmatpush.msra.mxu1 %v6162_v38  ;;  %v6921_v38 = vld [vmem:[#allocation49_spill] sm:$0xff] }
 0xbee   :  { %3469 = vmatpush.msrb.mxu3 %v6262_v63 }
 0xbef   :  { %3540 = vmatpush.msra.mxu0 %v6505_v58  ;;  %3560 = vmatpush.msra.mxu1 %v6167_v62  ;;  %v6922_v62 = vld [vmem:[#allocation51_spill] sm:$0xff] }
 0xbf0   :  { %3470 = vmatpush.msrb.mxu3 %v6267_v28 }
 0xbf1   :  { %3541 = vmatpush.msra.mxu0 %v6510_v6  ;;  %3561 = vmatpush.msra.mxu1 %v6172_v10  ;;  %v6923_v10 = vld [vmem:[#allocation45_spill] sm:$0xff] }
 0xbf2   :  { %3471 = vmatpush.msrb.mxu3 %v6272_v43 }
 0xbf3   :  { %3542 = vmatpush.msra.mxu0 %v6176_v31  ;;  %3562 = vmatpush.msra.mxu1 %v6179_v60  ;;  %v6924_v31 = vld [vmem:[#allocation50_spill] sm:$0xff] }
 0xbf4   :  { %3472 = vmatpush.msrb.mxu3 %v6277_v9  ;;  %v6925_v60 = vld [vmem:[#allocation26_spill] sm:$0xff] }
 0xbf5   :  { %3543 = vmatpush.msra.mxu0 %v6183_v2  ;;  %3563 = vmatpush.msra.mxu1 %v6186_v22  ;;  %v6926_v2 = vld [vmem:[#allocation21_spill] sm:$0xff] }
 0xbf6   :  { %3473 = vmatpush.msrb.mxu3 %v6282_v37  ;;  %v2379_v22 = vadd.f32 %v6926_v2, %v6925_v60 }
 0xbf7   :  { %3544 = vmatpush.msra.mxu0 %v6190_v18  ;;  %3564 = vmatpush.msra.mxu1 %v6286_v42 }
 0xbf8   :  { %3474 = vmatpush.msrb.mxu3 %v6289_v0 }
 0xbf9   :  { %3545 = vmatpush.msra.mxu0 %v6195_v50  ;;  %3565 = vmatpush.msra.mxu1 %v6293_v44 }
 0xbfa   :  { %3475 = vmatpush.msrb.mxu3 %v6296_v27 }
 0xbfb   :  { %3546 = vmatpush.msra.mxu0 %v6200_v48  ;;  %3566 = vmatpush.msra.mxu1 %v6300_v55 }
 0xbfc   :  { %3476 = vmatpush.msrb.mxu3 %v6303_v45 }
 0xbfd   :  { %3547 = vmatpush.msra.mxu0 %v6205_v1  ;;  %3567 = vmatpush.msra.mxu1 %v6307_v13  ;;  %v6927_v1 = vld [vmem:[#allocation25_spill] sm:$0xff] }
 0xbfe   :  { %3477 = vmatpush.msrb.mxu3 %v6310_v61 }
 0xbff   :  { %3548 = vmatpush.msra.mxu0 %v6210_v39  ;;  %3568 = vmatpush.msra.mxu1 %v6314_v56  ;;  %v6928_v39 = vld [vmem:[#allocation24_spill] sm:$0xff] }
 0xc00   :  { %3478 = vmatpush.msrb.mxu3 %v6317_v46 }
 0xc01   :  { %3549 = vmatpush.msra.mxu0 %v6215_v41  ;;  %3569 = vmatpush.msra.mxu1 %v6321_v32  ;;  %v2326_v41 = vadd.f32 %v6928_v39, %v6927_v1 }
 0xc02   :  { %3479 = vmatpush.msrb.mxu3 %v6324_v59 }
 0xc03   :  { %3550 = vmatpush.msra.mxu0 %v6220_v26  ;;  %3570 = vmatpush.msra.mxu1 %v6328_v15 }
 0xc04   :  { %3480 = vmatpush.msrb.mxu3 %v6331_v30 }
 0xc05   :  { %3551 = vmatpush.msra.mxu0 %v6225_v4  ;;  %3571 = vmatpush.msra.mxu1 %v6335_v49 }
 0xc06   :  { %3481 = vmatpush.msrb.mxu3 %v6907_v20 }
 0xc07   :  { %3552 = vmatpush.msra.mxu0 %v6908_v17  ;;  %3572 = vmatpush.msra.mxu1 %v6909_v5 }
 0xc08   :  { %3482 = vmatpush.msrb.mxu3 %v6910_v23 }
 0xc09   :  { %3553 = vmatpush.msra.mxu0 %v6911_v29  ;;  %3573 = vmatpush.msra.mxu1 %v6921_v38 }
 0xc0a   :  { %3483 = vmatpush.msrb.mxu3 %v6922_v62 }
 0xc0b   :  { %3554 = vmatpush.msra.mxu0 %v6923_v10  ;;  %3574 = vmatpush.msra.mxu1 %v6924_v31 }
 0xc68   :  { %v3243_v18 = vpop.f32.mrf.mxu0 }
 0xc69   :  { %v3267_v50 = vadd.f32 %v3243_v18, %v2379_v22  ;;  %v3263_v36 = vpop.f32.mrf.mxu1  ;;  %v6929_v18 = vld [vmem:[#allocation31_spill] sm:$0xff] }
 0xc6a   :  { %v3306_v57 = vadd.f32 %v6488_v25, %v3263_v36 }
 0xc6b   :  { %v4005_v48 = vmul.f32 -1.442695, %v3267_v50  ;;  %v2432_v50 = vadd.f32 %v6929_v18, %v6024_v14 }
 0xc6d   :  { %4212 = vpow2.f32 %v4005_v48 }
 0xc6e   :  { %v3223_v26 = vpop.f32.mrf.mxu3 }
 0xc6f   :  { %v3266_v4 = vadd.f32 %v3223_v26, %v2326_v41 }
 0xc71   :  { %v4004_v17 = vmul.f32 -1.442695, %v3266_v4 }
 0xc73   :  { %v4213_v29 = vpop.eup %4212  ;;  %4214 = vpow2.f32 %v4004_v17 }
 0xc74   :  { %v3275_v24 = vadd.f32 1.0, %v4213_v29 }
 0xc76   :  { %4216 = vrcp.f32 %v3275_v24  ;;  %v3302_v48 = vand.u32 2147483648, %v3275_v24  ;;  %vm3296_vm5 = vweird.f32 %v3275_v24  ;;  %v3300_v41 = vand.u32 2147483647, %v3275_v24 }
 0xc78   :  { %v3303_v17 = vor.u32 1.1754944e-38, %v3302_v48  ;;  %vm3301_vm7 = vcmp.eq.f32.partialorder %v3300_v41, 8.507059e+37 }
 0xc79   :  { %v4215_v53 = vpop.eup %4214 }
 0xc7a   :  { %v3274_v16 = vadd.f32 1.0, %v4215_v53 }
 0xc7c   :  { %4218 = vrcp.f32 %v3274_v16  ;;  %v4217_v21 = vpop.eup %4216  ;;  %v3287_v33 = vand.u32 2147483648, %v3274_v16  ;;  %v3285_v47 = vand.u32 2147483647, %v3274_v16  ;;  %vm3281_vm1 = vweird.f32 %v3274_v16 }
 0xc7d   :  { %v3292_v3 = vmul.f32 %v4217_v21, %v3275_v24  ;;  %vm3297_vm4 = vweird.f32 %v4217_v21  ;;  %v6568_v24 = vld [vmem:[#allocation9 + $0x170] sm:$0xff] }
 0xc7e   :  { %v3288_v54 = vor.u32 1.1754944e-38, %v3287_v33  ;;  %vm3286_vm3 = vcmp.eq.f32.partialorder %v3285_v47, 8.507059e+37  ;;  %vm3298_vm6 = vmor %vm3296_vm5, %vm3297_vm4 }
 0xc7f   :  { %v3293_v51 = vsub.f32 1.0, %v3292_v3 }
 0xc81   :  { %v3294_v35 = vmul.f32 %v4217_v21, %v3293_v51  ;;  %v6589_v51 = vld [vmem:[#allocation9 + $0x108] sm:$0xff] }
 0xc82   :  { %v4219_v7 = vpop.eup %4218 }
 0xc83   :  { %v3277_v11 = vmul.f32 %v4219_v7, %v3274_v16  ;;  %vm3282_vm0 = vweird.f32 %v4219_v7  ;;  %v3295_v2 = vadd.f32 %v4217_v21, %v3294_v35 }
 0xc84   :  { %vm3283_vm2 = vmor %vm3281_vm1, %vm3282_vm0 }
 0xc85   :  { %v3278_v40 = vsub.f32 1.0, %v3277_v11  ;;  %v3299_v4 = vsel %vm3298_vm6, %v4217_v21, %v3295_v2  ;;  %v6578_v21 = vld [vmem:[#allocation9 + $0x140] sm:$0xff] }
 0xc86   :  { %v3304_v29 = vsel %vm3301_vm7, %v3303_v17, %v3299_v4  ;;  %v6932_v17 = vld [vmem:[#allocation34_spill] sm:$0xff] }
 0xc87   :  { %v3279_v34 = vmul.f32 %v4219_v7, %v3278_v40  ;;  %v3310_v53 = vsub.f32 1.0, %v3304_v29  ;;  %v6601_v40 = vld [vmem:[#allocation9 + $0xd8] sm:$0xff] }
 0xc89   :  { %v3280_v52 = vadd.f32 %v4219_v7, %v3279_v34 }
 0xc8b   :  { %v3284_v10 = vsel %vm3283_vm2, %v4219_v7, %v3280_v52  ;;  %v3312_v7 = vmul.f32 %v3304_v29, %v6494_v19  ;;  %v6573_v19 = vld [vmem:[#allocation9 + $0x158] sm:$0xff]  ;;  %v2435_v29 = vadd.f32 %v6932_v17, %v6024_v14 }
 0xc8c   :  { %v3289_v22 = vsel %vm3286_vm3, %v3288_v54, %v3284_v10 }
 0xc8d   :  { %v3307_v39 = vmul.f32 %v3306_v57, %v3289_v22 }
 0xc8f   :  { %v3308_v26 = vadd.f32 %v3307_v39, %v2432_v50 }
 0xc91   :  { %4220 = vtanh.f32 %v3308_v26 }
 0xc97   :  { %v4221_v16 = vpop.eup %4220 }
 0xc98   :  { %v3311_v3 = vmul.f32 %v4221_v16, %v3310_v53 }
 0xc9a   :  { %v6561_v11 = vadd.f32 %v3312_v7, %v3311_v3 }
 0xc9c   :  { %3333 = vmatmul.f32.vlgmr.msra.gmra.mxu2 %v6561_v11  ;;  %3353 = vmatmul.f32.vlgmr.msra.gmra.mxu3 %v6561_v11 }
 0xc9d   :  { %3373 = vmatmul.f32.vlgmr.msrb.gmra.mxu0 %v6561_v11  ;;  %3579 = vmatpush.msra.mxu2 %v6257_v12  ;;  %v6582_v12 = vld [vmem:[#allocation9 + $0x120] sm:$0xff] }
 0xc9e   :  { %3650 = vmatpush.msra.mxu3 %v6500_v8  ;;  %3670 = vmatpush.msrb.mxu0 %v6568_v24 }
 0xc9f   :  { %3580 = vmatpush.msra.mxu2 %v6262_v63  ;;  %v6585_v63 = vld [vmem:[#allocation9 + $0x128] sm:$0xff] }
 0xca0   :  { %3651 = vmatpush.msra.mxu3 %v6505_v58  ;;  %3671 = vmatpush.msrb.mxu0 %v6573_v19 }
 0xca1   :  { %3581 = vmatpush.msra.mxu2 %v6267_v28  ;;  %v6592_v28 = vld [vmem:[#allocation9 + $0x110] sm:$0xff] }
 0xca2   :  { %3652 = vmatpush.msra.mxu3 %v6510_v6  ;;  %3672 = vmatpush.msrb.mxu0 %v6578_v21 }
 0xca3   :  { %3582 = vmatpush.msra.mxu2 %v6272_v43  ;;  %v6596_v43 = vld [vmem:[#allocation9 + $0xf0] sm:$0xff] }
 0xca4   :  { %3653 = vmatpush.msra.mxu3 %v6582_v12  ;;  %3673 = vmatpush.msrb.mxu0 %v6585_v63 }
 0xca5   :  { %3583 = vmatpush.msra.mxu2 %v6277_v9  ;;  %v6606_v9 = vld [vmem:[#allocation9 + $0xc0] sm:$0xff] }
 0xca6   :  { %3654 = vmatpush.msra.mxu3 %v6589_v51  ;;  %3674 = vmatpush.msrb.mxu0 %v6592_v28 }
 0xca7   :  { %3584 = vmatpush.msra.mxu2 %v6282_v37  ;;  %v6611_v37 = vld [vmem:[#allocation9 + $0xa8] sm:$0xff] }
 0xca8   :  { %3655 = vmatpush.msra.mxu3 %v6596_v43  ;;  %3675 = vmatpush.msrb.mxu0 %v6286_v42  ;;  %v6616_v42 = vld [vmem:[#allocation9 + $0x90] sm:$0xff] }
 0xca9   :  { %3585 = vmatpush.msra.mxu2 %v6289_v0  ;;  %v6621_v0 = vld [vmem:[#allocation9 + $0x78] sm:$0xff] }
 0xcaa   :  { %3656 = vmatpush.msra.mxu3 %v6601_v40  ;;  %3676 = vmatpush.msrb.mxu0 %v6293_v44  ;;  %v6626_v44 = vld [vmem:[#allocation9 + $0x60] sm:$0xff] }
 0xcab   :  { %3586 = vmatpush.msra.mxu2 %v6296_v27  ;;  %v6631_v27 = vld [vmem:[#allocation9 + $0x48] sm:$0xff] }
 0xcac   :  { %3657 = vmatpush.msra.mxu3 %v6606_v9  ;;  %3677 = vmatpush.msrb.mxu0 %v6300_v55  ;;  %v6636_v55 = vld [vmem:[#allocation9 + $0x30] sm:$0xff] }
 0xcad   :  { %3587 = vmatpush.msra.mxu2 %v6303_v45  ;;  %v6641_v45 = vld [vmem:[#allocation9 + $0x18] sm:$0xff] }
 0xcae   :  { %3658 = vmatpush.msra.mxu3 %v6611_v37  ;;  %3678 = vmatpush.msrb.mxu0 %v6307_v13  ;;  %v6646_v13 = vld [vmem:[#allocation9] sm:$0xff] }
 0xcaf   :  { %3588 = vmatpush.msra.mxu2 %v6310_v61  ;;  %v6930_v61 = vld [vmem:[#allocation27_spill] sm:$0xff] }
 0xcb0   :  { %3659 = vmatpush.msra.mxu3 %v6616_v42  ;;  %3679 = vmatpush.msrb.mxu0 %v6314_v56  ;;  %v2329_v56 = vadd.f32 %v6930_v61, %v6927_v1 }
 0xcb1   :  { %3589 = vmatpush.msra.mxu2 %v6317_v46  ;;  %v6931_v46 = vld [vmem:[#allocation22_spill] sm:$0xff] }
 0xcb2   :  { %3660 = vmatpush.msra.mxu3 %v6621_v0  ;;  %3680 = vmatpush.msrb.mxu0 %v6321_v32  ;;  %v2382_v32 = vadd.f32 %v6931_v46, %v6925_v60 }
 0xcb3   :  { %3590 = vmatpush.msra.mxu2 %v6324_v59 }
 0xcb4   :  { %3661 = vmatpush.msra.mxu3 %v6626_v44  ;;  %3681 = vmatpush.msrb.mxu0 %v6328_v15 }
 0xcb5   :  { %3591 = vmatpush.msra.mxu2 %v6331_v30 }
 0xcb6   :  { %3662 = vmatpush.msra.mxu3 %v6631_v27  ;;  %3682 = vmatpush.msrb.mxu0 %v6335_v49 }
 0xcb7   :  { %3592 = vmatpush.msra.mxu2 %v6907_v20 }
 0xcb8   :  { %3663 = vmatpush.msra.mxu3 %v6636_v55  ;;  %3683 = vmatpush.msrb.mxu0 %v6909_v5 }
 0xcb9   :  { %3593 = vmatpush.msra.mxu2 %v6910_v23 }
 0xcba   :  { %3664 = vmatpush.msra.mxu3 %v6641_v45  ;;  %3684 = vmatpush.msrb.mxu0 %v6921_v38 }
 0xcbb   :  { %3594 = vmatpush.msra.mxu2 %v6922_v62 }
 0xcbc   :  { %3665 = vmatpush.msra.mxu3 %v6646_v13  ;;  %3685 = vmatpush.msrb.mxu0 %v6924_v31 }
 0xd1a   :  { %v3374_v22 = vpop.f32.mrf.mxu0 }
 0xd1b   :  { %v3417_v39 = vadd.f32 %v6488_v25, %v3374_v22 }
 0xd1f   :  { %v3334_v59 = vpop.f32.mrf.mxu2  ;;  %v3354_v15 = vpop.f32.mrf.mxu3 }
 0xd20   :  { %v3377_v30 = vadd.f32 %v3334_v59, %v2329_v56  ;;  %v3378_v49 = vadd.f32 %v3354_v15, %v2382_v32 }
 0xd22   :  { %v4006_v20 = vmul.f32 -1.442695, %v3377_v30  ;;  %v4007_v5 = vmul.f32 -1.442695, %v3378_v49 }
 0xd24   :  { %4222 = vpow2.f32 %v4006_v20  ;;  %v6663_v20 = vld [vmem:[#allocation9 + $0x178] sm:$0xff] }
 0xd25   :  { %4224 = vpow2.f32 %v4007_v5  ;;  %v6668_v5 = vld [vmem:[#allocation9 + $0x160] sm:$0xff] }
 0xd2a   :  { %v4223_v23 = vpop.eup %4222 }
 0xd2b   :  { %v4225_v38 = vpop.eup %4224  ;;  %v3385_v33 = vadd.f32 1.0, %v4223_v23  ;;  %v6678_v23 = vld [vmem:[#allocation9 + $0x130] sm:$0xff] }
 0xd2c   :  { %v3386_v34 = vadd.f32 1.0, %v4225_v38  ;;  %v6712_v38 = vld [vmem:[#allocation9 + $0x70] sm:$0xff] }
 0xd2d   :  { %4226 = vrcp.f32 %v3385_v33  ;;  %v3398_v54 = vand.u32 2147483648, %v3385_v33  ;;  %v3396_v2 = vand.u32 2147483647, %v3385_v33  ;;  %vm3392_vm9 = vweird.f32 %v3385_v33 }
 0xd2e   :  { %4228 = vrcp.f32 %v3386_v34  ;;  %v3413_v16 = vand.u32 2147483648, %v3386_v34  ;;  %vm3407_vm13 = vweird.f32 %v3386_v34  ;;  %v3411_v3 = vand.u32 2147483647, %v3386_v34 }
 0xd2f   :  { %v3399_v48 = vor.u32 1.1754944e-38, %v3398_v54  ;;  %vm3397_vm11 = vcmp.eq.f32.partialorder %v3396_v2, 8.507059e+37  ;;  %v6934_v54 = vld [vmem:[#allocation29_spill] sm:$0xff] }
 0xd30   :  { %v3414_v56 = vor.u32 1.1754944e-38, %v3413_v16  ;;  %vm3412_vm15 = vcmp.eq.f32.partialorder %v3411_v3, 8.507059e+37 }
 0xd33   :  { %v4227_v31 = vpop.eup %4226 }
 0xd34   :  { %v4229_v47 = vpop.eup %4228  ;;  %v3388_v35 = vmul.f32 %v4227_v31, %v3385_v33  ;;  %vm3393_vm8 = vweird.f32 %v4227_v31  ;;  %v6716_v33 = vld [vmem:[#allocation9 + $0x58] sm:$0xff] }
 0xd35   :  { %v3403_v36 = vmul.f32 %v4229_v47, %v3386_v34  ;;  %vm3394_vm10 = vmor %vm3392_vm9, %vm3393_vm8  ;;  %vm3408_vm12 = vweird.f32 %v4229_v47  ;;  %v6720_v34 = vld [vmem:[#allocation9 + $0x40] sm:$0xff] }
 0xd36   :  { %v3389_v52 = vsub.f32 1.0, %v3388_v35  ;;  %vm3409_vm14 = vmor %vm3407_vm13, %vm3408_vm12 }
 0xd37   :  { %v3404_v57 = vsub.f32 1.0, %v3403_v36 }
 0xd38   :  { %v3390_v10 = vmul.f32 %v4227_v31, %v3389_v52 }
 0xd39   :  { %v3405_v18 = vmul.f32 %v4229_v47, %v3404_v57  ;;  %v2385_v57 = vadd.f32 %v6934_v54, %v6925_v60 }
 0xd3a   :  { %v3391_v50 = vadd.f32 %v4227_v31, %v3390_v10 }
 0xd3b   :  { %v3406_v4 = vadd.f32 %v4229_v47, %v3405_v18 }
 0xd3c   :  { %v3395_v41 = vsel %vm3394_vm10, %v4227_v31, %v3391_v50  ;;  %v6724_v31 = vld [vmem:[#allocation9 + $0x28] sm:$0xff] }
 0xd3d   :  { %v3400_v26 = vsel %vm3397_vm11, %v3399_v48, %v3395_v41  ;;  %v3410_v61 = vsel %vm3409_vm14, %v4229_v47, %v3406_v4  ;;  %v6933_v47 = vld [vmem:[#allocation30_spill] sm:$0xff] }
 0xd3e   :  { %v3418_v53 = vmul.f32 %v3417_v39, %v3400_v26  ;;  %v3415_v46 = vsel %vm3412_vm15, %v3414_v56, %v3410_v61  ;;  %v2332_v35 = vadd.f32 %v6933_v47, %v6927_v1 }
 0xd3f   :  { %v3421_v32 = vsub.f32 1.0, %v3415_v46  ;;  %v3423_v30 = vmul.f32 %v3415_v46, %v6561_v11  ;;  %v6673_v11 = vld [vmem:[#allocation9 + $0x148] sm:$0xff] }
 0xd40   :  { %v3419_v7 = vadd.f32 %v3418_v53, %v2435_v29 }
 0xd42   :  { %4230 = vtanh.f32 %v3419_v7 }
 0xd48   :  { %v4231_v59 = vpop.eup %4230 }
 0xd49   :  { %v3422_v15 = vmul.f32 %v4231_v59, %v3421_v32  ;;  %v6935_v32 = vld [vmem:[#allocation37_spill] sm:$0xff] }
 0xd4a   :  { %v2438_v59 = vadd.f32 %v6935_v32, %v6024_v14 }
 0xd4b   :  { %v6658_v49 = vadd.f32 %v3423_v30, %v3422_v15 }
 0xd4d   :  { %3444 = vmatmul.f32.vlgmr.msrb.gmra.mxu1 %v6658_v49  ;;  %3464 = vmatmul.f32.vlgmr.msrb.gmra.mxu2 %v6658_v49 }
 0xd4e   :  { %3484 = vmatmul.f32.vlgmr.msrb.gmra.mxu3 %v6658_v49  ;;  %3690 = vmatpush.msrb.mxu1 %v6663_v20 }
 0xd4f   :  { %3761 = vmatpush.msrb.mxu2 %v6500_v8  ;;  %3781 = vmatpush.msrb.mxu3 %v6568_v24  ;;  %v6683_v8 = vld [vmem:[#allocation9 + $0x118] sm:$0xff]  ;;  %v6692_v24 = vld [vmem:[#allocation9 + $0xe8] sm:$0xff] }
 0xd50   :  { %3691 = vmatpush.msrb.mxu1 %v6668_v5 }
 0xd51   :  { %3762 = vmatpush.msrb.mxu2 %v6505_v58  ;;  %3782 = vmatpush.msrb.mxu3 %v6573_v19  ;;  %v6688_v58 = vld [vmem:[#allocation9 + $0x100] sm:$0xff] }
 0xd52   :  { %3692 = vmatpush.msrb.mxu1 %v6673_v11  ;;  %v4353_v19 = vld [vmem:[#allocation9 + $0xe0] sm:$0xff] }
 0xd53   :  { %3763 = vmatpush.msrb.mxu2 %v6510_v6  ;;  %3783 = vmatpush.msrb.mxu3 %v6578_v21  ;;  %v4351_v6 = vld [vmem:[#allocation9 + $0xf8] sm:$0xff]  ;;  %v6696_v21 = vld [vmem:[#allocation9 + $0xd0] sm:$0xff] }
 0xd54   :  { %3693 = vmatpush.msrb.mxu1 %v6678_v23 }
 0xd55   :  { %3764 = vmatpush.msrb.mxu2 %v6582_v12  ;;  %3784 = vmatpush.msrb.mxu3 %v6585_v63  ;;  %v4355_v12 = vld [vmem:[#allocation9 + $0xc8] sm:$0xff]  ;;  %v6700_v63 = vld [vmem:[#allocation9 + $0xb8] sm:$0xff] }
 0xd56   :  { %3694 = vmatpush.msrb.mxu1 %v6683_v8 }
 0xd57   :  { %3765 = vmatpush.msrb.mxu2 %v6589_v51  ;;  %3785 = vmatpush.msrb.mxu3 %v6592_v28  ;;  %v4357_v51 = vld [vmem:[#allocation9 + $0xb0] sm:$0xff]  ;;  %v6704_v28 = vld [vmem:[#allocation9 + $0xa0] sm:$0xff] }
 0xd58   :  { %3695 = vmatpush.msrb.mxu1 %v6688_v58 }
 0xd59   :  { %3766 = vmatpush.msrb.mxu2 %v6596_v43  ;;  %3786 = vmatpush.msrb.mxu3 %v4351_v6  ;;  %v4359_v43 = vld [vmem:[#allocation9 + $0x98] sm:$0xff] }
 0xd5a   :  { %3696 = vmatpush.msrb.mxu1 %v6692_v24 }
 0xd5b   :  { %3767 = vmatpush.msrb.mxu2 %v6601_v40  ;;  %3787 = vmatpush.msrb.mxu3 %v4353_v19  ;;  %v6708_v40 = vld [vmem:[#allocation9 + $0x88] sm:$0xff] }
 0xd5c   :  { %3697 = vmatpush.msrb.mxu1 %v6696_v21 }
 0xd5d   :  { %3768 = vmatpush.msrb.mxu2 %v6606_v9  ;;  %3788 = vmatpush.msrb.mxu3 %v4355_v12  ;;  %v4361_v9 = vld [vmem:[#allocation9 + $0x80] sm:$0xff] }
 0xd5e   :  { %3698 = vmatpush.msrb.mxu1 %v6700_v63 }
 0xd5f   :  { %3769 = vmatpush.msrb.mxu2 %v6611_v37  ;;  %3789 = vmatpush.msrb.mxu3 %v4357_v51  ;;  %v4363_v37 = vld [vmem:[#allocation9 + $0x68] sm:$0xff] }
 0xd60   :  { %3699 = vmatpush.msrb.mxu1 %v6704_v28 }
 0xd61   :  { %3770 = vmatpush.msrb.mxu2 %v6616_v42  ;;  %3790 = vmatpush.msrb.mxu3 %v4359_v43  ;;  %v4365_v42 = vld [vmem:[#allocation9 + $0x50] sm:$0xff] }
 0xd62   :  { %3700 = vmatpush.msrb.mxu1 %v6708_v40 }
 0xd63   :  { %3771 = vmatpush.msrb.mxu2 %v6621_v0  ;;  %3791 = vmatpush.msrb.mxu3 %v4361_v9  ;;  %v4367_v0 = vld [vmem:[#allocation9 + $0x38] sm:$0xff] }
 0xd64   :  { %3701 = vmatpush.msrb.mxu1 %v6712_v38 }
 0xd65   :  { %3772 = vmatpush.msrb.mxu2 %v6626_v44  ;;  %3792 = vmatpush.msrb.mxu3 %v4363_v37  ;;  %v4369_v44 = vld [vmem:[#allocation9 + $0x20] sm:$0xff] }
 0xd66   :  { %3702 = vmatpush.msrb.mxu1 %v6716_v33 }
 0xd67   :  { %3773 = vmatpush.msrb.mxu2 %v6631_v27  ;;  %3793 = vmatpush.msrb.mxu3 %v4365_v42  ;;  %v4370_v27 = vld [vmem:[#allocation9 + $0x8] sm:$0xff] }
 0xd68   :  { %3703 = vmatpush.msrb.mxu1 %v6720_v34 }
 0xd69   :  { %3774 = vmatpush.msrb.mxu2 %v6636_v55  ;;  %3794 = vmatpush.msrb.mxu3 %v4367_v0 }
 0xd6a   :  { %3704 = vmatpush.msrb.mxu1 %v6724_v31 }
 0xd6b   :  { %3775 = vmatpush.msrb.mxu2 %v6641_v45  ;;  %3795 = vmatpush.msrb.mxu3 %v4369_v44 }
 0xd6c   :  { %3705 = vmatpush.msrb.mxu1 %v6922_v62 }
 0xd6d   :  { %3776 = vmatpush.msrb.mxu2 %v6646_v13  ;;  %3796 = vmatpush.msrb.mxu3 %v4370_v27 }
 0xdca   :  { %v3445_v55 = vpop.f32.mrf.mxu1 }
 0xdcb   :  { %v3488_v36 = vadd.f32 %v3445_v55, %v2332_v35 }
 0xdcd   :  { %v4008_v52 = vmul.f32 -1.442695, %v3488_v36 }
 0xdcf   :  { %4232 = vpow2.f32 %v4008_v52 }
 0xdd0   :  { %v3465_v10 = vpop.f32.mrf.mxu2 }
 0xdd1   :  { %v3489_v45 = vadd.f32 %v3465_v10, %v2385_v57  ;;  %v3485_v53 = vpop.f32.mrf.mxu3 }
 0xdd2   :  { %v3528_v46 = vadd.f32 %v6488_v25, %v3485_v53 }
 0xdd3   :  { %v4009_v2 = vmul.f32 -1.442695, %v3489_v45 }
 0xdd5   :  { %v4233_v22 = vpop.eup %4232  ;;  %4234 = vpow2.f32 %v4009_v2 }
 0xdd6   :  { %v3496_v18 = vadd.f32 1.0, %v4233_v22 }
 0xdd8   :  { %4236 = vrcp.f32 %v3496_v18  ;;  %v3509_v26 = vand.u32 2147483648, %v3496_v18  ;;  %v3507_v17 = vand.u32 2147483647, %v3496_v18  ;;  %vm3503_vm1 = vweird.f32 %v3496_v18 }
 0xdda   :  { %v3510_v7 = vor.u32 1.1754944e-38, %v3509_v26  ;;  %vm3508_vm3 = vcmp.eq.f32.partialorder %v3507_v17, 8.507059e+37 }
 0xddb   :  { %v4235_v13 = vpop.eup %4234 }
 0xddc   :  { %v3497_v50 = vadd.f32 1.0, %v4235_v13 }
 0xdde   :  { %v4237_v48 = vpop.eup %4236  ;;  %4238 = vrcp.f32 %v3497_v50  ;;  %v3524_v6 = vand.u32 2147483648, %v3497_v50  ;;  %v3522_v12 = vand.u32 2147483647, %v3497_v50  ;;  %vm3518_vm5 = vweird.f32 %v3497_v50 }
 0xddf   :  { %v3499_v39 = vmul.f32 %v4237_v48, %v3496_v18  ;;  %vm3504_vm0 = vweird.f32 %v4237_v48 }
 0xde0   :  { %vm3505_vm2 = vmor %vm3503_vm1, %vm3504_vm0  ;;  %v3525_v9 = vor.u32 1.1754944e-38, %v3524_v6  ;;  %vm3523_vm7 = vcmp.eq.f32.partialorder %v3522_v12, 8.507059e+37 }
 0xde1   :  { %v3500_v41 = vsub.f32 1.0, %v3499_v39 }
 0xde3   :  { %v3501_v4 = vmul.f32 %v4237_v48, %v3500_v41  ;;  %v6938_v41 = vld [vmem:[#allocation40_spill] sm:$0xff] }
 0xde4   :  { %v4239_v29 = vpop.eup %4238  ;;  %v2441_v26 = vadd.f32 %v6938_v41, %v6024_v14  ;;  %v3897_v41 = vld [vmem:[#allocation10 + $0xe0] sm:$0xff] }
 0xde5   :  { %v3514_v16 = vmul.f32 %v4239_v29, %v3497_v50  ;;  %v3502_v3 = vadd.f32 %v4237_v48, %v3501_v4  ;;  %vm3519_vm4 = vweird.f32 %v4239_v29 }
 0xde6   :  { %vm3520_vm6 = vmor %vm3518_vm5, %vm3519_vm4 }
 0xde7   :  { %v3515_v61 = vsub.f32 1.0, %v3514_v16  ;;  %v3506_v56 = vsel %vm3505_vm2, %v4237_v48, %v3502_v3 }
 0xde8   :  { %v3511_v15 = vsel %vm3508_vm3, %v3510_v7, %v3506_v56 }
 0xde9   :  { %v3516_v30 = vmul.f32 %v4239_v29, %v3515_v61  ;;  %v3529_v19 = vmul.f32 %v3528_v46, %v3511_v15  ;;  %v6939_v15 = vld [vmem:[#allocation36_spill] sm:$0xff] }
 0xdeb   :  { %v3517_v51 = vadd.f32 %v4239_v29, %v3516_v30  ;;  %v3530_v43 = vadd.f32 %v3529_v19, %v2438_v59  ;;  %v2391_v30 = vadd.f32 %v6939_v15, %v6925_v60  ;;  %v6942_v15 = vld [vmem:[#allocation38_spill] sm:$0xff] }
 0xded   :  { %v3521_v37 = vsel %vm3520_vm6, %v4239_v29, %v3517_v51  ;;  %4240 = vtanh.f32 %v3530_v43  ;;  %v6940_v51 = vld [vmem:[#allocation35_spill] sm:$0xff] }
 0xdee   :  { %v3526_v42 = vsel %vm3523_vm7, %v3525_v9, %v3521_v37  ;;  %v2338_v43 = vadd.f32 %v6940_v51, %v6927_v1  ;;  %v3884_v51 = vld [vmem:[#allocation10 + $0x78] sm:$0xff] }
 0xdef   :  { %v3532_v0 = vsub.f32 1.0, %v3526_v42  ;;  %v3534_v47 = vmul.f32 %v3526_v42, %v6658_v49  ;;  %v6936_v49 = vld [vmem:[#allocation33_spill] sm:$0xff] }
 0xdf3   :  { %v4241_v44 = vpop.eup %4240 }
 0xdf4   :  { %v3533_v27 = vmul.f32 %v4241_v44, %v3532_v0 }
 0xdf6   :  { %v6738_v35 = vadd.f32 %v3534_v47, %v3533_v27 }
 0xdf8   :  { %3555 = vmatmul.f32.vlgmr.msra.gmra.mxu0 %v6738_v35  ;;  %3575 = vmatmul.f32.vlgmr.msra.gmra.mxu1 %v6738_v35 }
 0xdf9   :  { %3595 = vmatmul.f32.vlgmr.msra.gmra.mxu2 %v6738_v35  ;;  %3801 = vmatpush.msra.mxu0 %v6663_v20  ;;  %v2335_v20 = vadd.f32 %v6936_v49, %v6927_v1 }
 0xdfb   :  { %3802 = vmatpush.msra.mxu0 %v6668_v5  ;;  %v6937_v5 = vld [vmem:[#allocation32_spill] sm:$0xff] }
 0xdfd   :  { %3803 = vmatpush.msra.mxu0 %v6673_v11  ;;  %v2388_v11 = vadd.f32 %v6937_v5, %v6925_v60 }
 0xdff   :  { %3804 = vmatpush.msra.mxu0 %v6678_v23 }
 0xe01   :  { %3805 = vmatpush.msra.mxu0 %v6683_v8 }
 0xe03   :  { %3806 = vmatpush.msra.mxu0 %v6688_v58 }
 0xe05   :  { %3807 = vmatpush.msra.mxu0 %v6692_v24 }
 0xe07   :  { %3808 = vmatpush.msra.mxu0 %v6696_v21 }
 0xe09   :  { %3809 = vmatpush.msra.mxu0 %v6700_v63 }
 0xe0b   :  { %3810 = vmatpush.msra.mxu0 %v6704_v28 }
 0xe0d   :  { %3811 = vmatpush.msra.mxu0 %v6708_v40 }
 0xe0f   :  { %3812 = vmatpush.msra.mxu0 %v6712_v38 }
 0xe11   :  { %3813 = vmatpush.msra.mxu0 %v6716_v33 }
 0xe13   :  { %3814 = vmatpush.msra.mxu0 %v6720_v34 }
 0xe15   :  { %3815 = vmatpush.msra.mxu0 %v6724_v31 }
 0xe17   :  { %3816 = vmatpush.msra.mxu0 %v6922_v62 }
 0xe75   :  { %v3556_v23 = vpop.f32.mrf.mxu0  ;;  %v3576_v8 = vpop.f32.mrf.mxu1 }
 0xe76   :  { %v3599_v58 = vadd.f32 %v3556_v23, %v2335_v20  ;;  %v3600_v24 = vadd.f32 %v3576_v8, %v2388_v11 }
 0xe78   :  { %v4010_v21 = vmul.f32 -1.442695, %v3599_v58  ;;  %v4011_v63 = vmul.f32 -1.442695, %v3600_v24 }
 0xe7a   :  { %4242 = vpow2.f32 %v4010_v21 }
 0xe7b   :  { %4244 = vpow2.f32 %v4011_v63 }
 0xe7c   :  { %v3596_v2 = vpop.f32.mrf.mxu2 }
 0xe7d   :  { %v3639_v50 = vadd.f32 %v6488_v25, %v3596_v2 }
 0xe80   :  { %v4243_v28 = vpop.eup %4242 }
 0xe81   :  { %v4245_v40 = vpop.eup %4244  ;;  %v3607_v38 = vadd.f32 1.0, %v4243_v28 }
 0xe82   :  { %v3608_v33 = vadd.f32 1.0, %v4245_v40 }
 0xe83   :  { %4246 = vrcp.f32 %v3607_v38  ;;  %v3620_v54 = vand.u32 2147483648, %v3607_v38  ;;  %v3618_v10 = vand.u32 2147483647, %v3607_v38  ;;  %vm3614_vm9 = vweird.f32 %v3607_v38 }
 0xe84   :  { %4248 = vrcp.f32 %v3608_v33  ;;  %v3635_v17 = vand.u32 2147483648, %v3608_v33  ;;  %vm3629_vm13 = vweird.f32 %v3608_v33  ;;  %v3633_v29 = vand.u32 2147483647, %v3608_v33 }
 0xe85   :  { %v3621_v18 = vor.u32 1.1754944e-38, %v3620_v54  ;;  %vm3619_vm11 = vcmp.eq.f32.partialorder %v3618_v10, 8.507059e+37 }
 0xe86   :  { %v3636_v3 = vor.u32 1.1754944e-38, %v3635_v17  ;;  %vm3634_vm15 = vcmp.eq.f32.partialorder %v3633_v29, 8.507059e+37  ;;  %v3896_v17 = vld [vmem:[#allocation10 + $0xd8] sm:$0xff]  ;;  %v3893_v29 = vld [vmem:[#allocation10 + $0xc0] sm:$0xff] }
 0xe89   :  { %v4247_v62 = vpop.eup %4246 }
 0xe8a   :  { %v4249_v34 = vpop.eup %4248  ;;  %v3610_v31 = vmul.f32 %v4247_v62, %v3607_v38  ;;  %vm3615_vm8 = vweird.f32 %v4247_v62 }
 0xe8b   :  { %v3625_v55 = vmul.f32 %v4249_v34, %v3608_v33  ;;  %vm3616_vm10 = vmor %vm3614_vm9, %vm3615_vm8  ;;  %vm3630_vm12 = vweird.f32 %v4249_v34 }
 0xe8c   :  { %v3611_v36 = vsub.f32 1.0, %v3610_v31  ;;  %vm3631_vm14 = vmor %vm3629_vm13, %vm3630_vm12  ;;  %v6941_v31 = vld [vmem:[#allocation41_spill] sm:$0xff] }
 0xe8d   :  { %v3626_v52 = vsub.f32 1.0, %v3625_v55  ;;  %v2444_v55 = vadd.f32 %v6941_v31, %v6024_v14 }
 0xe8e   :  { %v3612_v57 = vmul.f32 %v4247_v62, %v3611_v36 }
 0xe8f   :  { %v3627_v45 = vmul.f32 %v4249_v34, %v3626_v52 }
 0xe90   :  { %v3613_v22 = vadd.f32 %v4247_v62, %v3612_v57 }
 0xe91   :  { %v3628_v39 = vadd.f32 %v4249_v34, %v3627_v45 }
 0xe92   :  { %v3617_v13 = vsel %vm3616_vm10, %v4247_v62, %v3613_v22 }
 0xe93   :  { %v3622_v48 = vsel %vm3619_vm11, %v3621_v18, %v3617_v13  ;;  %v3632_v16 = vsel %vm3631_vm14, %v4249_v34, %v3628_v39  ;;  %v3900_v39 = vld [vmem:[#allocation10 + $0xf8] sm:$0xff] }
 0xe94   :  { %v3640_v4 = vmul.f32 %v3639_v50, %v3622_v48  ;;  %v3637_v7 = vsel %vm3634_vm15, %v3636_v3, %v3632_v16  ;;  %v3899_v48 = vld [vmem:[#allocation10 + $0xf0] sm:$0xff]  ;;  %3927 = vmatpush.msra.mxu2 %v3900_v39  ;;  %v3892_v3 = vld [vmem:[#allocation10 + $0xb8] sm:$0xff] }
 0xe95   :  { %v3643_v61 = vsub.f32 1.0, %v3637_v7  ;;  %v3645_v32 = vmul.f32 %v3637_v7, %v6738_v35  ;;  %3907 = vmatpush.msra.mxu1 %v3899_v48  ;;  %v3891_v16 = vld [vmem:[#allocation10 + $0xb0] sm:$0xff]  ;;  %v3889_v7 = vld [vmem:[#allocation10 + $0xa0] sm:$0xff] }
 0xe96   :  { %v3641_v53 = vadd.f32 %v3640_v4, %v2441_v26  ;;  %v3898_v26 = vld [vmem:[#allocation10 + $0xe8] sm:$0xff]  ;;  %v3895_v4 = vld [vmem:[#allocation10 + $0xd0] sm:$0xff] }
 0xe97   :  { %3908 = vmatpush.msra.mxu1 %v3897_v41  ;;  %3928 = vmatpush.msra.mxu2 %v3898_v26  ;;  %v6944_v41 = vld [vmem:[#allocation42_spill] sm:$0xff] }
 0xe98   :  { %4250 = vtanh.f32 %v3641_v53  ;;  %v3894_v53 = vld [vmem:[#allocation10 + $0xc8] sm:$0xff]  ;;  %v2447_v26 = vadd.f32 %v6944_v41, %v6024_v14  ;;  %v3901_v14 = vld [vmem:[%s6805_s10] sm:$0x3] }
 0xe99   :  { %3909 = vmatpush.msra.mxu1 %v3895_v4  ;;  %3929 = vmatpush.msra.mxu2 %v3896_v17 }
 0xe9b   :  { %3910 = vmatpush.msra.mxu1 %v3893_v29  ;;  %3930 = vmatpush.msra.mxu2 %v3894_v53 }
 0xe9d   :  { %3911 = vmatpush.msra.mxu1 %v3891_v16  ;;  %3931 = vmatpush.msra.mxu2 %v3892_v3 }
 0xe9e   :  { %v4251_v56 = vpop.eup %4250 }
 0xe9f   :  { %v3644_v46 = vmul.f32 %v4251_v56, %v3643_v61  ;;  %v3890_v61 = vld [vmem:[#allocation10 + $0xa8] sm:$0xff]  ;;  %3912 = vmatpush.msra.mxu1 %v3889_v7  ;;  %v3887_v56 = vld [vmem:[#allocation10 + $0x90] sm:$0xff] }
 0xea0   :  { %3932 = vmatpush.msra.mxu2 %v3890_v61 }
 0xea1   :  { %v3646_v59 = vadd.f32 %v3645_v32, %v3644_v46  ;;  %v3888_v46 = vld [vmem:[#allocation10 + $0x98] sm:$0xff]  ;;  %3913 = vmatpush.msra.mxu1 %v3887_v56  ;;  %v3885_v32 = vld [vmem:[#allocation10 + $0x80] sm:$0xff] }
 0xea2   :  { %3933 = vmatpush.msra.mxu2 %v3888_v46 }
 0xea3   :  { %3666 = vmatmul.f32.vlgmr.msra.gmra.mxu3 %v3646_v59  ;;  %3686 = vmatmul.f32.vlgmr.msrb.gmra.mxu0 %v3646_v59 }
 0xea4   :  { %3706 = vmatmul.f32.vlgmr.msrb.gmra.mxu1 %v3646_v59 }
 0xea5   :  { %3914 = vmatpush.msra.mxu1 %v3885_v32 }
 0xf20   :  { %v3687_v6 = vpop.f32.mrf.mxu0 }
 0xf21   :  { %v3711_v19 = vadd.f32 %v3687_v6, %v2391_v30  ;;  %v3707_v63 = vpop.f32.mrf.mxu1  ;;  %v2341_v30 = vadd.f32 %v6942_v15, %v6927_v1  ;;  %v6943_v6 = vld [vmem:[#allocation39_spill] sm:$0xff]  ;;  %v3903_v15 = vperm.slane %v3901_v14, 0 }
 0xf22   :  { %v3750_v38 = vadd.f32 %v6488_v25, %v3707_v63  ;;  %v3877_v1 = vld [vmem:[#allocation10 + $0x40] sm:$0xff]  ;;  %v3870_v63 = vld [vmem:[#allocation10 + $0x8] sm:$0xff] }
 0xf23   :  { %v4013_v12 = vmul.f32 -1.442695, %v3711_v19  ;;  %v2394_v19 = vadd.f32 %v6943_v6, %v6925_v60  ;;  %v3875_v60 = vld [vmem:[#allocation10 + $0x30] sm:$0xff] }
 0xf25   :  { %4252 = vpow2.f32 %v4013_v12  ;;  %v3883_v12 = vld [vmem:[#allocation10 + $0x70] sm:$0xff] }
 0xf26   :  { %v3667_v9 = vpop.f32.mrf.mxu3  ;;  %3915 = vmatpush.msra.mxu1 %v3883_v12 }
 0xf27   :  { %v3710_v37 = vadd.f32 %v3667_v9, %v2338_v43  ;;  %v3881_v43 = vld [vmem:[#allocation10 + $0x60] sm:$0xff] }
 0xf28   :  { %3916 = vmatpush.msra.mxu1 %v3881_v43 }
 0xf29   :  { %v4012_v42 = vmul.f32 -1.442695, %v3710_v37 }
 0xf2b   :  { %v4253_v0 = vpop.eup %4252  ;;  %4254 = vpow2.f32 %v4012_v42  ;;  %v3882_v42 = vld [vmem:[#allocation10 + $0x68] sm:$0xff] }
 0xf2c   :  { %v3719_v44 = vadd.f32 1.0, %v4253_v0 }
 0xf2e   :  { %4256 = vrcp.f32 %v3719_v44  ;;  %v3746_v36 = vand.u32 2147483648, %v3719_v44  ;;  %vm3740_vm5 = vweird.f32 %v3719_v44  ;;  %v3744_v54 = vand.u32 2147483647, %v3719_v44 }
 0xf30   :  { %v3747_v45 = vor.u32 1.1754944e-38, %v3746_v36  ;;  %vm3745_vm7 = vcmp.eq.f32.partialorder %v3744_v54, 8.507059e+37 }
 0xf31   :  { %v4255_v27 = vpop.eup %4254 }
 0xf32   :  { %v3718_v47 = vadd.f32 1.0, %v4255_v27  ;;  %v3879_v27 = vld [vmem:[#allocation10 + $0x50] sm:$0xff] }
 0xf33   :  { %3917 = vmatpush.msra.mxu1 %v3879_v27 }
 0xf34   :  { %4258 = vrcp.f32 %v3718_v47  ;;  %v4257_v35 = vpop.eup %4256  ;;  %v3731_v8 = vand.u32 2147483648, %v3718_v47  ;;  %v3729_v24 = vand.u32 2147483647, %v3718_v47  ;;  %vm3725_vm1 = vweird.f32 %v3718_v47 }
 0xf35   :  { %v3736_v49 = vmul.f32 %v4257_v35, %v3719_v44  ;;  %vm3741_vm4 = vweird.f32 %v4257_v35  ;;  %3918 = vmatpush.msra.mxu1 %v3877_v1 }
 0xf36   :  { %v3732_v40 = vor.u32 1.1754944e-38, %v3731_v8  ;;  %vm3730_vm3 = vcmp.eq.f32.partialorder %v3729_v24, 8.507059e+37  ;;  %vm3742_vm6 = vmor %vm3740_vm5, %vm3741_vm4  ;;  %v3871_v8 = vld [vmem:[#allocation10 + $0x10] sm:$0xff] }
 0xf37   :  { %v3737_v11 = vsub.f32 1.0, %v3736_v49  ;;  %3919 = vmatpush.msra.mxu1 %v3875_v60 }
 0xf39   :  { %v3738_v21 = vmul.f32 %v4257_v35, %v3737_v11  ;;  %v3873_v11 = vld [vmem:[#allocation10 + $0x20] sm:$0xff] }
 0xf3a   :  { %v4259_v20 = vpop.eup %4258  ;;  %3920 = vmatpush.msra.mxu1 %v3873_v11 }
 0xf3b   :  { %v3721_v5 = vmul.f32 %v4259_v20, %v3718_v47  ;;  %vm3726_vm0 = vweird.f32 %v4259_v20  ;;  %v3739_v62 = vadd.f32 %v4257_v35, %v3738_v21  ;;  %v3880_v47 = vld [vmem:[#allocation10 + $0x58] sm:$0xff]  ;;  %v3869_v21 = vld [vmem:[#allocation10] sm:$0xff] }
 0xf3c   :  { %vm3727_vm2 = vmor %vm3725_vm1, %vm3726_vm0  ;;  %3921 = vmatpush.msra.mxu1 %v3871_v8 }
 0xf3d   :  { %v3722_v23 = vsub.f32 1.0, %v3721_v5  ;;  %v3743_v10 = vsel %vm3742_vm6, %v4257_v35, %v3739_v62  ;;  %v3876_v5 = vld [vmem:[#allocation10 + $0x38] sm:$0xff] }
 0xf3e   :  { %v3748_v2 = vsel %vm3745_vm7, %v3747_v45, %v3743_v10  ;;  %3922 = vmatpush.msra.mxu1 %v3869_v21 }
 0xf3f   :  { %v3723_v58 = vmul.f32 %v4259_v20, %v3722_v23  ;;  %v3754_v25 = vsub.f32 1.0, %v3748_v2  ;;  %v3756_v13 = vmul.f32 %v3748_v2, %v3646_v59  ;;  %v3886_v59 = vld [vmem:[#allocation10 + $0x88] sm:$0xff] }
 0xf40   :  { %3934 = vmatpush.msra.mxu2 %v3886_v59  ;;  %v3874_v23 = vld [vmem:[#allocation10 + $0x28] sm:$0xff] }
 0xf41   :  { %v3724_v28 = vadd.f32 %v4259_v20, %v3723_v58  ;;  %v3872_v58 = vld [vmem:[#allocation10 + $0x18] sm:$0xff] }
 0xf42   :  { %3935 = vmatpush.msra.mxu2 %v3884_v51 }
 0xf43   :  { %v3728_v33 = vsel %vm3727_vm2, %v4259_v20, %v3724_v28  ;;  %v3878_v20 = vld [vmem:[#allocation10 + $0x48] sm:$0xff] }
 0xf44   :  { %v3733_v34 = vsel %vm3730_vm3, %v3732_v40, %v3728_v33  ;;  %3936 = vmatpush.msra.mxu2 %v3882_v42 }
 0xf45   :  { %v3751_v52 = vmul.f32 %v3750_v38, %v3733_v34 }
 0xf46   :  { %3937 = vmatpush.msra.mxu2 %v3880_v47 }
 0xf47   :  { %v3752_v57 = vadd.f32 %v3751_v52, %v2444_v55 }
 0xf48   :  { %3938 = vmatpush.msra.mxu2 %v3878_v20 }
 0xf49   :  { %4260 = vtanh.f32 %v3752_v57 }
 0xf4a   :  { %3939 = vmatpush.msra.mxu2 %v3876_v5 }
 0xf4c   :  { %3940 = vmatpush.msra.mxu2 %v3874_v23 }
 0xf4e   :  { %3941 = vmatpush.msra.mxu2 %v3872_v58 }
 0xf4f   :  { %v4261_v22 = vpop.eup %4260 }
 0xf50   :  { %v3755_v18 = vmul.f32 %v4261_v22, %v3754_v25  ;;  %3942 = vmatpush.msra.mxu2 %v3870_v63  ;;  %v4371_v22 = vld [vmem:[%s6803_s8] ss:$0 sm:$0xff] }
 0xf52   :  { %v6774_v50 = vadd.f32 %v3756_v13, %v3755_v18 }
 0xf54   :  { %3777 = vmatmul.f32.vlgmr.msrb.gmra.mxu2 %v6774_v50  ;;  %3797 = vmatmul.f32.vlgmr.msrb.gmra.mxu3 %v6774_v50 }
 0xf55   :  { %3817 = vmatmul.f32.vlgmr.msra.gmra.mxu0 %v6774_v50 }
 0xfd2   :  { %v3818_v10 = vpop.f32.mrf.mxu0 }
 0xfd3   :  { %v3861_v18 = vadd.f32 %v4371_v22, %v3818_v10 }
 0xfd7   :  { %v3778_v9 = vpop.f32.mrf.mxu2  ;;  %v3798_v37 = vpop.f32.mrf.mxu3 }
 0xfd8   :  { %v3821_v0 = vadd.f32 %v3778_v9, %v2341_v30  ;;  %v3822_v44 = vadd.f32 %v3798_v37, %v2394_v19  ;;  %v3904_v19 = vperm.slane %v3901_v14, 1 }
 0xfda   :  { %v4014_v35 = vmul.f32 -1.442695, %v3821_v0  ;;  %v4015_v49 = vmul.f32 -1.442695, %v3822_v44 }
 0xfdc   :  { %4262 = vpow2.f32 %v4014_v35 }
 0xfdd   :  { %4264 = vpow2.f32 %v4015_v49 }
 0xfe2   :  { %v4263_v24 = vpop.eup %4262 }
 0xfe3   :  { %v4265_v28 = vpop.eup %4264  ;;  %v3829_v40 = vadd.f32 1.0, %v4263_v24 }
 0xfe4   :  { %v3830_v38 = vadd.f32 1.0, %v4265_v28 }
 0xfe5   :  { %4266 = vrcp.f32 %v3829_v40  ;;  %v3842_v36 = vand.u32 2147483648, %v3829_v40  ;;  %v3840_v57 = vand.u32 2147483647, %v3829_v40  ;;  %vm3836_vm9 = vweird.f32 %v3829_v40 }
 0xfe6   :  { %4268 = vrcp.f32 %v3830_v38  ;;  %v3857_v17 = vand.u32 2147483648, %v3830_v38  ;;  %vm3851_vm13 = vweird.f32 %v3830_v38  ;;  %v3855_v29 = vand.u32 2147483647, %v3830_v38 }
 0xfe7   :  { %v3843_v25 = vor.u32 1.1754944e-38, %v3842_v36  ;;  %vm3841_vm11 = vcmp.eq.f32.partialorder %v3840_v57, 8.507059e+37 }
 0xfe8   :  { %v3858_v3 = vor.u32 1.1754944e-38, %v3857_v17  ;;  %vm3856_vm15 = vcmp.eq.f32.partialorder %v3855_v29, 8.507059e+37 }
 0xfeb   :  { %v4267_v33 = vpop.eup %4266 }
 0xfec   :  { %v4269_v62 = vpop.eup %4268  ;;  %v3832_v34 = vmul.f32 %v4267_v33, %v3829_v40  ;;  %vm3837_vm8 = vweird.f32 %v4267_v33 }
 0xfed   :  { %v3847_v31 = vmul.f32 %v4269_v62, %v3830_v38  ;;  %vm3838_vm10 = vmor %vm3836_vm9, %vm3837_vm8  ;;  %vm3852_vm12 = vweird.f32 %v4269_v62 }
 0xfee   :  { %v3833_v55 = vsub.f32 1.0, %v3832_v34  ;;  %vm3853_vm14 = vmor %vm3851_vm13, %vm3852_vm12 }
 0xfef   :  { %v3848_v52 = vsub.f32 1.0, %v3847_v31 }
 0xff0   :  { %v3834_v54 = vmul.f32 %v4267_v33, %v3833_v55 }
 0xff1   :  { %v3849_v45 = vmul.f32 %v4269_v62, %v3848_v52 }
 0xff2   :  { %v3835_v2 = vadd.f32 %v4267_v33, %v3834_v54 }
 0xff3   :  { %v3850_v39 = vadd.f32 %v4269_v62, %v3849_v45 }
 0xff4   :  { %v3839_v13 = vsel %vm3838_vm10, %v4267_v33, %v3835_v2 }
 0xff5   :  { %v3844_v48 = vsel %vm3841_vm11, %v3843_v25, %v3839_v13  ;;  %v3854_v16 = vsel %vm3853_vm14, %v4269_v62, %v3850_v39 }
 0xff6   :  { %v3862_v4 = vmul.f32 %v3861_v18, %v3844_v48  ;;  %v3859_v7 = vsel %vm3856_vm15, %v3858_v3, %v3854_v16 }
 0xff7   :  { %v3865_v61 = vsub.f32 1.0, %v3859_v7  ;;  %v3867_v32 = vmul.f32 %v3859_v7, %v6774_v50 }
 0xff8   :  { %v3863_v53 = vadd.f32 %v3862_v4, %v2447_v26 }
 0xffa   :  { %4270 = vtanh.f32 %v3863_v53 }
0x1000   :  { %v4271_v56 = vpop.eup %4270 }
0x1001   :  { %v3866_v46 = vmul.f32 %v4271_v56, %v3865_v61 }
0x1003   :  { %v3868_v59 = vadd.f32 %v3867_v32, %v3866_v46 }
0x1005   :  { %3923 = vmatmul.f32.vlgmr.msra.gmra.mxu1 %v3868_v59  ;;  %3943 = vmatmul.f32.vlgmr.msra.gmra.mxu2 %v3868_v59 }
0x1082   :  { %v3924_v30 = vpop.f32.mrf.mxu1 }
0x1083   :  { %v3925_v6 = vadd.f32 %v3924_v30, %v3903_v15 }
0x1085   :  { %3947 = vst [vmem:[#allocation12] sm:$0xff] %v3925_v6 }
0x1088   :  { %v3944_v12 = vpop.f32.mrf.mxu2 }
0x1089   :  { %v3945_v50 = vadd.f32 %v3944_v12, %v3904_v19 }
0x108b   :  { %3948 = vst [vmem:[#allocation12 + $0x8] sm:$0xff] %v3945_v50 }
0x108c   :  { %3959 = dma.vmem_to_hbm [thread:$0]  %s3955_s14, 256, %s3957_s2, [#allocation6]  }
0x108d   :  { %4498 = dma.done.wait [#allocation6], 256  }
0x108e   :  { %4499 = vsyncadd [#allocation6], 4294967040 }
0x108f   :  { %3964 = vsyncpa [#allocation5], 1 }
0x1090   :  { %3965 = vsyncpa [#allocation8], 1 }
0x1091   :  { %3966 = vsyncpa [#allocation11], 1 }
0x1092   :  { %3967 = vsyncpa [#allocation6], 1 }

</bundles_post_ra>
